<compile_context>
chip_gen: v6e
topology: v6e:2x2x1
jax: 0.10.0
libtpu: 0.0.40
codegen_flags: <defaults>
</compile_context>

<pallas_src>
import functools

import jax
import jax.numpy as jnp
import numpy as np
from jax.experimental import pallas as pl
from jax.experimental.pallas import tpu as pltpu


# ----------------------------- in-kernel helpers -----------------------------
def _sigmoid(x):
    # exp on EUP + approx reciprocal on EUP (keeps the divide off the VALU slot)
    return pl.reciprocal(1.0 + jnp.exp(-x), approx=True)


def _im2col_conv3x3(xpad_scr, src_hwc, w_ref, scale_ref, bias_ref, *, H, W, relu):
    """SAME 3x3 conv + folded BN (+ optional ReLU) as ONE im2col MXU matmul.

    src_hwc : (H, W, Cin)  f32 value
    xpad_scr: (H+2, W+2, Cin) f32 VMEM scratch (halo stays zero)
    w_ref   : (9*Cin, Cout) bf16 ref, layout (dy, dx, cin) -> row
    returns (H*W, Cout) f32
    """
    Cin = src_hwc.shape[-1]
    # SAME padding inside the kernel (no wrapper-side pad / HBM round trip)
    xpad_scr[...] = jnp.zeros_like(xpad_scr)
    xpad_scr[1:H + 1, 1:W + 1, :] = src_hwc
    xp = xpad_scr[...]
    # (H*W, 9*Cin) patch matrix -> single deep-contraction matmul (bf16 in, f32 acc)
    patches = jnp.concatenate(
        [xp[dy:dy + H, dx:dx + W, :].reshape(H * W, Cin)
         for dy in range(3) for dx in range(3)],
        axis=-1).astype(jnp.bfloat16)
    y = jnp.dot(patches, w_ref[...], preferred_element_type=jnp.float32)
    y = y * scale_ref[...] + bias_ref[...]          # folded BatchNorm (f32)
    if relu:
        y = jnp.maximum(y, 0.0)
    return y


# ------------------------------- stem conv -----------------------------------
def _stem_kernel(x_ref, w_ref, scale_ref, bias_ref, out_ref, xpad, *, H, W):
    Cout = w_ref.shape[-1]
    y = _im2col_conv3x3(xpad, x_ref[0], w_ref, scale_ref, bias_ref,
                        H=H, W=W, relu=True)
    out_ref[0] = y.reshape(H, W, Cout)


def stem_conv(x, w_flat, scale, bias):
    N, H, W, Cin = x.shape
    Cout = w_flat.shape[-1]
    kern = functools.partial(_stem_kernel, H=H, W=W)
    return pl.pallas_call(
        kern,
        out_shape=jax.ShapeDtypeStruct((N, H, W, Cout), jnp.float32),
        grid_spec=pltpu.PrefetchScalarGridSpec(
            num_scalar_prefetch=0,
            grid=(N,),
            in_specs=[
                pl.BlockSpec((1, H, W, Cin), lambda n: (n, 0, 0, 0)),
                pl.BlockSpec((9 * Cin, Cout), lambda n: (0, 0)),
                pl.BlockSpec((1, Cout), lambda n: (0, 0)),
                pl.BlockSpec((1, Cout), lambda n: (0, 0)),
            ],
            out_specs=pl.BlockSpec((1, H, W, Cout), lambda n: (n, 0, 0, 0)),
            scratch_shapes=[pltpu.VMEM((H + 2, W + 2, Cin), jnp.float32)],
        ),
        compiler_params=pltpu.CompilerParams(
            dimension_semantics=("parallel",)),
    )(x, w_flat, scale, bias)


# -------------------------- fused residual block ------------------------------
def _resblock_kernel(x_ref, wl_ref, sl_ref, bl_ref, wu_ref, su_ref, bu_ref,
                     caw1_ref, caw2_ref, sab_ref, out_ref, xpad, sapad,
                     *, H, W, K):
    C = x_ref.shape[-1]
    P = K // 2
    PW = W + K - 1

    x0 = x_ref[0]                                       # (H, W, C) residual input

    # conv_lower: 3x3 + BN + ReLU ;  conv_upper: 3x3 + BN      (both stay in VMEM)
    p = _im2col_conv3x3(xpad, x0, wl_ref, sl_ref, bl_ref, H=H, W=W, relu=True)
    p = _im2col_conv3x3(xpad, p.reshape(H, W, C), wu_ref, su_ref, bu_ref,
                        H=H, W=W, relu=False)           # (H*W, C)

    # ---- CBAM channel attention: global avg/max pool + shared 2-layer MLP ----
    avg_c = jnp.mean(p, axis=0, keepdims=True)          # (1, C)
    max_c = jnp.max(p, axis=0, keepdims=True)           # (1, C)
    s = jnp.concatenate([avg_c, max_c], axis=0)         # (2, C)
    h = jnp.maximum(
        jnp.dot(s, caw1_ref[...], preferred_element_type=jnp.float32), 0.0)
    o = jnp.dot(h, caw2_ref[...], preferred_element_type=jnp.float32)
    ca = _sigmoid(o[0:1, :] + o[1:2, :])                # (1, C) gate

    pm = (p * ca).reshape(H, W, C)                      # CA-gated path

    # ---- CBAM spatial attention: 7x7 conv over [chan-mean, chan-max] ---------
    # expressed as K banded MXU matmuls along W (weights prebuilt in wrapper).
    avg_s = jnp.mean(pm, axis=-1)                       # (H, W)
    max_s = jnp.max(pm, axis=-1)                        # (H, W)
    sapad[...] = jnp.zeros_like(sapad)
    sapad[P:P + H, P:P + W] = avg_s
    sapad[P:P + H, PW + P:PW + P + W] = max_s
    sp = sapad[...]                                     # (H+K-1, 2*(W+K-1))
    acc = jnp.zeros((H, W), jnp.float32)
    for dy in range(K):
        acc = acc + jnp.dot(sp[dy:dy + H, :], sab_ref[dy],
                            preferred_element_type=jnp.float32)
    gate = _sigmoid(acc)                                # (H, W)

    # gate * path + residual, ReLU
    out_ref[0] = jnp.maximum(pm * gate[:, :, None] + x0, 0.0)


def res_block(x, wl, sl, bl, wu, su, bu, caw1, caw2, sa_band):
    N, H, W, C = x.shape
    K = sa_band.shape[0]
    PW2 = sa_band.shape[1]                              # 2*(W+K-1)
    Cr = caw1.shape[1]
    kern = functools.partial(_resblock_kernel, H=H, W=W, K=K)
    return pl.pallas_call(
        kern,
        out_shape=jax.ShapeDtypeStruct((N, H, W, C), jnp.float32),
        grid_spec=pltpu.PrefetchScalarGridSpec(
            num_scalar_prefetch=0,
            grid=(N,),
            in_specs=[
                pl.BlockSpec((1, H, W, C), lambda n: (n, 0, 0, 0)),
                pl.BlockSpec((9 * C, C), lambda n: (0, 0)),
                pl.BlockSpec((1, C), lambda n: (0, 0)),
                pl.BlockSpec((1, C), lambda n: (0, 0)),
                pl.BlockSpec((9 * C, C), lambda n: (0, 0)),
                pl.BlockSpec((1, C), lambda n: (0, 0)),
                pl.BlockSpec((1, C), lambda n: (0, 0)),
                pl.BlockSpec((C, Cr), lambda n: (0, 0)),
                pl.BlockSpec((Cr, C), lambda n: (0, 0)),
                pl.BlockSpec((K, PW2, W), lambda n: (0, 0, 0)),
            ],
            out_specs=pl.BlockSpec((1, H, W, C), lambda n: (n, 0, 0, 0)),
            scratch_shapes=[
                pltpu.VMEM((H + 2, W + 2, C), jnp.float32),
                pltpu.VMEM((H + K - 1, 2 * (W + K - 1)), jnp.float32),
            ],
        ),
        compiler_params=pltpu.CompilerParams(
            dimension_semantics=("parallel",)),
    )(x, wl, sl, bl, wu, su, bu, caw1, caw2, sa_band)


# ------- classifier: 1x1 conv + BN + ReLU + global avg pool + Linear ----------
def _classifier_kernel(x_ref, w1_ref, scale_ref, bias_ref, wl_ref, bl_ref,
                       out_ref, *, N, H, W):
    C = x_ref.shape[-1]
    HW = H * W
    xm = x_ref[...].reshape(N * HW, C).astype(jnp.bfloat16)   # fold batch into M
    h = jnp.dot(xm, w1_ref[...], preferred_element_type=jnp.float32)
    h = jnp.maximum(h * scale_ref[...] + bias_ref[...], 0.0)  # (N*HW, 128)
    pooled = jnp.concatenate(
        [jnp.mean(h[i * HW:(i + 1) * HW, :], axis=0, keepdims=True)
         for i in range(N)], axis=0)                          # (N, 128)
    out_ref[...] = (jnp.dot(pooled, wl_ref[...],
                            preferred_element_type=jnp.float32) + bl_ref[...])


def classifier(x, w1, scale, bias, wl, bl):
    N, H, W, C = x.shape
    hid = w1.shape[1]
    nc = wl.shape[1]
    kern = functools.partial(_classifier_kernel, N=N, H=H, W=W)
    return pl.pallas_call(
        kern,
        out_shape=jax.ShapeDtypeStruct((N, nc), jnp.float32),
        grid_spec=pltpu.PrefetchScalarGridSpec(
            num_scalar_prefetch=0,
            grid=(1,),
            in_specs=[
                pl.BlockSpec((N, H, W, C), lambda i: (0, 0, 0, 0)),
                pl.BlockSpec((C, hid), lambda i: (0, 0)),
                pl.BlockSpec((1, hid), lambda i: (0, 0)),
                pl.BlockSpec((1, hid), lambda i: (0, 0)),
                pl.BlockSpec((hid, nc), lambda i: (0, 0)),
                pl.BlockSpec((1, nc), lambda i: (0, 0)),
            ],
            out_specs=pl.BlockSpec((N, nc), lambda i: (0, 0)),
        ),
        compiler_params=pltpu.CompilerParams(
            dimension_semantics=("arbitrary",)),
    )(x, w1, scale, bias, wl, bl)


# ------------------------ wrapper-side weight prep ----------------------------
def build_sa_band(sa_w, W):
    """(K,K,2) spatial-attn weights -> (K, 2*(W+K-1), W) banded matrices so the
    7x7 conv over [avg|max] becomes K MXU matmuls along the W axis."""
    K = sa_w.shape[0]
    PW = W + K - 1
    j = jnp.arange(PW)[:, None]              # padded-column index
    wcol = jnp.arange(W)[None, :]            # output-column index
    dx = j - wcol
    valid = (dx >= 0) & (dx < K)
    dxc = jnp.clip(dx, 0, K - 1)
    avg_b = jnp.where(valid[None, :, :], sa_w[:, :, 0][:, dxc], 0.0)   # (K, PW, W)
    max_b = jnp.where(valid[None, :, :], sa_w[:, :, 1][:, dxc], 0.0)
    return jnp.concatenate([avg_b, max_b], axis=1)                      # (K, 2PW, W)


def _flatten_conv_w(w):
    """HWIO (3,3,Cin,Cout) f32 -> (9*Cin, Cout) bf16, row order (dy, dx, cin)."""
    kh, kw, cin, cout = w.shape
    return w.reshape(kh * kw * cin, cout).astype(jnp.bfloat16)


# --------------------------- parameters & forward ----------------------------
def init_params(key, in_channel, filters, blocks, num_classes, ratio=16):
    eps = 1e-5

    def bn(c):
        # PyTorch eval-mode defaults: gamma=1, beta=0, running_mean=0, var=1
        scale = jnp.ones((1, c), jnp.float32) / jnp.sqrt(1.0 + eps)
        bias = jnp.zeros((1, c), jnp.float32)
        return scale, bias

    def conv_w(k, kh, kw, cin, cout):
        return jax.random.normal(k, (kh, kw, cin, cout), jnp.float32) * (
            1.0 / (kh * kw * cin) ** 0.5)

    params = {}
    key, k = jax.random.split(key)
    params["conv0_w"] = conv_w(k, 3, 3, in_channel, filters)
    params["conv0_scale"], params["conv0_bias"] = bn(filters)

    cr = max(filters // ratio, 1)
    res = []
    for _ in range(blocks):
        key, k1, k2, k3, k4, k5 = jax.random.split(key, 6)
        blk = {
            "w_lower": conv_w(k1, 3, 3, filters, filters),
            "w_upper": conv_w(k2, 3, 3, filters, filters),
            "ca_w1": jax.random.normal(k3, (filters, cr), jnp.float32)
            * (1.0 / filters ** 0.5),
            "ca_w2": jax.random.normal(k4, (cr, filters), jnp.float32)
            * (1.0 / cr ** 0.5),
            "sa_w": jax.random.normal(k5, (7, 7, 2), jnp.float32)
            * (1.0 / 98.0 ** 0.5),
        }
        blk["s_lower"], blk["b_lower"] = bn(filters)
        blk["s_upper"], blk["b_upper"] = bn(filters)
        res.append(blk)
    params["res_blocks"] = res

    key, k1, k2, k3 = jax.random.split(key, 4)
    params["cls_w1"] = jax.random.normal(k1, (filters, 128), jnp.float32) * (
        1.0 / filters ** 0.5)
    params["cls_scale"], params["cls_bias"] = bn(128)
    params["lin_w"] = jax.random.normal(k2, (128, num_classes), jnp.float32) * (
        1.0 / 128.0 ** 0.5)
    params["lin_b"] = jax.random.normal(k3, (1, num_classes), jnp.float32) * 0.01
    return params


@jax.jit
def network_forward(params, x_nchw):
    x = jnp.transpose(x_nchw, (0, 2, 3, 1))          # NCHW -> NHWC (one-time glue)
    Wsp = x.shape[2]

    x = stem_conv(x, _flatten_conv_w(params["conv0_w"]),
                  params["conv0_scale"], params["conv0_bias"])
    for blk in params["res_blocks"]:
        x = res_block(x,
                      _flatten_conv_w(blk["w_lower"]), blk["s_lower"], blk["b_lower"],
                      _flatten_conv_w(blk["w_upper"]), blk["s_upper"], blk["b_upper"],
                      blk["ca_w1"], blk["ca_w2"],
                      build_sa_band(blk["sa_w"], Wsp))
    return classifier(x, params["cls_w1"].astype(jnp.bfloat16),
                      params["cls_scale"], params["cls_bias"],
                      params["lin_w"], params["lin_b"])


# --------------------------- pure-JAX reference ------------------------------
def _sigmoid_ref(x):
    return 1.0 / (1.0 + jnp.exp(-x))


def _conv_ref(x, w, use_bf16=True):
    if use_bf16:   # mirror the kernels: bf16 MXU operands, f32 accumulate
        x = x.astype(jnp.bfloat16)
        w = w.astype(jnp.bfloat16)
    return jax.lax.conv_general_dilated(
        x, w, window_strides=(1, 1), padding="SAME",
        dimension_numbers=("NHWC", "HWIO", "NHWC"),
        preferred_element_type=jnp.float32)


def network_ref(params, x_nchw):
    def bn_act(y, s, b, relu):
        y = y * s + b
        return jnp.maximum(y, 0.0) if relu else y

    x = jnp.transpose(x_nchw, (0, 2, 3, 1))
    x = bn_act(_conv_ref(x, params["conv0_w"]), params["conv0_scale"],
               params["conv0_bias"], True)
    for blk in params["res_blocks"]:
        p = bn_act(_conv_ref(x, blk["w_lower"]), blk["s_lower"],
                   blk["b_lower"], True)
        p = bn_act(_conv_ref(p, blk["w_upper"]), blk["s_upper"],
                   blk["b_upper"], False)
        avg = jnp.mean(p, axis=(1, 2))
        mx = jnp.max(p, axis=(1, 2))

        def fc(v):
            return jnp.maximum(v @ blk["ca_w1"], 0.0) @ blk["ca_w2"]

        ca = _sigmoid_ref(fc(avg) + fc(mx))                       # (N, C)
        p = p * ca[:, None, None, :]
        sa_in = jnp.stack([jnp.mean(p, axis=-1), jnp.max(p, axis=-1)], axis=-1)
        sa = _sigmoid_ref(_conv_ref(sa_in, blk["sa_w"].reshape(7, 7, 2, 1),
                                    use_bf16=False))
        x = jnp.maximum(p * sa + x, 0.0)
    h = jnp.einsum("nhwc,cd->nhwd", x.astype(jnp.bfloat16),
                   params["cls_w1"].astype(jnp.bfloat16),
                   preferred_element_type=jnp.float32)
    h = jnp.maximum(h * params["cls_scale"] + params["cls_bias"], 0.0)
    pooled = jnp.mean(h, axis=(1, 2))
    return pooled @ params["lin_w"] + params["lin_b"]


if __name__ == "__main__":
    in_channel, filters, blocks, num_classes = 4, 32, 2, 10
    N, H, W = 2, 16, 16

    key = jax.random.PRNGKey(0)
    pkey, xkey = jax.random.split(key)
    params = init_params(pkey, in_channel, filters, blocks, num_classes)
    x = jax.random.normal(xkey, (N, in_channel, H, W), jnp.float32)  # NCHW input

    logits = jax.block_until_ready(network_forward(params, x))
    ref = jax.block_until_ready(network_ref(params, x))

    assert logits.shape == (N, num_classes)
    # tolerance accounts for deliberate bf16 MXU operands + EUP approx reciprocal
    np.testing.assert_allclose(np.asarray(logits), np.asarray(ref),
                               rtol=1e-2, atol=1e-2)
    print("KERNEL_OK")
</pallas_src>

<mosaic_0001>
module attributes {stable_mosaic.version = 11 : i64} {
  func.func @_stem_kernel(%arg0: i32, %arg1: memref<1x16x16x4xf32, #tpu.memory_space<vmem>>, %arg2: memref<36x32xbf16, #tpu.memory_space<vmem>>, %arg3: memref<1x32xf32, #tpu.memory_space<vmem>>, %arg4: memref<1x32xf32, #tpu.memory_space<vmem>>, %arg5: memref<1x16x16x32xf32, #tpu.memory_space<vmem>>, %arg6: memref<18x18x4xf32, #tpu.memory_space<vmem>>) attributes {dimension_semantics = [#tpu.dimension_semantics<parallel>], iteration_bounds = array<i64: 2>, scalar_prefetch = 0 : i64, scratch_operands = 1 : i64, tpu.core_type = #tpu.core_type<tc>, window_params = [{transform_indices = @transform_0, window_bounds = array<i64: 1, 16, 16, 4>}, {pipeline_mode = #tpu.pipeline_mode<synchronous>, transform_indices = @transform_1, window_bounds = array<i64: 36, 32>}, {pipeline_mode = #tpu.pipeline_mode<synchronous>, transform_indices = @transform_2, window_bounds = array<i64: 1, 32>}, {pipeline_mode = #tpu.pipeline_mode<synchronous>, transform_indices = @transform_3, window_bounds = array<i64: 1, 32>}, {transform_indices = @transform_4, window_bounds = array<i64: 1, 16, 16, 32>}]} {
    %c0 = arith.constant 0 : index
    %c0_0 = arith.constant 0 : index
    %c0_1 = arith.constant 0 : index
    %c0_2 = arith.constant 0 : index
    %0 = vector.load %arg1[%c0, %c0_0, %c0_1, %c0_2] : memref<1x16x16x4xf32, #tpu.memory_space<vmem>>, vector<1x16x16x4xf32>
    %1 = vector.shape_cast %0 : vector<1x16x16x4xf32> to vector<16x16x4xf32>
    %cst = arith.constant 0.000000e+00 : f32
    %2 = vector.broadcast %cst : f32 to vector<18x18x4xf32>
    %c0_3 = arith.constant 0 : index
    %c0_4 = arith.constant 0 : index
    %c0_5 = arith.constant 0 : index
    %3 = vector.load %arg6[%c0_3, %c0_4, %c0_5] : memref<18x18x4xf32, #tpu.memory_space<vmem>>, vector<18x18x4xf32>
    tpu.vector_store %arg6[%c0_3, %c0_4, %c0_5], %2 {strides = array<i32>} : memref<18x18x4xf32, #tpu.memory_space<vmem>>, vector<18x18x4xf32>,
    %c1 = arith.constant 1 : index
    %c1_6 = arith.constant 1 : index
    %c0_7 = arith.constant 0 : index
    %4 = vector.load %arg6[%c1, %c1_6, %c0_7] : memref<18x18x4xf32, #tpu.memory_space<vmem>>, vector<16x16x4xf32>
    tpu.vector_store %arg6[%c1, %c1_6, %c0_7], %1 {strides = array<i32>} : memref<18x18x4xf32, #tpu.memory_space<vmem>>, vector<16x16x4xf32>,
    %c0_8 = arith.constant 0 : index
    %c0_9 = arith.constant 0 : index
    %c0_10 = arith.constant 0 : index
    %5 = vector.load %arg6[%c0_8, %c0_9, %c0_10] : memref<18x18x4xf32, #tpu.memory_space<vmem>>, vector<18x18x4xf32>
    %6 = vector.extract_strided_slice %5 {offsets = [0, 0, 0], sizes = [16, 16, 4], strides = [1, 1, 1]} : vector<18x18x4xf32> to vector<16x16x4xf32>
    %7 = vector.shape_cast %6 : vector<16x16x4xf32> to vector<256x4xf32>
    %8 = vector.extract_strided_slice %5 {offsets = [0, 1, 0], sizes = [16, 16, 4], strides = [1, 1, 1]} : vector<18x18x4xf32> to vector<16x16x4xf32>
    %9 = vector.shape_cast %8 : vector<16x16x4xf32> to vector<256x4xf32>
    %10 = vector.extract_strided_slice %5 {offsets = [0, 2, 0], sizes = [16, 16, 4], strides = [1, 1, 1]} : vector<18x18x4xf32> to vector<16x16x4xf32>
    %11 = vector.shape_cast %10 : vector<16x16x4xf32> to vector<256x4xf32>
    %12 = vector.extract_strided_slice %5 {offsets = [1, 0, 0], sizes = [16, 16, 4], strides = [1, 1, 1]} : vector<18x18x4xf32> to vector<16x16x4xf32>
    %13 = vector.shape_cast %12 : vector<16x16x4xf32> to vector<256x4xf32>
    %14 = vector.extract_strided_slice %5 {offsets = [1, 1, 0], sizes = [16, 16, 4], strides = [1, 1, 1]} : vector<18x18x4xf32> to vector<16x16x4xf32>
    %15 = vector.shape_cast %14 : vector<16x16x4xf32> to vector<256x4xf32>
    %16 = vector.extract_strided_slice %5 {offsets = [1, 2, 0], sizes = [16, 16, 4], strides = [1, 1, 1]} : vector<18x18x4xf32> to vector<16x16x4xf32>
    %17 = vector.shape_cast %16 : vector<16x16x4xf32> to vector<256x4xf32>
    %18 = vector.extract_strided_slice %5 {offsets = [2, 0, 0], sizes = [16, 16, 4], strides = [1, 1, 1]} : vector<18x18x4xf32> to vector<16x16x4xf32>
    %19 = vector.shape_cast %18 : vector<16x16x4xf32> to vector<256x4xf32>
    %20 = vector.extract_strided_slice %5 {offsets = [2, 1, 0], sizes = [16, 16, 4], strides = [1, 1, 1]} : vector<18x18x4xf32> to vector<16x16x4xf32>
    %21 = vector.shape_cast %20 : vector<16x16x4xf32> to vector<256x4xf32>
    %22 = vector.extract_strided_slice %5 {offsets = [2, 2, 0], sizes = [16, 16, 4], strides = [1, 1, 1]} : vector<18x18x4xf32> to vector<16x16x4xf32>
    %23 = vector.shape_cast %22 : vector<16x16x4xf32> to vector<256x4xf32>
    %24 = tpu.concatenate %7, %9, %11, %13, %15, %17, %19, %21, %23 in 1 : vector<256x4xf32>, vector<256x4xf32>, vector<256x4xf32>, vector<256x4xf32>, vector<256x4xf32>, vector<256x4xf32>, vector<256x4xf32>, vector<256x4xf32>, vector<256x4xf32> -> vector<256x36xf32>
    %25 = arith.truncf %24 : vector<256x36xf32> to vector<256x36xbf16>
    %c0_11 = arith.constant 0 : index
    %c0_12 = arith.constant 0 : index
    %26 = vector.load %arg2[%c0_11, %c0_12] : memref<36x32xbf16, #tpu.memory_space<vmem>>, vector<36x32xbf16>
    %cst_13 = arith.constant dense<0.000000e+00> : vector<256x32xf32>
    %27 = tpu.matmul %25, %26, %cst_13 {dimension_numbers = #tpu.dot_dimension_numbers<[1], [0], [0], [1], [0, 0, 1, 1], [], []>} : vector<256x36xbf16>, vector<36x32xbf16>, vector<256x32xf32> -> vector<256x32xf32>
    %c0_14 = arith.constant 0 : index
    %c0_15 = arith.constant 0 : index
    %28 = vector.load %arg3[%c0_14, %c0_15] : memref<1x32xf32, #tpu.memory_space<vmem>>, vector<1x32xf32>
    %29 = vector.broadcast %28 : vector<1x32xf32> to vector<256x32xf32>
    %30 = arith.mulf %27, %29 : vector<256x32xf32>
    %c0_16 = arith.constant 0 : index
    %c0_17 = arith.constant 0 : index
    %31 = vector.load %arg4[%c0_16, %c0_17] : memref<1x32xf32, #tpu.memory_space<vmem>>, vector<1x32xf32>
    %32 = vector.broadcast %31 : vector<1x32xf32> to vector<256x32xf32>
    %33 = arith.addf %30, %32 : vector<256x32xf32>
    %cst_18 = arith.constant 0.000000e+00 : f32
    %34 = vector.broadcast %cst_18 : f32 to vector<256x32xf32>
    %35 = arith.maximumf %33, %34 : vector<256x32xf32>
    %36 = vector.shape_cast %35 : vector<256x32xf32> to vector<16x16x32xf32>
    %c0_19 = arith.constant 0 : index
    %c0_20 = arith.constant 0 : index
    %c0_21 = arith.constant 0 : index
    %c0_22 = arith.constant 0 : index
    %37 = vector.load %arg5[%c0_19, %c0_20, %c0_21, %c0_22] : memref<1x16x16x32xf32, #tpu.memory_space<vmem>>, vector<1x16x16x32xf32>
    %38 = vector.shape_cast %37 : vector<1x16x16x32xf32> to vector<16x16x32xf32>
    %39 = vector.shape_cast %36 : vector<16x16x32xf32> to vector<1x16x16x32xf32>
    tpu.vector_store %arg5[%c0_19, %c0_20, %c0_21, %c0_22], %39 {strides = array<i32>} : memref<1x16x16x32xf32, #tpu.memory_space<vmem>>, vector<1x16x16x32xf32>,
    return
  }
  func.func @transform_0(%arg0: i32) -> (i32, i32, i32, i32) {
    %c0_i32 = arith.constant 0 : i32
    %c0_i32_0 = arith.constant 0 : i32
    %c0_i32_1 = arith.constant 0 : i32
    %c0_i32_2 = arith.constant 0 : i32
    return %arg0, %c0_i32, %c0_i32_0, %c0_i32_1 : i32, i32, i32, i32
  }
  func.func @transform_1(%arg0: i32) -> (i32, i32) {
    %c0_i32 = arith.constant 0 : i32
    %c0_i32_0 = arith.constant 0 : i32
    %c0_i32_1 = arith.constant 0 : i32
    return %c0_i32, %c0_i32_0 : i32, i32
  }
  func.func @transform_2(%arg0: i32) -> (i32, i32) {
    %c0_i32 = arith.constant 0 : i32
    %c0_i32_0 = arith.constant 0 : i32
    %c0_i32_1 = arith.constant 0 : i32
    return %c0_i32, %c0_i32_0 : i32, i32
  }
  func.func @transform_3(%arg0: i32) -> (i32, i32) {
    %c0_i32 = arith.constant 0 : i32
    %c0_i32_0 = arith.constant 0 : i32
    %c0_i32_1 = arith.constant 0 : i32
    return %c0_i32, %c0_i32_0 : i32, i32
  }
  func.func @transform_4(%arg0: i32) -> (i32, i32, i32, i32) {
    %c0_i32 = arith.constant 0 : i32
    %c0_i32_0 = arith.constant 0 : i32
    %c0_i32_1 = arith.constant 0 : i32
    %c0_i32_2 = arith.constant 0 : i32
    return %arg0, %c0_i32, %c0_i32_0, %c0_i32_1 : i32, i32, i32, i32
  }
}

module attributes {stable_mosaic.version = 11 : i64} {
  func.func @_resblock_kernel(%arg0: i32, %arg1: memref<1x16x16x32xf32, #tpu.memory_space<vmem>>, %arg2: memref<288x32xbf16, #tpu.memory_space<vmem>>, %arg3: memref<1x32xf32, #tpu.memory_space<vmem>>, %arg4: memref<1x32xf32, #tpu.memory_space<vmem>>, %arg5: memref<288x32xbf16, #tpu.memory_space<vmem>>, %arg6: memref<1x32xf32, #tpu.memory_space<vmem>>, %arg7: memref<1x32xf32, #tpu.memory_space<vmem>>, %arg8: memref<32x2xf32, #tpu.memory_space<vmem>>, %arg9: memref<2x32xf32, #tpu.memory_space<vmem>>, %arg10: memref<7x44x16xf32, #tpu.memory_space<vmem>>, %arg11: memref<1x16x16x32xf32, #tpu.memory_space<vmem>>, %arg12: memref<18x18x32xf32, #tpu.memory_space<vmem>>, %arg13: memref<22x44xf32, #tpu.memory_space<vmem>>) attributes {dimension_semantics = [#tpu.dimension_semantics<parallel>], iteration_bounds = array<i64: 2>, scalar_prefetch = 0 : i64, scratch_operands = 2 : i64, tpu.core_type = #tpu.core_type<tc>, window_params = [{transform_indices = @transform_0, window_bounds = array<i64: 1, 16, 16, 32>}, {pipeline_mode = #tpu.pipeline_mode<synchronous>, transform_indices = @transform_1, window_bounds = array<i64: 288, 32>}, {pipeline_mode = #tpu.pipeline_mode<synchronous>, transform_indices = @transform_2, window_bounds = array<i64: 1, 32>}, {pipeline_mode = #tpu.pipeline_mode<synchronous>, transform_indices = @transform_3, window_bounds = array<i64: 1, 32>}, {pipeline_mode = #tpu.pipeline_mode<synchronous>, transform_indices = @transform_4, window_bounds = array<i64: 288, 32>}, {pipeline_mode = #tpu.pipeline_mode<synchronous>, transform_indices = @transform_5, window_bounds = array<i64: 1, 32>}, {pipeline_mode = #tpu.pipeline_mode<synchronous>, transform_indices = @transform_6, window_bounds = array<i64: 1, 32>}, {pipeline_mode = #tpu.pipeline_mode<synchronous>, transform_indices = @transform_7, window_bounds = array<i64: 32, 2>}, {pipeline_mode = #tpu.pipeline_mode<synchronous>, transform_indices = @transform_8, window_bounds = array<i64: 2, 32>}, {pipeline_mode = #tpu.pipeline_mode<synchronous>, transform_indices = @transform_9, window_bounds = array<i64: 7, 44, 16>}, {transform_indices = @transform_10, window_bounds = array<i64: 1, 16, 16, 32>}]} {
    %c0 = arith.constant 0 : index
    %c0_0 = arith.constant 0 : index
    %c0_1 = arith.constant 0 : index
    %c0_2 = arith.constant 0 : index
    %0 = vector.load %arg1[%c0, %c0_0, %c0_1, %c0_2] : memref<1x16x16x32xf32, #tpu.memory_space<vmem>>, vector<1x16x16x32xf32>
    %1 = vector.shape_cast %0 : vector<1x16x16x32xf32> to vector<16x16x32xf32>
    %cst = arith.constant 0.000000e+00 : f32
    %2 = vector.broadcast %cst : f32 to vector<18x18x32xf32>
    %c0_3 = arith.constant 0 : index
    %c0_4 = arith.constant 0 : index
    %c0_5 = arith.constant 0 : index
    %3 = vector.load %arg12[%c0_3, %c0_4, %c0_5] : memref<18x18x32xf32, #tpu.memory_space<vmem>>, vector<18x18x32xf32>
    tpu.vector_store %arg12[%c0_3, %c0_4, %c0_5], %2 {strides = array<i32>} : memref<18x18x32xf32, #tpu.memory_space<vmem>>, vector<18x18x32xf32>,
    %c1 = arith.constant 1 : index
    %c1_6 = arith.constant 1 : index
    %c0_7 = arith.constant 0 : index
    %4 = vector.load %arg12[%c1, %c1_6, %c0_7] : memref<18x18x32xf32, #tpu.memory_space<vmem>>, vector<16x16x32xf32>
    tpu.vector_store %arg12[%c1, %c1_6, %c0_7], %1 {strides = array<i32>} : memref<18x18x32xf32, #tpu.memory_space<vmem>>, vector<16x16x32xf32>,
    %c0_8 = arith.constant 0 : index
    %c0_9 = arith.constant 0 : index
    %c0_10 = arith.constant 0 : index
    %5 = vector.load %arg12[%c0_8, %c0_9, %c0_10] : memref<18x18x32xf32, #tpu.memory_space<vmem>>, vector<18x18x32xf32>
    %6 = vector.extract_strided_slice %5 {offsets = [0, 0, 0], sizes = [16, 16, 32], strides = [1, 1, 1]} : vector<18x18x32xf32> to vector<16x16x32xf32>
    %7 = vector.shape_cast %6 : vector<16x16x32xf32> to vector<256x32xf32>
    %8 = vector.extract_strided_slice %5 {offsets = [0, 1, 0], sizes = [16, 16, 32], strides = [1, 1, 1]} : vector<18x18x32xf32> to vector<16x16x32xf32>
    %9 = vector.shape_cast %8 : vector<16x16x32xf32> to vector<256x32xf32>
    %10 = vector.extract_strided_slice %5 {offsets = [0, 2, 0], sizes = [16, 16, 32], strides = [1, 1, 1]} : vector<18x18x32xf32> to vector<16x16x32xf32>
    %11 = vector.shape_cast %10 : vector<16x16x32xf32> to vector<256x32xf32>
    %12 = vector.extract_strided_slice %5 {offsets = [1, 0, 0], sizes = [16, 16, 32], strides = [1, 1, 1]} : vector<18x18x32xf32> to vector<16x16x32xf32>
    %13 = vector.shape_cast %12 : vector<16x16x32xf32> to vector<256x32xf32>
    %14 = vector.extract_strided_slice %5 {offsets = [1, 1, 0], sizes = [16, 16, 32], strides = [1, 1, 1]} : vector<18x18x32xf32> to vector<16x16x32xf32>
    %15 = vector.shape_cast %14 : vector<16x16x32xf32> to vector<256x32xf32>
    %16 = vector.extract_strided_slice %5 {offsets = [1, 2, 0], sizes = [16, 16, 32], strides = [1, 1, 1]} : vector<18x18x32xf32> to vector<16x16x32xf32>
    %17 = vector.shape_cast %16 : vector<16x16x32xf32> to vector<256x32xf32>
    %18 = vector.extract_strided_slice %5 {offsets = [2, 0, 0], sizes = [16, 16, 32], strides = [1, 1, 1]} : vector<18x18x32xf32> to vector<16x16x32xf32>
    %19 = vector.shape_cast %18 : vector<16x16x32xf32> to vector<256x32xf32>
    %20 = vector.extract_strided_slice %5 {offsets = [2, 1, 0], sizes = [16, 16, 32], strides = [1, 1, 1]} : vector<18x18x32xf32> to vector<16x16x32xf32>
    %21 = vector.shape_cast %20 : vector<16x16x32xf32> to vector<256x32xf32>
    %22 = vector.extract_strided_slice %5 {offsets = [2, 2, 0], sizes = [16, 16, 32], strides = [1, 1, 1]} : vector<18x18x32xf32> to vector<16x16x32xf32>
    %23 = vector.shape_cast %22 : vector<16x16x32xf32> to vector<256x32xf32>
    %24 = tpu.concatenate %7, %9, %11, %13, %15, %17, %19, %21, %23 in 1 : vector<256x32xf32>, vector<256x32xf32>, vector<256x32xf32>, vector<256x32xf32>, vector<256x32xf32>, vector<256x32xf32>, vector<256x32xf32>, vector<256x32xf32>, vector<256x32xf32> -> vector<256x288xf32>
    %25 = arith.truncf %24 : vector<256x288xf32> to vector<256x288xbf16>
    %c0_11 = arith.constant 0 : index
    %c0_12 = arith.constant 0 : index
    %26 = vector.load %arg2[%c0_11, %c0_12] : memref<288x32xbf16, #tpu.memory_space<vmem>>, vector<288x32xbf16>
    %cst_13 = arith.constant dense<0.000000e+00> : vector<256x32xf32>
    %27 = tpu.matmul %25, %26, %cst_13 {dimension_numbers = #tpu.dot_dimension_numbers<[1], [0], [0], [1], [0, 0, 1, 1], [], []>} : vector<256x288xbf16>, vector<288x32xbf16>, vector<256x32xf32> -> vector<256x32xf32>
    %c0_14 = arith.constant 0 : index
    %c0_15 = arith.constant 0 : index
    %28 = vector.load %arg3[%c0_14, %c0_15] : memref<1x32xf32, #tpu.memory_space<vmem>>, vector<1x32xf32>
    %29 = vector.broadcast %28 : vector<1x32xf32> to vector<256x32xf32>
    %30 = arith.mulf %27, %29 : vector<256x32xf32>
    %c0_16 = arith.constant 0 : index
    %c0_17 = arith.constant 0 : index
    %31 = vector.load %arg4[%c0_16, %c0_17] : memref<1x32xf32, #tpu.memory_space<vmem>>, vector<1x32xf32>
    %32 = vector.broadcast %31 : vector<1x32xf32> to vector<256x32xf32>
    %33 = arith.addf %30, %32 : vector<256x32xf32>
    %cst_18 = arith.constant 0.000000e+00 : f32
    %34 = vector.broadcast %cst_18 : f32 to vector<256x32xf32>
    %35 = arith.maximumf %33, %34 : vector<256x32xf32>
    %36 = vector.shape_cast %35 : vector<256x32xf32> to vector<16x16x32xf32>
    %cst_19 = arith.constant 0.000000e+00 : f32
    %37 = vector.broadcast %cst_19 : f32 to vector<18x18x32xf32>
    %c0_20 = arith.constant 0 : index
    %c0_21 = arith.constant 0 : index
    %c0_22 = arith.constant 0 : index
    %38 = vector.load %arg12[%c0_20, %c0_21, %c0_22] : memref<18x18x32xf32, #tpu.memory_space<vmem>>, vector<18x18x32xf32>
    tpu.vector_store %arg12[%c0_20, %c0_21, %c0_22], %37 {strides = array<i32>} : memref<18x18x32xf32, #tpu.memory_space<vmem>>, vector<18x18x32xf32>,
    %c1_23 = arith.constant 1 : index
    %c1_24 = arith.constant 1 : index
    %c0_25 = arith.constant 0 : index
    %39 = vector.load %arg12[%c1_23, %c1_24, %c0_25] : memref<18x18x32xf32, #tpu.memory_space<vmem>>, vector<16x16x32xf32>
    tpu.vector_store %arg12[%c1_23, %c1_24, %c0_25], %36 {strides = array<i32>} : memref<18x18x32xf32, #tpu.memory_space<vmem>>, vector<16x16x32xf32>,
    %c0_26 = arith.constant 0 : index
    %c0_27 = arith.constant 0 : index
    %c0_28 = arith.constant 0 : index
    %40 = vector.load %arg12[%c0_26, %c0_27, %c0_28] : memref<18x18x32xf32, #tpu.memory_space<vmem>>, vector<18x18x32xf32>
    %41 = vector.extract_strided_slice %40 {offsets = [0, 0, 0], sizes = [16, 16, 32], strides = [1, 1, 1]} : vector<18x18x32xf32> to vector<16x16x32xf32>
    %42 = vector.shape_cast %41 : vector<16x16x32xf32> to vector<256x32xf32>
    %43 = vector.extract_strided_slice %40 {offsets = [0, 1, 0], sizes = [16, 16, 32], strides = [1, 1, 1]} : vector<18x18x32xf32> to vector<16x16x32xf32>
    %44 = vector.shape_cast %43 : vector<16x16x32xf32> to vector<256x32xf32>
    %45 = vector.extract_strided_slice %40 {offsets = [0, 2, 0], sizes = [16, 16, 32], strides = [1, 1, 1]} : vector<18x18x32xf32> to vector<16x16x32xf32>
    %46 = vector.shape_cast %45 : vector<16x16x32xf32> to vector<256x32xf32>
    %47 = vector.extract_strided_slice %40 {offsets = [1, 0, 0], sizes = [16, 16, 32], strides = [1, 1, 1]} : vector<18x18x32xf32> to vector<16x16x32xf32>
    %48 = vector.shape_cast %47 : vector<16x16x32xf32> to vector<256x32xf32>
    %49 = vector.extract_strided_slice %40 {offsets = [1, 1, 0], sizes = [16, 16, 32], strides = [1, 1, 1]} : vector<18x18x32xf32> to vector<16x16x32xf32>
    %50 = vector.shape_cast %49 : vector<16x16x32xf32> to vector<256x32xf32>
    %51 = vector.extract_strided_slice %40 {offsets = [1, 2, 0], sizes = [16, 16, 32], strides = [1, 1, 1]} : vector<18x18x32xf32> to vector<16x16x32xf32>
    %52 = vector.shape_cast %51 : vector<16x16x32xf32> to vector<256x32xf32>
    %53 = vector.extract_strided_slice %40 {offsets = [2, 0, 0], sizes = [16, 16, 32], strides = [1, 1, 1]} : vector<18x18x32xf32> to vector<16x16x32xf32>
    %54 = vector.shape_cast %53 : vector<16x16x32xf32> to vector<256x32xf32>
    %55 = vector.extract_strided_slice %40 {offsets = [2, 1, 0], sizes = [16, 16, 32], strides = [1, 1, 1]} : vector<18x18x32xf32> to vector<16x16x32xf32>
    %56 = vector.shape_cast %55 : vector<16x16x32xf32> to vector<256x32xf32>
    %57 = vector.extract_strided_slice %40 {offsets = [2, 2, 0], sizes = [16, 16, 32], strides = [1, 1, 1]} : vector<18x18x32xf32> to vector<16x16x32xf32>
    %58 = vector.shape_cast %57 : vector<16x16x32xf32> to vector<256x32xf32>
    %59 = tpu.concatenate %42, %44, %46, %48, %50, %52, %54, %56, %58 in 1 : vector<256x32xf32>, vector<256x32xf32>, vector<256x32xf32>, vector<256x32xf32>, vector<256x32xf32>, vector<256x32xf32>, vector<256x32xf32>, vector<256x32xf32>, vector<256x32xf32> -> vector<256x288xf32>
    %60 = arith.truncf %59 : vector<256x288xf32> to vector<256x288xbf16>
    %c0_29 = arith.constant 0 : index
    %c0_30 = arith.constant 0 : index
    %61 = vector.load %arg5[%c0_29, %c0_30] : memref<288x32xbf16, #tpu.memory_space<vmem>>, vector<288x32xbf16>
    %cst_31 = arith.constant dense<0.000000e+00> : vector<256x32xf32>
    %62 = tpu.matmul %60, %61, %cst_31 {dimension_numbers = #tpu.dot_dimension_numbers<[1], [0], [0], [1], [0, 0, 1, 1], [], []>} : vector<256x288xbf16>, vector<288x32xbf16>, vector<256x32xf32> -> vector<256x32xf32>
    %c0_32 = arith.constant 0 : index
    %c0_33 = arith.constant 0 : index
    %63 = vector.load %arg6[%c0_32, %c0_33] : memref<1x32xf32, #tpu.memory_space<vmem>>, vector<1x32xf32>
    %64 = vector.broadcast %63 : vector<1x32xf32> to vector<256x32xf32>
    %65 = arith.mulf %62, %64 : vector<256x32xf32>
    %c0_34 = arith.constant 0 : index
    %c0_35 = arith.constant 0 : index
    %66 = vector.load %arg7[%c0_34, %c0_35] : memref<1x32xf32, #tpu.memory_space<vmem>>, vector<1x32xf32>
    %67 = vector.broadcast %66 : vector<1x32xf32> to vector<256x32xf32>
    %68 = arith.addf %65, %67 : vector<256x32xf32>
    %cst_36 = arith.constant dense<0.000000e+00> : vector<32xf32>
    %69 = vector.multi_reduction <add>, %68, %cst_36 [0] : vector<256x32xf32> to vector<32xf32>
    %70 = vector.shape_cast %69 : vector<32xf32> to vector<1x32xf32>
    %cst_37 = arith.constant 2.560000e+02 : f32
    %71 = vector.broadcast %cst_37 : f32 to vector<1x32xf32>
    %72 = arith.divf %70, %71 : vector<1x32xf32>
    %cst_38 = arith.constant dense<0xFF800000> : vector<32xf32>
    %73 = vector.multi_reduction <maximumf>, %68, %cst_38 [0] : vector<256x32xf32> to vector<32xf32>
    %74 = vector.shape_cast %73 : vector<32xf32> to vector<1x32xf32>
    %75 = tpu.concatenate %72, %74 in 0 : vector<1x32xf32>, vector<1x32xf32> -> vector<2x32xf32>
    %c0_39 = arith.constant 0 : index
    %c0_40 = arith.constant 0 : index
    %76 = vector.load %arg8[%c0_39, %c0_40] : memref<32x2xf32, #tpu.memory_space<vmem>>, vector<32x2xf32>
    %cst_41 = arith.constant dense<0.000000e+00> : vector<2x2xf32>
    %77 = tpu.matmul %75, %76, %cst_41 {dimension_numbers = #tpu.dot_dimension_numbers<[1], [0], [0], [1], [0, 0, 1, 1], [], []>} : vector<2x32xf32>, vector<32x2xf32>, vector<2x2xf32> -> vector<2x2xf32>
    %cst_42 = arith.constant 0.000000e+00 : f32
    %78 = vector.broadcast %cst_42 : f32 to vector<2x2xf32>
    %79 = arith.maximumf %77, %78 : vector<2x2xf32>
    %c0_43 = arith.constant 0 : index
    %c0_44 = arith.constant 0 : index
    %80 = vector.load %arg9[%c0_43, %c0_44] : memref<2x32xf32, #tpu.memory_space<vmem>>, vector<2x32xf32>
    %cst_45 = arith.constant dense<0.000000e+00> : vector<2x32xf32>
    %81 = tpu.matmul %79, %80, %cst_45 {dimension_numbers = #tpu.dot_dimension_numbers<[1], [0], [0], [1], [0, 0, 1, 1], [], []>} : vector<2x2xf32>, vector<2x32xf32>, vector<2x32xf32> -> vector<2x32xf32>
    %82 = vector.extract_strided_slice %81 {offsets = [0, 0], sizes = [1, 32], strides = [1, 1]} : vector<2x32xf32> to vector<1x32xf32>
    %83 = vector.extract_strided_slice %81 {offsets = [1, 0], sizes = [1, 32], strides = [1, 1]} : vector<2x32xf32> to vector<1x32xf32>
    %84 = arith.addf %82, %83 : vector<1x32xf32>
    %cst_46 = arith.constant 0.000000e+00 : f32
    %85 = vector.broadcast %cst_46 : f32 to vector<1x32xf32>
    %86 = arith.subf %85, %84 : vector<1x32xf32>
    %87 = math.exp %86 : vector<1x32xf32>
    %cst_47 = arith.constant 1.000000e+00 : f32
    %88 = vector.broadcast %cst_47 : f32 to vector<1x32xf32>
    %89 = arith.addf %88, %87 : vector<1x32xf32>
    %90 = tpu.reciprocal %89 {approx = true} : vector<1x32xf32> -> vector<1x32xf32>
    %91 = vector.broadcast %90 : vector<1x32xf32> to vector<256x32xf32>
    %92 = arith.mulf %68, %91 : vector<256x32xf32>
    %93 = vector.shape_cast %92 : vector<256x32xf32> to vector<16x16x32xf32>
    %cst_48 = arith.constant dense<0.000000e+00> : vector<16x16xf32>
    %94 = vector.multi_reduction <add>, %93, %cst_48 [2] : vector<16x16x32xf32> to vector<16x16xf32>
    %cst_49 = arith.constant 3.200000e+01 : f32
    %95 = vector.broadcast %cst_49 : f32 to vector<16x16xf32>
    %96 = arith.divf %94, %95 : vector<16x16xf32>
    %cst_50 = arith.constant dense<0xFF800000> : vector<16x16xf32>
    %97 = vector.multi_reduction <maximumf>, %93, %cst_50 [2] : vector<16x16x32xf32> to vector<16x16xf32>
    %cst_51 = arith.constant 0.000000e+00 : f32
    %98 = vector.broadcast %cst_51 : f32 to vector<22x44xf32>
    %c0_52 = arith.constant 0 : index
    %c0_53 = arith.constant 0 : index
    %99 = vector.load %arg13[%c0_52, %c0_53] : memref<22x44xf32, #tpu.memory_space<vmem>>, vector<22x44xf32>
    tpu.vector_store %arg13[%c0_52, %c0_53], %98 {strides = array<i32>} : memref<22x44xf32, #tpu.memory_space<vmem>>, vector<22x44xf32>,
    %c3 = arith.constant 3 : index
    %c3_54 = arith.constant 3 : index
    %100 = vector.load %arg13[%c3, %c3_54] : memref<22x44xf32, #tpu.memory_space<vmem>>, vector<16x16xf32>
    tpu.vector_store %arg13[%c3, %c3_54], %96 {strides = array<i32>} : memref<22x44xf32, #tpu.memory_space<vmem>>, vector<16x16xf32>,
    %c3_55 = arith.constant 3 : index
    %c25 = arith.constant 25 : index
    %101 = vector.load %arg13[%c3_55, %c25] : memref<22x44xf32, #tpu.memory_space<vmem>>, vector<16x16xf32>
    tpu.vector_store %arg13[%c3_55, %c25], %97 {strides = array<i32>} : memref<22x44xf32, #tpu.memory_space<vmem>>, vector<16x16xf32>,
    %c0_56 = arith.constant 0 : index
    %c0_57 = arith.constant 0 : index
    %102 = vector.load %arg13[%c0_56, %c0_57] : memref<22x44xf32, #tpu.memory_space<vmem>>, vector<22x44xf32>
    %cst_58 = arith.constant 0.000000e+00 : f32
    %103 = vector.broadcast %cst_58 : f32 to vector<16x16xf32>
    %104 = vector.extract_strided_slice %102 {offsets = [0, 0], sizes = [16, 44], strides = [1, 1]} : vector<22x44xf32> to vector<16x44xf32>
    %c0_59 = arith.constant 0 : index
    %c0_60 = arith.constant 0 : index
    %c0_61 = arith.constant 0 : index
    %105 = vector.load %arg10[%c0_59, %c0_60, %c0_61] : memref<7x44x16xf32, #tpu.memory_space<vmem>>, vector<1x44x16xf32>
    %106 = vector.shape_cast %105 : vector<1x44x16xf32> to vector<44x16xf32>
    %cst_62 = arith.constant dense<0.000000e+00> : vector<16x16xf32>
    %107 = tpu.matmul %104, %106, %cst_62 {dimension_numbers = #tpu.dot_dimension_numbers<[1], [0], [0], [1], [0, 0, 1, 1], [], []>} : vector<16x44xf32>, vector<44x16xf32>, vector<16x16xf32> -> vector<16x16xf32>
    %108 = arith.addf %103, %107 : vector<16x16xf32>
    %109 = vector.extract_strided_slice %102 {offsets = [1, 0], sizes = [16, 44], strides = [1, 1]} : vector<22x44xf32> to vector<16x44xf32>
    %c1_63 = arith.constant 1 : index
    %c0_64 = arith.constant 0 : index
    %c0_65 = arith.constant 0 : index
    %110 = vector.load %arg10[%c1_63, %c0_64, %c0_65] : memref<7x44x16xf32, #tpu.memory_space<vmem>>, vector<1x44x16xf32>
    %111 = vector.shape_cast %110 : vector<1x44x16xf32> to vector<44x16xf32>
    %cst_66 = arith.constant dense<0.000000e+00> : vector<16x16xf32>
    %112 = tpu.matmul %109, %111, %cst_66 {dimension_numbers = #tpu.dot_dimension_numbers<[1], [0], [0], [1], [0, 0, 1, 1], [], []>} : vector<16x44xf32>, vector<44x16xf32>, vector<16x16xf32> -> vector<16x16xf32>
    %113 = arith.addf %108, %112 : vector<16x16xf32>
    %114 = vector.extract_strided_slice %102 {offsets = [2, 0], sizes = [16, 44], strides = [1, 1]} : vector<22x44xf32> to vector<16x44xf32>
    %c2 = arith.constant 2 : index
    %c0_67 = arith.constant 0 : index
    %c0_68 = arith.constant 0 : index
    %115 = vector.load %arg10[%c2, %c0_67, %c0_68] : memref<7x44x16xf32, #tpu.memory_space<vmem>>, vector<1x44x16xf32>
    %116 = vector.shape_cast %115 : vector<1x44x16xf32> to vector<44x16xf32>
    %cst_69 = arith.constant dense<0.000000e+00> : vector<16x16xf32>
    %117 = tpu.matmul %114, %116, %cst_69 {dimension_numbers = #tpu.dot_dimension_numbers<[1], [0], [0], [1], [0, 0, 1, 1], [], []>} : vector<16x44xf32>, vector<44x16xf32>, vector<16x16xf32> -> vector<16x16xf32>
    %118 = arith.addf %113, %117 : vector<16x16xf32>
    %119 = vector.extract_strided_slice %102 {offsets = [3, 0], sizes = [16, 44], strides = [1, 1]} : vector<22x44xf32> to vector<16x44xf32>
    %c3_70 = arith.constant 3 : index
    %c0_71 = arith.constant 0 : index
    %c0_72 = arith.constant 0 : index
    %120 = vector.load %arg10[%c3_70, %c0_71, %c0_72] : memref<7x44x16xf32, #tpu.memory_space<vmem>>, vector<1x44x16xf32>
    %121 = vector.shape_cast %120 : vector<1x44x16xf32> to vector<44x16xf32>
    %cst_73 = arith.constant dense<0.000000e+00> : vector<16x16xf32>
    %122 = tpu.matmul %119, %121, %cst_73 {dimension_numbers = #tpu.dot_dimension_numbers<[1], [0], [0], [1], [0, 0, 1, 1], [], []>} : vector<16x44xf32>, vector<44x16xf32>, vector<16x16xf32> -> vector<16x16xf32>
    %123 = arith.addf %118, %122 : vector<16x16xf32>
    %124 = vector.extract_strided_slice %102 {offsets = [4, 0], sizes = [16, 44], strides = [1, 1]} : vector<22x44xf32> to vector<16x44xf32>
    %c4 = arith.constant 4 : index
    %c0_74 = arith.constant 0 : index
    %c0_75 = arith.constant 0 : index
    %125 = vector.load %arg10[%c4, %c0_74, %c0_75] : memref<7x44x16xf32, #tpu.memory_space<vmem>>, vector<1x44x16xf32>
    %126 = vector.shape_cast %125 : vector<1x44x16xf32> to vector<44x16xf32>
    %cst_76 = arith.constant dense<0.000000e+00> : vector<16x16xf32>
    %127 = tpu.matmul %124, %126, %cst_76 {dimension_numbers = #tpu.dot_dimension_numbers<[1], [0], [0], [1], [0, 0, 1, 1], [], []>} : vector<16x44xf32>, vector<44x16xf32>, vector<16x16xf32> -> vector<16x16xf32>
    %128 = arith.addf %123, %127 : vector<16x16xf32>
    %129 = vector.extract_strided_slice %102 {offsets = [5, 0], sizes = [16, 44], strides = [1, 1]} : vector<22x44xf32> to vector<16x44xf32>
    %c5 = arith.constant 5 : index
    %c0_77 = arith.constant 0 : index
    %c0_78 = arith.constant 0 : index
    %130 = vector.load %arg10[%c5, %c0_77, %c0_78] : memref<7x44x16xf32, #tpu.memory_space<vmem>>, vector<1x44x16xf32>
    %131 = vector.shape_cast %130 : vector<1x44x16xf32> to vector<44x16xf32>
    %cst_79 = arith.constant dense<0.000000e+00> : vector<16x16xf32>
    %132 = tpu.matmul %129, %131, %cst_79 {dimension_numbers = #tpu.dot_dimension_numbers<[1], [0], [0], [1], [0, 0, 1, 1], [], []>} : vector<16x44xf32>, vector<44x16xf32>, vector<16x16xf32> -> vector<16x16xf32>
    %133 = arith.addf %128, %132 : vector<16x16xf32>
    %134 = vector.extract_strided_slice %102 {offsets = [6, 0], sizes = [16, 44], strides = [1, 1]} : vector<22x44xf32> to vector<16x44xf32>
    %c6 = arith.constant 6 : index
    %c0_80 = arith.constant 0 : index
    %c0_81 = arith.constant 0 : index
    %135 = vector.load %arg10[%c6, %c0_80, %c0_81] : memref<7x44x16xf32, #tpu.memory_space<vmem>>, vector<1x44x16xf32>
    %136 = vector.shape_cast %135 : vector<1x44x16xf32> to vector<44x16xf32>
    %cst_82 = arith.constant dense<0.000000e+00> : vector<16x16xf32>
    %137 = tpu.matmul %134, %136, %cst_82 {dimension_numbers = #tpu.dot_dimension_numbers<[1], [0], [0], [1], [0, 0, 1, 1], [], []>} : vector<16x44xf32>, vector<44x16xf32>, vector<16x16xf32> -> vector<16x16xf32>
    %138 = arith.addf %133, %137 : vector<16x16xf32>
    %cst_83 = arith.constant 0.000000e+00 : f32
    %139 = vector.broadcast %cst_83 : f32 to vector<16x16xf32>
    %140 = arith.subf %139, %138 : vector<16x16xf32>
    %141 = math.exp %140 : vector<16x16xf32>
    %cst_84 = arith.constant 1.000000e+00 : f32
    %142 = vector.broadcast %cst_84 : f32 to vector<16x16xf32>
    %143 = arith.addf %142, %141 : vector<16x16xf32>
    %144 = tpu.reciprocal %143 {approx = true} : vector<16x16xf32> -> vector<16x16xf32>
    %145 = vector.shape_cast %144 : vector<16x16xf32> to vector<16x16x1xf32>
    %146 = vector.broadcast %145 : vector<16x16x1xf32> to vector<16x16x32xf32>
    %147 = arith.mulf %93, %146 : vector<16x16x32xf32>
    %148 = arith.addf %147, %1 : vector<16x16x32xf32>
    %cst_85 = arith.constant 0.000000e+00 : f32
    %149 = vector.broadcast %cst_85 : f32 to vector<16x16x32xf32>
    %150 = arith.maximumf %148, %149 : vector<16x16x32xf32>
    %c0_86 = arith.constant 0 : index
    %c0_87 = arith.constant 0 : index
    %c0_88 = arith.constant 0 : index
    %c0_89 = arith.constant 0 : index
    %151 = vector.load %arg11[%c0_86, %c0_87, %c0_88, %c0_89] : memref<1x16x16x32xf32, #tpu.memory_space<vmem>>, vector<1x16x16x32xf32>
    %152 = vector.shape_cast %151 : vector<1x16x16x32xf32> to vector<16x16x32xf32>
    %153 = vector.shape_cast %150 : vector<16x16x32xf32> to vector<1x16x16x32xf32>
    tpu.vector_store %arg11[%c0_86, %c0_87, %c0_88, %c0_89], %153 {strides = array<i32>} : memref<1x16x16x32xf32, #tpu.memory_space<vmem>>, vector<1x16x16x32xf32>,
    return
  }
  func.func @transform_0(%arg0: i32) -> (i32, i32, i32, i32) {
    %c0_i32 = arith.constant 0 : i32
    %c0_i32_0 = arith.constant 0 : i32
    %c0_i32_1 = arith.constant 0 : i32
    %c0_i32_2 = arith.constant 0 : i32
    return %arg0, %c0_i32, %c0_i32_0, %c0_i32_1 : i32, i32, i32, i32
  }
  func.func @transform_1(%arg0: i32) -> (i32, i32) {
    %c0_i32 = arith.constant 0 : i32
    %c0_i32_0 = arith.constant 0 : i32
    %c0_i32_1 = arith.constant 0 : i32
    return %c0_i32, %c0_i32_0 : i32, i32
  }
  func.func @transform_2(%arg0: i32) -> (i32, i32) {
    %c0_i32 = arith.constant 0 : i32
    %c0_i32_0 = arith.constant 0 : i32
    %c0_i32_1 = arith.constant 0 : i32
    return %c0_i32, %c0_i32_0 : i32, i32
  }
  func.func @transform_3(%arg0: i32) -> (i32, i32) {
    %c0_i32 = arith.constant 0 : i32
    %c0_i32_0 = arith.constant 0 : i32
    %c0_i32_1 = arith.constant 0 : i32
    return %c0_i32, %c0_i32_0 : i32, i32
  }
  func.func @transform_4(%arg0: i32) -> (i32, i32) {
    %c0_i32 = arith.constant 0 : i32
    %c0_i32_0 = arith.constant 0 : i32
    %c0_i32_1 = arith.constant 0 : i32
    return %c0_i32, %c0_i32_0 : i32, i32
  }
  func.func @transform_5(%arg0: i32) -> (i32, i32) {
    %c0_i32 = arith.constant 0 : i32
    %c0_i32_0 = arith.constant 0 : i32
    %c0_i32_1 = arith.constant 0 : i32
    return %c0_i32, %c0_i32_0 : i32, i32
  }
  func.func @transform_6(%arg0: i32) -> (i32, i32) {
    %c0_i32 = arith.constant 0 : i32
    %c0_i32_0 = arith.constant 0 : i32
    %c0_i32_1 = arith.constant 0 : i32
    return %c0_i32, %c0_i32_0 : i32, i32
  }
  func.func @transform_7(%arg0: i32) -> (i32, i32) {
    %c0_i32 = arith.constant 0 : i32
    %c0_i32_0 = arith.constant 0 : i32
    %c0_i32_1 = arith.constant 0 : i32
    return %c0_i32, %c0_i32_0 : i32, i32
  }
  func.func @transform_8(%arg0: i32) -> (i32, i32) {
    %c0_i32 = arith.constant 0 : i32
    %c0_i32_0 = arith.constant 0 : i32
    %c0_i32_1 = arith.constant 0 : i32
    return %c0_i32, %c0_i32_0 : i32, i32
  }
  func.func @transform_9(%arg0: i32) -> (i32, i32, i32) {
    %c0_i32 = arith.constant 0 : i32
    %c0_i32_0 = arith.constant 0 : i32
    %c0_i32_1 = arith.constant 0 : i32
    %c0_i32_2 = arith.constant 0 : i32
    return %c0_i32, %c0_i32_0, %c0_i32_1 : i32, i32, i32
  }
  func.func @transform_10(%arg0: i32) -> (i32, i32, i32, i32) {
    %c0_i32 = arith.constant 0 : i32
    %c0_i32_0 = arith.constant 0 : i32
    %c0_i32_1 = arith.constant 0 : i32
    %c0_i32_2 = arith.constant 0 : i32
    return %arg0, %c0_i32, %c0_i32_0, %c0_i32_1 : i32, i32, i32, i32
  }
}

module attributes {stable_mosaic.version = 11 : i64} {
  func.func @_classifier_kernel(%arg0: i32, %arg1: memref<2x16x16x32xf32, #tpu.memory_space<vmem>>, %arg2: memref<32x128xbf16, #tpu.memory_space<vmem>>, %arg3: memref<1x128xf32, #tpu.memory_space<vmem>>, %arg4: memref<1x128xf32, #tpu.memory_space<vmem>>, %arg5: memref<128x10xf32, #tpu.memory_space<vmem>>, %arg6: memref<1x10xf32, #tpu.memory_space<vmem>>, %arg7: memref<2x10xf32, #tpu.memory_space<vmem>>) attributes {dimension_semantics = [#tpu.dimension_semantics<arbitrary>], iteration_bounds = array<i64: 1>, scalar_prefetch = 0 : i64, scratch_operands = 0 : i64, tpu.core_type = #tpu.core_type<tc>, window_params = [{pipeline_mode = #tpu.pipeline_mode<synchronous>, transform_indices = @transform_0, window_bounds = array<i64: 2, 16, 16, 32>}, {pipeline_mode = #tpu.pipeline_mode<synchronous>, transform_indices = @transform_1, window_bounds = array<i64: 32, 128>}, {pipeline_mode = #tpu.pipeline_mode<synchronous>, transform_indices = @transform_2, window_bounds = array<i64: 1, 128>}, {pipeline_mode = #tpu.pipeline_mode<synchronous>, transform_indices = @transform_3, window_bounds = array<i64: 1, 128>}, {pipeline_mode = #tpu.pipeline_mode<synchronous>, transform_indices = @transform_4, window_bounds = array<i64: 128, 10>}, {pipeline_mode = #tpu.pipeline_mode<synchronous>, transform_indices = @transform_5, window_bounds = array<i64: 1, 10>}, {pipeline_mode = #tpu.pipeline_mode<synchronous>, transform_indices = @transform_6, window_bounds = array<i64: 2, 10>}]} {
    %c0 = arith.constant 0 : index
    %c0_0 = arith.constant 0 : index
    %c0_1 = arith.constant 0 : index
    %c0_2 = arith.constant 0 : index
    %0 = vector.load %arg1[%c0, %c0_0, %c0_1, %c0_2] : memref<2x16x16x32xf32, #tpu.memory_space<vmem>>, vector<2x16x16x32xf32>
    %1 = vector.shape_cast %0 : vector<2x16x16x32xf32> to vector<512x32xf32>
    %2 = arith.truncf %1 : vector<512x32xf32> to vector<512x32xbf16>
    %c0_3 = arith.constant 0 : index
    %c0_4 = arith.constant 0 : index
    %3 = vector.load %arg2[%c0_3, %c0_4] : memref<32x128xbf16, #tpu.memory_space<vmem>>, vector<32x128xbf16>
    %cst = arith.constant dense<0.000000e+00> : vector<512x128xf32>
    %4 = tpu.matmul %2, %3, %cst {dimension_numbers = #tpu.dot_dimension_numbers<[1], [0], [0], [1], [0, 0, 1, 1], [], []>} : vector<512x32xbf16>, vector<32x128xbf16>, vector<512x128xf32> -> vector<512x128xf32>
    %c0_5 = arith.constant 0 : index
    %c0_6 = arith.constant 0 : index
    %5 = vector.load %arg3[%c0_5, %c0_6] : memref<1x128xf32, #tpu.memory_space<vmem>>, vector<1x128xf32>
    %6 = vector.broadcast %5 : vector<1x128xf32> to vector<512x128xf32>
    %7 = arith.mulf %4, %6 : vector<512x128xf32>
    %c0_7 = arith.constant 0 : index
    %c0_8 = arith.constant 0 : index
    %8 = vector.load %arg4[%c0_7, %c0_8] : memref<1x128xf32, #tpu.memory_space<vmem>>, vector<1x128xf32>
    %9 = vector.broadcast %8 : vector<1x128xf32> to vector<512x128xf32>
    %10 = arith.addf %7, %9 : vector<512x128xf32>
    %cst_9 = arith.constant 0.000000e+00 : f32
    %11 = vector.broadcast %cst_9 : f32 to vector<512x128xf32>
    %12 = arith.maximumf %10, %11 : vector<512x128xf32>
    %13 = vector.extract_strided_slice %12 {offsets = [0, 0], sizes = [256, 128], strides = [1, 1]} : vector<512x128xf32> to vector<256x128xf32>
    %cst_10 = arith.constant dense<0.000000e+00> : vector<128xf32>
    %14 = vector.multi_reduction <add>, %13, %cst_10 [0] : vector<256x128xf32> to vector<128xf32>
    %15 = vector.shape_cast %14 : vector<128xf32> to vector<1x128xf32>
    %cst_11 = arith.constant 2.560000e+02 : f32
    %16 = vector.broadcast %cst_11 : f32 to vector<1x128xf32>
    %17 = arith.divf %15, %16 : vector<1x128xf32>
    %18 = vector.extract_strided_slice %12 {offsets = [256, 0], sizes = [256, 128], strides = [1, 1]} : vector<512x128xf32> to vector<256x128xf32>
    %cst_12 = arith.constant dense<0.000000e+00> : vector<128xf32>
    %19 = vector.multi_reduction <add>, %18, %cst_12 [0] : vector<256x128xf32> to vector<128xf32>
    %20 = vector.shape_cast %19 : vector<128xf32> to vector<1x128xf32>
    %cst_13 = arith.constant 2.560000e+02 : f32
    %21 = vector.broadcast %cst_13 : f32 to vector<1x128xf32>
    %22 = arith.divf %20, %21 : vector<1x128xf32>
    %23 = tpu.concatenate %17, %22 in 0 : vector<1x128xf32>, vector<1x128xf32> -> vector<2x128xf32>
    %c0_14 = arith.constant 0 : index
    %c0_15 = arith.constant 0 : index
    %24 = vector.load %arg5[%c0_14, %c0_15] : memref<128x10xf32, #tpu.memory_space<vmem>>, vector<128x10xf32>
    %cst_16 = arith.constant dense<0.000000e+00> : vector<2x10xf32>
    %25 = tpu.matmul %23, %24, %cst_16 {dimension_numbers = #tpu.dot_dimension_numbers<[1], [0], [0], [1], [0, 0, 1, 1], [], []>} : vector<2x128xf32>, vector<128x10xf32>, vector<2x10xf32> -> vector<2x10xf32>
    %c0_17 = arith.constant 0 : index
    %c0_18 = arith.constant 0 : index
    %26 = vector.load %arg6[%c0_17, %c0_18] : memref<1x10xf32, #tpu.memory_space<vmem>>, vector<1x10xf32>
    %27 = vector.broadcast %26 : vector<1x10xf32> to vector<2x10xf32>
    %28 = arith.addf %25, %27 : vector<2x10xf32>
    %c0_19 = arith.constant 0 : index
    %c0_20 = arith.constant 0 : index
    %29 = vector.load %arg7[%c0_19, %c0_20] : memref<2x10xf32, #tpu.memory_space<vmem>>, vector<2x10xf32>
    tpu.vector_store %arg7[%c0_19, %c0_20], %28 {strides = array<i32>} : memref<2x10xf32, #tpu.memory_space<vmem>>, vector<2x10xf32>,
    return
  }
  func.func @transform_0(%arg0: i32) -> (i32, i32, i32, i32) {
    %c0_i32 = arith.constant 0 : i32
    %c0_i32_0 = arith.constant 0 : i32
    %c0_i32_1 = arith.constant 0 : i32
    %c0_i32_2 = arith.constant 0 : i32
    %c0_i32_3 = arith.constant 0 : i32
    return %c0_i32, %c0_i32_0, %c0_i32_1, %c0_i32_2 : i32, i32, i32, i32
  }
  func.func @transform_1(%arg0: i32) -> (i32, i32) {
    %c0_i32 = arith.constant 0 : i32
    %c0_i32_0 = arith.constant 0 : i32
    %c0_i32_1 = arith.constant 0 : i32
    return %c0_i32, %c0_i32_0 : i32, i32
  }
  func.func @transform_2(%arg0: i32) -> (i32, i32) {
    %c0_i32 = arith.constant 0 : i32
    %c0_i32_0 = arith.constant 0 : i32
    %c0_i32_1 = arith.constant 0 : i32
    return %c0_i32, %c0_i32_0 : i32, i32
  }
  func.func @transform_3(%arg0: i32) -> (i32, i32) {
    %c0_i32 = arith.constant 0 : i32
    %c0_i32_0 = arith.constant 0 : i32
    %c0_i32_1 = arith.constant 0 : i32
    return %c0_i32, %c0_i32_0 : i32, i32
  }
  func.func @transform_4(%arg0: i32) -> (i32, i32) {
    %c0_i32 = arith.constant 0 : i32
    %c0_i32_0 = arith.constant 0 : i32
    %c0_i32_1 = arith.constant 0 : i32
    return %c0_i32, %c0_i32_0 : i32, i32
  }
  func.func @transform_5(%arg0: i32) -> (i32, i32) {
    %c0_i32 = arith.constant 0 : i32
    %c0_i32_0 = arith.constant 0 : i32
    %c0_i32_1 = arith.constant 0 : i32
    return %c0_i32, %c0_i32_0 : i32, i32
  }
  func.func @transform_6(%arg0: i32) -> (i32, i32) {
    %c0_i32 = arith.constant 0 : i32
    %c0_i32_0 = arith.constant 0 : i32
    %c0_i32_1 = arith.constant 0 : i32
    return %c0_i32, %c0_i32_0 : i32, i32
  }
}

</mosaic_0001>

<bundles_post_ra>
// kernel: network_forward.7
= control target key start
LH: loop header
LB: loop body
LE: loop exit
PB: predicated region body
PF: predicated region fallthrough
CT: control target
= control target key end

     0   :  { %vm137_vm0 = vcmask 261120   ;;  %s1668_s0 = inlined_call_operand.vmem [shape: f32[2,16,16,32], index: 0, kind: input, shape index: {}]   ;;  %s1669_s1 = inlined_call_operand.vmem [shape: bf16[32,128], index: 1, kind: input, shape index: {}]   ;;  %s1670_s2 = inlined_call_operand.vmem [shape: f32[1,128], index: 2, kind: input, shape index: {}]   ;;  %s1671_s3 = inlined_call_operand.vmem [shape: f32[1,128], index: 3, kind: input, shape index: {}]   ;;  %s1672_s4 = inlined_call_operand.vmem [shape: f32[128,10], index: 4, kind: input, shape index: {}]   ;;  %s1673_s5 = inlined_call_operand.vmem [shape: f32[1,10], index: 5, kind: input, shape index: {}]   ;;  %s1674_s6 = inlined_call_operand.hbm [shape: f32[2,10], index: 6, kind: output, shape index: {}]  }
   0x1   :  { %v1115_v0 = vld [vmem:[%s1669_s1 + $0x8] sm:$0xff]   ;;  %v1116_v1 = vld [vmem:[%s1669_s1] sm:$0xff]   ;;  %v27_v5 = vld [vmem:[%s1668_s0 + $0x10] sm:$0xff] }
   0x2   :  { %1005 = vmatprep.subr.bf16.mxu0 %v1115_v0  ;;  %v25_v2 = vld [vmem:[%s1668_s0] sm:$0xff]  ;;  %v26_v3 = vld [vmem:[%s1668_s0 + $0x8] sm:$0xff]  ;;  %1108 = vmatprep.subr.bf16.mxu1 %v1115_v0  ;;  %v28_v6 = vld [vmem:[%s1668_s0 + $0x18] sm:$0xff] }
   0x3   :  { %1006 = vmatpush3.bf16.msra.mxu0 %v1115_v0  ;;  %v89_v4 = vpack.c.bf16 %v26_v3, %v25_v2  ;;  %1110 = vmatpush3.bf16.msra.mxu1 %v1115_v0  ;;  %v29_v7 = vld [vmem:[%s1668_s0 + $0x20] sm:$0xff]  ;;  %v30_v8 = vld [vmem:[%s1668_s0 + $0x28] sm:$0xff]  ;;  %v90_v9 = vpack.c.bf16 %v28_v6, %v27_v5  ;;  %v31_v11 = vld [vmem:[%s1668_s0 + $0x30] sm:$0xff] }
   0x4   :  { %1007 = vmatprep.subr.bf16.mxu0 %v1116_v1  ;;  %1109 = vmatprep.subr.bf16.mxu1 %v1116_v1  ;;  %v91_v10 = vpack.c.bf16 %v30_v8, %v29_v7  ;;  %v32_v12 = vld [vmem:[%s1668_s0 + $0x38] sm:$0xff]  ;;  %v33_v13 = vld [vmem:[%s1668_s0 + $0x40] sm:$0xff]  ;;  %v34_v14 = vld [vmem:[%s1668_s0 + $0x48] sm:$0xff] }
   0x5   :  { %1009 = vmatprep.mubr.msk.bf16.mxu0 %vm137_vm0, %v89_v4  ;;  %v92_v15 = vpack.c.bf16 %v32_v12, %v31_v11  ;;  %v61_v16 = vld [vmem:[%s1668_s0 + $0x120] sm:$0xff]  ;;  %v62_v17 = vld [vmem:[%s1668_s0 + $0x128] sm:$0xff]  ;;  %v63_v18 = vld [vmem:[%s1668_s0 + $0x130] sm:$0xff]  ;;  %v93_v19 = vpack.c.bf16 %v34_v14, %v33_v13 }
   0x6   :  { %v107_v20 = vpack.c.bf16 %v62_v17, %v61_v16  ;;  %v64_v21 = vld [vmem:[%s1668_s0 + $0x138] sm:$0xff]  ;;  %v65_v22 = vld [vmem:[%s1668_s0 + $0x140] sm:$0xff]  ;;  %v66_v23 = vld [vmem:[%s1668_s0 + $0x148] sm:$0xff] }
   0x7   :  { %1008 = vmatpush3.bf16.msra.mxu0 %v1116_v1  ;;  %1111 = vmatpush3.bf16.msra.mxu1 %v1116_v1  ;;  %v108_v24 = vpack.c.bf16 %v64_v21, %v63_v18  ;;  %v109_v25 = vpack.c.bf16 %v66_v23, %v65_v22  ;;  %v35_v26 = vld [vmem:[%s1668_s0 + $0x50] sm:$0xff]  ;;  %v36_v27 = vld [vmem:[%s1668_s0 + $0x58] sm:$0xff]  ;;  %v37_v28 = vld [vmem:[%s1668_s0 + $0x60] sm:$0xff] }
   0x8   :  { %1045 = vmatprep.mubr.msk.bf16.mxu1 %vm137_vm0, %v107_v20  ;;  %v67_v29 = vld [vmem:[%s1668_s0 + $0x150] sm:$0xff]  ;;  %v68_v30 = vld [vmem:[%s1668_s0 + $0x158] sm:$0xff]  ;;  %v38_v31 = vld [vmem:[%s1668_s0 + $0x68] sm:$0xff]  ;;  %v94_v34 = vpack.c.bf16 %v36_v27, %v35_v26 }
   0x9   :  { %v69_v32 = vld [vmem:[%s1668_s0 + $0x160] sm:$0xff]  ;;  %v70_v33 = vld [vmem:[%s1668_s0 + $0x168] sm:$0xff]  ;;  %v110_v35 = vpack.c.bf16 %v68_v30, %v67_v29  ;;  %v95_v36 = vpack.c.bf16 %v38_v31, %v37_v28 }
   0xa   :  { %1010 = vmatmul.mubr.msk.bf16.vlgmr.msra.gmra.mxu0 %vm137_vm0, %v90_v9  ;;  %1046 = vmatmul.mubr.msk.bf16.vlgmr.msra.gmra.mxu1 %vm137_vm0, %v108_v24  ;;  %v111_v37 = vpack.c.bf16 %v70_v33, %v69_v32 }
   0xb   :  { %1013 = vmatprep.mubr.msk.bf16.mxu0 %vm137_vm0, %v91_v10  ;;  %1049 = vmatprep.mubr.msk.bf16.mxu1 %vm137_vm0, %v109_v25 }
  0x12   :  { %1014 = vmatmul.mubr.msk.bf16.gmra.mxu0 %vm137_vm0, %v92_v15 }
  0x13   :  { %1017 = vmatprep.mubr.msk.bf16.mxu0 %vm137_vm0, %v93_v19 }
  0x14   :  { %11 = vsyncpa [#allocation3], 0  ;;  %v39_v38 = vld [vmem:[%s1668_s0 + $0x70] sm:$0xff]  ;;  %v40_v39 = vld [vmem:[%s1668_s0 + $0x78] sm:$0xff]  ;;  %1050 = vmatmul.mubr.msk.bf16.gmra.mxu1 %vm137_vm0, %v110_v35  ;;  %v1139_v35 = vmov 0.0   ;;  %vm1140_vm1 = vmmov 0  }
  0x15   :  { %v41_v40 = vld [vmem:[%s1668_s0 + $0x80] sm:$0xff]  ;;  %1053 = vmatprep.mubr.msk.bf16.mxu1 %vm137_vm0, %v111_v37  ;;  %v71_v41 = vld [vmem:[%s1668_s0 + $0x170] sm:$0xff]  ;;  %v72_v42 = vld [vmem:[%s1668_s0 + $0x178] sm:$0xff]  ;;  %v96_v46 = vpack.c.bf16 %v40_v39, %v39_v38  ;;  %1073 = vmatprep.subr.mxu1 %v1139_v35  ;;  %vm806_vm2 = vcmask 1040384   ;;  %s1141_s11 = smov [#allocation2]   ;;  %vm901_vm3 = vcmask 74752  }
  0x16   :  { %v42_v43 = vld [vmem:[%s1668_s0 + $0x88] sm:$0xff]  ;;  %v73_v44 = vld [vmem:[%s1668_s0 + $0x180] sm:$0xff]  ;;  %v112_v47 = vpack.c.bf16 %v72_v42, %v71_v41  ;;  %v43_v50 = vld [vmem:[%s1668_s0 + $0x90] sm:$0xff]  ;;  %s909_s12 = sshll.u32 %s1141_s11, 4  ;;  %s910_s12 = int_to_ptr.vmem [resolvable:$true] %s909_s12 }
  0x17   :  { %v74_v45 = vld [vmem:[%s1668_s0 + $0x188] sm:$0xff]  ;;  %v97_v48 = vpack.c.bf16 %v42_v43, %v41_v40  ;;  %v44_v51 = vld [vmem:[%s1668_s0 + $0x98] sm:$0xff]  ;;  %v45_v52 = vld [vmem:[%s1668_s0 + $0xa0] sm:$0xff]  ;;  %s1117_s13 = scalar_lea.vmem %s910_s12, 32  ;;  %p1122_p1 = scmp.lt.s32.totalorder %s910_s12, %s910_s12 }
  0x18   :  { %v113_v49 = vpack.c.bf16 %v74_v45, %v73_v44  ;;  %v75_v53 = vld [vmem:[%s1668_s0 + $0x190] sm:$0xff]  ;;  %v76_v54 = vld [vmem:[%s1668_s0 + $0x198] sm:$0xff]  ;;  %v46_v55 = vld [vmem:[%s1668_s0 + $0xa8] sm:$0xff]  ;;  %v98_v58 = vpack.c.bf16 %v44_v51, %v43_v50  ;;  %p1118_p0 = scmp.ne.s32.totalorder %s910_s12, %s1117_s13  ;;  %p1123_p2 = scmp.lt.s32.totalorder %s1117_s13, %s1117_s13 }
  0x19   :  { %v77_v56 = vld [vmem:[%s1668_s0 + $0x1a0] sm:$0xff]  ;;  %v78_v57 = vld [vmem:[%s1668_s0 + $0x1a8] sm:$0xff]  ;;  %v114_v59 = vpack.c.bf16 %v76_v54, %v75_v53  ;;  %v99_v60 = vpack.c.bf16 %v46_v55, %v45_v52  ;;  %v47_v62 = vld [vmem:[%s1668_s0 + $0xb0] sm:$0xff] }
  0x1a   :  { %1018 = vmatmul.mubr.msk.bf16.gmra.mxu0 %vm137_vm0, %v94_v34  ;;  %v115_v61 = vpack.c.bf16 %v78_v57, %v77_v56  ;;  %v48_v63 = vld [vmem:[%s1668_s0 + $0xb8] sm:$0xff]  ;;  %v49_v0 = vld [vmem:[%s1668_s0 + $0xc0] sm:$0xff]  ;;  %v79_v1 = vld [vmem:[%s1668_s0 + $0x1b0] sm:$0xff]  ;;  %p1124_p3 = por %p1123_p2, %p1122_p1 }
  0x1b   :  { %1021 = vmatprep.mubr.msk.bf16.mxu0 %vm137_vm0, %v95_v36  ;;  %v80_v2 = vld [vmem:[%s1668_s0 + $0x1b8] sm:$0xff]  ;;  %v50_v3 = vld [vmem:[%s1668_s0 + $0xc8] sm:$0xff]  ;;  %v81_v4 = vld [vmem:[%s1668_s0 + $0x1c0] sm:$0xff]  ;;  %v100_v6 = vpack.c.bf16 %v48_v63, %v47_v62 }
  0x1c   :  { %1054 = vmatmul.mubr.msk.bf16.gmra.mxu1 %vm137_vm0, %v112_v47  ;;  %v82_v5 = vld [vmem:[%s1668_s0 + $0x1c8] sm:$0xff]  ;;  %v116_v7 = vpack.c.bf16 %v80_v2, %v79_v1  ;;  %v101_v8 = vpack.c.bf16 %v50_v3, %v49_v0  ;;  %v51_v10 = vld [vmem:[%s1668_s0 + $0xd0] sm:$0xff]  ;;  %v52_v11 = vld [vmem:[%s1668_s0 + $0xd8] sm:$0xff]  ;;  %p1125_p4 = pnand %p1124_p3, %p1118_p0 }
  0x1d   :  { %1057 = vmatprep.mubr.msk.bf16.mxu1 %vm137_vm0, %v113_v49  ;;  %v117_v9 = vpack.c.bf16 %v82_v5, %v81_v4  ;;  %v53_v12 = vld [vmem:[%s1668_s0 + $0xe0] sm:$0xff]  ;;  %v83_v13 = vld [vmem:[%s1668_s0 + $0x1d0] sm:$0xff]  ;;  %v84_v14 = vld [vmem:[%s1668_s0 + $0x1d8] sm:$0xff]  ;;  %v102_v18 = vpack.c.bf16 %v52_v11, %v51_v10 }
  0x1e   :  { %v54_v15 = vld [vmem:[%s1668_s0 + $0xe8] sm:$0xff]  ;;  %v85_v16 = vld [vmem:[%s1668_s0 + $0x1e0] sm:$0xff]  ;;  %v118_v19 = vpack.c.bf16 %v84_v14, %v83_v13  ;;  %v55_v22 = vld [vmem:[%s1668_s0 + $0xf0] sm:$0xff] }
  0x1f   :  { %v86_v17 = vld [vmem:[%s1668_s0 + $0x1e8] sm:$0xff]  ;;  %v103_v20 = vpack.c.bf16 %v54_v15, %v53_v12  ;;  %v56_v23 = vld [vmem:[%s1668_s0 + $0xf8] sm:$0xff]  ;;  %v87_v24 = vld [vmem:[%s1668_s0 + $0x1f0] sm:$0xff] }
  0x20   :  { %v119_v21 = vpack.c.bf16 %v86_v17, %v85_v16  ;;  %v88_v25 = vld [vmem:[%s1668_s0 + $0x1f8] sm:$0xff]  ;;  %v57_v26 = vld [vmem:[%s1668_s0 + $0x100] sm:$0xff]  ;;  %v58_v27 = vld [vmem:[%s1668_s0 + $0x108] sm:$0xff]  ;;  %v104_v28 = vpack.c.bf16 %v56_v23, %v55_v22 }
  0x21   :  { %v120_v29 = vpack.c.bf16 %v88_v25, %v87_v24  ;;  %v105_v30 = vpack.c.bf16 %v58_v27, %v57_v26  ;;  %v59_v31 = vld [vmem:[%s1668_s0 + $0x110] sm:$0xff]  ;;  %v60_v32 = vld [vmem:[%s1668_s0 + $0x118] sm:$0xff]  ;;  %v821_v37 = vld [vmem:[%s1672_s4 + $0x68] sm:$0xff] }
  0x22   :  { %1022 = vmatmul.mubr.msk.bf16.gmra.mxu0 %vm137_vm0, %v96_v46  ;;  %v106_v33 = vpack.c.bf16 %v60_v32, %v59_v31  ;;  %v823_v34 = vld [vmem:[%s1672_s4 + $0x78] sm:$0xff]  ;;  %v822_v36 = vld [vmem:[%s1672_s4 + $0x70] sm:$0xff]  ;;  %v820_v38 = vld [vmem:[%s1672_s4 + $0x60] sm:$0xff] }
  0x23   :  { %1025 = vmatprep.mubr.msk.bf16.mxu0 %vm137_vm0, %v97_v48  ;;  %1074 = vmatpush3.msra.mxu1 %v823_v34  ;;  %v819_v39 = vld [vmem:[%s1672_s4 + $0x58] sm:$0xff]  ;;  %v1431_v41 = vld [vmem:[%s1670_s2] ss:$0 sm:$0xff]  ;;  %v818_v44 = vld [vmem:[%s1672_s4 + $0x50] sm:$0xff] }
  0x24   :  { %1058 = vmatmul.mubr.msk.bf16.gmra.mxu1 %vm137_vm0, %v114_v59  ;;  %1075 = vmatprep.subr.mxu1 %v1139_v35  ;;  %v817_v45 = vld [vmem:[%s1672_s4 + $0x48] sm:$0xff]  ;;  %v1445_v48 = vld [vmem:[%s1671_s3] ss:$0 sm:$0xff]  ;;  %v814_v1 = vld [vmem:[%s1672_s4 + $0x30] sm:$0xff] }
  0x25   :  { %1061 = vmatprep.mubr.msk.bf16.mxu1 %vm137_vm0, %v115_v61  ;;  %1076 = vmatpush3.msra.mxu1 %v822_v36  ;;  %v816_v54 = vld [vmem:[%s1672_s4 + $0x40] sm:$0xff]  ;;  %v811_v15 = vld [vmem:[%s1672_s4 + $0x18] sm:$0xff] }
  0x26   :  { %1077 = vmatprep.subr.mxu1 %v1139_v35  ;;  %v812_v12 = vld [vmem:[%s1672_s4 + $0x20] sm:$0xff] }
  0x27   :  { %1078 = vmatpush3.msra.mxu1 %v821_v37  ;;  %v808_v34 = vld [vmem:[%s1672_s4] sm:$0xff] }
  0x28   :  { %1079 = vmatprep.subr.mxu1 %v1139_v35 }
  0x29   :  { %1080 = vmatpush3.msra.mxu1 %v820_v38 }
  0x2a   :  { %1026 = vmatmul.mubr.msk.bf16.gmra.mxu0 %vm137_vm0, %v98_v58  ;;  %1081 = vmatprep.subr.mxu1 %v1139_v35  ;;  %v815_v58 = vld [vmem:[%s1672_s4 + $0x38] sm:$0xff] }
  0x2b   :  { %1029 = vmatprep.mubr.msk.bf16.mxu0 %vm137_vm0, %v99_v60  ;;  %1082 = vmatpush3.msra.mxu1 %v819_v39 }
  0x2c   :  { %1062 = vmatmul.mubr.msk.bf16.gmra.mxu1 %vm137_vm0, %v116_v7  ;;  %1083 = vmatprep.subr.mxu1 %v1139_v35  ;;  %v813_v7 = vld [vmem:[%s1672_s4 + $0x28] sm:$0xff] }
  0x2d   :  { %1065 = vmatprep.mubr.msk.bf16.mxu1 %vm137_vm0, %v117_v9  ;;  %1084 = vmatpush3.msra.mxu1 %v818_v44 }
  0x2e   :  { %1085 = vmatprep.subr.mxu1 %v1139_v35 }
  0x2f   :  { %1086 = vmatpush3.msra.mxu1 %v817_v45 }
  0x30   :  { %1087 = vmatprep.subr.mxu1 %v1139_v35 }
  0x31   :  { %1088 = vmatpush3.msra.mxu1 %v816_v54 }
  0x32   :  { %1030 = vmatmul.mubr.msk.bf16.gmra.mxu0 %vm137_vm0, %v100_v6  ;;  %1089 = vmatprep.subr.mxu1 %v1139_v35 }
  0x33   :  { %1033 = vmatprep.mubr.msk.bf16.mxu0 %vm137_vm0, %v101_v8  ;;  %1090 = vmatpush3.msra.mxu1 %v815_v58 }
  0x34   :  { %1066 = vmatmul.mubr.msk.bf16.gmra.mxu1 %vm137_vm0, %v118_v19  ;;  %1091 = vmatprep.subr.mxu1 %v1139_v35 }
  0x35   :  { %1069 = vmatprep.mubr.msk.bf16.mxu1 %vm137_vm0, %v119_v21  ;;  %1092 = vmatpush3.msra.mxu1 %v814_v1  ;;  %v810_v21 = vld [vmem:[%s1672_s4 + $0x10] sm:$0xff] }
  0x36   :  { %1093 = vmatprep.subr.mxu1 %v1139_v35 }
  0x37   :  { %1094 = vmatpush3.msra.mxu1 %v813_v7 }
  0x38   :  { %1095 = vmatprep.subr.mxu1 %v1139_v35 }
  0x39   :  { %1096 = vmatpush3.msra.mxu1 %v812_v12 }
  0x3a   :  { %1034 = vmatmul.mubr.msk.bf16.gmra.mxu0 %vm137_vm0, %v102_v18  ;;  %1097 = vmatprep.subr.mxu1 %v1139_v35 }
  0x3b   :  { %1037 = vmatprep.mubr.msk.bf16.mxu0 %vm137_vm0, %v103_v20  ;;  %1098 = vmatpush3.msra.mxu1 %v811_v15 }
  0x3c   :  { %1070 = vmatmul.mubr.msk.bf16.gmra.mxu1 %vm137_vm0, %v120_v29  ;;  %1099 = vmatprep.subr.mxu1 %v1139_v35 }
  0x3d   :  { %1105 = vmatprep.mubr.msk.f32.mxu1 %vm1140_vm1, %v1139_v35  ;;  %1100 = vmatpush3.msra.mxu1 %v810_v21 }
  0x3e   :  { %1101 = vmatprep.subr.mxu1 %v1139_v35 }
  0x42   :  { %1038 = vmatmul.mubr.msk.bf16.gmra.mxu0 %vm137_vm0, %v104_v28  ;;  %v809_v28 = vld [vmem:[%s1672_s4 + $0x8] sm:$0xff] }
  0x43   :  { %1041 = vmatprep.mubr.msk.bf16.mxu0 %vm137_vm0, %v105_v30  ;;  %1102 = vmatpush3.msra.mxu1 %v809_v28 }
  0x44   :  { %1103 = vmatprep.subr.mxu1 %v1139_v35 }
  0x45   :  { %1104 = vmatpush3.msra.mxu1 %v808_v34 }
  0x4a   :  { %1042 = vmatmul.mubr.msk.bf16.gmra.mxu0 %vm137_vm0, %v106_v33 }
  0xca   :  { %v1011_v40 = vpop.f32.mrf.mxu0  ;;  %v1462_v0 = vpop.f32.mrf.mxu1 }
  0xcb   :  { %v532_v47 = vmul.f32 %v1011_v40, %v1431_v41 }
  0xcc   :  { %v268_v42 = vpop.f32.mrf.mxu0  ;;  %v1479_v14 = vpop.f32.mrf.mxu1 }
  0xcd   :  { %v530_v43 = vmul.f32 %v1431_v41, %v268_v42  ;;  %v603_v55 = vadd.f32 %v1445_v48, %v532_v47 }
  0xce   :  { %v1012_v46 = vpop.f32.mrf.mxu0  ;;  %v1494_v27 = vpop.f32.mrf.mxu1 }
  0xcf   :  { %v601_v50 = vadd.f32 %v1445_v48, %v530_v43  ;;  %v533_v51 = vmul.f32 %v1012_v46, %v1431_v41  ;;  %v667_v2 = vmax.f32 %v603_v55, 0.0 }
  0xd0   :  { %v271_v49 = vpop.f32.mrf.mxu0  ;;  %v1508_v42 = vpop.f32.mrf.mxu1 }
  0xd1   :  { %v531_v52 = vmul.f32 %v1431_v41, %v271_v49  ;;  %v665_v59 = vmax.f32 %v601_v50, 0.0  ;;  %v604_v60 = vadd.f32 %v1445_v48, %v533_v51 }
  0xd2   :  { %v1015_v53 = vpop.f32.mrf.mxu0 }
  0xd3   :  { %v602_v56 = vadd.f32 %v1445_v48, %v531_v52  ;;  %v536_v4 = vmul.f32 %v1015_v53, %v1431_v41  ;;  %v668_v8 = vmax.f32 %v604_v60, 0.0 }
  0xd4   :  { %v284_v57 = vpop.f32.mrf.mxu0  ;;  %v1515_v54 = vpop.f32.mrf.mxu1 }
  0xd5   :  { %v666_v61 = vmax.f32 %v602_v56, 0.0  ;;  %v534_v62 = vmul.f32 %v1431_v41, %v284_v57  ;;  %v607_v16 = vadd.f32 %v1445_v48, %v536_v4 }
  0xd6   :  { %v1016_v63 = vpop.f32.mrf.mxu0  ;;  %v1521_v1 = vpop.f32.mrf.mxu1 }
  0xd7   :  { %v729_v3 = vadd.f32 %v666_v61, %v665_v59  ;;  %v605_v5 = vadd.f32 %v1445_v48, %v534_v62  ;;  %v537_v10 = vmul.f32 %v1016_v63, %v1431_v41  ;;  %v671_v29 = vmax.f32 %v607_v16, 0.0 }
  0xd8   :  { %v287_v6 = vpop.f32.mrf.mxu0  ;;  %v1527_v12 = vpop.f32.mrf.mxu1 }
  0xd9   :  { %v730_v9 = vadd.f32 %v729_v3, %v667_v2  ;;  %v535_v11 = vmul.f32 %v1431_v41, %v287_v6  ;;  %v669_v17 = vmax.f32 %v605_v5, 0.0  ;;  %v608_v23 = vadd.f32 %v1445_v48, %v537_v10 }
  0xda   :  { %v1019_v13 = vpop.f32.mrf.mxu0 }
  0xdb   :  { %v731_v18 = vadd.f32 %v730_v9, %v668_v8  ;;  %v606_v19 = vadd.f32 %v1445_v48, %v535_v11  ;;  %v540_v31 = vmul.f32 %v1019_v13, %v1431_v41  ;;  %v672_v36 = vmax.f32 %v608_v23, 0.0 }
  0xdc   :  { %v300_v20 = vpop.f32.mrf.mxu0 }
  0xdd   :  { %v732_v22 = vadd.f32 %v731_v18, %v669_v17  ;;  %v670_v24 = vmax.f32 %v606_v19, 0.0  ;;  %v538_v25 = vmul.f32 %v1431_v41, %v300_v20  ;;  %v611_v43 = vadd.f32 %v1445_v48, %v540_v31 }
  0xde   :  { %v1020_v26 = vpop.f32.mrf.mxu0 }
  0xdf   :  { %v733_v30 = vadd.f32 %v732_v22, %v670_v24  ;;  %v609_v32 = vadd.f32 %v1445_v48, %v538_v25  ;;  %v541_v38 = vmul.f32 %v1020_v26, %v1431_v41  ;;  %v675_v55 = vmax.f32 %v611_v43, 0.0  ;;  %v1533_v24 = vpop.f32.mrf.mxu1 }
  0xe0   :  { %v303_v33 = vpop.f32.mrf.mxu0 }
  0xe1   :  { %v734_v37 = vadd.f32 %v733_v30, %v671_v29  ;;  %v539_v39 = vmul.f32 %v1431_v41, %v303_v33  ;;  %v673_v44 = vmax.f32 %v609_v32, 0.0  ;;  %v612_v50 = vadd.f32 %v1445_v48, %v541_v38 }
  0xe2   :  { %v1023_v40 = vpop.f32.mrf.mxu0 }
  0xe3   :  { %v735_v45 = vadd.f32 %v734_v37, %v672_v36  ;;  %v610_v46 = vadd.f32 %v1445_v48, %v539_v39  ;;  %v544_v35 = vmul.f32 %v1023_v40, %v1431_v41  ;;  %v676_v59 = vmax.f32 %v612_v50, 0.0  ;;  %v1539_v37 = vpop.f32.mrf.mxu1 }
  0xe4   :  { %v316_v47 = vpop.f32.mrf.mxu0 }
  0xe5   :  { %v736_v49 = vadd.f32 %v735_v45, %v673_v44  ;;  %v674_v51 = vmax.f32 %v610_v46, 0.0  ;;  %v542_v52 = vmul.f32 %v1431_v41, %v316_v47  ;;  %v615_v2 = vadd.f32 %v1445_v48, %v544_v35 }
  0xe6   :  { %v1024_v53 = vpop.f32.mrf.mxu0 }
  0xe7   :  { %v737_v56 = vadd.f32 %v736_v49, %v674_v51  ;;  %v613_v57 = vadd.f32 %v1445_v48, %v542_v52  ;;  %v545_v61 = vmul.f32 %v1024_v53, %v1431_v41  ;;  %v679_v13 = vmax.f32 %v615_v2, 0.0  ;;  %v1545_v51 = vpop.f32.mrf.mxu1 }
  0xe8   :  { %v319_v58 = vpop.f32.mrf.mxu0 }
  0xe9   :  { %v738_v60 = vadd.f32 %v737_v56, %v675_v55  ;;  %v543_v62 = vmul.f32 %v1431_v41, %v319_v58  ;;  %v677_v3 = vmax.f32 %v613_v57, 0.0  ;;  %v616_v8 = vadd.f32 %v1445_v48, %v545_v61 }
  0xea   :  { %v1027_v63 = vpop.f32.mrf.mxu0 }
  0xeb   :  { %v739_v4 = vadd.f32 %v738_v60, %v676_v59  ;;  %v614_v5 = vadd.f32 %v1445_v48, %v543_v62  ;;  %v548_v16 = vmul.f32 %v1027_v63, %v1431_v41  ;;  %v680_v19 = vmax.f32 %v616_v8, 0.0  ;;  %v1551_v62 = vpop.f32.mrf.mxu1 }
  0xec   :  { %v332_v6 = vpop.f32.mrf.mxu0 }
  0xed   :  { %v740_v7 = vadd.f32 %v739_v4, %v677_v3  ;;  %v678_v9 = vmax.f32 %v614_v5, 0.0  ;;  %v546_v10 = vmul.f32 %v1431_v41, %v332_v6  ;;  %v619_v25 = vadd.f32 %v1445_v48, %v548_v16 }
  0xee   :  { %v1028_v11 = vpop.f32.mrf.mxu0 }
  0xef   :  { %v741_v15 = vadd.f32 %v740_v7, %v678_v9  ;;  %v617_v17 = vadd.f32 %v1445_v48, %v546_v10  ;;  %v549_v21 = vmul.f32 %v1028_v11, %v1431_v41  ;;  %v683_v38 = vmax.f32 %v619_v25, 0.0  ;;  %v1557_v11 = vpop.f32.mrf.mxu1 }
  0xf0   :  { %v335_v18 = vpop.f32.mrf.mxu0 }
  0xf1   :  { %v742_v20 = vadd.f32 %v741_v15, %v679_v13  ;;  %v547_v22 = vmul.f32 %v1431_v41, %v335_v18  ;;  %v681_v26 = vmax.f32 %v617_v17, 0.0  ;;  %v620_v32 = vadd.f32 %v1445_v48, %v549_v21  ;;  %v1563_v25 = vpop.f32.mrf.mxu1 }
  0xf2   :  { %v1031_v23 = vpop.f32.mrf.mxu0 }
  0xf3   :  { %v743_v28 = vadd.f32 %v742_v20, %v680_v19  ;;  %v618_v29 = vadd.f32 %v1445_v48, %v547_v22  ;;  %v552_v40 = vmul.f32 %v1031_v23, %v1431_v41  ;;  %v684_v45 = vmax.f32 %v620_v32, 0.0 }
  0xf4   :  { %v348_v30 = vpop.f32.mrf.mxu0 }
  0xf5   :  { %v744_v31 = vadd.f32 %v743_v28, %v681_v26  ;;  %v682_v33 = vmax.f32 %v618_v29, 0.0  ;;  %v550_v34 = vmul.f32 %v1431_v41, %v348_v30  ;;  %v623_v52 = vadd.f32 %v1445_v48, %v552_v40 }
  0xf6   :  { %v1032_v36 = vpop.f32.mrf.mxu0 }
  0xf7   :  { %v745_v39 = vadd.f32 %v744_v31, %v682_v33  ;;  %v621_v43 = vadd.f32 %v1445_v48, %v550_v34  ;;  %v553_v47 = vmul.f32 %v1032_v36, %v1431_v41  ;;  %v687_v63 = vmax.f32 %v623_v52, 0.0 }
  0xf8   :  { %v351_v44 = vpop.f32.mrf.mxu0 }
  0xf9   :  { %v746_v46 = vadd.f32 %v745_v39, %v683_v38  ;;  %v551_v49 = vmul.f32 %v1431_v41, %v351_v44  ;;  %v685_v53 = vmax.f32 %v621_v43, 0.0  ;;  %v624_v58 = vadd.f32 %v1445_v48, %v553_v47  ;;  %v1569_v39 = vpop.f32.mrf.mxu1 }
  0xfa   :  { %v1035_v50 = vpop.f32.mrf.mxu0 }
  0xfb   :  { %v747_v55 = vadd.f32 %v746_v46, %v684_v45  ;;  %v622_v56 = vadd.f32 %v1445_v48, %v551_v49  ;;  %v556_v3 = vmul.f32 %v1035_v50, %v1431_v41  ;;  %v688_v6 = vmax.f32 %v624_v58, 0.0 }
  0xfc   :  { %v364_v35 = vpop.f32.mrf.mxu0 }
  0xfd   :  { %v748_v57 = vadd.f32 %v747_v55, %v685_v53  ;;  %v686_v59 = vmax.f32 %v622_v56, 0.0  ;;  %v554_v60 = vmul.f32 %v1431_v41, %v364_v35  ;;  %v627_v13 = vadd.f32 %v1445_v48, %v556_v3  ;;  %v1575_v55 = vpop.f32.mrf.mxu1 }
  0xfe   :  { %v1036_v61 = vpop.f32.mrf.mxu0 }
  0xff   :  { %v749_v2 = vadd.f32 %v748_v57, %v686_v59  ;;  %v625_v4 = vadd.f32 %v1445_v48, %v554_v60  ;;  %v557_v8 = vmul.f32 %v1036_v61, %v1431_v41  ;;  %v691_v26 = vmax.f32 %v627_v13, 0.0  ;;  %v463_v3 = vpop.f32.mrf.mxu1 }
 0x100   :  { %v367_v5 = vpop.f32.mrf.mxu0  ;;  %v567_v13 = vmul.f32 %v1431_v41, %v1508_v42 }
 0x101   :  { %v750_v7 = vadd.f32 %v749_v2, %v687_v63  ;;  %v555_v9 = vmul.f32 %v1431_v41, %v367_v5  ;;  %v689_v15 = vmax.f32 %v625_v4, 0.0  ;;  %v628_v20 = vadd.f32 %v1445_v48, %v557_v8 }
 0x102   :  { %v1039_v10 = vpop.f32.mrf.mxu0 }
 0x103   :  { %v751_v16 = vadd.f32 %v750_v7, %v688_v6  ;;  %v626_v17 = vadd.f32 %v1445_v48, %v555_v9  ;;  %v560_v29 = vmul.f32 %v1039_v10, %v1431_v41  ;;  %v692_v33 = vmax.f32 %v628_v20, 0.0 }
 0x104   :  { %v380_v18 = vpop.f32.mrf.mxu0  ;;  %v566_v6 = vmul.f32 %v1431_v41, %v1479_v14 }
 0x105   :  { %v752_v19 = vadd.f32 %v751_v16, %v689_v15  ;;  %v690_v21 = vmax.f32 %v626_v17, 0.0  ;;  %v558_v22 = vmul.f32 %v1431_v41, %v380_v18  ;;  %v631_v40 = vadd.f32 %v1445_v48, %v560_v29  ;;  %v1590_v15 = vpop.f32.mrf.mxu1 }
 0x106   :  { %v1040_v23 = vpop.f32.mrf.mxu0  ;;  %v568_v17 = vmul.f32 %v1462_v0, %v1431_v41  ;;  %v637_v18 = vadd.f32 %v1445_v48, %v566_v6  ;;  %v570_v29 = vmul.f32 %v1431_v41, %v1521_v1  ;;  %v573_v1 = vmul.f32 %v1527_v12, %v1431_v41 }
 0x107   :  { %v753_v28 = vadd.f32 %v752_v19, %v690_v21  ;;  %v629_v30 = vadd.f32 %v1445_v48, %v558_v22  ;;  %v561_v31 = vmul.f32 %v1040_v23, %v1431_v41  ;;  %v695_v56 = vmax.f32 %v631_v40, 0.0  ;;  %v476_v23 = vpop.f32.mrf.mxu1 }
 0x108   :  { %v383_v32 = vpop.f32.mrf.mxu0  ;;  %v569_v21 = vmul.f32 %v1494_v27, %v1431_v41  ;;  %v638_v22 = vadd.f32 %v1445_v48, %v567_v13  ;;  %v701_v42 = vmax.f32 %v637_v18, 0.0  ;;  %v578_v6 = vmul.f32 %v1431_v41, %v1569_v39 }
 0x109   :  { %v754_v34 = vadd.f32 %v753_v28, %v691_v26  ;;  %v559_v36 = vmul.f32 %v1431_v41, %v383_v32  ;;  %v693_v43 = vmax.f32 %v629_v30, 0.0  ;;  %v632_v46 = vadd.f32 %v1445_v48, %v561_v31 }
 0x10a   :  { %v1043_v38 = vpop.f32.mrf.mxu0  ;;  %v639_v26 = vadd.f32 %v1445_v48, %v568_v17  ;;  %v640_v0 = vadd.f32 %v1445_v48, %v569_v21  ;;  %v702_v30 = vmax.f32 %v638_v22, 0.0  ;;  %v571_v32 = vmul.f32 %v1431_v41, %v1533_v24 }
 0x10b   :  { %v755_v44 = vadd.f32 %v754_v34, %v692_v33  ;;  %v630_v45 = vadd.f32 %v1445_v48, %v559_v36  ;;  %v564_v57 = vmul.f32 %v1043_v38, %v1431_v41  ;;  %v696_v58 = vmax.f32 %v632_v46, 0.0  ;;  %v1064_v33 = vpop.f32.mrf.mxu1 }
 0x10c   :  { %v396_v47 = vpop.f32.mrf.mxu0  ;;  %v703_v34 = vmax.f32 %v639_v26, 0.0  ;;  %v572_v36 = vmul.f32 %v1515_v54, %v1431_v41  ;;  %v641_v38 = vadd.f32 %v1445_v48, %v570_v29  ;;  %v704_v40 = vmax.f32 %v640_v0, 0.0 }
 0x10d   :  { %v756_v49 = vadd.f32 %v755_v44, %v693_v43  ;;  %v694_v50 = vmax.f32 %v630_v45, 0.0  ;;  %v562_v52 = vmul.f32 %v1431_v41, %v396_v47  ;;  %v635_v5 = vadd.f32 %v1445_v48, %v564_v57  ;;  %v479_v45 = vpop.f32.mrf.mxu1 }
 0x10e   :  { %v1044_v53 = vpop.f32.mrf.mxu0  ;;  %v642_v44 = vadd.f32 %v1445_v48, %v571_v32  ;;  %v643_v46 = vadd.f32 %v1445_v48, %v572_v36  ;;  %v705_v47 = vmax.f32 %v641_v38, 0.0  ;;  %v644_v54 = vadd.f32 %v1445_v48, %v573_v1 }
 0x10f   :  { %v757_v35 = vadd.f32 %v756_v49, %v694_v50  ;;  %v633_v61 = vadd.f32 %v1445_v48, %v562_v52  ;;  %v565_v63 = vmul.f32 %v1044_v53, %v1431_v41  ;;  %v699_v16 = vmax.f32 %v635_v5, 0.0 }
 0x110   :  { %v399_v59 = vpop.f32.mrf.mxu0  ;;  %v574_v49 = vmul.f32 %v1431_v41, %v1545_v51  ;;  %v706_v52 = vmax.f32 %v642_v44, 0.0  ;;  %v575_v53 = vmul.f32 %v1431_v41, %v1557_v11  ;;  %v576_v57 = vmul.f32 %v1539_v37, %v1431_v41 }
 0x111   :  { %v758_v60 = vadd.f32 %v757_v35, %v695_v56  ;;  %v563_v2 = vmul.f32 %v1431_v41, %v399_v59  ;;  %v697_v8 = vmax.f32 %v633_v61, 0.0  ;;  %v636_v9 = vadd.f32 %v1445_v48, %v565_v63  ;;  %v1067_v56 = vpop.f32.mrf.mxu1 }
 0x112   :  { %v707_v35 = vmax.f32 %v643_v46, 0.0  ;;  %v708_v59 = vmax.f32 %v644_v54, 0.0  ;;  %v577_v51 = vmul.f32 %v1551_v62, %v1431_v41  ;;  %v646_v61 = vadd.f32 %v1445_v48, %v575_v53 }
 0x113   :  { %v1581_v4 = vadd.f32 %v758_v60, %v696_v58  ;;  %v634_v7 = vadd.f32 %v1445_v48, %v563_v2  ;;  %v700_v20 = vmax.f32 %v636_v9, 0.0  ;;  %v645_v58 = vadd.f32 %v1445_v48, %v574_v49  ;;  %v492_v63 = vpop.f32.mrf.mxu1 }
 0x114   :  { %v647_v2 = vadd.f32 %v1445_v48, %v576_v57  ;;  %v648_v37 = vadd.f32 %v1445_v48, %v577_v51  ;;  %v579_v9 = vmul.f32 %v1431_v41, %v463_v3  ;;  %v580_v62 = vmul.f32 %v1563_v25, %v1431_v41 }
 0x115   :  { %v698_v10 = vmax.f32 %v634_v7, 0.0  ;;  %v709_v5 = vmax.f32 %v645_v58, 0.0  ;;  %v649_v17 = vadd.f32 %v1445_v48, %v578_v6  ;;  %v582_v26 = vmul.f32 %v1431_v41, %v476_v23 }
 0x116   :  { %v711_v13 = vmax.f32 %v647_v2, 0.0  ;;  %v712_v18 = vmax.f32 %v648_v37, 0.0  ;;  %v650_v39 = vadd.f32 %v1445_v48, %v579_v9  ;;  %v651_v21 = vadd.f32 %v1445_v48, %v580_v62 }
 0x117   :  { %v768_v19 = vadd.f32 %v698_v10, %v697_v8  ;;  %v710_v8 = vmax.f32 %v646_v61, 0.0  ;;  %v1068_v10 = vpop.f32.mrf.mxu1  ;;  %v713_v22 = vmax.f32 %v649_v17, 0.0  ;;  %v583_v29 = vmul.f32 %v1431_v41, %v479_v45 }
 0x118   :  { %v714_v25 = vmax.f32 %v650_v39, 0.0  ;;  %v653_v32 = vadd.f32 %v1445_v48, %v582_v26  ;;  %v585_v36 = vmul.f32 %v1064_v33, %v1431_v41  ;;  %v586_v44 = vmul.f32 %v1431_v41, %v492_v63 }
 0x119   :  { %v769_v14 = vadd.f32 %v768_v19, %v699_v16  ;;  %v654_v23 = vadd.f32 %v1445_v48, %v583_v29  ;;  %v588_v33 = vmul.f32 %v1067_v56, %v1431_v41 }
 0x11a   :  { %v656_v46 = vadd.f32 %v1445_v48, %v585_v36  ;;  %v657_v54 = vadd.f32 %v1445_v48, %v586_v44 }
 0x11b   :  { %v770_v28 = vadd.f32 %v769_v14, %v700_v20  ;;  %v581_v20 = vmul.f32 %v1575_v55, %v1431_v41  ;;  %v495_v14 = vpop.f32.mrf.mxu1  ;;  %v584_v55 = vmul.f32 %v1590_v15, %v1431_v41  ;;  %v659_v58 = vadd.f32 %v1445_v48, %v588_v33 }
 0x11c   :  { %v587_v15 = vmul.f32 %v1431_v41, %v495_v14  ;;  %v720_v53 = vmax.f32 %v656_v46, 0.0 }
 0x11d   :  { %v771_v31 = vadd.f32 %v770_v28, %v701_v42  ;;  %v652_v28 = vadd.f32 %v1445_v48, %v581_v20  ;;  %v1071_v0 = vpop.f32.mrf.mxu1 }
 0x11e   :  { %v592_v6 = vmul.f32 %v1071_v0, %v1431_v41 }
 0x11f   :  { %v772_v27 = vadd.f32 %v771_v31, %v702_v30  ;;  %v715_v30 = vmax.f32 %v651_v21, 0.0  ;;  %v508_v38 = vpop.f32.mrf.mxu1 }
 0x120   :  { %v590_v51 = vmul.f32 %v1431_v41, %v508_v38 }
 0x121   :  { %v773_v43 = vadd.f32 %v772_v27, %v703_v34  ;;  %v716_v34 = vmax.f32 %v652_v28, 0.0 }
 0x123   :  { %v774_v24 = vadd.f32 %v773_v43, %v704_v40  ;;  %v655_v40 = vadd.f32 %v1445_v48, %v584_v55  ;;  %v717_v43 = vmax.f32 %v653_v32, 0.0 }
 0x125   :  { %v775_v50 = vadd.f32 %v774_v24, %v705_v47  ;;  %v718_v47 = vmax.f32 %v654_v23, 0.0  ;;  %v1072_v24 = vpop.f32.mrf.mxu1  ;;  %v719_v49 = vmax.f32 %v655_v40, 0.0 }
 0x127   :  { %v776_v12 = vadd.f32 %v775_v50, %v706_v52  ;;  %v589_v52 = vmul.f32 %v1068_v10, %v1431_v41  ;;  %v511_v57 = vpop.f32.mrf.mxu1  ;;  %v593_v10 = vmul.f32 %v1072_v24, %v1431_v41 }
 0x128   :  { %v591_v56 = vmul.f32 %v1431_v41, %v511_v57 }
 0x129   :  { %v777_v60 = vadd.f32 %v776_v12, %v707_v35  ;;  %v658_v12 = vadd.f32 %v1445_v48, %v587_v15  ;;  %v660_v61 = vadd.f32 %v1445_v48, %v589_v52  ;;  %v664_v20 = vadd.f32 %v1445_v48, %v593_v10 }
 0x12b   :  { %v778_v11 = vadd.f32 %v777_v60, %v708_v59  ;;  %v721_v59 = vmax.f32 %v657_v54, 0.0  ;;  %v722_v2 = vmax.f32 %v658_v12, 0.0  ;;  %v724_v37 = vmax.f32 %v660_v61, 0.0 }
 0x12d   :  { %v779_v7 = vadd.f32 %v778_v11, %v709_v5  ;;  %v723_v5 = vmax.f32 %v659_v58, 0.0 }
 0x12f   :  { %v780_v16 = vadd.f32 %v779_v7, %v710_v8  ;;  %v661_v7 = vadd.f32 %v1445_v48, %v590_v51  ;;  %v760_v8 = vrot.slane %v1581_v4, 4 }
 0x131   :  { %v781_v19 = vadd.f32 %v780_v16, %v711_v13  ;;  %v662_v13 = vadd.f32 %v1445_v48, %v591_v56  ;;  %v663_v16 = vadd.f32 %v1445_v48, %v592_v6  ;;  %v725_v62 = vmax.f32 %v661_v7, 0.0 }
 0x133   :  { %v782_v3 = vadd.f32 %v781_v19, %v712_v18  ;;  %v761_v18 = vadd.f32 %v760_v8, %v1581_v4  ;;  %v726_v39 = vmax.f32 %v662_v13, 0.0  ;;  %v727_v14 = vmax.f32 %v663_v16, 0.0 }
 0x135   :  { %v783_v42 = vadd.f32 %v782_v3, %v713_v22  ;;  %v762_v22 = vrot.slane %v761_v18, 2  ;;  %v728_v3 = vmax.f32 %v664_v20, 0.0 }
 0x137   :  { %v784_v31 = vadd.f32 %v783_v42, %v714_v25  ;;  %v763_v41 = vadd.f32 %v762_v22, %v761_v18 }
 0x139   :  { %v785_v27 = vadd.f32 %v784_v31, %v715_v30  ;;  %v764_v0 = vrot.slane %v763_v41, 1 }
 0x13b   :  { %v786_v1 = vadd.f32 %v785_v27, %v716_v34  ;;  %v765_v31 = vadd.f32 %v764_v0, %v763_v41  ;;  %v953_v27 = vld [vmem:[%s1673_s5] ss:$0 sm:$0xff] }
 0x13d   :  { %v787_v45 = vadd.f32 %v786_v1, %v717_v43  ;;  %v767_v4 = vmul.f32 0.00390625, %v765_v31 }
 0x13f   :  { %v788_v50 = vadd.f32 %v787_v45, %v718_v47 }
 0x141   :  { %v789_v35 = vadd.f32 %v788_v50, %v719_v49 }
 0x143   :  { %v790_v60 = vadd.f32 %v789_v35, %v720_v53 }
 0x145   :  { %v791_v63 = vadd.f32 %v790_v60, %v721_v59 }
 0x147   :  { %v792_v11 = vadd.f32 %v791_v63, %v722_v2 }
 0x149   :  { %v793_v9 = vadd.f32 %v792_v11, %v723_v5 }
 0x14b   :  { %v794_v17 = vadd.f32 %v793_v9, %v724_v37 }
 0x14d   :  { %v795_v19 = vadd.f32 %v794_v17, %v725_v62 }
 0x14f   :  { %v796_v21 = vadd.f32 %v795_v19, %v726_v39 }
 0x151   :  { %v797_v26 = vadd.f32 %v796_v21, %v727_v14 }
 0x153   :  { %v798_v42 = vadd.f32 %v797_v26, %v728_v3 }
 0x155   :  { %v799_v28 = vrot.slane %v798_v42, 4 }
 0x157   :  { %v800_v25 = vadd.f32 %v799_v28, %v798_v42 }
 0x159   :  { %v801_v29 = vrot.slane %v800_v25, 2 }
 0x15b   :  { %v802_v30 = vadd.f32 %v801_v29, %v800_v25 }
 0x15d   :  { %v803_v55 = vrot.slane %v802_v30, 1 }
 0x15f   :  { %v804_v32 = vadd.f32 %v803_v55, %v802_v30 }
 0x161   :  { %v805_v34 = vmul.f32 0.00390625, %v804_v32 }
 0x163   :  { %v807_v48 = vsel %vm806_vm2, %v767_v4, %v805_v34 }
 0x164   :  { %1106 = vmatmul.mubr.f32.vlgmr.msra.gmra.mxu1 %v807_v48 }
 0x224   :  { %v897_v36 = vpop.f32.mrf.mxu1 }
 0x225   :  { %v898_v23 = vadd.f32 %v953_v27, %v897_v36 }
 0x226   :  { %v1107_v38 = vpop.f32.mrf.mxu1 }
 0x227   :  { %902 = vst.msk [vmem:[#allocation2] sm:$0x3] %vm901_vm3, %v898_v23 }
 0x228   :  { %1128 = shalt.err (!%p1125_p4)
}
 0x229   :  { %912 = dma.vmem_to_hbm [thread:$0]  %s910_s12, 32, %s1674_s6, [#allocation3]  }
 0x22a   :  { %1137 = dma.done.wait [#allocation3], 32  }
 0x22b   :  { %1138 = vsyncadd [#allocation3], 4294967264 }
 0x22c   :  { %916 = vsyncpa [#allocation3], 1 }

// kernel: network_forward.4
= control target key start
LH: loop header
LB: loop body
LE: loop exit
PB: predicated region body
PF: predicated region fallthrough
CT: control target
= control target key end

     0   :  { %s2907_s15 = smov 0   ;;  %s4520_s0 = inlined_call_operand.vmem [shape: f32[2,16,16,4], index: 0, kind: input, shape index: {}]   ;;  %s4521_s1 = inlined_call_operand.vmem [shape: bf16[36,32], index: 1, kind: input, shape index: {}]   ;;  %s4522_s2 = inlined_call_operand.vmem [shape: f32[1,32], index: 2, kind: input, shape index: {}]   ;;  %s4523_s3 = inlined_call_operand.vmem [shape: f32[1,32], index: 3, kind: input, shape index: {}]   ;;  %s4524_s4 = inlined_call_operand.vmem [shape: f32[2,16,16,32], index: 4, kind: output, shape index: {}]  }
   0x1 LB: > { %s2088_s16 = sadd.s32 4294967295, %s2871_s15   ;;  %p2092_p0 = scmp.ge.s32.totalorder %s2871_s15, 1  ;;  %s2871_s15 = sphi %s2907_s15, %s14_s15  }
   0x2   : > { %p162_p1 = scmp.lt.s32.totalorder %s2871_s15, 3 }
   0x4   : > { %p163_p2 = pnand %p2092_p0, %p162_p1 }
   0x6   : > { %166 = sbr.rel (%p163_p2) target bundleno = 633 (0x279), region = 36 }
   0xb   : > { %vm231_vm0 = vcmask 31744   ;;  %vm234_vm1 = vcmask 25600   ;;  %p2917_p3 = scmp.lt.s32.totalorder %s2088_s16, 1  ;;  %v2873_v0 = vmov 0.0   ;;  %vm422_vm2 = vcmask 1046528   ;;  %s2874_s22 = smov 4  }
   0xc   : > { %232 = vst.msk [vmem:[#allocation2] sm:$0xff] %vm231_vm0, %v2873_v0  ;;  %233 = vst.msk [vmem:[#allocation2 + $0x8] sm:$0xff] %vm231_vm0, %v2873_v0  ;;  %vm503_vm3 = vcmask 1045504   ;;  %s2875_s23 = smov 8   ;;  %s2876_s24 = smov 12   ;;  %vm1726_vm4 = vcmask 1041408  }
   0xd   : > { %235 = vst.msk [vmem:[#allocation2 + $0x10] sm:$0x3] %vm234_vm1, %v2873_v0  ;;  %238 = vst.msk [vmem:[#allocation2 + $0x28] sm:$0x3] %vm234_vm1, %v2873_v0  ;;  %s4688_s16 = smov (!%p2917_p3, %s2088_s16), 1  ;;  %s2877_s25 = smov 16  }
   0xe   : > { %236 = vst.msk [vmem:[#allocation2 + $0x18] sm:$0xff] %vm231_vm0, %v2873_v0  ;;  %237 = vst.msk [vmem:[#allocation2 + $0x20] sm:$0xff] %vm231_vm0, %v2873_v0  ;;  %s2120_s18 = sshll.u32 %s4688_s16, 8  ;;  %s2878_s26 = smov 20   ;;  %vm1410_vm5 = vcmask 64512   ;;  %vm1443_vm6 = vcmask 97280  }
   0xf   : > { %239 = vst.msk [vmem:[#allocation2 + $0x30] sm:$0xff] %vm231_vm0, %v2873_v0  ;;  %240 = vst.msk [vmem:[#allocation2 + $0x38] sm:$0xff] %vm231_vm0, %v2873_v0  ;;  %s2987_s21 = scalar_lea.vmem %s4520_s0, %s2120_s18  ;;  %s2879_s27 = smov 24   ;;  %vm1476_vm7 = vcmask 130048   ;;  %vm1509_vm8 = vcmask 162816   ;;  %vm1542_vm9 = vcmask 195584  }
  0x10   : > { %241 = vst.msk [vmem:[#allocation2 + $0x40] sm:$0x3] %vm234_vm1, %v2873_v0  ;;  %244 = vst.msk [vmem:[#allocation2 + $0x58] sm:$0x3] %vm234_vm1, %v2873_v0  ;;  %v201_v1 = vld [vmem:[%s2987_s21 + $0x10] sm:$0xff]  ;;  %v202_v2 = vld [vmem:[%s2987_s21 + $0x18] sm:$0xff]  ;;  %s4391_s19 = scalar_lea.vmem %s4524_s4, %s2120_s18 }
  0x11   : > { %242 = vst.msk [vmem:[#allocation2 + $0x48] sm:$0xff] %vm231_vm0, %v2873_v0  ;;  %243 = vst.msk [vmem:[#allocation2 + $0x50] sm:$0xff] %vm231_vm0, %v2873_v0  ;;  %v199_v3 = vld [vmem:[%s2987_s21] sm:$0xff]  ;;  %v200_v4 = vld [vmem:[%s2987_s21 + $0x8] sm:$0xff]  ;;  %s2880_s6 = smov 28   ;;  %s2881_s9 = smov 32  }
  0x12   : > { %245 = vst.msk [vmem:[#allocation2 + $0x60] sm:$0xff] %vm231_vm0, %v2873_v0  ;;  %246 = vst.msk [vmem:[#allocation2 + $0x68] sm:$0xff] %vm231_vm0, %v2873_v0  ;;  %v203_v5 = vld [vmem:[%s2987_s21 + $0x20] sm:$0xff]  ;;  %v204_v6 = vld [vmem:[%s2987_s21 + $0x28] sm:$0xff]  ;;  %vm1575_vm10 = vcmask 228352   ;;  %vm1608_vm11 = vcmask 261120  }
  0x13   : > { %247 = vst.msk [vmem:[#allocation2 + $0x70] sm:$0x3] %vm234_vm1, %v2873_v0  ;;  %250 = vst.msk [vmem:[#allocation2 + $0x88] sm:$0x3] %vm234_vm1, %v2873_v0  ;;  %v2998_v7 = vld [vmem:[#allocation2] sm:$0xff]  ;;  %v3000_v8 = vld [vmem:[#allocation2 + $0x8] sm:$0xff] }
  0x14   : > { %248 = vst.msk [vmem:[#allocation2 + $0x78] sm:$0xff] %vm231_vm0, %v2873_v0  ;;  %249 = vst.msk [vmem:[#allocation2 + $0x80] sm:$0xff] %vm231_vm0, %v2873_v0  ;;  %v3002_v9 = vld [vmem:[#allocation2 + $0x10] sm:$0x3]  ;;  %v423_v10 = vrot.slane %v2998_v7, 1  ;;  %v424_v11 = vrot.slane %v3000_v8, 1 }
  0x15   : > { %251 = vst.msk [vmem:[#allocation2 + $0x90] sm:$0xff] %vm231_vm0, %v2873_v0  ;;  %252 = vst.msk [vmem:[#allocation2 + $0x98] sm:$0xff] %vm231_vm0, %v2873_v0  ;;  %v426_v12 = vrot.slane %v3002_v9, 1  ;;  %v205_v13 = vld [vmem:[%s2987_s21 + $0x30] sm:$0xff]  ;;  %v206_v14 = vld [vmem:[%s2987_s21 + $0x38] sm:$0xff]  ;;  %vm1677_vm12 = vcmask 293888  }
  0x16   : > { %253 = vst.msk [vmem:[#allocation2 + $0xa0] sm:$0x3] %vm234_vm1, %v2873_v0  ;;  %256 = vst.msk [vmem:[#allocation2 + $0xb8] sm:$0x3] %vm234_vm1, %v2873_v0  ;;  %v207_v15 = vld [vmem:[%s2987_s21 + $0x40] sm:$0xff]  ;;  %v208_v16 = vld [vmem:[%s2987_s21 + $0x48] sm:$0xff]  ;;  %v425_v18 = vsel %vm422_vm2, %v423_v10, %v424_v11 }
  0x17   : > { %254 = vst.msk [vmem:[#allocation2 + $0xa8] sm:$0xff] %vm231_vm0, %v2873_v0  ;;  %255 = vst.msk [vmem:[#allocation2 + $0xb0] sm:$0xff] %vm231_vm0, %v2873_v0  ;;  %v209_v17 = vld [vmem:[%s2987_s21 + $0x50] sm:$0xff]  ;;  %v427_v19 = vsel %vm422_vm2, %v424_v11, %v426_v12  ;;  %v210_v20 = vld [vmem:[%s2987_s21 + $0x58] sm:$0xff] }
  0x18   : > { %257 = vst.msk [vmem:[#allocation2 + $0xc0] sm:$0xff] %vm231_vm0, %v2873_v0  ;;  %258 = vst.msk [vmem:[#allocation2 + $0xc8] sm:$0xff] %vm231_vm0, %v2873_v0  ;;  %v211_v21 = vld [vmem:[%s2987_s21 + $0x60] sm:$0xff]  ;;  %v212_v22 = vld [vmem:[%s2987_s21 + $0x68] sm:$0xff]  ;;  %v2204_v23 = vpack.i.bf16 %v427_v19, %v425_v18 }
  0x19   : > { %259 = vst.msk [vmem:[#allocation2 + $0xd0] sm:$0x3] %vm234_vm1, %v2873_v0  ;;  %262 = vst.msk [vmem:[#allocation2 + $0xe8] sm:$0x3] %vm234_vm1, %v2873_v0  ;;  %v213_v24 = vld [vmem:[%s2987_s21 + $0x70] sm:$0xff]  ;;  %v214_v25 = vld [vmem:[%s2987_s21 + $0x78] sm:$0xff] }
  0x1a   : > { %260 = vst.msk [vmem:[#allocation2 + $0xd8] sm:$0xff] %vm231_vm0, %v2873_v0  ;;  %261 = vst.msk [vmem:[#allocation2 + $0xe0] sm:$0xff] %vm231_vm0, %v2873_v0  ;;  %v215_v26 = vld [vmem:[%s2987_s21 + $0x80] sm:$0xff]  ;;  %v216_v27 = vld [vmem:[%s2987_s21 + $0x88] sm:$0xff]  ;;  %2205 = vrot.lane.b32.xlu0 %v2204_v23, %s2874_s22 }
  0x1b   : > { %263 = vst.msk [vmem:[#allocation2 + $0xf0] sm:$0xff] %vm231_vm0, %v2873_v0  ;;  %264 = vst.msk [vmem:[#allocation2 + $0xf8] sm:$0xff] %vm231_vm0, %v2873_v0  ;;  %v217_v28 = vld [vmem:[%s2987_s21 + $0x90] sm:$0xff]  ;;  %v218_v29 = vld [vmem:[%s2987_s21 + $0x98] sm:$0xff] }
  0x1c   : > { %265 = vst.msk [vmem:[#allocation2 + $0x100] sm:$0x3] %vm234_vm1, %v2873_v0  ;;  %268 = vst.msk [vmem:[#allocation2 + $0x118] sm:$0x3] %vm234_vm1, %v2873_v0 }
  0x1d   : > { %266 = vst.msk [vmem:[#allocation2 + $0x108] sm:$0xff] %vm231_vm0, %v2873_v0  ;;  %267 = vst.msk [vmem:[#allocation2 + $0x110] sm:$0xff] %vm231_vm0, %v2873_v0 }
  0x1e   : > { %269 = vst.msk [vmem:[#allocation2 + $0x120] sm:$0xff] %vm231_vm0, %v2873_v0  ;;  %270 = vst.msk [vmem:[#allocation2 + $0x128] sm:$0xff] %vm231_vm0, %v2873_v0 }
  0x1f   : > { %271 = vst.msk [vmem:[#allocation2 + $0x130] sm:$0x3] %vm234_vm1, %v2873_v0  ;;  %274 = vst.msk [vmem:[#allocation2 + $0x148] sm:$0x3] %vm234_vm1, %v2873_v0 }
  0x20   : > { %272 = vst.msk [vmem:[#allocation2 + $0x138] sm:$0xff] %vm231_vm0, %v2873_v0  ;;  %273 = vst.msk [vmem:[#allocation2 + $0x140] sm:$0xff] %vm231_vm0, %v2873_v0 }
  0x21   : > { %275 = vst.msk [vmem:[#allocation2 + $0x150] sm:$0xff] %vm231_vm0, %v2873_v0  ;;  %276 = vst.msk [vmem:[#allocation2 + $0x158] sm:$0xff] %vm231_vm0, %v2873_v0 }
  0x22   : > { %277 = vst.msk [vmem:[#allocation2 + $0x160] sm:$0x3] %vm234_vm1, %v2873_v0  ;;  %280 = vst.msk [vmem:[#allocation2 + $0x178] sm:$0x3] %vm234_vm1, %v2873_v0 }
  0x23   : > { %278 = vst.msk [vmem:[#allocation2 + $0x168] sm:$0xff] %vm231_vm0, %v2873_v0  ;;  %279 = vst.msk [vmem:[#allocation2 + $0x170] sm:$0xff] %vm231_vm0, %v2873_v0 }
  0x24   : > { %281 = vst.msk [vmem:[#allocation2 + $0x180] sm:$0xff] %vm231_vm0, %v2873_v0  ;;  %282 = vst.msk [vmem:[#allocation2 + $0x188] sm:$0xff] %vm231_vm0, %v2873_v0 }
  0x25   : > { %283 = vst.msk [vmem:[#allocation2 + $0x190] sm:$0x3] %vm234_vm1, %v2873_v0  ;;  %286 = vst.msk [vmem:[#allocation2 + $0x1a8] sm:$0x3] %vm234_vm1, %v2873_v0 }
  0x26   : > { %284 = vst.msk [vmem:[#allocation2 + $0x198] sm:$0xff] %vm231_vm0, %v2873_v0  ;;  %285 = vst.msk [vmem:[#allocation2 + $0x1a0] sm:$0xff] %vm231_vm0, %v2873_v0 }
  0x27   : > { %290 = vst.msk [vmem:[#allocation2 + $0x31] sm:$0xff] %vm231_vm0, %v201_v1  ;;  %291 = vst.msk [vmem:[#allocation2 + $0x39] sm:$0xff] %vm231_vm0, %v202_v2 }
  0x28   : > { %288 = vst.msk [vmem:[#allocation2 + $0x19] sm:$0xff] %vm231_vm0, %v199_v3  ;;  %289 = vst.msk [vmem:[#allocation2 + $0x21] sm:$0xff] %vm231_vm0, %v200_v4 }
  0x29   : > { %292 = vst.msk [vmem:[#allocation2 + $0x49] sm:$0xff] %vm231_vm0, %v203_v5  ;;  %293 = vst.msk [vmem:[#allocation2 + $0x51] sm:$0xff] %vm231_vm0, %v204_v6 }
  0x2a   : > { %294 = vst.msk [vmem:[#allocation2 + $0x61] sm:$0xff] %vm231_vm0, %v205_v13  ;;  %295 = vst.msk [vmem:[#allocation2 + $0x69] sm:$0xff] %vm231_vm0, %v206_v14 }
  0x2b   : > { %296 = vst.msk [vmem:[#allocation2 + $0x79] sm:$0xff] %vm231_vm0, %v207_v15  ;;  %297 = vst.msk [vmem:[#allocation2 + $0x81] sm:$0xff] %vm231_vm0, %v208_v16 }
  0x2c   : > { %298 = vst.msk [vmem:[#allocation2 + $0x91] sm:$0xff] %vm231_vm0, %v209_v17  ;;  %299 = vst.msk [vmem:[#allocation2 + $0x99] sm:$0xff] %vm231_vm0, %v210_v20 }
  0x2d   : > { %300 = vst.msk [vmem:[#allocation2 + $0xa9] sm:$0xff] %vm231_vm0, %v211_v21  ;;  %301 = vst.msk [vmem:[#allocation2 + $0xb1] sm:$0xff] %vm231_vm0, %v212_v22 }
  0x2e   : > { %302 = vst.msk [vmem:[#allocation2 + $0xc1] sm:$0xff] %vm231_vm0, %v213_v24  ;;  %303 = vst.msk [vmem:[#allocation2 + $0xc9] sm:$0xff] %vm231_vm0, %v214_v25  ;;  %v3038_v30 = vld [vmem:[#allocation2 + $0x30] sm:$0xff]  ;;  %v3040_v31 = vld [vmem:[#allocation2 + $0x38] sm:$0xff] }
  0x2f   : > { %304 = vst.msk [vmem:[#allocation2 + $0xd9] sm:$0xff] %vm231_vm0, %v215_v26  ;;  %4582 = vst [vmem:[#allocation3_spill] sm:$0xff] %v3038_v30  ;;  %v3042_v32 = vld [vmem:[#allocation2 + $0x40] sm:$0x3]  ;;  %v433_v33 = vrot.slane %v3038_v30, 1  ;;  %v434_v34 = vrot.slane %v3040_v31, 1 }
  0x30   : > { %4583 = vst [vmem:[#allocation4_spill] sm:$0xff] %v3040_v31  ;;  %305 = vst.msk [vmem:[#allocation2 + $0xe1] sm:$0xff] %vm231_vm0, %v216_v27  ;;  %v436_v35 = vrot.slane %v3042_v32, 1  ;;  %v3050_v36 = vld [vmem:[#allocation2 + $0x18] sm:$0xff]  ;;  %v3052_v37 = vld [vmem:[#allocation2 + $0x20] sm:$0xff] }
  0x31   : > { %306 = vst.msk [vmem:[#allocation2 + $0xf1] sm:$0xff] %vm231_vm0, %v217_v28  ;;  %307 = vst.msk [vmem:[#allocation2 + $0xf9] sm:$0xff] %vm231_vm0, %v218_v29  ;;  %v3054_v38 = vld [vmem:[#allocation2 + $0x28] sm:$0x3]  ;;  %v428_v39 = vrot.slane %v3050_v36, 1  ;;  %v429_v40 = vrot.slane %v3052_v37, 1  ;;  %v435_v43 = vsel %vm422_vm2, %v433_v33, %v434_v34 }
  0x32   : > { %4584 = vst [vmem:[#allocation5_spill] sm:$0xff] %v3050_v36  ;;  %4585 = vst [vmem:[#allocation6_spill] sm:$0xff] %v3052_v37  ;;  %v3058_v41 = vld [vmem:[#allocation2 + $0x48] sm:$0xff]  ;;  %v3060_v42 = vld [vmem:[#allocation2 + $0x50] sm:$0xff]  ;;  %v437_v44 = vsel %vm422_vm2, %v434_v34, %v436_v35  ;;  %v431_v45 = vrot.slane %v3054_v38, 1 }
  0x33   : > { %v3065_v46 = vld [vmem:[#allocation2 + $0x58] sm:$0x3]  ;;  %v438_v47 = vrot.slane %v3058_v41, 1  ;;  %v3068_v48 = vld [vmem:[#allocation2 + $0x60] sm:$0xff]  ;;  %v3070_v49 = vld [vmem:[#allocation2 + $0x68] sm:$0xff]  ;;  %v3072_v50 = vpack.i.bf16 %v437_v44, %v435_v43  ;;  %v430_v51 = vsel %vm422_vm2, %v428_v39, %v429_v40  ;;  %v439_v52 = vrot.slane %v3060_v42, 1 }
  0x34   : > { %v441_v53 = vrot.slane %v3065_v46, 1  ;;  %v3077_v54 = vld [vmem:[#allocation2 + $0x70] sm:$0x3]  ;;  %v3079_v55 = vld [vmem:[#allocation2 + $0x78] sm:$0xff]  ;;  %v3081_v56 = vld [vmem:[#allocation2 + $0x80] sm:$0xff]  ;;  %v432_v57 = vsel %vm422_vm2, %v429_v40, %v431_v45  ;;  %v443_v58 = vrot.slane %v3068_v48, 1 }
  0x35   : > { %4586 = vst [vmem:[#allocation7_spill] sm:$0xff] %v3072_v50  ;;  %v444_v59 = vrot.slane %v3070_v49, 1  ;;  %v446_v60 = vrot.slane %v3077_v54, 1  ;;  %v3087_v61 = vld [vmem:[#allocation2 + $0x88] sm:$0x3]  ;;  %v3089_v62 = vld [vmem:[#allocation2 + $0x90] sm:$0xff]  ;;  %2215 = vrot.lane.b32.xlu1 %v3072_v50, %s2874_s22  ;;  %v3093_v63 = vpack.i.bf16 %v432_v57, %v430_v51  ;;  %v440_v0 = vsel %vm422_vm2, %v438_v47, %v439_v52 }
  0x36   : > { %v442_v1 = vsel %vm422_vm2, %v439_v52, %v441_v53  ;;  %v448_v2 = vrot.slane %v3079_v55, 1  ;;  %v3098_v3 = vld [vmem:[#allocation2 + $0x98] sm:$0xff]  ;;  %v3100_v4 = vld [vmem:[#allocation2 + $0xa0] sm:$0x3]  ;;  %v3102_v5 = vld [vmem:[#allocation2 + $0xa8] sm:$0xff]  ;;  %v449_v12 = vrot.slane %v3081_v56, 1 }
  0x37   : > { %4587 = vst [vmem:[#allocation8_spill] sm:$0xff] %v3093_v63  ;;  %v3104_v6 = vpack.i.bf16 %v442_v1, %v440_v0  ;;  %v445_v10 = vsel %vm422_vm2, %v443_v58, %v444_v59  ;;  %v447_v11 = vsel %vm422_vm2, %v444_v59, %v446_v60  ;;  %v3109_v13 = vld [vmem:[#allocation2 + $0xb0] sm:$0xff]  ;;  %v3111_v14 = vld [vmem:[#allocation2 + $0xb8] sm:$0x3]  ;;  %v3113_v15 = vld [vmem:[#allocation2 + $0xc0] sm:$0xff]  ;;  %2210 = vrot.lane.b32.xlu0 %v3093_v63, %s2874_s22  ;;  %v451_v17 = vrot.slane %v3087_v61, 1 }
  0x38   : > { %v3117_v16 = vpack.i.bf16 %v447_v11, %v445_v10  ;;  %v453_v18 = vrot.slane %v3089_v62, 1  ;;  %v454_v19 = vrot.slane %v3098_v3, 1  ;;  %v3122_v20 = vld [vmem:[#allocation2 + $0xc8] sm:$0xff]  ;;  %v3124_v21 = vld [vmem:[#allocation2 + $0xd0] sm:$0x3]  ;;  %v450_v22 = vsel %vm422_vm2, %v448_v2, %v449_v12  ;;  %v3130_v26 = vld [vmem:[#allocation2 + $0xd8] sm:$0xff] }
  0x39   : > { %4588 = vst [vmem:[#allocation9_spill] sm:$0xff] %v3104_v6  ;;  %v456_v23 = vrot.slane %v3100_v4, 1  ;;  %v458_v24 = vrot.slane %v3102_v5, 1  ;;  %v459_v25 = vrot.slane %v3109_v13, 1  ;;  %v3132_v27 = vld [vmem:[#allocation2 + $0xe0] sm:$0xff]  ;;  %v3134_v28 = vld [vmem:[#allocation2 + $0xf0] sm:$0xff]  ;;  %2220 = vrot.lane.b32.xlu1 %v3104_v6, %s2874_s22  ;;  %v452_v29 = vsel %vm422_vm2, %v449_v12, %v451_v17 }
  0x3a   : > { %4589 = vst [vmem:[#allocation10_spill] sm:$0xff] %v3117_v16  ;;  %v455_v33 = vsel %vm422_vm2, %v453_v18, %v454_v19  ;;  %v461_v34 = vrot.slane %v3111_v14, 1  ;;  %v463_v35 = vrot.slane %v3113_v15, 1  ;;  %v3142_v39 = vld [vmem:[#allocation2 + $0xe8] sm:$0x3]  ;;  %v3144_v40 = vld [vmem:[#allocation2 + $0xf8] sm:$0xff]  ;;  %v3147_v44 = vpack.i.bf16 %v452_v29, %v450_v22 }
  0x3b   : > { %v219_v43 = vld [vmem:[%s2987_s21 + $0xa0] sm:$0xff]  ;;  %v457_v45 = vsel %vm422_vm2, %v454_v19, %v456_v23  ;;  %v3151_v47 = vsel %vm422_vm2, %v458_v24, %v459_v25  ;;  %v464_v51 = vrot.slane %v3122_v20, 1  ;;  %v220_v53 = vld [vmem:[%s2987_s21 + $0xa8] sm:$0xff]  ;;  %v221_v57 = vld [vmem:[%s2987_s21 + $0xb0] sm:$0xff]  ;;  %2225 = vrot.lane.b32.xlu0 %v3117_v16, %s2874_s22  ;;  %v466_v60 = vrot.slane %v3124_v21, 1 }
  0x3c   : > { %4590 = vst [vmem:[#allocation11_spill] sm:$0xff] %v3147_v44  ;;  %4591 = vst [vmem:[#allocation12_spill] sm:$0xff] %v3151_v47  ;;  %v3154_v52 = vld [vmem:[#allocation2 + $0x100] sm:$0x3]  ;;  %v3161_v58 = vpack.i.bf16 %v457_v45, %v455_v33  ;;  %v3164_v59 = vsel %vm422_vm2, %v459_v25, %v461_v34  ;;  %v468_v0 = vrot.slane %v3130_v26, 1  ;;  %v222_v1 = vld [vmem:[%s2987_s21 + $0xb8] sm:$0xff] }
  0x3d   : > { %308 = vst.msk [vmem:[#allocation2 + $0x109] sm:$0xff] %vm231_vm0, %v219_v43  ;;  %4593 = vst [vmem:[#allocation14_spill] sm:$0xff] %v3164_v59  ;;  %v223_v2 = vld [vmem:[%s2987_s21 + $0xc0] sm:$0xff]  ;;  %v224_v10 = vld [vmem:[%s2987_s21 + $0xc8] sm:$0xff]  ;;  %v3175_v11 = vpack.i.bf16 %v3164_v59, %v3151_v47  ;;  %v465_v12 = vsel %vm422_vm2, %v463_v35, %v464_v51  ;;  %v469_v17 = vrot.slane %v3132_v27, 1  ;;  %v471_v18 = vrot.slane %v3142_v39, 1  ;;  %2230 = vrot.lane.b32.xlu1 %v3147_v44, %s2874_s22 }
  0x3e   : > { %4592 = vst [vmem:[#allocation13_spill] sm:$0xff] %v3161_v58  ;;  %309 = vst.msk [vmem:[#allocation2 + $0x111] sm:$0xff] %vm231_vm0, %v220_v53  ;;  %v225_v19 = vld [vmem:[%s2987_s21 + $0xd0] sm:$0xff]  ;;  %v226_v22 = vld [vmem:[%s2987_s21 + $0xd8] sm:$0xff]  ;;  %v467_v24 = vsel %vm422_vm2, %v464_v51, %v466_v60  ;;  %v473_v25 = vrot.slane %v3134_v28, 1  ;;  %v474_v29 = vrot.slane %v3144_v40, 1 }
  0x3f   : > { %310 = vst.msk [vmem:[#allocation2 + $0x121] sm:$0xff] %vm231_vm0, %v221_v57  ;;  %4594 = vst [vmem:[#allocation15_spill] sm:$0xff] %v3175_v11  ;;  %v227_v23 = vld [vmem:[%s2987_s21 + $0xe0] sm:$0xff]  ;;  %v476_v33 = vrot.slane %v3154_v52, 1  ;;  %v228_v34 = vld [vmem:[%s2987_s21 + $0xe8] sm:$0xff]  ;;  %v3199_v45 = vsel %vm422_vm2, %v468_v0, %v469_v17  ;;  %v3202_v51 = vsel %vm422_vm2, %v469_v17, %v471_v18  ;;  %2235 = vrot.lane.b32.xlu0 %v3161_v58, %s2874_s22  ;;  %v509_v17 = vrot.slane %v3050_v36, 2 }
  0x40   : > { %311 = vst.msk [vmem:[#allocation2 + $0x129] sm:$0xff] %vm231_vm0, %v222_v1  ;;  %312 = vst.msk [vmem:[#allocation2 + $0x139] sm:$0xff] %vm231_vm0, %v223_v2  ;;  %v229_v35 = vld [vmem:[%s2987_s21 + $0xf0] sm:$0xff]  ;;  %v230_v43 = vld [vmem:[%s2987_s21 + $0xf8] sm:$0xff]  ;;  %v3210_v57 = vpack.i.bf16 %v467_v24, %v465_v12  ;;  %v3213_v60 = vsel %vm422_vm2, %v473_v25, %v474_v29  ;;  %v504_v1 = vrot.slane %v2998_v7, 2  ;;  %v505_v2 = vrot.slane %v3000_v8, 2 }
  0x41   : > { %313 = vst.msk [vmem:[#allocation2 + $0x141] sm:$0xff] %vm231_vm0, %v224_v10  ;;  %314 = vst.msk [vmem:[#allocation2 + $0x151] sm:$0xff] %vm231_vm0, %v225_v19  ;;  %v3216_v0 = vsel %vm422_vm2, %v474_v29, %v476_v33  ;;  %2240 = vrot.lane.b32.xlu1 %v3175_v11, %s2874_s22  ;;  %v3224_v10 = vpack.i.bf16 %v3202_v51, %v3199_v45  ;;  %v510_v18 = vrot.slane %v3052_v37, 2  ;;  %v512_v19 = vrot.slane %v3054_v38, 2 }
  0x42   : > { %315 = vst.msk [vmem:[#allocation2 + $0x159] sm:$0xff] %vm231_vm0, %v226_v22  ;;  %316 = vst.msk [vmem:[#allocation2 + $0x169] sm:$0xff] %vm231_vm0, %v227_v23  ;;  %v514_v24 = vrot.slane %v3038_v30, 2  ;;  %v3243_v25 = vpack.i.bf16 %v3216_v0, %v3213_v60 }
  0x43   : > { %4595 = vst [vmem:[#allocation16_spill] sm:$0xff] %v3199_v45  ;;  %4596 = vst [vmem:[#allocation17_spill] sm:$0xff] %v3202_v51  ;;  %2245 = vrot.lane.b32.xlu0 %v3210_v57, %s2874_s22 }
  0x44   : > { %317 = vst.msk [vmem:[#allocation2 + $0x171] sm:$0xff] %vm231_vm0, %v228_v34  ;;  %318 = vst.msk [vmem:[#allocation2 + $0x181] sm:$0xff] %vm231_vm0, %v229_v35  ;;  %v3226_v12 = vld [vmem:[#allocation2 + $0x108] sm:$0xff] }
  0x45   : > { %319 = vst.msk [vmem:[#allocation2 + $0x189] sm:$0xff] %vm231_vm0, %v230_v43  ;;  %4597 = vst [vmem:[#allocation18_spill] sm:$0xff] %v3210_v57  ;;  %v3231_v22 = vld [vmem:[#allocation2 + $0x110] sm:$0xff]  ;;  %v3233_v7 = vld [vmem:[#allocation2 + $0x118] sm:$0x3]  ;;  %v478_v8 = vrot.slane %v3226_v12, 1  ;;  %2250 = vrot.lane.b32.xlu1 %v3224_v10, %s2874_s22 }
  0x46   : > { %4598 = vst [vmem:[#allocation19_spill] sm:$0xff] %v3213_v60  ;;  %4599 = vst [vmem:[#allocation20_spill] sm:$0xff] %v3224_v10  ;;  %v3236_v23 = vld [vmem:[#allocation2 + $0x120] sm:$0xff]  ;;  %v479_v29 = vrot.slane %v3231_v22, 1  ;;  %v481_v38 = vrot.slane %v3233_v7, 1 }
  0x47   : > { %4600 = vst [vmem:[#allocation21_spill] sm:$0xff] %v3243_v25  ;;  %v3247_v33 = vld [vmem:[#allocation2 + $0x128] sm:$0xff]  ;;  %v3249_v34 = vld [vmem:[#allocation2 + $0x130] sm:$0x3]  ;;  %v483_v35 = vrot.slane %v3236_v23, 1  ;;  %v3254_v11 = vld [vmem:[#allocation2 + $0x138] sm:$0xff]  ;;  %2255 = vrot.lane.b32.xlu0 %v3243_v25, %s2874_s22 }
  0x48   : > { %v484_v43 = vrot.slane %v3247_v33, 1  ;;  %v486_v53 = vrot.slane %v3249_v34, 1  ;;  %v3256_v57 = vld [vmem:[#allocation2 + $0x140] sm:$0xff]  ;;  %v3258_v59 = vld [vmem:[#allocation2 + $0x148] sm:$0x3]  ;;  %v3263_v60 = vsel %vm422_vm2, %v478_v8, %v479_v29  ;;  %v3266_v51 = vsel %vm422_vm2, %v479_v29, %v481_v38  ;;  %v3270_v47 = vld [vmem:[#allocation2 + $0x150] sm:$0xff] }
  0x49   : > { %4601 = vst [vmem:[#allocation22_spill] sm:$0xff] %v3266_v51  ;;  %v488_v58 = vrot.slane %v3254_v11, 1  ;;  %v489_v45 = vrot.slane %v3256_v57, 1  ;;  %v3272_v44 = vld [vmem:[#allocation2 + $0x158] sm:$0xff]  ;;  %v3274_v16 = vld [vmem:[#allocation2 + $0x160] sm:$0x3]  ;;  %v3278_v6 = vpack.i.bf16 %v3266_v51, %v3263_v60 }
  0x4a   : > { %v3281_v8 = vsel %vm422_vm2, %v483_v35, %v484_v43  ;;  %v3284_v29 = vsel %vm422_vm2, %v484_v43, %v486_v53  ;;  %v491_v38 = vrot.slane %v3258_v59, 1  ;;  %v3287_v10 = vld [vmem:[#allocation2 + $0x168] sm:$0xff]  ;;  %v493_v53 = vrot.slane %v3270_v47, 1 }
  0x4b   : > { %4602 = vst [vmem:[#allocation23_spill] sm:$0xff] %v3278_v6  ;;  %4603 = vst [vmem:[#allocation24_spill] sm:$0xff] %v3281_v8  ;;  %v3289_v50 = vld [vmem:[#allocation2 + $0x170] sm:$0xff]  ;;  %v3291_v63 = vld [vmem:[#allocation2 + $0x178] sm:$0x3]  ;;  %v3297_v30 = vpack.i.bf16 %v3284_v29, %v3281_v8  ;;  %v3300_v35 = vsel %vm422_vm2, %v488_v58, %v489_v45  ;;  %v494_v43 = vrot.slane %v3272_v44, 1  ;;  %2260 = vrot.lane.b32.xlu1 %v3278_v6, %s2874_s22 }
  0x4c   : > { %4604 = vst [vmem:[#allocation25_spill] sm:$0xff] %v3284_v29  ;;  %4605 = vst [vmem:[#allocation26_spill] sm:$0xff] %v3287_v10  ;;  %v3305_v37 = vsel %vm422_vm2, %v489_v45, %v491_v38  ;;  %v496_v36 = vrot.slane %v3274_v16, 1  ;;  %v498_v51 = vrot.slane %v3287_v10, 1  ;;  %v499_v25 = vrot.slane %v3289_v50, 1 }
  0x4d   : > { %4606 = vst [vmem:[#allocation27_spill] sm:$0xff] %v3289_v50  ;;  %4607 = vst [vmem:[#allocation28_spill] sm:$0xff] %v3297_v30  ;;  %v3314_v58 = vpack.i.bf16 %v3305_v37, %v3300_v35  ;;  %v3317_v29 = vsel %vm422_vm2, %v493_v53, %v494_v43  ;;  %v501_v8 = vrot.slane %v3291_v63, 1  ;;  %v515_v45 = vrot.slane %v3040_v31, 2  ;;  %2265 = vrot.lane.b32.xlu0 %v3297_v30, %s2874_s22 }
  0x4e   : > { %4608 = vst [vmem:[#allocation29_spill] sm:$0xff] %v3305_v37  ;;  %v517_v38 = vrot.slane %v3042_v32, 2  ;;  %v3323_v10 = vsel %vm422_vm2, %v494_v43, %v496_v36  ;;  %v500_v50 = vsel %vm422_vm2, %v498_v51, %v499_v25  ;;  %v506_v37 = vsel %vm503_vm3, %v504_v1, %v505_v2 }
  0x4f   : > { %4609 = vst [vmem:[#allocation30_spill] sm:$0xff] %v3323_v10  ;;  %v3330_v6 = vpack.i.bf16 %v3323_v10, %v3317_v29  ;;  %v502_v53 = vsel %vm422_vm2, %v499_v25, %v501_v8  ;;  %v4610_v31 = vrot.slane %v3002_v9, 2  ;;  %v511_v36 = vsel %vm503_vm3, %v509_v17, %v510_v18  ;;  %2270 = vrot.lane.b32.xlu1 %v3314_v58, %s2874_s22 }
  0x50   : > { %v519_v43 = vrot.slane %v3058_v41, 2  ;;  %v520_v51 = vrot.slane %v3060_v42, 2  ;;  %v3342_v30 = vpack.i.bf16 %v502_v53, %v500_v50  ;;  %v513_v10 = vsel %vm503_vm3, %v510_v18, %v512_v19 }
  0x51   : > { %v508_v32 = vsel %vm503_vm3, %v505_v2, %v4610_v31  ;;  %v516_v25 = vsel %vm503_vm3, %v514_v24, %v515_v45  ;;  %v522_v1 = vrot.slane %v3065_v46, 2  ;;  %v518_v9 = vsel %vm503_vm3, %v515_v45, %v517_v38  ;;  %2275 = vrot.lane.b32.xlu0 %v3330_v6, %s2874_s22 }
  0x52   : > { %4611 = vst [vmem:[#allocation31_spill] sm:$0xff] %v3342_v30  ;;  %v524_v31 = vrot.slane %v3068_v48, 2  ;;  %v525_v2 = vrot.slane %v3070_v49, 2  ;;  %v527_v17 = vrot.slane %v3077_v54, 2  ;;  %v2284_v8 = vpack.i.bf16 %v508_v32, %v506_v37 }
  0x53   : > { %v529_v50 = vrot.slane %v3079_v55, 2  ;;  %v530_v18 = vrot.slane %v3081_v56, 2  ;;  %v532_v19 = vrot.slane %v3087_v61, 2  ;;  %2280 = vrot.lane.b32.xlu1 %v3342_v30, %s2874_s22  ;;  %v3358_v46 = vpack.i.bf16 %v513_v10, %v511_v36 }
  0x54   : > { %v3360_v24 = vpack.i.bf16 %v518_v9, %v516_v25  ;;  %v521_v45 = vsel %vm503_vm3, %v519_v43, %v520_v51  ;;  %v523_v54 = vsel %vm503_vm3, %v520_v51, %v522_v1  ;;  %v526_v38 = vsel %vm503_vm3, %v524_v31, %v525_v2 }
  0x55   : > { %v528_v37 = vsel %vm503_vm3, %v525_v2, %v527_v17  ;;  %v534_v53 = vrot.slane %v3089_v62, 2  ;;  %2285 = vrot.lane.b32.xlu0 %v2284_v8, %s2875_s23  ;;  %v531_v61 = vsel %vm503_vm3, %v529_v50, %v530_v18  ;;  %v533_v10 = vsel %vm503_vm3, %v530_v18, %v532_v19 }
  0x56   : > { %v535_v32 = vrot.slane %v3098_v3, 2  ;;  %v537_v36 = vrot.slane %v3100_v4, 2  ;;  %v539_v43 = vrot.slane %v3102_v5, 2  ;;  %v540_v51 = vrot.slane %v3109_v13, 2 }
  0x57   : > { %v542_v25 = vrot.slane %v3111_v14, 2  ;;  %2290 = vrot.lane.b32.xlu1 %v3358_v46, %s2875_s23  ;;  %v3377_v1 = vpack.i.bf16 %v523_v54, %v521_v45  ;;  %v3379_v9 = vpack.i.bf16 %v528_v37, %v526_v38  ;;  %v3381_v31 = vpack.i.bf16 %v533_v10, %v531_v61 }
  0x58   : > { %v536_v4 = vsel %vm503_vm3, %v534_v53, %v535_v32  ;;  %v538_v2 = vsel %vm503_vm3, %v535_v32, %v537_v36  ;;  %v544_v17 = vrot.slane %v3113_v15, 2  ;;  %v545_v14 = vrot.slane %v3122_v20, 2 }
  0x59   : > { %2295 = vrot.lane.b32.xlu0 %v3360_v24, %s2875_s23  ;;  %v541_v8 = vsel %vm503_vm3, %v539_v43, %v540_v51  ;;  %v543_v50 = vsel %vm503_vm3, %v540_v51, %v542_v25  ;;  %v547_v18 = vrot.slane %v3124_v21, 2  ;;  %v549_v19 = vrot.slane %v3130_v26, 2 }
  0x5a   : > { %v550_v45 = vrot.slane %v3132_v27, 2  ;;  %v552_v54 = vrot.slane %v3142_v39, 2  ;;  %v554_v38 = vrot.slane %v3134_v28, 2  ;;  %v555_v37 = vrot.slane %v3144_v40, 2 }
  0x5b   : > { %2300 = vrot.lane.b32.xlu1 %v3377_v1, %s2875_s23  ;;  %v557_v53 = vrot.slane %v3154_v52, 2  ;;  %v559_v61 = vrot.slane %v3226_v12, 2  ;;  %v560_v10 = vrot.slane %v3231_v22, 2  ;;  %v562_v21 = vrot.slane %v3233_v7, 2 }
  0x5c   : > { %v3405_v32 = vpack.i.bf16 %v538_v2, %v536_v4  ;;  %v546_v36 = vsel %vm503_vm3, %v544_v17, %v545_v14  ;;  %v548_v39 = vsel %vm503_vm3, %v545_v14, %v547_v18  ;;  %v564_v43 = vrot.slane %v3236_v23, 2 }
  0x5d   : > { %2305 = vrot.lane.b32.xlu0 %v3379_v9, %s2875_s23  ;;  %v565_v51 = vrot.slane %v3247_v33, 2  ;;  %v567_v52 = vrot.slane %v3249_v34, 2  ;;  %v3414_v25 = vpack.i.bf16 %v543_v50, %v541_v8  ;;  %v551_v7 = vsel %vm503_vm3, %v549_v19, %v550_v45 }
  0x5e   : > { %v553_v4 = vsel %vm503_vm3, %v550_v45, %v552_v54  ;;  %v556_v2 = vsel %vm503_vm3, %v554_v38, %v555_v37  ;;  %v558_v17 = vsel %vm503_vm3, %v555_v37, %v557_v53  ;;  %v561_v14 = vsel %vm503_vm3, %v559_v61, %v560_v10 }
  0x5f   : > { %2310 = vrot.lane.b32.xlu1 %v3381_v31, %s2875_s23  ;;  %4612 = vst [vmem:[#allocation32_spill] sm:$0xff] %v3414_v25  ;;  %v563_v18 = vsel %vm503_vm3, %v560_v10, %v562_v21  ;;  %v3424_v34 = vpack.i.bf16 %v548_v39, %v546_v36  ;;  %v569_v8 = vrot.slane %v3254_v11, 2  ;;  %v570_v50 = vrot.slane %v3256_v57, 2 }
  0x60   : > { %v572_v19 = vrot.slane %v3258_v59, 2  ;;  %v566_v45 = vsel %vm503_vm3, %v564_v43, %v565_v51  ;;  %v568_v54 = vsel %vm503_vm3, %v565_v51, %v567_v52  ;;  %v574_v38 = vrot.slane %v3270_v47, 2 }
  0x61   : > { %2315 = vrot.lane.b32.xlu0 %v3405_v32, %s2875_s23  ;;  %4613 = vst [vmem:[#allocation33_spill] sm:$0xff] %v3424_v34  ;;  %v575_v37 = vrot.slane %v3272_v44, 2  ;;  %v3435_v53 = vpack.i.bf16 %v553_v4, %v551_v7  ;;  %v3437_v61 = vpack.i.bf16 %v558_v17, %v556_v2  ;;  %v3439_v10 = vpack.i.bf16 %v563_v18, %v561_v14  ;;  %v4616_v4 = vld [vmem:[#allocation27_spill] sm:$0xff]  ;;  %v4617_v18 = vld [vmem:[#allocation22_spill] sm:$0xff] }
  0x62   : > { %v577_v21 = vrot.slane %v3274_v16, 2  ;;  %v3444_v59 = vpack.i.bf16 %v568_v54, %v566_v45  ;;  %v571_v36 = vsel %vm503_vm3, %v569_v8, %v570_v50  ;;  %v573_v39 = vsel %vm503_vm3, %v570_v50, %v572_v19  ;;  %v4615_v16 = vld [vmem:[#allocation26_spill] sm:$0xff]  ;;  %v4618_v8 = vld [vmem:[#allocation24_spill] sm:$0xff]  ;;  %v4619_v19 = vld [vmem:[#allocation25_spill] sm:$0xff] }
  0x63   : > { %2320 = vrot.lane.b32.xlu1 %v3414_v25, %s2875_s23  ;;  %4614 = vst [vmem:[#allocation34_spill] sm:$0xff] %v3435_v53  ;;  %v576_v43 = vsel %vm503_vm3, %v574_v38, %v575_v37  ;;  %v579_v7 = vrot.slane %v4615_v16, 2  ;;  %v580_v2 = vrot.slane %v4616_v4, 2  ;;  %v582_v17 = vrot.slane %v3291_v63, 2  ;;  %v4628_v45 = vld [vmem:[#allocation8_spill] sm:$0xff]  ;;  %v4630_v25 = vld [vmem:[#allocation9_spill] sm:$0xff] }
  0x64   : > { %v578_v52 = vsel %vm503_vm3, %v575_v37, %v577_v21  ;;  %v3459_v14 = vpack.i.bf16 %v573_v39, %v571_v36  ;;  %v4621_v21 = vld [vmem:[#allocation29_spill] sm:$0xff] }
  0x65   : > { %2325 = vrot.lane.b32.xlu0 %v3424_v34, %s2875_s23  ;;  %v3467_v54 = vpack.i.bf16 %v578_v52, %v576_v43  ;;  %v581_v38 = vsel %vm503_vm3, %v579_v7, %v580_v2  ;;  %v583_v63 = vsel %vm503_vm3, %v580_v2, %v582_v17  ;;  %v4622_v39 = vld [vmem:[#allocation5_spill] sm:$0xff]  ;;  %v4623_v43 = vld [vmem:[#allocation6_spill] sm:$0xff]  ;;  %v4624_v7 = vld [vmem:[#allocation3_spill] sm:$0xff] }
  0x66   : > { %v3475_v37 = vpack.i.bf16 %v583_v63, %v581_v38  ;;  %v2364_v52 = vpack.i.bf16 %v4623_v43, %v4622_v39  ;;  %v4625_v2 = vld [vmem:[#allocation4_spill] sm:$0xff]  ;;  %v3492_v38 = vpack.i.bf16 %v3060_v42, %v3058_v41  ;;  %v3498_v63 = vpack.i.bf16 %v3070_v49, %v3068_v48  ;;  %v4629_v34 = vld [vmem:[#allocation7_spill] sm:$0xff] }
  0x67   : > { %2330 = vrot.lane.b32.xlu1 %v3435_v53, %s2875_s23  ;;  %v3487_v17 = vpack.i.bf16 %v4625_v2, %v4624_v7  ;;  %v3504_v39 = vpack.i.bf16 %v3081_v56, %v3079_v55  ;;  %v3510_v41 = vpack.i.bf16 %v3098_v3, %v3089_v62  ;;  %v2394_v42 = vpack.i.bf16 %v3109_v13, %v3102_v5  ;;  %v370_v2 = vld [vmem:[#allocation2 + $0x190] sm:$0x3] }
  0x68   : > { %4620 = vst [vmem:[#allocation26_spill] sm:$0xff] %v3475_v37  ;;  %v2399_v43 = vpack.i.bf16 %v3122_v20, %v3113_v15  ;;  %v2409_v7 = vpack.i.bf16 %v3144_v40, %v3134_v28  ;;  %v3529_v5 = vpack.i.bf16 %v3231_v22, %v3226_v12  ;;  %v3534_v13 = vpack.i.bf16 %v3247_v33, %v3236_v23 }
  0x69   : > { %2335 = vrot.lane.b32.xlu0 %v3437_v61, %s2875_s23  ;;  %v3540_v15 = vpack.i.bf16 %v3256_v57, %v3254_v11  ;;  %v3546_v20 = vpack.i.bf16 %v3272_v44, %v3270_v47  ;;  %v3552_v28 = vpack.i.bf16 %v4616_v4, %v4615_v16 }
  0x6b   : > { %2340 = vrot.lane.b32.xlu1 %v3439_v10, %s2875_s23 }
  0x6d   : > { %2345 = vrot.lane.b32.xlu0 %v3444_v59, %s2875_s23 }
  0x6f   : > { %2350 = vrot.lane.b32.xlu1 %v3459_v14, %s2875_s23 }
  0x71   : > { %2355 = vrot.lane.b32.xlu0 %v3467_v54, %s2875_s23 }
  0x73   : > { %2360 = vrot.lane.b32.xlu1 %v3475_v37, %s2875_s23  ;;  %v595_v37 = vrot.slane %v370_v2, 2 }
  0x75   : > { %2365 = vrot.lane.b32.xlu0 %v2364_v52, %s2876_s24  ;;  %v2404_v52 = vpack.i.bf16 %v3132_v27, %v3130_v26  ;;  %v368_v26 = vld [vmem:[#allocation2 + $0x180] sm:$0xff]  ;;  %v369_v27 = vld [vmem:[#allocation2 + $0x188] sm:$0xff] }
  0x76   : > { %v588_v40 = vrot.slane %v369_v27, 1  ;;  %v587_v12 = vrot.slane %v368_v26, 1  ;;  %v3556_v22 = vpack.i.bf16 %v369_v27, %v368_v26  ;;  %v593_v50 = vrot.slane %v369_v27, 2  ;;  %v4634_v27 = vld [vmem:[#allocation16_spill] sm:$0xff] }
  0x77   : > { %2370 = vrot.lane.b32.xlu1 %v3487_v17, %s2876_s24  ;;  %v592_v51 = vrot.slane %v368_v26, 2  ;;  %v4633_v26 = vld [vmem:[#allocation12_spill] sm:$0xff] }
  0x78   : > { %4626 = vst [vmem:[#allocation27_spill] sm:$0xff] %v3556_v22 }
  0x79   : > { %2375 = vrot.lane.b32.xlu0 %v3492_v38, %s2876_s24 }
  0x7b   : > { %2380 = vrot.lane.b32.xlu1 %v3498_v63, %s2876_s24 }
  0x7d   : > { %2385 = vrot.lane.b32.xlu0 %v3504_v39, %s2876_s24 }
  0x7f   : > { %2390 = vrot.lane.b32.xlu1 %v3510_v41, %s2876_s24 }
  0x81   : > { %2395 = vrot.lane.b32.xlu0 %v2394_v42, %s2876_s24  ;;  %v590_v42 = vrot.slane %v370_v2, 1  ;;  %v4635_v2 = vld [vmem:[#allocation13_spill] sm:$0xff] }
  0x83   : > { %2400 = vrot.lane.b32.xlu1 %v2399_v43, %s2876_s24  ;;  %v589_v43 = vsel %vm422_vm2, %v587_v12, %v588_v40  ;;  %v596_v12 = vsel %vm503_vm3, %v593_v50, %v595_v37 }
  0x85   : > { %2405 = vrot.lane.b32.xlu0 %v2404_v52, %s2876_s24  ;;  %v591_v52 = vsel %vm422_vm2, %v588_v40, %v590_v42  ;;  %v594_v40 = vsel %vm503_vm3, %v592_v51, %v593_v50  ;;  %v4631_v42 = vld [vmem:[#allocation10_spill] sm:$0xff]  ;;  %v4638_v51 = vpack.i.bf16 %v3263_v60, %v3216_v0  ;;  %v2844_v0 = vld [vmem:[%s4521_s1 + $0x10] ss:$0 sps:$4 sm:$0x33]  }
  0x86   : > { %v3564_v36 = vpack.i.bf16 %v591_v52, %v589_v43  ;;  %v3576_v43 = vpack.i.bf16 %v596_v12, %v594_v40  ;;  %v2474_v52 = vpack.i.bf16 %v4634_v27, %v4633_v26  ;;  %2185 = vmatprep.subr.msk.bf16.mxu0 %vm1726_vm4, %v2844_v0  ;;  %2186 = vmatprep.subr.msk.bf16.mxu1 %vm1726_vm4, %v2844_v0  ;;  %v1728_v40 = vsel %vm1726_vm4, %v2844_v0, 0  ;;  %v4639_v26 = vld [vmem:[#allocation21_spill] sm:$0xff] }
  0x87   : > { %2410 = vrot.lane.b32.xlu1 %v2409_v7, %s2876_s24  ;;  %2142 = vmatpush3.bf16.msra.mxu0 %v1728_v40 }
  0x88   : > { %4627 = vst [vmem:[#allocation22_spill] sm:$0xff] %v3564_v36  ;;  %v4637_v36 = vld [vmem:[#allocation19_spill] sm:$0xff]  ;;  %2182 = vmatpush3.bf16.msra.mxu1 %v1728_v40 }
  0x89   : > { %2415 = vrot.lane.b32.xlu0 %v3529_v5, %s2876_s24 }
  0x8b   : > { %2420 = vrot.lane.b32.xlu1 %v3534_v13, %s2876_s24 }
  0x8c   : > { %v3592_v50 = vpop.permute.xlu0 %2205 }
  0x8d   : > { %2425 = vrot.lane.b32.xlu0 %v3540_v15, %s2876_s24 }
  0x8f   : > { %2430 = vrot.lane.b32.xlu1 %v3546_v20, %s2876_s24 }
  0x91   : > { %2435 = vrot.lane.b32.xlu0 %v3552_v28, %s2876_s24 }
  0x93   : > { %2440 = vrot.lane.b32.xlu1 %v3556_v22, %s2876_s24  ;;  %v4636_v22 = vld [vmem:[#allocation17_spill] sm:$0xff] }
  0x94   : > { %v2479_v30 = vpack.i.bf16 %v4637_v36, %v4636_v22 }
  0x95   : > { %2445 = vrot.lane.b32.xlu0 %v4628_v45, %s2877_s25  ;;  %v4632_v45 = vld [vmem:[#allocation11_spill] sm:$0xff] }
  0x97   : > { %2450 = vrot.lane.b32.xlu1 %v4629_v34, %s2877_s25 }
  0x99   : > { %2455 = vrot.lane.b32.xlu0 %v4630_v25, %s2877_s25 }
  0x9b   : > { %2460 = vrot.lane.b32.xlu1 %v4631_v42, %s2877_s25 }
  0x9d   : > { %2465 = vrot.lane.b32.xlu0 %v4632_v45, %s2877_s25 }
  0x9f   : > { %2470 = vrot.lane.b32.xlu1 %v4635_v2, %s2877_s25 }
  0xa1   : > { %2475 = vrot.lane.b32.xlu0 %v2474_v52, %s2877_s25 }
  0xa3   : > { %2480 = vrot.lane.b32.xlu1 %v2479_v30, %s2877_s25 }
  0xa5   : > { %2485 = vrot.lane.b32.xlu0 %v4638_v51, %s2877_s25 }
  0xa7   : > { %2490 = vrot.lane.b32.xlu1 %v3358_v46, %s2878_s26  ;;  %v3598_v37 = vpop.permute.xlu1 %2215 }
  0xa9   : > { %2495 = vrot.lane.b32.xlu0 %v3435_v53, %s2878_s26  ;;  %v3600_v36 = vpop.permute.xlu0 %2210 }
  0xab   : > { %2500 = vrot.lane.b32.xlu1 %v3360_v24, %s2878_s26  ;;  %v3606_v30 = vpop.permute.xlu1 %2220 }
  0xad   : > { %2505 = vrot.lane.b32.xlu0 %v3437_v61, %s2878_s26  ;;  %v3608_v60 = vpop.permute.xlu0 %2225 }
  0xaf   : > { %2510 = vrot.lane.b32.xlu1 %v3487_v17, %s2879_s27  ;;  %v3616_v46 = vpop.permute.xlu1 %2230  ;;  %v2845_v17 = vld [vmem:[%s4521_s1 + $0x8] sm:$0xff]  }
  0xb0   : > { %2143 = vmatprep.subr.bf16.mxu0 %v2845_v17  ;;  %2180 = vmatprep.subr.bf16.mxu1 %v2845_v17 }
  0xb1   : > { %2515 = vrot.lane.b32.xlu0 %v2409_v7, %s2879_s27  ;;  %v3618_v22 = vpop.permute.xlu0 %2235  ;;  %2144 = vmatpush3.bf16.msra.mxu0 %v2845_v17 }
  0xb2   : > { %2183 = vmatpush3.bf16.msra.mxu1 %v2845_v17 }
  0xb3   : > { %2520 = vrot.lane.b32.xlu1 %v3492_v38, %s2879_s27  ;;  %v3627_v7 = vpop.permute.xlu1 %2240  ;;  %v2846_v38 = vld [vmem:[%s4521_s1] sm:$0xff]  }
  0xb4   : > { %2145 = vmatprep.subr.bf16.mxu0 %v2846_v38  ;;  %2181 = vmatprep.subr.bf16.mxu1 %v2846_v38 }
  0xb5   : > { %2525 = vrot.lane.b32.xlu0 %v3529_v5, %s2879_s27  ;;  %v3629_v12 = vpop.permute.xlu0 %2245  ;;  %2146 = vmatpush3.bf16.msra.mxu0 %v2846_v38 }
  0xb6   : > { %2184 = vmatpush3.bf16.msra.mxu1 %v2846_v38  ;;  %v4643_v38 = vpack.i.bf16 %v4618_v8, %v4617_v18 }
  0xb7   : > { %2530 = vrot.lane.b32.xlu1 %v4629_v34, %s2880_s6  ;;  %v3638_v5 = vpop.permute.xlu1 %2250  ;;  %v4641_v34 = vld [vmem:[#allocation23_spill] sm:$0xff] }
  0xb9   : > { %2535 = vrot.lane.b32.xlu0 %v4639_v26, %s2880_s6  ;;  %v3640_v27 = vpop.permute.xlu0 %2255 }
  0xba   : > { %4640 = vst [vmem:[#allocation24_spill] sm:$0xff] %v3640_v27 }
  0xbb   : > { %2540 = vrot.lane.b32.xlu1 %v4630_v25, %s2880_s6 }
  0xbd   : > { %2545 = vrot.lane.b32.xlu0 %v4641_v34, %s2880_s6  ;;  %v3646_v52 = vpop.permute.xlu1 %2260 }
  0xbe   : > { %4642 = vst [vmem:[#allocation25_spill] sm:$0xff] %v3646_v52 }
  0xbf   : > { %v3648_v51 = vpop.permute.xlu0 %2265  ;;  %2550 = vrot.lane.b32.xlu1 %v3360_v24, %s2881_s9  ;;  %v4644_v24 = vpack.i.bf16 %v3300_v35, %v4619_v19 }
  0xc1   : > { %2555 = vrot.lane.b32.xlu0 %v3437_v61, %s2881_s9  ;;  %v3654_v0 = vpop.permute.xlu1 %2270 }
  0xc3   : > { %v2276_v40 = vpop.permute.xlu0 %2275  ;;  %2560 = vrot.lane.b32.xlu1 %v3377_v1, %s2881_s9 }
  0xc5   : > { %2565 = vrot.lane.b32.xlu0 %v3439_v10, %s2881_s9  ;;  %v2281_v25 = vpop.permute.xlu1 %2280 }
  0xc6   : > { %v2282_v27 = vunpack.i.l.bf16 %v2281_v25 }
  0xc7   : > { %v3660_v17 = vpop.permute.xlu0 %2285  ;;  %2570 = vrot.lane.b32.xlu1 %v4643_v38, %s2877_s25 }
  0xc9   : > { %2575 = vrot.lane.b32.xlu0 %v4644_v24, %s2877_s25  ;;  %v3670_v61 = vpop.permute.xlu1 %2290  ;;  %v2277_v24 = vunpack.i.l.bf16 %v2276_v40 }
  0xcb   : > { %v3672_v26 = vpop.permute.xlu0 %2295  ;;  %2580 = vrot.lane.b32.xlu1 %v3377_v1, %s2878_s26 }
  0xcd   : > { %2585 = vrot.lane.b32.xlu0 %v3439_v10, %s2878_s26  ;;  %v3678_v34 = vpop.permute.xlu1 %2300 }
  0xcf   : > { %v3680_v52 = vpop.permute.xlu0 %2305  ;;  %2590 = vrot.lane.b32.xlu1 %v3379_v9, %s2878_s26 }
  0xd1   : > { %2595 = vrot.lane.b32.xlu0 %v3444_v59, %s2878_s26  ;;  %v3686_v35 = vpop.permute.xlu1 %2310 }
  0xd3   : > { %v3688_v18 = vpop.permute.xlu0 %2315  ;;  %2600 = vrot.lane.b32.xlu1 %v3498_v63, %s2879_s27  ;;  %v4647_v63 = vld [vmem:[#allocation28_spill] sm:$0xff] }
  0xd5   : > { %2605 = vrot.lane.b32.xlu0 %v3534_v13, %s2879_s27  ;;  %v3694_v1 = vpop.permute.xlu1 %2320 }
  0xd7   : > { %v3696_v10 = vpop.permute.xlu0 %2325  ;;  %2610 = vrot.lane.b32.xlu1 %v3504_v39, %s2879_s27  ;;  %v2278_v39 = vunpack.i.h.bf16 %v2276_v40 }
  0xd9   : > { %2615 = vrot.lane.b32.xlu0 %v3540_v15, %s2879_s27  ;;  %v3702_v8 = vpop.permute.xlu1 %2330  ;;  %v1407_v53 = vsel %vm231_vm0, %v3272_v44, %v2278_v39  ;;  %v1408_v44 = vsel %vm231_vm0, %v4615_v16, %v2282_v27  ;;  %v2228_v16 = vunpack.i.h.bf16 %v3608_v60  ;;  %v2227_v27 = vunpack.i.l.bf16 %v3608_v60 }
  0xda   : > { %4645 = vst [vmem:[#allocation29_spill] sm:$0xff] %v3702_v8  ;;  %v2307_v60 = vunpack.i.l.bf16 %v3680_v52 }
  0xdb   : > { %v3704_v19 = vpop.permute.xlu0 %2335  ;;  %2620 = vrot.lane.b32.xlu1 %v4631_v42, %s2880_s6 }
  0xdc   : > { %4646 = vst [vmem:[#allocation5_spill] sm:$0xff] %v3704_v19  ;;  %v2283_v19 = vunpack.i.h.bf16 %v2281_v25 }
  0xdd   : > { %2625 = vrot.lane.b32.xlu0 %v4647_v63, %s2880_s6  ;;  %v3710_v13 = vpop.permute.xlu1 %2340 }
  0xde   : > { %4648 = vst [vmem:[#allocation6_spill] sm:$0xff] %v3710_v13 }
  0xdf   : > { %v3712_v38 = vpop.permute.xlu0 %2345  ;;  %2630 = vrot.lane.b32.xlu1 %v4632_v45, %s2880_s6  ;;  %v1406_v45 = vsel %vm231_vm0, %v3270_v47, %v2277_v24  ;;  %v2233_v24 = vunpack.i.h.bf16 %v3616_v46 }
  0xe1   : > { %2635 = vrot.lane.b32.xlu0 %v3314_v58, %s2880_s6  ;;  %v3718_v15 = vpop.permute.xlu1 %2350 }
  0xe3   : > { %v2356_v42 = vpop.permute.xlu0 %2355  ;;  %2640 = vrot.lane.b32.xlu1 %v3379_v9, %s2881_s9 }
  0xe4   : > { %v2358_v63 = vunpack.i.h.bf16 %v2356_v42  ;;  %v2357_v13 = vunpack.i.l.bf16 %v2356_v42  ;;  %v1409_v42 = vsel %vm231_vm0, %v4616_v4, %v2283_v19  ;;  %v4649_v4 = vld [vmem:[#allocation30_spill] sm:$0xff] }
  0xe5   : > { %2645 = vrot.lane.b32.xlu0 %v3444_v59, %s2881_s9  ;;  %v2361_v58 = vpop.permute.xlu1 %2360  ;;  %v4650_v19 = vld [vmem:[#allocation14_spill] sm:$0xff] }
  0xe6   : > { %v3729_v40 = vsel %vm1410_vm5, %v1406_v45, %v2357_v13  ;;  %v3732_v25 = vsel %vm1410_vm5, %v1407_v53, %v2358_v63  ;;  %v2363_v9 = vunpack.i.h.bf16 %v2361_v58  ;;  %v2362_v8 = vunpack.i.l.bf16 %v2361_v58 }
  0xe7   : > { %v3738_v47 = vpop.permute.xlu0 %2365  ;;  %2650 = vrot.lane.b32.xlu1 %v3381_v31, %s2881_s9  ;;  %v2664_v39 = vpack.i.bf16 %v4650_v19, %v4649_v4  ;;  %v2232_v63 = vunpack.i.l.bf16 %v3616_v46  ;;  %v2238_v45 = vunpack.i.h.bf16 %v3618_v22  ;;  %v1387_v46 = vsel %vm231_vm0, %v3070_v49, %v2228_v16 }
  0xe8   : > { %v3743_v59 = vsel %vm1410_vm5, %v1409_v42, %v2363_v9  ;;  %v3746_v13 = vsel %vm1410_vm5, %v1408_v44, %v2362_v8  ;;  %v2237_v8 = vunpack.i.l.bf16 %v3618_v22  ;;  %v4651_v9 = vpack.i.bf16 %v3317_v29, %v4621_v21 }
  0xe9   : > { %2655 = vrot.lane.b32.xlu0 %v3459_v14, %s2881_s9  ;;  %v3750_v53 = vpop.permute.xlu1 %2370  ;;  %v2308_v42 = vunpack.i.h.bf16 %v3680_v52  ;;  %v1386_v22 = vsel %vm231_vm0, %v3068_v48, %v2227_v27  ;;  %v1389_v4 = vsel %vm231_vm0, %v3081_v56, %v2233_v24  ;;  %v1388_v29 = vsel %vm231_vm0, %v3079_v55, %v2232_v63 }
  0xea   : > { %v1391_v21 = vsel %vm231_vm0, %v3098_v3, %v2238_v45  ;;  %v1390_v52 = vsel %vm231_vm0, %v3089_v62, %v2237_v8  ;;  %v2313_v19 = vunpack.i.h.bf16 %v3686_v35  ;;  %v2243_v48 = vunpack.i.h.bf16 %v3627_v7 }
  0xeb   : > { %v3760_v58 = vpop.permute.xlu0 %2375  ;;  %2660 = vrot.lane.b32.xlu1 %v4651_v9, %s2877_s25  ;;  %v2242_v56 = vunpack.i.l.bf16 %v3627_v7  ;;  %v1419_v27 = vsel %vm1410_vm5, %v1386_v22, %v2307_v60  ;;  %v1420_v3 = vsel %vm1410_vm5, %v1387_v46, %v2308_v42  ;;  %v2318_v62 = vunpack.i.h.bf16 %v3688_v18 }
  0xec   : > { %v2317_v24 = vunpack.i.l.bf16 %v3688_v18  ;;  %v1422_v8 = vsel %vm1410_vm5, %v1389_v4, %v2313_v19  ;;  %v2323_v42 = vunpack.i.h.bf16 %v3694_v1  ;;  %v2322_v18 = vunpack.i.l.bf16 %v3694_v1 }
  0xed   : > { %2665 = vrot.lane.b32.xlu0 %v2664_v39, %s2877_s25  ;;  %v3769_v44 = vpop.permute.xlu1 %2380  ;;  %v2312_v39 = vunpack.i.l.bf16 %v3686_v35 }
  0xee   : > { %v1423_v1 = vsel %vm1410_vm5, %v1390_v52, %v2317_v24 }
  0xef   : > { %v2386_v49 = vpop.permute.xlu0 %2385  ;;  %2670 = vrot.lane.b32.xlu1 %v3381_v31, %s2878_s26  ;;  %v1421_v9 = vsel %vm1410_vm5, %v1388_v29, %v2312_v39  ;;  %v2848_v29 = vld [vmem:[#allocation2 + $0xa8] sm:$0xff]  ;;  %v1424_v39 = vsel %vm1410_vm5, %v1391_v21, %v2318_v62 }
  0xf0   : > { %v2388_v16 = vunpack.i.h.bf16 %v2386_v49  ;;  %v2387_v55 = vunpack.i.l.bf16 %v2386_v49  ;;  %v1392_v19 = vsel %vm231_vm0, %v2848_v29, %v2242_v56 }
  0xf1   : > { %2675 = vrot.lane.b32.xlu0 %v3459_v14, %s2878_s26  ;;  %v2391_v35 = vpop.permute.xlu1 %2390  ;;  %v1425_v56 = vsel %vm1410_vm5, %v1392_v19, %v2322_v18  ;;  %v2272_v18 = vunpack.i.l.bf16 %v3654_v0 }
  0xf2   : > { %v3796_v31 = vsel %vm1443_vm6, %v1419_v27, %v2387_v55  ;;  %v3799_v63 = vsel %vm1443_vm6, %v1420_v3, %v2388_v16  ;;  %v2393_v7 = vunpack.i.h.bf16 %v2391_v35  ;;  %v2392_v45 = vunpack.i.l.bf16 %v2391_v35  ;;  %v2847_v16 = vld [vmem:[#allocation2 + $0xb0] sm:$0xff] }
  0xf3   : > { %v2396_v60 = vpop.permute.xlu0 %2395  ;;  %2680 = vrot.lane.b32.xlu1 %v3405_v32, %s2878_s26  ;;  %v1393_v4 = vsel %vm231_vm0, %v2847_v16, %v2243_v48  ;;  %v2699_v21 = vpack.i.bf16 %v2847_v16, %v2848_v29  ;;  %v2352_v16 = vunpack.i.l.bf16 %v3718_v15  ;;  %v1404_v19 = vsel %vm231_vm0, %v3254_v11, %v2272_v18 }
  0xf4   : > { %v3808_v14 = vsel %vm1443_vm6, %v1421_v9, %v2392_v45  ;;  %v3811_v46 = vsel %vm1443_vm6, %v1422_v8, %v2393_v7  ;;  %v2398_v22 = vunpack.i.h.bf16 %v2396_v60  ;;  %v2397_v49 = vunpack.i.l.bf16 %v2396_v60 }
  0xf5   : > { %2685 = vrot.lane.b32.xlu0 %v3467_v54, %s2878_s26  ;;  %v2401_v55 = vpop.permute.xlu1 %2400  ;;  %v1426_v48 = vsel %vm1410_vm5, %v1393_v4, %v2323_v42  ;;  %v2268_v9 = vunpack.i.h.bf16 %v3648_v51  ;;  %v2273_v42 = vunpack.i.h.bf16 %v3654_v0  ;;  %v2348_v60 = vunpack.i.h.bf16 %v3712_v38 }
  0xf6   : > { %v3820_v27 = vsel %vm1443_vm6, %v1423_v1, %v2397_v49  ;;  %v3823_v3 = vsel %vm1443_vm6, %v1424_v39, %v2398_v22  ;;  %v2403_v35 = vunpack.i.h.bf16 %v2401_v55  ;;  %v2402_v7 = vunpack.i.l.bf16 %v2401_v55 }
  0xf7   : > { %4652 = vst [vmem:[#allocation3_spill] sm:$0xff] %v3823_v3  ;;  %v3827_v45 = vpop.permute.xlu0 %2405  ;;  %2690 = vrot.lane.b32.xlu1 %v3510_v41, %s2879_s27  ;;  %v2267_v41 = vunpack.i.l.bf16 %v3648_v51  ;;  %v2347_v22 = vunpack.i.l.bf16 %v3712_v38  ;;  %v2353_v49 = vunpack.i.h.bf16 %v3718_v15  ;;  %v1403_v51 = vsel %vm231_vm0, %v3247_v33, %v2268_v9 }
  0xf8   : > { %v3832_v52 = vsel %vm1443_vm6, %v1425_v56, %v2402_v7  ;;  %v3835_v62 = vsel %vm1443_vm6, %v1426_v48, %v2403_v35  ;;  %v1436_v1 = vsel %vm1410_vm5, %v1403_v51, %v2348_v60  ;;  %v1437_v11 = vsel %vm1410_vm5, %v1404_v19, %v2352_v16  ;;  %v4655_v7 = vld [vmem:[#allocation15_spill] sm:$0xff]  ;;  %v2849_v19 = vld [vmem:[#allocation2 + $0x38] sm:$0xff] }
  0xf9   : > { %4653 = vst [vmem:[#allocation4_spill] sm:$0xff] %v3832_v52  ;;  %4654 = vst [vmem:[#allocation8_spill] sm:$0xff] %v3835_v62  ;;  %2695 = vrot.lane.b32.xlu0 %v3546_v20, %s2879_s27  ;;  %v3839_v24 = vpop.permute.xlu1 %2410  ;;  %v1402_v0 = vsel %vm231_vm0, %v3236_v23, %v2267_v41  ;;  %v2218_v9 = vunpack.i.h.bf16 %v3598_v37  ;;  %v2217_v41 = vunpack.i.l.bf16 %v3598_v37  ;;  %v2222_v51 = vunpack.i.l.bf16 %v3606_v30 }
  0xfa   : > { %v1435_v15 = vsel %vm1410_vm5, %v1402_v0, %v2347_v22  ;;  %v2298_v0 = vunpack.i.h.bf16 %v3672_v26 }
  0xfb   : > { %v3841_v8 = vpop.permute.xlu0 %2415  ;;  %2700 = vrot.lane.b32.xlu1 %v2699_v21, %s2879_s27 }
  0xfd   : > { %2705 = vrot.lane.b32.xlu0 %v3552_v28, %s2879_s27  ;;  %v3852_v20 = vpop.permute.xlu1 %2420  ;;  %v1405_v28 = vsel %vm231_vm0, %v3256_v57, %v2273_v42  ;;  %v4656_v42 = vld [vmem:[#allocation31_spill] sm:$0xff] }
  0xfe   : > { %v1438_v57 = vsel %vm1410_vm5, %v1405_v28, %v2353_v49  ;;  %v2378_v28 = vunpack.i.h.bf16 %v3760_v58 }
  0xff   : > { %v2426_v4 = vpop.permute.xlu0 %2425  ;;  %2710 = vrot.lane.b32.xlu1 %v4635_v2, %s2880_s6 }
 0x100   : > { %v2428_v38 = vunpack.i.h.bf16 %v2426_v4  ;;  %v2427_v29 = vunpack.i.l.bf16 %v2426_v4  ;;  %v2223_v4 = vunpack.i.h.bf16 %v3606_v30  ;;  %v2303_v30 = vunpack.i.h.bf16 %v3678_v34 }
 0x101   : > { %2715 = vrot.lane.b32.xlu0 %v3330_v6, %s2880_s6  ;;  %v2431_v2 = vpop.permute.xlu1 %2430 }
 0x102   : > { %v3871_v33 = vsel %vm1443_vm6, %v1435_v15, %v2427_v29  ;;  %v3874_v23 = vsel %vm1443_vm6, %v1436_v1, %v2428_v38  ;;  %v2433_v39 = vunpack.i.h.bf16 %v2431_v2  ;;  %v2432_v55 = vunpack.i.l.bf16 %v2431_v2  ;;  %v2850_v15 = vld [vmem:[#allocation2 + $0x30] sm:$0xff] }
 0x103   : > { %v2436_v35 = vpop.permute.xlu0 %2435  ;;  %2720 = vrot.lane.b32.xlu1 %v4655_v7, %s2880_s6  ;;  %v2302_v29 = vunpack.i.l.bf16 %v3678_v34  ;;  %v2851_v1 = vld [vmem:[#allocation2 + $0x50] sm:$0xff] }
 0x104   : > { %v3881_v48 = vsel %vm1443_vm6, %v1437_v11, %v2432_v55  ;;  %v3884_v6 = vsel %vm1443_vm6, %v1438_v57, %v2433_v39  ;;  %v2438_v56 = vunpack.i.h.bf16 %v2436_v35  ;;  %v2437_v21 = vunpack.i.l.bf16 %v2436_v35  ;;  %v2852_v39 = vld [vmem:[#allocation2 + $0x48] sm:$0xff] }
 0x105   : > { %2725 = vrot.lane.b32.xlu0 %v4656_v42, %s2880_s6  ;;  %v2441_v18 = vpop.permute.xlu1 %2440  ;;  %v1385_v2 = vsel %vm231_vm0, %v2851_v1, %v2223_v4  ;;  %v1384_v34 = vsel %vm231_vm0, %v2852_v39, %v2222_v51  ;;  %v2383_v55 = vunpack.i.h.bf16 %v3769_v44  ;;  %v3956_v1 = vld [vmem:[#allocation2 + $0x1a0] sm:$0xff] }
 0x106   : > { %v3892_v60 = vsel %vm1443_vm6, %v3729_v40, %v2437_v21  ;;  %v3896_v22 = vsel %vm1443_vm6, %v3732_v25, %v2438_v56  ;;  %v2443_v49 = vunpack.i.h.bf16 %v2441_v18  ;;  %v2442_v16 = vunpack.i.l.bf16 %v2441_v18 }
 0x107   : > { %4657 = vst [vmem:[#allocation7_spill] sm:$0xff] %v3892_v60  ;;  %4658 = vst [vmem:[#allocation9_spill] sm:$0xff] %v3896_v22  ;;  %v3900_v37 = vpop.permute.xlu0 %2445  ;;  %2730 = vrot.lane.b32.xlu1 %v3405_v32, %s2881_s9  ;;  %v2297_v40 = vunpack.i.l.bf16 %v3672_v26  ;;  %v2377_v32 = vunpack.i.l.bf16 %v3760_v58  ;;  %v2382_v58 = vunpack.i.l.bf16 %v3769_v44  ;;  %v1418_v21 = vsel %vm1410_vm5, %v1385_v2, %v2303_v30  ;;  %v4662_v44 = vld [vmem:[#allocation26_spill] sm:$0xff] }
 0x108   : > { %v3908_v25 = vsel %vm1443_vm6, %v3746_v13, %v2442_v16  ;;  %v3912_v38 = vsel %vm1443_vm6, %v3743_v59, %v2443_v49  ;;  %v1383_v13 = vsel %vm231_vm0, %v2849_v19, %v2218_v9  ;;  %v1382_v59 = vsel %vm231_vm0, %v2850_v15, %v2217_v41  ;;  %v4663_v2 = vld [vmem:[#allocation18_spill] sm:$0xff] }
 0x109   : > { %4659 = vst [vmem:[#allocation10_spill] sm:$0xff] %v3908_v25  ;;  %4660 = vst [vmem:[#allocation11_spill] sm:$0xff] %v3912_v38  ;;  %2735 = vrot.lane.b32.xlu0 %v3467_v54, %s2881_s9  ;;  %v3920_v26 = vpop.permute.xlu1 %2450  ;;  %v4661_v54 = vld [vmem:[#allocation32_spill] sm:$0xff]  ;;  %v1416_v11 = vsel %vm1410_vm5, %v1383_v13, %v2298_v0  ;;  %v1415_v35 = vsel %vm1410_vm5, %v1382_v59, %v2297_v40  ;;  %v1417_v9 = vsel %vm1410_vm5, %v1384_v34, %v2302_v29  ;;  %v373_v40 = vld [vmem:[#allocation2 + $0x1a8] sm:$0x3] }
 0x10a   : > { %v1448_v41 = vsel %vm1443_vm6, %v1415_v35, %v2377_v32  ;;  %v1449_v18 = vsel %vm1443_vm6, %v1416_v11, %v2378_v28  ;;  %v1450_v30 = vsel %vm1443_vm6, %v1417_v9, %v2382_v58  ;;  %v1451_v29 = vsel %vm1443_vm6, %v1418_v21, %v2383_v55  ;;  %v3954_v59 = vld [vmem:[#allocation2 + $0x198] sm:$0xff] }
 0x10b   : > { %v2456_v57 = vpop.permute.xlu0 %2455  ;;  %2740 = vrot.lane.b32.xlu1 %v4661_v54, %s2881_s9  ;;  %v601_v34 = vrot.slane %v3956_v1, 1  ;;  %v603_v55 = vrot.slane %v373_v40, 1  ;;  %v2208_v21 = vunpack.i.h.bf16 %v3592_v50  ;;  %v2253_v25 = vunpack.i.h.bf16 %v3638_v5 }
 0x10c   : > { %v2458_v7 = vunpack.i.h.bf16 %v2456_v57  ;;  %v2457_v56 = vunpack.i.l.bf16 %v2456_v57 }
 0x10d   : > { %2745 = vrot.lane.b32.xlu0 %v4662_v44, %s2881_s9  ;;  %v2461_v49 = vpop.permute.xlu1 %2460 }
 0x10e   : > { %v3939_v16 = vsel %vm1476_vm7, %v1448_v41, %v2457_v56  ;;  %v3942_v4 = vsel %vm1476_vm7, %v1449_v18, %v2458_v7  ;;  %v2463_v51 = vunpack.i.h.bf16 %v2461_v49  ;;  %v2462_v0 = vunpack.i.l.bf16 %v2461_v49  ;;  %v4664_v56 = vld [vmem:[#allocation22_spill] sm:$0xff] }
 0x10f   : > { %v2466_v32 = vpop.permute.xlu0 %2465  ;;  %2750 = vrot.lane.b32.xlu1 %v4656_v42, %s2877_s25  ;;  %v600_v42 = vrot.slane %v3954_v59, 1  ;;  %v2207_v41 = vunpack.i.l.bf16 %v3592_v50  ;;  %v606_v49 = vrot.slane %v3956_v1, 2  ;;  %v608_v50 = vrot.slane %v373_v40, 2 }
 0x110   : > { %v3949_v28 = vsel %vm1476_vm7, %v1450_v30, %v2462_v0  ;;  %v3952_v19 = vsel %vm1476_vm7, %v1451_v29, %v2463_v51  ;;  %v2468_v13 = vunpack.i.h.bf16 %v2466_v32  ;;  %v2467_v15 = vunpack.i.l.bf16 %v2466_v32  ;;  %v2853_v32 = vld [vmem:[#allocation2 + $0xc0] sm:$0xff] }
 0x111   : > { %2755 = vrot.lane.b32.xlu0 %v4663_v2, %s2877_s25  ;;  %v2471_v39 = vpop.permute.xlu1 %2470  ;;  %v605_v51 = vrot.slane %v3954_v59, 2  ;;  %v3999_v0 = vsel %vm422_vm2, %v601_v34, %v603_v55  ;;  %v2213_v30 = vunpack.i.h.bf16 %v3600_v36  ;;  %v2799_v40 = vpack.i.bf16 %v3956_v1, %v3954_v59  ;;  %v2858_v55 = vld [vmem:[#allocation2] sm:$0xff] }
 0x112   : > { %v3964_v58 = vsel %vm1476_vm7, %v3796_v31, %v2467_v15  ;;  %v3968_v57 = vsel %vm1476_vm7, %v3799_v63, %v2468_v13  ;;  %v2473_v11 = vunpack.i.h.bf16 %v2471_v39  ;;  %v2472_v35 = vunpack.i.l.bf16 %v2471_v39  ;;  %v2854_v13 = vld [vmem:[#allocation2 + $0xc8] sm:$0xff]  ;;  %v2859_v1 = vld [vmem:[#allocation2 + $0x20] sm:$0xff] }
 0x113   : > { %v3970_v7 = vpop.permute.xlu0 %2475  ;;  %2760 = vrot.lane.b32.xlu1 %v4664_v56, %s2877_s25  ;;  %v2855_v15 = vld [vmem:[#allocation2 + $0x8] sm:$0xff]  ;;  %v4023_v59 = vsel %vm503_vm3, %v606_v49, %v608_v50  ;;  %v2292_v50 = vunpack.i.l.bf16 %v3670_v61 }
 0x114   : > { %v3977_v9 = vsel %vm1476_vm7, %v3808_v14, %v2472_v35  ;;  %v3981_v31 = vsel %vm1476_vm7, %v3811_v46, %v2473_v11  ;;  %v2477_v63 = vunpack.i.l.bf16 %v3970_v7  ;;  %v3996_v46 = vsel %vm422_vm2, %v600_v42, %v601_v34  ;;  %v2856_v42 = vld [vmem:[#allocation2 + $0xd8] sm:$0xff]  ;;  %v2857_v11 = vld [vmem:[#allocation2 + $0xe0] sm:$0xff] }
 0x115   : > { %4665 = vst [vmem:[#allocation12_spill] sm:$0xff] %v3981_v31  ;;  %2765 = vrot.lane.b32.xlu0 %v4661_v54, %s2878_s26  ;;  %v3987_v18 = vpop.permute.xlu1 %2480  ;;  %v2212_v54 = vunpack.i.l.bf16 %v3600_v36  ;;  %v1379_v39 = vsel %vm231_vm0, %v2855_v15, %v2208_v21  ;;  %v2794_v34 = vpack.i.bf16 %v2857_v11, %v2856_v42  ;;  %v1378_v36 = vsel %vm231_vm0, %v2858_v55, %v2207_v41  ;;  %v4667_v35 = vld [vmem:[#allocation33_spill] sm:$0xff]  ;;  %v2860_v55 = vld [vmem:[#allocation2 + $0x18] sm:$0xff] }
 0x116   : > { %v3993_v14 = vsel %vm1476_vm7, %v3820_v27, %v2477_v63  ;;  %v2784_v27 = vpack.i.bf16 %v2854_v13, %v2853_v32  ;;  %v2247_v21 = vunpack.i.l.bf16 %v3629_v12  ;;  %v4020_v15 = vsel %vm503_vm3, %v605_v51, %v606_v49 }
 0x117   : > { %4666 = vst [vmem:[#allocation16_spill] sm:$0xff] %v3993_v14  ;;  %v4003_v29 = vpop.permute.xlu0 %2485  ;;  %2770 = vrot.lane.b32.xlu1 %v4662_v44, %s2878_s26  ;;  %v2248_v14 = vunpack.i.h.bf16 %v3629_v12  ;;  %v1381_v41 = vsel %vm231_vm0, %v2859_v1, %v2213_v30  ;;  %v1380_v38 = vsel %vm231_vm0, %v2860_v55, %v2212_v54  ;;  %v2252_v44 = vunpack.i.l.bf16 %v3638_v5  ;;  %v4669_v1 = vld [vmem:[#allocation27_spill] sm:$0xff] }
 0x118   : > { %v2288_v12 = vunpack.i.h.bf16 %v3660_v17  ;;  %v2287_v49 = vunpack.i.l.bf16 %v3660_v17  ;;  %v2293_v51 = vunpack.i.h.bf16 %v3670_v61  ;;  %v2328_v30 = vunpack.i.h.bf16 %v3696_v10  ;;  %v4668_v17 = vld [vmem:[#allocation29_spill] sm:$0xff] }
 0x119   : > { %2775 = vrot.lane.b32.xlu0 %v4667_v35, %s2878_s26  ;;  %v4013_v63 = vpop.permute.xlu1 %2490  ;;  %v2327_v54 = vunpack.i.l.bf16 %v3696_v10  ;;  %v1395_v55 = vsel %vm231_vm0, %v2854_v13, %v2248_v14  ;;  %v1394_v62 = vsel %vm231_vm0, %v2853_v32, %v2247_v21  ;;  %v2333_v22 = vunpack.i.h.bf16 %v4668_v17 }
 0x11a   : > { %v2332_v60 = vunpack.i.l.bf16 %v4668_v17  ;;  %v1397_v61 = vsel %vm231_vm0, %v2857_v11, %v2253_v25  ;;  %v1396_v3 = vsel %vm231_vm0, %v2856_v42, %v2252_v44  ;;  %v2368_v10 = vunpack.i.h.bf16 %v3738_v47 }
 0x11b   : > { %v4029_v52 = vpop.permute.xlu0 %2495  ;;  %2780 = vrot.lane.b32.xlu1 %v3576_v43, %s2878_s26  ;;  %v1412_v14 = vsel %vm1410_vm5, %v1379_v39, %v2288_v12  ;;  %v1411_v32 = vsel %vm1410_vm5, %v1378_v36, %v2287_v49  ;;  %v1413_v13 = vsel %vm1410_vm5, %v1380_v38, %v2292_v50  ;;  %v1414_v21 = vsel %vm1410_vm5, %v1381_v41, %v2293_v51 }
 0x11c   : > { %v1427_v25 = vsel %vm1410_vm5, %v1394_v62, %v2327_v54  ;;  %v1428_v42 = vsel %vm1410_vm5, %v1395_v55, %v2328_v30  ;;  %v2372_v11 = vunpack.i.l.bf16 %v3750_v53  ;;  %v1430_v39 = vsel %vm1410_vm5, %v1397_v61, %v2333_v22 }
 0x11d   : > { %2785 = vrot.lane.b32.xlu0 %v2784_v27, %s2879_s27  ;;  %v4040_v5 = vpop.permute.xlu1 %2500  ;;  %v2367_v27 = vunpack.i.l.bf16 %v3738_v47  ;;  %v2373_v47 = vunpack.i.h.bf16 %v3750_v53  ;;  %v1429_v36 = vsel %vm1410_vm5, %v1396_v3, %v2332_v60  ;;  %v2408_v38 = vunpack.i.h.bf16 %v3827_v45 }
 0x11e   : > { %v2407_v41 = vunpack.i.l.bf16 %v3827_v45  ;;  %v1445_v12 = vsel %vm1443_vm6, %v1412_v14, %v2368_v10  ;;  %v2413_v49 = vunpack.i.h.bf16 %v3839_v24  ;;  %v2412_v53 = vunpack.i.l.bf16 %v3839_v24 }
 0x11f   : > { %v4052_v31 = vpop.permute.xlu0 %2505  ;;  %2790 = vrot.lane.b32.xlu1 %v4669_v1, %s2879_s27  ;;  %v1444_v62 = vsel %vm1443_vm6, %v1411_v32, %v2367_v27  ;;  %v2448_v22 = vunpack.i.h.bf16 %v3900_v37  ;;  %v2447_v3 = vunpack.i.l.bf16 %v3900_v37  ;;  %v2453_v60 = vunpack.i.h.bf16 %v3920_v26 }
 0x120   : > { %v2452_v45 = vunpack.i.l.bf16 %v3920_v26  ;;  %v1447_v50 = vsel %vm1443_vm6, %v1414_v21, %v2373_v47  ;;  %v2478_v30 = vunpack.i.h.bf16 %v3970_v7  ;;  %v2482_v24 = vunpack.i.l.bf16 %v3987_v18 }
 0x121   : > { %2795 = vrot.lane.b32.xlu0 %v2794_v34, %s2879_s27  ;;  %v4065_v44 = vpop.permute.xlu1 %2510  ;;  %v1446_v34 = vsel %vm1443_vm6, %v1413_v13, %v2372_v11  ;;  %v1460_v54 = vsel %vm1443_vm6, %v1427_v25, %v2407_v41  ;;  %v1461_v37 = vsel %vm1443_vm6, %v1428_v42, %v2408_v38  ;;  %v2483_v1 = vunpack.i.h.bf16 %v3987_v18  ;;  %v4670_v25 = vld [vmem:[#allocation20_spill] sm:$0xff] }
 0x122   : > { %v2487_v26 = vunpack.i.l.bf16 %v4003_v29  ;;  %v1462_v55 = vsel %vm1443_vm6, %v1429_v36, %v2412_v53  ;;  %v1463_v17 = vsel %vm1443_vm6, %v1430_v39, %v2413_v49  ;;  %v2493_v7 = vunpack.i.h.bf16 %v4013_v63 }
 0x123   : > { %v4075_v51 = vpop.permute.xlu0 %2515  ;;  %2800 = vrot.lane.b32.xlu1 %v2799_v40, %s2879_s27  ;;  %v2492_v61 = vunpack.i.l.bf16 %v4013_v63  ;;  %v1478_v18 = vsel %vm1476_vm7, %v1445_v12, %v2448_v22  ;;  %v1479_v27 = vsel %vm1476_vm7, %v1446_v34, %v2452_v45  ;;  %v1480_v14 = vsel %vm1476_vm7, %v1447_v50, %v2453_v60 }
 0x124   : > { %v1493_v32 = vsel %vm1476_vm7, %v1460_v54, %v2478_v30  ;;  %v1494_v13 = vsel %vm1476_vm7, %v1461_v37, %v2482_v24  ;;  %v2498_v63 = vunpack.i.h.bf16 %v4029_v52  ;;  %v2497_v21 = vunpack.i.l.bf16 %v4029_v52 }
 0x125   : > { %2805 = vrot.lane.b32.xlu0 %v4663_v2, %s2880_s6  ;;  %v2521_v40 = vpop.permute.xlu1 %2520  ;;  %v1477_v2 = vsel %vm1476_vm7, %v1444_v62, %v2447_v3  ;;  %v1495_v42 = vsel %vm1476_vm7, %v1462_v55, %v2483_v1  ;;  %v1496_v47 = vsel %vm1476_vm7, %v1463_v17, %v2487_v26  ;;  %v2503_v11 = vunpack.i.h.bf16 %v4040_v5 }
 0x126   : > { %v2502_v39 = vunpack.i.l.bf16 %v4040_v5  ;;  %v1510_v36 = vsel %vm1509_vm8, %v1477_v2, %v2492_v61  ;;  %v1511_v38 = vsel %vm1509_vm8, %v1478_v18, %v2493_v7  ;;  %v2508_v41 = vunpack.i.h.bf16 %v4052_v31  ;;  %v4672_v2 = vld [vmem:[#allocation34_spill] sm:$0xff] }
 0x127   : > { %v4096_v10 = vpop.permute.xlu0 %2525  ;;  %2810 = vrot.lane.b32.xlu1 %v4664_v56, %s2880_s6  ;;  %v2507_v52 = vunpack.i.l.bf16 %v4052_v31  ;;  %v4671_v12 = vpack.i.bf16 %v3999_v0, %v3996_v46  ;;  %v2513_v49 = vunpack.i.h.bf16 %v4065_v44  ;;  %v2512_v53 = vunpack.i.l.bf16 %v4065_v44 }
 0x128   : > { %v2518_v5 = vunpack.i.h.bf16 %v4075_v51  ;;  %v2517_v22 = vunpack.i.l.bf16 %v4075_v51  ;;  %v1526_v3 = vsel %vm1509_vm8, %v1493_v32, %v2497_v21  ;;  %v1527_v60 = vsel %vm1509_vm8, %v1494_v13, %v2498_v63 }
 0x129   : > { %2815 = vrot.lane.b32.xlu0 %v4670_v25, %s2880_s6  ;;  %v2531_v56 = vpop.permute.xlu1 %2530  ;;  %v2523_v31 = vunpack.i.h.bf16 %v2521_v40  ;;  %v2522_v45 = vunpack.i.l.bf16 %v2521_v40  ;;  %v1512_v0 = vsel %vm1509_vm8, %v1479_v27, %v2502_v39  ;;  %v1513_v34 = vsel %vm1509_vm8, %v1480_v14, %v2503_v11 }
 0x12a   : > { %v2527_v44 = vunpack.i.l.bf16 %v4096_v10  ;;  %v2532_v50 = vunpack.i.l.bf16 %v2531_v56  ;;  %v1528_v51 = vsel %vm1509_vm8, %v1495_v42, %v2507_v52  ;;  %v1529_v30 = vsel %vm1509_vm8, %v1496_v47, %v2508_v41 }
 0x12b   : > { %v2536_v62 = vpop.permute.xlu0 %2535  ;;  %2820 = vrot.lane.b32.xlu1 %v4671_v12, %s2880_s6  ;;  %v2533_v24 = vunpack.i.h.bf16 %v2531_v56  ;;  %v1544_v40 = vsel %vm1542_vm9, %v1511_v38, %v2513_v49  ;;  %v1559_v1 = vsel %vm1542_vm9, %v1526_v3, %v2517_v22  ;;  %v1560_v26 = vsel %vm1542_vm9, %v1527_v60, %v2518_v5 }
 0x12c   : > { %v2537_v54 = vunpack.i.l.bf16 %v2536_v62  ;;  %v1545_v55 = vsel %vm1542_vm9, %v1512_v0, %v2522_v45  ;;  %v1546_v17 = vsel %vm1542_vm9, %v1513_v34, %v2523_v31  ;;  %v2528_v7 = vunpack.i.h.bf16 %v4096_v10 }
 0x12d   : > { %2825 = vrot.lane.b32.xlu0 %v4667_v35, %s2881_s9  ;;  %v2541_v46 = vpop.permute.xlu1 %2540  ;;  %v1543_v35 = vsel %vm1542_vm9, %v1510_v36, %v2512_v53  ;;  %v2538_v61 = vunpack.i.h.bf16 %v2536_v62  ;;  %v4673_v25 = vpack.i.bf16 %v4023_v59, %v4020_v15  ;;  %v1577_v10 = vsel %vm1575_vm10, %v1544_v40, %v2533_v24 }
 0x12e   : > { %v1576_v32 = vsel %vm1575_vm10, %v1543_v35, %v2532_v50  ;;  %v2543_v13 = vunpack.i.h.bf16 %v2541_v46  ;;  %v2542_v63 = vunpack.i.l.bf16 %v2541_v46  ;;  %v1592_v56 = vsel %vm1575_vm10, %v1559_v1, %v2537_v54 }
 0x12f   : > { %v2546_v37 = vpop.permute.xlu0 %2545  ;;  %2830 = vrot.lane.b32.xlu1 %v3576_v43, %s2881_s9  ;;  %v1561_v43 = vsel %vm1542_vm9, %v1528_v51, %v2527_v44  ;;  %v1593_v62 = vsel %vm1575_vm10, %v1560_v26, %v2538_v61  ;;  %v1562_v53 = vsel %vm1542_vm9, %v1529_v30, %v2528_v7  ;;  %v4674_v26 = vld [vmem:[#allocation24_spill] sm:$0xff]  ;;  %v4675_v61 = vld [vmem:[#allocation25_spill] sm:$0xff] }
 0x130   : > { %v2548_v36 = vunpack.i.h.bf16 %v2546_v37  ;;  %v2547_v38 = vunpack.i.l.bf16 %v2546_v37  ;;  %v1578_v5 = vsel %vm1575_vm10, %v1545_v55, %v2542_v63  ;;  %v1579_v22 = vsel %vm1575_vm10, %v1546_v17, %v2543_v13  ;;  %v2861_v13 = vld [vmem:[#allocation2 + $0xf8] sm:$0xff] }
 0x131   : > { %2835 = vrot.lane.b32.xlu0 %v4672_v2, %s2881_s9  ;;  %v2551_v18 = vpop.permute.xlu1 %2550  ;;  %v2258_v55 = vunpack.i.h.bf16 %v4674_v26  ;;  %v2257_v17 = vunpack.i.l.bf16 %v4674_v26  ;;  %v2263_v2 = vunpack.i.h.bf16 %v4675_v61 }
 0x132   : > { %v2553_v27 = vunpack.i.h.bf16 %v2551_v18  ;;  %v2552_v14 = vunpack.i.l.bf16 %v2551_v18  ;;  %v1594_v34 = vsel %vm1575_vm10, %v1561_v43, %v2547_v38  ;;  %v1595_v44 = vsel %vm1575_vm10, %v1562_v53, %v2548_v36 }
 0x133   : > { %v2556_v21 = vpop.permute.xlu0 %2555  ;;  %2840 = vrot.lane.b32.xlu1 %v4673_v25, %s2881_s9  ;;  %v2262_v18 = vunpack.i.l.bf16 %v4675_v61  ;;  %v1399_v63 = vsel %vm231_vm0, %v2861_v13, %v2258_v55  ;;  %v2423_v36 = vunpack.i.h.bf16 %v3852_v20  ;;  %v2422_v38 = vunpack.i.l.bf16 %v3852_v20 }
 0x134   : > { %v2558_v42 = vunpack.i.h.bf16 %v2556_v21  ;;  %v2557_v47 = vunpack.i.l.bf16 %v2556_v21  ;;  %v1609_v11 = vsel %vm1608_vm11, %v1576_v32, %v2552_v14  ;;  %v1610_v39 = vsel %vm1608_vm11, %v1577_v10, %v2553_v27  ;;  %v4676_v27 = vld [vmem:[#allocation5_spill] sm:$0xff]  ;;  %v2862_v21 = vld [vmem:[#allocation2 + $0xf0] sm:$0xff]  ;;  %v4677_v10 = vld [vmem:[#allocation6_spill] sm:$0xff] }
 0x135   : > { %v2561_v41 = vpop.permute.xlu1 %2560  ;;  %v1641_v52 = vpack.c.bf16 %v1610_v39, %v1609_v11  ;;  %v2338_v14 = vunpack.i.h.bf16 %v4676_v27  ;;  %v2337_v32 = vunpack.i.l.bf16 %v4676_v27  ;;  %v1398_v25 = vsel %vm231_vm0, %v2862_v21, %v2257_v17 }
 0x136   : > { %v2563_v12 = vunpack.i.h.bf16 %v2561_v41  ;;  %v2562_v49 = vunpack.i.l.bf16 %v2561_v41  ;;  %v1625_v15 = vsel %vm1608_vm11, %v1592_v56, %v2557_v47  ;;  %v1626_v59 = vsel %vm1608_vm11, %v1593_v62, %v2558_v42  ;;  %v2863_v41 = vld [vmem:[#allocation2 + $0x110] sm:$0xff]  ;;  %v2864_v62 = vld [vmem:[#allocation2 + $0x108] sm:$0xff] }
 0x137   : > { %v2566_v3 = vpop.permute.xlu0 %2565  ;;  %2147 = vmatprep.mubr.msk.bf16.mxu0 %vm1677_vm12, %v1641_v52  ;;  %v1649_v60 = vpack.c.bf16 %v1626_v59, %v1625_v15  ;;  %v2343_v56 = vunpack.i.h.bf16 %v4677_v10  ;;  %v2342_v42 = vunpack.i.l.bf16 %v4677_v10  ;;  %v2418_v11 = vunpack.i.h.bf16 %v3841_v8 }
 0x138   : > { %v1611_v31 = vsel %vm1608_vm11, %v1578_v5, %v2562_v49  ;;  %v1612_v45 = vsel %vm1608_vm11, %v1579_v22, %v2563_v12  ;;  %v2568_v46 = vunpack.i.h.bf16 %v2566_v3  ;;  %v2567_v0 = vunpack.i.l.bf16 %v2566_v3 }
 0x139   : > { %v1642_v50 = vpack.c.bf16 %v1612_v45, %v1611_v31  ;;  %2163 = vmatprep.mubr.msk.bf16.mxu1 %vm1677_vm12, %v1649_v60  ;;  %v2571_v51 = vpop.permute.xlu1 %2570  ;;  %v2417_v39 = vunpack.i.l.bf16 %v3841_v8  ;;  %v1401_v52 = vsel %vm231_vm0, %v2863_v41, %v2263_v2  ;;  %v1400_v12 = vsel %vm231_vm0, %v2864_v62, %v2262_v18 }
 0x13a   : > { %v1627_v30 = vsel %vm1608_vm11, %v1594_v34, %v2567_v0  ;;  %v1628_v24 = vsel %vm1608_vm11, %v1595_v44, %v2568_v46  ;;  %v2488_v49 = vunpack.i.h.bf16 %v4003_v29  ;;  %v2572_v15 = vunpack.i.l.bf16 %v2571_v51 }
 0x13b   : > { %v1650_v54 = vpack.c.bf16 %v1628_v24, %v1627_v30  ;;  %v4170_v37 = vpop.permute.xlu0 %2575  ;;  %2148 = vmatmul.mubr.msk.bf16.vlgmr.msra.gmra.mxu0 %vm1677_vm12, %v1642_v50  ;;  %v1431_v53 = vsel %vm1410_vm5, %v1398_v25, %v2337_v32  ;;  %v1432_v5 = vsel %vm1410_vm5, %v1399_v63, %v2338_v14  ;;  %v2573_v22 = vunpack.i.h.bf16 %v2571_v51 }
 0x13c   : > { %v2577_v8 = vunpack.i.l.bf16 %v4170_v37  ;;  %v1434_v3 = vsel %vm1410_vm5, %v1401_v52, %v2343_v56  ;;  %v1433_v20 = vsel %vm1410_vm5, %v1400_v12, %v2342_v42  ;;  %v1464_v46 = vsel %vm1443_vm6, %v1431_v53, %v2417_v39 }
 0x13d   : > { %2164 = vmatmul.mubr.msk.bf16.vlgmr.msra.gmra.mxu1 %vm1677_vm12, %v1650_v54  ;;  %v2581_v35 = vpop.permute.xlu1 %2580  ;;  %v1465_v29 = vsel %vm1443_vm6, %v1432_v5, %v2418_v11  ;;  %v1466_v0 = vsel %vm1443_vm6, %v1433_v20, %v2422_v38  ;;  %v1467_v34 = vsel %vm1443_vm6, %v1434_v3, %v2423_v36  ;;  %v1497_v44 = vsel %vm1476_vm7, %v1464_v46, %v2488_v49 }
 0x13e   : > { %v2583_v60 = vunpack.i.h.bf16 %v2581_v35  ;;  %v2582_v31 = vunpack.i.l.bf16 %v2581_v35  ;;  %v1498_v50 = vsel %vm1476_vm7, %v1465_v29, %v2572_v15  ;;  %v1499_v54 = vsel %vm1476_vm7, %v1466_v0, %v2573_v22 }
 0x13f   : > { %v2586_v40 = vpop.permute.xlu0 %2585  ;;  %v1500_v35 = vsel %vm1476_vm7, %v1467_v34, %v2577_v8 }
 0x140   : > { %v2588_v51 = vunpack.i.h.bf16 %v2586_v40  ;;  %v2587_v30 = vunpack.i.l.bf16 %v2586_v40  ;;  %v1514_v17 = vsel %vm1509_vm8, %v3939_v16, %v2582_v31  ;;  %v1515_v61 = vsel %vm1509_vm8, %v3942_v4, %v2583_v60 }
 0x141   : > { %v4174_v1 = vpop.permute.xlu1 %2590 }
 0x142   : > { %v2593_v26 = vunpack.i.h.bf16 %v4174_v1  ;;  %v2592_v55 = vunpack.i.l.bf16 %v4174_v1  ;;  %v1530_v63 = vsel %vm1509_vm8, %v1497_v44, %v2587_v30  ;;  %v1531_v1 = vsel %vm1509_vm8, %v1498_v50, %v2588_v51 }
 0x143   : > { %v4178_v7 = vpop.permute.xlu0 %2595 }
 0x144   : > { %v2598_v2 = vunpack.i.h.bf16 %v4178_v7  ;;  %v2597_v18 = vunpack.i.l.bf16 %v4178_v7  ;;  %v1516_v4 = vsel %vm1509_vm8, %v3949_v28, %v2592_v55  ;;  %v1517_v7 = vsel %vm1509_vm8, %v3952_v19, %v2593_v26 }
 0x145   : > { %v4182_v43 = vpop.permute.xlu1 %2600 }
 0x146   : > { %v2603_v27 = vunpack.i.h.bf16 %v4182_v43  ;;  %v2602_v14 = vunpack.i.l.bf16 %v4182_v43  ;;  %v1532_v43 = vsel %vm1509_vm8, %v1499_v54, %v2597_v18  ;;  %v1533_v42 = vsel %vm1509_vm8, %v1500_v35, %v2598_v2 }
 0x147   : > { %v2606_v47 = vpop.permute.xlu0 %2605 }
 0x148   : > { %v2608_v32 = vunpack.i.h.bf16 %v2606_v47  ;;  %v2607_v13 = vunpack.i.l.bf16 %v2606_v47  ;;  %v1547_v36 = vsel %vm1542_vm9, %v1514_v17, %v2602_v14  ;;  %v1548_v38 = vsel %vm1542_vm9, %v1515_v61, %v2603_v27 }
 0x149   : > { %v2611_v59 = vpop.permute.xlu1 %2610 }
 0x14a   : > { %v2613_v21 = vunpack.i.h.bf16 %v2611_v59  ;;  %v2612_v16 = vunpack.i.l.bf16 %v2611_v59  ;;  %v1563_v41 = vsel %vm1542_vm9, %v1530_v63, %v2607_v13  ;;  %v1564_v28 = vsel %vm1542_vm9, %v1531_v1, %v2608_v32 }
 0x14b   : > { %v4202_v45 = vpop.permute.xlu0 %2615 }
 0x14c   : > { %v2617_v10 = vunpack.i.l.bf16 %v4202_v45  ;;  %v1549_v19 = vsel %vm1542_vm9, %v1516_v4, %v2612_v16  ;;  %v1550_v52 = vsel %vm1542_vm9, %v1517_v7, %v2613_v21  ;;  %v2618_v62 = vunpack.i.h.bf16 %v4202_v45 }
 0x14d   : > { %v2621_v24 = vpop.permute.xlu1 %2620 }
 0x14e   : > { %v2622_v56 = vunpack.i.l.bf16 %v2621_v24  ;;  %v2623_v47 = vunpack.i.h.bf16 %v2621_v24  ;;  %v1565_v15 = vsel %vm1542_vm9, %v1532_v43, %v2617_v10  ;;  %v1566_v26 = vsel %vm1542_vm9, %v1533_v42, %v2618_v62 }
 0x14f   : > { %v2626_v40 = vpop.permute.xlu0 %2625 }
 0x150   : > { %v2627_v11 = vunpack.i.l.bf16 %v2626_v40  ;;  %v2628_v12 = vunpack.i.h.bf16 %v2626_v40  ;;  %v1580_v59 = vsel %vm1575_vm10, %v1547_v36, %v2622_v56  ;;  %v1581_v22 = vsel %vm1575_vm10, %v1548_v38, %v2623_v47 }
 0x151   : > { %v2631_v25 = vpop.permute.xlu1 %2630 }
 0x152   : > { %v1596_v8 = vsel %vm1575_vm10, %v1563_v41, %v2627_v11  ;;  %v2633_v3 = vunpack.i.h.bf16 %v2631_v25  ;;  %v2632_v20 = vunpack.i.l.bf16 %v2631_v25  ;;  %v1597_v0 = vsel %vm1575_vm10, %v1564_v28, %v2628_v12 }
 0x153   : > { %v2636_v39 = vpop.permute.xlu0 %2635  ;;  %v2578_v11 = vunpack.i.h.bf16 %v4170_v37 }
 0x154   : > { %v2638_v34 = vunpack.i.h.bf16 %v2636_v39  ;;  %v2637_v44 = vunpack.i.l.bf16 %v2636_v39  ;;  %v1582_v55 = vsel %vm1575_vm10, %v1549_v19, %v2632_v20  ;;  %v1583_v17 = vsel %vm1575_vm10, %v1550_v52, %v2633_v3 }
 0x155   : > { %v2641_v49 = vpop.permute.xlu1 %2640  ;;  %v1501_v62 = vsel %vm1476_vm7, %v3871_v33, %v2578_v11 }
 0x156   : > { %v2643_v53 = vunpack.i.h.bf16 %v2641_v49  ;;  %v2642_v5 = vunpack.i.l.bf16 %v2641_v49  ;;  %v1598_v32 = vsel %vm1575_vm10, %v1565_v15, %v2637_v44  ;;  %v1599_v13 = vsel %vm1575_vm10, %v1566_v26, %v2638_v34  ;;  %v4678_v44 = vld [vmem:[#allocation12_spill] sm:$0xff] }
 0x157   : > { %v2646_v60 = vpop.permute.xlu0 %2645 }
 0x158   : > { %v1613_v31 = vsel %vm1608_vm11, %v1580_v59, %v2642_v5  ;;  %v1614_v46 = vsel %vm1608_vm11, %v1581_v22, %v2643_v53  ;;  %v2648_v45 = vunpack.i.h.bf16 %v2646_v60  ;;  %v2647_v29 = vunpack.i.l.bf16 %v2646_v60 }
 0x159   : > { %v1643_v50 = vpack.c.bf16 %v1614_v46, %v1613_v31  ;;  %v2651_v51 = vpop.permute.xlu1 %2650 }
 0x15a   : > { %v1629_v30 = vsel %vm1608_vm11, %v1596_v8, %v2647_v29  ;;  %v1630_v24 = vsel %vm1608_vm11, %v1597_v0, %v2648_v45  ;;  %v2653_v54 = vunpack.i.h.bf16 %v2651_v51  ;;  %v2652_v35 = vunpack.i.l.bf16 %v2651_v51 }
 0x15b   : > { %v1651_v61 = vpack.c.bf16 %v1630_v24, %v1629_v30  ;;  %v2656_v2 = vpop.permute.xlu0 %2655  ;;  %2151 = vmatprep.mubr.msk.bf16.mxu0 %vm1677_vm12, %v1643_v50 }
 0x15c   : > { %v1615_v18 = vsel %vm1608_vm11, %v1582_v55, %v2652_v35  ;;  %v1616_v40 = vsel %vm1608_vm11, %v1583_v17, %v2653_v54  ;;  %v2658_v27 = vunpack.i.h.bf16 %v2656_v2  ;;  %v2657_v14 = vunpack.i.l.bf16 %v2656_v2 }
 0x15d   : > { %v1644_v63 = vpack.c.bf16 %v1616_v40, %v1615_v18  ;;  %2167 = vmatprep.mubr.msk.bf16.mxu1 %vm1677_vm12, %v1651_v61  ;;  %v2661_v1 = vpop.permute.xlu1 %2660 }
 0x15e   : > { %v1631_v21 = vsel %vm1608_vm11, %v1598_v32, %v2657_v14  ;;  %v1632_v16 = vsel %vm1608_vm11, %v1599_v13, %v2658_v27  ;;  %v2662_v39 = vunpack.i.l.bf16 %v2661_v1  ;;  %v2663_v38 = vunpack.i.h.bf16 %v2661_v1 }
 0x15f   : > { %v1652_v25 = vpack.c.bf16 %v1632_v16, %v1631_v21  ;;  %v4258_v4 = vpop.permute.xlu0 %2665  ;;  %2152 = vmatmul.mubr.msk.bf16.gmra.mxu0 %vm1677_vm12, %v1644_v63 }
 0x160   : > { %v2667_v41 = vunpack.i.l.bf16 %v4258_v4  ;;  %v1502_v12 = vsel %vm1476_vm7, %v3874_v23, %v2662_v39  ;;  %v1503_v37 = vsel %vm1476_vm7, %v3881_v48, %v2663_v38 }
 0x161   : > { %2168 = vmatmul.mubr.msk.bf16.gmra.mxu1 %vm1677_vm12, %v1652_v25  ;;  %v2671_v7 = vpop.permute.xlu1 %2670 }
 0x162   : > { %v2673_v28 = vunpack.i.h.bf16 %v2671_v7  ;;  %v2672_v19 = vunpack.i.l.bf16 %v2671_v7  ;;  %v1504_v53 = vsel %vm1476_vm7, %v3884_v6, %v2667_v41 }
 0x163   : > { %v2676_v10 = vpop.permute.xlu0 %2675 }
 0x164   : > { %v2678_v49 = vunpack.i.h.bf16 %v2676_v10  ;;  %v2677_v15 = vunpack.i.l.bf16 %v2676_v10  ;;  %v1518_v8 = vsel %vm1509_vm8, %v3964_v58, %v2672_v19  ;;  %v1519_v33 = vsel %vm1509_vm8, %v3968_v57, %v2673_v28 }
 0x165   : > { %v2681_v56 = vpop.permute.xlu1 %2680 }
 0x166   : > { %v2683_v5 = vunpack.i.h.bf16 %v2681_v56  ;;  %v2682_v22 = vunpack.i.l.bf16 %v2681_v56  ;;  %v1534_v48 = vsel %vm1509_vm8, %v1501_v62, %v2677_v15  ;;  %v1535_v29 = vsel %vm1509_vm8, %v1502_v12, %v2678_v49 }
 0x167   : > { %v2686_v43 = vpop.permute.xlu0 %2685 }
 0x168   : > { %v2688_v3 = vunpack.i.h.bf16 %v2686_v43  ;;  %v2687_v20 = vunpack.i.l.bf16 %v2686_v43  ;;  %v1520_v58 = vsel %vm1509_vm8, %v3977_v9, %v2682_v22  ;;  %v1521_v57 = vsel %vm1509_vm8, %v4678_v44, %v2683_v5 }
 0x169   : > { %v2691_v42 = vpop.permute.xlu1 %2690 }
 0x16a   : > { %v2693_v60 = vunpack.i.h.bf16 %v2691_v42  ;;  %v2692_v31 = vunpack.i.l.bf16 %v2691_v42  ;;  %v1536_v30 = vsel %vm1509_vm8, %v1503_v37, %v2687_v20  ;;  %v1537_v24 = vsel %vm1509_vm8, %v1504_v53, %v2688_v3 }
 0x16b   : > { %v2696_v47 = vpop.permute.xlu0 %2695 }
 0x16c   : > { %v2698_v46 = vunpack.i.h.bf16 %v2696_v47  ;;  %v2697_v45 = vunpack.i.l.bf16 %v2696_v47  ;;  %v1551_v55 = vsel %vm1542_vm9, %v1518_v8, %v2692_v31  ;;  %v1552_v17 = vsel %vm1542_vm9, %v1519_v33, %v2693_v60 }
 0x16d   : > { %v2701_v36 = vpop.permute.xlu1 %2700 }
 0x16e   : > { %v2703_v6 = vunpack.i.h.bf16 %v2701_v36  ;;  %v2702_v0 = vunpack.i.l.bf16 %v2701_v36  ;;  %v1567_v61 = vsel %vm1542_vm9, %v1534_v48, %v2697_v45  ;;  %v1568_v9 = vsel %vm1542_vm9, %v1535_v29, %v2698_v46 }
 0x16f   : > { %v4264_v52 = vpop.permute.xlu0 %2705 }
 0x170   : > { %v2707_v50 = vunpack.i.l.bf16 %v4264_v52  ;;  %v1553_v2 = vsel %vm1542_vm9, %v1520_v58, %v2702_v0  ;;  %v1554_v18 = vsel %vm1542_vm9, %v1521_v57, %v2703_v6  ;;  %v2708_v40 = vunpack.i.h.bf16 %v4264_v52 }
 0x171   : > { %v2711_v59 = vpop.permute.xlu1 %2710  ;;  %v2668_v57 = vunpack.i.h.bf16 %v4258_v4 }
 0x172   : > { %v2712_v51 = vunpack.i.l.bf16 %v2711_v59  ;;  %v2713_v54 = vunpack.i.h.bf16 %v2711_v59  ;;  %v1569_v32 = vsel %vm1542_vm9, %v1536_v30, %v2707_v50  ;;  %v1570_v12 = vsel %vm1542_vm9, %v1537_v24, %v2708_v40 }
 0x173   : > { %v2716_v23 = vpop.permute.xlu0 %2715 }
 0x174   : > { %v2717_v35 = vunpack.i.l.bf16 %v2716_v23  ;;  %v2718_v27 = vunpack.i.h.bf16 %v2716_v23  ;;  %v1584_v13 = vsel %vm1575_vm10, %v1551_v55, %v2712_v51  ;;  %v1585_v21 = vsel %vm1575_vm10, %v1552_v17, %v2713_v54 }
 0x175   : > { %v2721_v34 = vpop.permute.xlu1 %2720 }
 0x176   : > { %v1600_v16 = vsel %vm1575_vm10, %v1567_v61, %v2717_v35  ;;  %v2723_v25 = vunpack.i.h.bf16 %v2721_v34  ;;  %v2722_v7 = vunpack.i.l.bf16 %v2721_v34  ;;  %v1601_v11 = vsel %vm1575_vm10, %v1568_v9, %v2718_v27  ;;  %v4679_v9 = vld [vmem:[#allocation3_spill] sm:$0xff]  ;;  %v4681_v27 = vld [vmem:[#allocation9_spill] sm:$0xff] }
 0x177   : > { %v2726_v26 = vpop.permute.xlu0 %2725 }
 0x178   : > { %v2728_v39 = vunpack.i.h.bf16 %v2726_v26  ;;  %v2727_v36 = vunpack.i.l.bf16 %v2726_v26  ;;  %v1586_v49 = vsel %vm1575_vm10, %v1553_v2, %v2722_v7  ;;  %v1587_v15 = vsel %vm1575_vm10, %v1554_v18, %v2723_v25  ;;  %v4680_v18 = vld [vmem:[#allocation7_spill] sm:$0xff]  ;;  %v4684_v25 = vld [vmem:[#allocation10_spill] sm:$0xff] }
 0x179   : > { %v2731_v14 = vpop.permute.xlu1 %2730  ;;  %v1490_v2 = vsel %vm1476_vm7, %v4679_v9, %v2668_v57 }
 0x17a   : > { %v2733_v63 = vunpack.i.h.bf16 %v2731_v14  ;;  %v2732_v1 = vunpack.i.l.bf16 %v2731_v14  ;;  %v1602_v33 = vsel %vm1575_vm10, %v1569_v32, %v2727_v36  ;;  %v1603_v3 = vsel %vm1575_vm10, %v1570_v12, %v2728_v39  ;;  %v4682_v14 = vld [vmem:[#allocation8_spill] sm:$0xff] }
 0x17b   : > { %v2736_v10 = vpop.permute.xlu0 %2735 }
 0x17c   : > { %v1617_v56 = vsel %vm1608_vm11, %v1584_v13, %v2732_v1  ;;  %v1618_v43 = vsel %vm1608_vm11, %v1585_v21, %v2733_v63  ;;  %v2738_v42 = vunpack.i.h.bf16 %v2736_v10  ;;  %v2737_v47 = vunpack.i.l.bf16 %v2736_v10  ;;  %v4683_v13 = vld [vmem:[#allocation4_spill] sm:$0xff]  ;;  %v4685_v10 = vld [vmem:[#allocation11_spill] sm:$0xff] }
 0x17d   : > { %v1645_v38 = vpack.c.bf16 %v1618_v43, %v1617_v56  ;;  %v2741_v41 = vpop.permute.xlu1 %2740 }
 0x17e   : > { %v1633_v28 = vsel %vm1608_vm11, %v1600_v16, %v2737_v47  ;;  %v1634_v19 = vsel %vm1608_vm11, %v1601_v11, %v2738_v42  ;;  %v2743_v52 = vunpack.i.h.bf16 %v2741_v41  ;;  %v2742_v62 = vunpack.i.l.bf16 %v2741_v41  ;;  %v4686_v47 = vld [vmem:[#allocation16_spill] sm:$0xff] }
 0x17f   : > { %v1653_v59 = vpack.c.bf16 %v1634_v19, %v1633_v28  ;;  %v2746_v37 = vpop.permute.xlu0 %2745  ;;  %2155 = vmatprep.mubr.msk.bf16.mxu0 %vm1677_vm12, %v1645_v38 }
 0x180   : > { %v1619_v53 = vsel %vm1608_vm11, %v1586_v49, %v2742_v62  ;;  %v1620_v5 = vsel %vm1608_vm11, %v1587_v15, %v2743_v52  ;;  %v2748_v22 = vunpack.i.h.bf16 %v2746_v37  ;;  %v2747_v8 = vunpack.i.l.bf16 %v2746_v37 }
 0x181   : > { %v1646_v20 = vpack.c.bf16 %v1620_v5, %v1619_v53  ;;  %2171 = vmatprep.mubr.msk.bf16.mxu1 %vm1677_vm12, %v1653_v59  ;;  %v2751_v23 = vpop.permute.xlu1 %2750 }
 0x182   : > { %v1635_v60 = vsel %vm1608_vm11, %v1602_v33, %v2747_v8  ;;  %v1636_v31 = vsel %vm1608_vm11, %v1603_v3, %v2748_v22  ;;  %v2753_v50 = vunpack.i.h.bf16 %v2751_v23  ;;  %v2752_v51 = vunpack.i.l.bf16 %v2751_v23 }
 0x183   : > { %v1654_v46 = vpack.c.bf16 %v1636_v31, %v1635_v60  ;;  %v2756_v45 = vpop.permute.xlu0 %2755  ;;  %2156 = vmatmul.mubr.msk.bf16.gmra.mxu0 %vm1677_vm12, %v1646_v20 }
 0x184   : > { %v2758_v30 = vunpack.i.h.bf16 %v2756_v45  ;;  %v2757_v24 = vunpack.i.l.bf16 %v2756_v45  ;;  %v1505_v40 = vsel %vm1476_vm7, %v4680_v18, %v2752_v51  ;;  %v1506_v4 = vsel %vm1476_vm7, %v4681_v27, %v2753_v50 }
 0x185   : > { %2172 = vmatmul.mubr.msk.bf16.gmra.mxu1 %vm1677_vm12, %v1654_v46  ;;  %v2761_v48 = vpop.permute.xlu1 %2760 }
 0x186   : > { %v2763_v35 = vunpack.i.h.bf16 %v2761_v48  ;;  %v2762_v26 = vunpack.i.l.bf16 %v2761_v48  ;;  %v1492_v32 = vsel %vm1476_vm7, %v4682_v14, %v2758_v30  ;;  %v1491_v63 = vsel %vm1476_vm7, %v4683_v13, %v2757_v24 }
 0x187   : > { %v2766_v29 = vpop.permute.xlu0 %2765 }
 0x188   : > { %v2768_v55 = vunpack.i.h.bf16 %v2766_v29  ;;  %v2767_v17 = vunpack.i.l.bf16 %v2766_v29  ;;  %v1507_v7 = vsel %vm1476_vm7, %v4684_v25, %v2762_v26  ;;  %v1508_v56 = vsel %vm1476_vm7, %v4685_v10, %v2763_v35 }
 0x189   : > { %v2771_v6 = vpop.permute.xlu1 %2770 }
 0x18a   : > { %v2773_v1 = vunpack.i.h.bf16 %v2771_v6  ;;  %v2772_v21 = vunpack.i.l.bf16 %v2771_v6  ;;  %v1522_v11 = vsel %vm1509_vm8, %v4686_v47, %v2767_v17  ;;  %v1523_v39 = vsel %vm1509_vm8, %v1490_v2, %v2768_v55 }
 0x18b   : > { %v2776_v0 = vpop.permute.xlu0 %2775 }
 0x18c   : > { %v2778_v43 = vunpack.i.h.bf16 %v2776_v0  ;;  %v2777_v42 = vunpack.i.l.bf16 %v2776_v0  ;;  %v1538_v12 = vsel %vm1509_vm8, %v1505_v40, %v2772_v21  ;;  %v1539_v49 = vsel %vm1509_vm8, %v1506_v4, %v2773_v1 }
 0x18d   : > { %v2781_v34 = vpop.permute.xlu1 %2780 }
 0x18e   : > { %v2783_v36 = vunpack.i.h.bf16 %v2781_v34  ;;  %v2782_v38 = vunpack.i.l.bf16 %v2781_v34  ;;  %v1524_v53 = vsel %vm1509_vm8, %v1491_v63, %v2777_v42  ;;  %v1525_v5 = vsel %vm1509_vm8, %v1492_v32, %v2778_v43 }
 0x18f   : > { %v2786_v58 = vpop.permute.xlu0 %2785 }
 0x190   : > { %v2788_v28 = vunpack.i.h.bf16 %v2786_v58  ;;  %v2787_v19 = vunpack.i.l.bf16 %v2786_v58  ;;  %v1540_v33 = vsel %vm1509_vm8, %v1507_v7, %v2782_v38  ;;  %v1541_v3 = vsel %vm1509_vm8, %v1508_v56, %v2783_v36 }
 0x191   : > { %v2791_v44 = vpop.permute.xlu1 %2790 }
 0x192   : > { %v2793_v52 = vunpack.i.h.bf16 %v2791_v44  ;;  %v2792_v62 = vunpack.i.l.bf16 %v2791_v44  ;;  %v1555_v31 = vsel %vm1542_vm9, %v1522_v11, %v2787_v19  ;;  %v1556_v46 = vsel %vm1542_vm9, %v1523_v39, %v2788_v28  ;;  %v4375_v28 = vld [vmem:[%s4522_s2] ss:$0 sm:$0xff] }
 0x193   : > { %v2796_v54 = vpop.permute.xlu0 %2795 }
 0x194   : > { %v2798_v15 = vunpack.i.h.bf16 %v2796_v54  ;;  %v2797_v59 = vunpack.i.l.bf16 %v2796_v54  ;;  %v1571_v45 = vsel %vm1542_vm9, %v1538_v12, %v2792_v62  ;;  %v1572_v48 = vsel %vm1542_vm9, %v1539_v49, %v2793_v52  ;;  %v4380_v52 = vld [vmem:[%s4523_s3] ss:$0 sm:$0xff] }
 0x195   : > { %v4317_v61 = vpop.permute.xlu1 %2800 }
 0x196   : > { %v2802_v22 = vunpack.i.l.bf16 %v4317_v61  ;;  %v1557_v29 = vsel %vm1542_vm9, %v1524_v53, %v2797_v59  ;;  %v1558_v6 = vsel %vm1542_vm9, %v1525_v5, %v2798_v15  ;;  %v2803_v0 = vunpack.i.h.bf16 %v4317_v61 }
 0x197   : > { %v2806_v16 = vpop.permute.xlu0 %2805 }
 0x198   : > { %v2807_v8 = vunpack.i.l.bf16 %v2806_v16  ;;  %v2808_v20 = vunpack.i.h.bf16 %v2806_v16  ;;  %v1573_v44 = vsel %vm1542_vm9, %v1540_v33, %v2802_v22  ;;  %v1574_v1 = vsel %vm1542_vm9, %v1541_v3, %v2803_v0 }
 0x199   : > { %v2811_v41 = vpop.permute.xlu1 %2810 }
 0x19a   : > { %v2812_v23 = vunpack.i.l.bf16 %v2811_v41  ;;  %v2813_v34 = vunpack.i.h.bf16 %v2811_v41  ;;  %v1588_v57 = vsel %vm1575_vm10, %v1555_v31, %v2807_v8  ;;  %v1589_v30 = vsel %vm1575_vm10, %v1556_v46, %v2808_v20 }
 0x19b   : > { %v2816_v37 = vpop.permute.xlu0 %2815 }
 0x19c   : > { %v1604_v24 = vsel %vm1575_vm10, %v1571_v45, %v2812_v23  ;;  %v2818_v54 = vunpack.i.h.bf16 %v2816_v37  ;;  %v2817_v35 = vunpack.i.l.bf16 %v2816_v37  ;;  %v1605_v2 = vsel %vm1575_vm10, %v1572_v48, %v2813_v34 }
 0x19d   : > { %v2821_v60 = vpop.permute.xlu1 %2820 }
 0x19e   : > { %v2823_v18 = vunpack.i.h.bf16 %v2821_v60  ;;  %v2822_v40 = vunpack.i.l.bf16 %v2821_v60  ;;  %v1590_v21 = vsel %vm1575_vm10, %v1557_v29, %v2817_v35  ;;  %v1591_v16 = vsel %vm1575_vm10, %v1558_v6, %v2818_v54 }
 0x19f   : > { %v2826_v58 = vpop.permute.xlu0 %2825 }
 0x1a0   : > { %v2828_v50 = vunpack.i.h.bf16 %v2826_v58  ;;  %v2827_v51 = vunpack.i.l.bf16 %v2826_v58  ;;  %v1606_v47 = vsel %vm1575_vm10, %v1573_v44, %v2822_v40  ;;  %v1607_v11 = vsel %vm1575_vm10, %v1574_v1, %v2823_v18 }
 0x1a1   : > { %v2831_v26 = vpop.permute.xlu1 %2830 }
 0x1a2   : > { %v1621_v55 = vsel %vm1608_vm11, %v1588_v57, %v2827_v51  ;;  %v1622_v17 = vsel %vm1608_vm11, %v1589_v30, %v2828_v50  ;;  %v2833_v61 = vunpack.i.h.bf16 %v2831_v26  ;;  %v2832_v9 = vunpack.i.l.bf16 %v2831_v26 }
 0x1a3   : > { %v1647_v27 = vpack.c.bf16 %v1622_v17, %v1621_v55  ;;  %v2836_v4 = vpop.permute.xlu0 %2835 }
 0x1a4   : > { %v1637_v14 = vsel %vm1608_vm11, %v1604_v24, %v2832_v9  ;;  %v1638_v32 = vsel %vm1608_vm11, %v1605_v2, %v2833_v61  ;;  %v2838_v13 = vunpack.i.h.bf16 %v2836_v4  ;;  %v2837_v63 = vunpack.i.l.bf16 %v2836_v4 }
 0x1a5   : > { %v1655_v25 = vpack.c.bf16 %v1638_v32, %v1637_v14  ;;  %2159 = vmatprep.mubr.msk.bf16.mxu0 %vm1677_vm12, %v1647_v27  ;;  %v2841_v7 = vpop.permute.xlu1 %2840 }
 0x1a6   : > { %v1623_v10 = vsel %vm1608_vm11, %v1590_v21, %v2837_v63  ;;  %v1624_v56 = vsel %vm1608_vm11, %v1591_v16, %v2838_v13  ;;  %v2843_v43 = vunpack.i.h.bf16 %v2841_v7  ;;  %v2842_v42 = vunpack.i.l.bf16 %v2841_v7 }
 0x1a7   : > { %v1648_v39 = vpack.c.bf16 %v1624_v56, %v1623_v10  ;;  %2175 = vmatprep.mubr.msk.bf16.mxu1 %vm1677_vm12, %v1655_v25 }
 0x1a8   : > { %v1639_v36 = vsel %vm1608_vm11, %v1606_v47, %v2842_v42  ;;  %v1640_v38 = vsel %vm1608_vm11, %v1607_v11, %v2843_v43 }
 0x1a9   : > { %v1656_v41 = vpack.c.bf16 %v1640_v38, %v1639_v36  ;;  %2160 = vmatmul.mubr.msk.bf16.gmra.mxu0 %vm1677_vm12, %v1648_v39 }
 0x1ab   : > { %2176 = vmatmul.mubr.msk.bf16.gmra.mxu1 %vm1677_vm12, %v1656_v41 }
 0x1fb   : > { %v2149_v19 = vpop.f32.mrf.mxu0 }
 0x1fc   : > { %v1900_v62 = vmul.f32 %v2149_v19, %v4375_v28 }
 0x1fd   : > { %v2165_v12 = vpop.f32.mrf.mxu1  ;;  %v1764_v49 = vpop.f32.mrf.mxu0 }
 0x1fe   : > { %v1939_v15 = vadd.f32 %v4380_v52, %v1900_v62  ;;  %v1916_v59 = vmul.f32 %v2165_v12, %v4375_v28  ;;  %v1898_v37 = vmul.f32 %v4375_v28, %v1764_v49 }
 0x1ff   : > { %v1828_v53 = vpop.f32.mrf.mxu1  ;;  %v2150_v5 = vpop.f32.mrf.mxu0 }
 0x200   : > { %v1971_v22 = vmax.f32 %v1939_v15, 0.0  ;;  %v1955_v8 = vadd.f32 %v4380_v52, %v1916_v59  ;;  %v1937_v33 = vadd.f32 %v4380_v52, %v1898_v37  ;;  %v1914_v3 = vmul.f32 %v4375_v28, %v1828_v53 }
 0x201   : > { %v1901_v20 = vmul.f32 %v2150_v5, %v4375_v28  ;;  %v2166_v23 = vpop.f32.mrf.mxu1  ;;  %v1767_v60 = vpop.f32.mrf.mxu0 }
 0x202   : > { %2003 = vst.msk [vmem:[%s4391_s19 + $0x10] sm:$0xff] %vm1608_vm11, %v1971_v22  ;;  %v1987_v31 = vmax.f32 %v1955_v8, 0.0  ;;  %v1969_v46 = vmax.f32 %v1937_v33, 0.0  ;;  %v1953_v45 = vadd.f32 %v4380_v52, %v1914_v3  ;;  %v1917_v48 = vmul.f32 %v2166_v23, %v4375_v28 }
 0x203   : > { %v1940_v29 = vadd.f32 %v4380_v52, %v1901_v20  ;;  %v1899_v6 = vmul.f32 %v4375_v28, %v1767_v60  ;;  %v1831_v0 = vpop.f32.mrf.mxu1 }
 0x204   : > { %2019 = vst.msk [vmem:[%s4391_s19 + $0x90] sm:$0xff] %vm1608_vm11, %v1987_v31  ;;  %2001 = vst.msk [vmem:[%s4391_s19] sm:$0xff] %vm1608_vm11, %v1969_v46  ;;  %v1985_v34 = vmax.f32 %v1953_v45, 0.0  ;;  %v1956_v58 = vadd.f32 %v4380_v52, %v1917_v48  ;;  %v1915_v44 = vmul.f32 %v4375_v28, %v1831_v0 }
 0x205   : > { %v1972_v57 = vmax.f32 %v1940_v29, 0.0  ;;  %v1938_v50 = vadd.f32 %v4380_v52, %v1899_v6 }
 0x206   : > { %2017 = vst.msk [vmem:[%s4391_s19 + $0x80] sm:$0xff] %vm1608_vm11, %v1985_v34  ;;  %v1988_v51 = vmax.f32 %v1956_v58, 0.0  ;;  %v1954_v30 = vadd.f32 %v4380_v52, %v1915_v44 }
 0x207   : > { %2004 = vst.msk [vmem:[%s4391_s19 + $0x18] sm:$0xff] %vm1608_vm11, %v1972_v57  ;;  %v1970_v24 = vmax.f32 %v1938_v50, 0.0 }
 0x208   : > { %2020 = vst.msk [vmem:[%s4391_s19 + $0x98] sm:$0xff] %vm1608_vm11, %v1988_v51  ;;  %v1986_v54 = vmax.f32 %v1954_v30, 0.0 }
 0x209   : > { %2002 = vst.msk [vmem:[%s4391_s19 + $0x8] sm:$0xff] %vm1608_vm11, %v1970_v24 }
 0x20a   : > { %2018 = vst.msk [vmem:[%s4391_s19 + $0x88] sm:$0xff] %vm1608_vm11, %v1986_v54 }
 0x21f   : > { %v2153_v35 = vpop.f32.mrf.mxu0 }
 0x220   : > { %v1904_v26 = vmul.f32 %v2153_v35, %v4375_v28 }
 0x221   : > { %v2169_v55 = vpop.f32.mrf.mxu1  ;;  %v1780_v17 = vpop.f32.mrf.mxu0 }
 0x222   : > { %v1943_v61 = vadd.f32 %v4380_v52, %v1904_v26  ;;  %v1920_v9 = vmul.f32 %v2169_v55, %v4375_v28  ;;  %v1902_v2 = vmul.f32 %v4375_v28, %v1780_v17 }
 0x223   : > { %v1844_v18 = vpop.f32.mrf.mxu1  ;;  %v2154_v40 = vpop.f32.mrf.mxu0 }
 0x224   : > { %v1975_v27 = vmax.f32 %v1943_v61, 0.0  ;;  %v1959_v4 = vadd.f32 %v4380_v52, %v1920_v9  ;;  %v1941_v14 = vadd.f32 %v4380_v52, %v1902_v2  ;;  %v1918_v32 = vmul.f32 %v4375_v28, %v1844_v18 }
 0x225   : > { %v1905_v13 = vmul.f32 %v2154_v40, %v4375_v28  ;;  %v2170_v63 = vpop.f32.mrf.mxu1  ;;  %v1783_v1 = vpop.f32.mrf.mxu0 }
 0x226   : > { %2007 = vst.msk [vmem:[%s4391_s19 + $0x30] sm:$0xff] %vm1608_vm11, %v1975_v27  ;;  %v1991_v21 = vmax.f32 %v1959_v4, 0.0  ;;  %v1973_v16 = vmax.f32 %v1941_v14, 0.0  ;;  %v1957_v25 = vadd.f32 %v4380_v52, %v1918_v32  ;;  %v1921_v7 = vmul.f32 %v2170_v63, %v4375_v28 }
 0x227   : > { %v1944_v10 = vadd.f32 %v4380_v52, %v1905_v13  ;;  %v1903_v56 = vmul.f32 %v4375_v28, %v1783_v1  ;;  %v1847_v43 = vpop.f32.mrf.mxu1 }
 0x228   : > { %2023 = vst.msk [vmem:[%s4391_s19 + $0xb0] sm:$0xff] %vm1608_vm11, %v1991_v21  ;;  %2005 = vst.msk [vmem:[%s4391_s19 + $0x20] sm:$0xff] %vm1608_vm11, %v1973_v16  ;;  %v1989_v42 = vmax.f32 %v1957_v25, 0.0  ;;  %v1960_v47 = vadd.f32 %v4380_v52, %v1921_v7  ;;  %v1919_v11 = vmul.f32 %v4375_v28, %v1847_v43 }
 0x229   : > { %v1976_v39 = vmax.f32 %v1944_v10, 0.0  ;;  %v1942_v36 = vadd.f32 %v4380_v52, %v1903_v56 }
 0x22a   : > { %2021 = vst.msk [vmem:[%s4391_s19 + $0xa0] sm:$0xff] %vm1608_vm11, %v1989_v42  ;;  %v1992_v38 = vmax.f32 %v1960_v47, 0.0  ;;  %v1958_v41 = vadd.f32 %v4380_v52, %v1919_v11 }
 0x22b   : > { %2008 = vst.msk [vmem:[%s4391_s19 + $0x38] sm:$0xff] %vm1608_vm11, %v1976_v39  ;;  %v1974_v19 = vmax.f32 %v1942_v36, 0.0 }
 0x22c   : > { %2024 = vst.msk [vmem:[%s4391_s19 + $0xb8] sm:$0xff] %vm1608_vm11, %v1992_v38  ;;  %v1990_v62 = vmax.f32 %v1958_v41, 0.0 }
 0x22d   : > { %2006 = vst.msk [vmem:[%s4391_s19 + $0x28] sm:$0xff] %vm1608_vm11, %v1974_v19 }
 0x22e   : > { %2022 = vst.msk [vmem:[%s4391_s19 + $0xa8] sm:$0xff] %vm1608_vm11, %v1990_v62 }
 0x243   : > { %v2157_v12 = vpop.f32.mrf.mxu0 }
 0x244   : > { %v1908_v49 = vmul.f32 %v2157_v12, %v4375_v28 }
 0x245   : > { %v2173_v15 = vpop.f32.mrf.mxu1  ;;  %v1796_v59 = vpop.f32.mrf.mxu0 }
 0x246   : > { %v1947_v37 = vadd.f32 %v4380_v52, %v1908_v49  ;;  %v1924_v53 = vmul.f32 %v2173_v15, %v4375_v28  ;;  %v1906_v5 = vmul.f32 %v4375_v28, %v1796_v59 }
 0x247   : > { %v1860_v22 = vpop.f32.mrf.mxu1  ;;  %v2158_v8 = vpop.f32.mrf.mxu0 }
 0x248   : > { %v1979_v33 = vmax.f32 %v1947_v37, 0.0  ;;  %v1963_v3 = vadd.f32 %v4380_v52, %v1924_v53  ;;  %v1945_v20 = vadd.f32 %v4380_v52, %v1906_v5  ;;  %v1922_v23 = vmul.f32 %v4375_v28, %v1860_v22 }
 0x249   : > { %v1909_v60 = vmul.f32 %v2158_v8, %v4375_v28  ;;  %v2174_v31 = vpop.f32.mrf.mxu1  ;;  %v1799_v46 = vpop.f32.mrf.mxu0 }
 0x24a   : > { %2011 = vst.msk [vmem:[%s4391_s19 + $0x50] sm:$0xff] %vm1608_vm11, %v1979_v33  ;;  %v1995_v45 = vmax.f32 %v1963_v3, 0.0  ;;  %v1977_v48 = vmax.f32 %v1945_v20, 0.0  ;;  %v1961_v29 = vadd.f32 %v4380_v52, %v1922_v23  ;;  %v1925_v6 = vmul.f32 %v2174_v31, %v4375_v28 }
 0x24b   : > { %v1948_v0 = vadd.f32 %v4380_v52, %v1909_v60  ;;  %v1907_v34 = vmul.f32 %v4375_v28, %v1799_v46  ;;  %v1863_v58 = vpop.f32.mrf.mxu1 }
 0x24c   : > { %2027 = vst.msk [vmem:[%s4391_s19 + $0xd0] sm:$0xff] %vm1608_vm11, %v1995_v45  ;;  %2009 = vst.msk [vmem:[%s4391_s19 + $0x40] sm:$0xff] %vm1608_vm11, %v1977_v48  ;;  %v1993_v44 = vmax.f32 %v1961_v29, 0.0  ;;  %v1964_v57 = vadd.f32 %v4380_v52, %v1925_v6  ;;  %v1923_v50 = vmul.f32 %v4375_v28, %v1863_v58 }
 0x24d   : > { %v1980_v51 = vmax.f32 %v1948_v0, 0.0  ;;  %v1946_v30 = vadd.f32 %v4380_v52, %v1907_v34 }
 0x24e   : > { %2025 = vst.msk [vmem:[%s4391_s19 + $0xc0] sm:$0xff] %vm1608_vm11, %v1993_v44  ;;  %v1996_v24 = vmax.f32 %v1964_v57, 0.0  ;;  %v1962_v54 = vadd.f32 %v4380_v52, %v1923_v50 }
 0x24f   : > { %2012 = vst.msk [vmem:[%s4391_s19 + $0x58] sm:$0xff] %vm1608_vm11, %v1980_v51  ;;  %v1978_v35 = vmax.f32 %v1946_v30, 0.0 }
 0x250   : > { %2028 = vst.msk [vmem:[%s4391_s19 + $0xd8] sm:$0xff] %vm1608_vm11, %v1996_v24  ;;  %v1994_v26 = vmax.f32 %v1962_v54, 0.0 }
 0x251   : > { %2010 = vst.msk [vmem:[%s4391_s19 + $0x48] sm:$0xff] %vm1608_vm11, %v1978_v35 }
 0x252   : > { %2026 = vst.msk [vmem:[%s4391_s19 + $0xc8] sm:$0xff] %vm1608_vm11, %v1994_v26 }
 0x269   : > { %v2161_v55 = vpop.f32.mrf.mxu0 }
 0x26a   : > { %v1912_v17 = vmul.f32 %v2161_v55, %v4375_v28 }
 0x26b   : > { %v1812_v61 = vpop.f32.mrf.mxu0  ;;  %v2177_v9 = vpop.f32.mrf.mxu1 }
 0x26c   : > { %v1951_v2 = vadd.f32 %v4380_v52, %v1912_v17  ;;  %v1910_v18 = vmul.f32 %v4375_v28, %v1812_v61  ;;  %v1928_v40 = vmul.f32 %v2177_v9, %v4375_v28 }
 0x26d   : > { %v2162_v27 = vpop.f32.mrf.mxu0  ;;  %v1876_v4 = vpop.f32.mrf.mxu1 }
 0x26e   : > { %v1983_v14 = vmax.f32 %v1951_v2, 0.0  ;;  %v1949_v32 = vadd.f32 %v4380_v52, %v1910_v18  ;;  %v1913_v13 = vmul.f32 %v2162_v27, %v4375_v28  ;;  %v1967_v63 = vadd.f32 %v4380_v52, %v1928_v40 }
 0x26f   : > { %v1815_v1 = vpop.f32.mrf.mxu0  ;;  %v1926_v21 = vmul.f32 %v4375_v28, %v1876_v4  ;;  %v2178_v16 = vpop.f32.mrf.mxu1 }
 0x270   : > { %2015 = vst.msk [vmem:[%s4391_s19 + $0x70] sm:$0xff] %vm1608_vm11, %v1983_v14  ;;  %v1981_v25 = vmax.f32 %v1949_v32, 0.0  ;;  %v1952_v7 = vadd.f32 %v4380_v52, %v1913_v13  ;;  %v1999_v10 = vmax.f32 %v1967_v63, 0.0  ;;  %v1911_v56 = vmul.f32 %v4375_v28, %v1815_v1 }
 0x271   : > { %v1965_v43 = vadd.f32 %v4380_v52, %v1926_v21  ;;  %v1929_v42 = vmul.f32 %v2178_v16, %v4375_v28  ;;  %v1879_v47 = vpop.f32.mrf.mxu1 }
 0x272   : > { %2013 = vst.msk [vmem:[%s4391_s19 + $0x60] sm:$0xff] %vm1608_vm11, %v1981_v25  ;;  %v1984_v11 = vmax.f32 %v1952_v7, 0.0  ;;  %2031 = vst.msk [vmem:[%s4391_s19 + $0xf0] sm:$0xff] %vm1608_vm11, %v1999_v10  ;;  %v1950_v39 = vadd.f32 %v4380_v52, %v1911_v56  ;;  %v1927_v36 = vmul.f32 %v4375_v28, %v1879_v47 }
 0x273   : > { %v1997_v38 = vmax.f32 %v1965_v43, 0.0  ;;  %v1968_v41 = vadd.f32 %v4380_v52, %v1929_v42 }
 0x274   : > { %2016 = vst.msk [vmem:[%s4391_s19 + $0x78] sm:$0xff] %vm1608_vm11, %v1984_v11  ;;  %v1982_v19 = vmax.f32 %v1950_v39, 0.0  ;;  %v1966_v62 = vadd.f32 %v4380_v52, %v1927_v36 }
 0x275   : > { %2029 = vst.msk [vmem:[%s4391_s19 + $0xe0] sm:$0xff] %vm1608_vm11, %v1997_v38  ;;  %v2000_v12 = vmax.f32 %v1968_v41, 0.0 }
 0x276   : > { %2014 = vst.msk [vmem:[%s4391_s19 + $0x68] sm:$0xff] %vm1608_vm11, %v1982_v19  ;;  %v1998_v49 = vmax.f32 %v1966_v62, 0.0 }
 0x277   : > { %2032 = vst.msk [vmem:[%s4391_s19 + $0xf8] sm:$0xff] %vm1608_vm11, %v2000_v12 }
 0x278   : > { %2030 = vst.msk [vmem:[%s4391_s19 + $0xe8] sm:$0xff] %vm1608_vm11, %v1998_v49 }
 0x279 PF: > { %s14_s15 = sadd.s32 1, %s2871_s15  }
 0x27a   : > { %p11_p4 = scmp.ge.s32.totalorder %s14_s15, 4  }
 0x27c   :  { %13 = sbr.rel (!%p11_p4) target bundleno = 1 (0x1), region = 67 }

// kernel: network_forward.5
= control target key start
LH: loop header
LB: loop body
LE: loop exit
PB: predicated region body
PF: predicated region fallthrough
CT: control target
= control target key end

     0   :  { %s7928_s13 = smov 0   ;;  %s11511_s0 = inlined_call_operand.vmem [shape: f32[2,16,16,32], index: 0, kind: input, shape index: {}]   ;;  %s11512_s1 = inlined_call_operand.vmem [shape: bf16[288,32], index: 1, kind: input, shape index: {}]   ;;  %s11513_s2 = inlined_call_operand.vmem [shape: f32[1,32], index: 2, kind: input, shape index: {}]   ;;  %s11514_s3 = inlined_call_operand.vmem [shape: f32[1,32], index: 3, kind: input, shape index: {}]   ;;  %s11515_s4 = inlined_call_operand.vmem [shape: bf16[288,32], index: 4, kind: input, shape index: {}]   ;;  %s11516_s5 = inlined_call_operand.vmem [shape: f32[1,32], index: 5, kind: input, shape index: {}]   ;;  %s11517_s6 = inlined_call_operand.vmem [shape: f32[1,32], index: 6, kind: input, shape index: {}]   ;;  %s11518_s7 = inlined_call_operand.vmem [shape: f32[32,2], index: 7, kind: input, shape index: {}]   ;;  %s11519_s8 = inlined_call_operand.vmem [shape: f32[2,32], index: 8, kind: input, shape index: {}]   ;;  %s11520_s9 = inlined_call_operand.vmem [shape: f32[7,44,16], index: 9, kind: input, shape index: {}]   ;;  %s11521_s10 = inlined_call_operand.vmem [shape: f32[2,16,16,32], index: 10, kind: output, shape index: {}]  }
   0x1 LB: > { %s6143_s14 = sadd.s32 4294967295, %s7866_s13   ;;  %p6147_p0 = scmp.ge.s32.totalorder %s7866_s13, 1  ;;  %s7866_s13 = sphi %s7928_s13, %s20_s13  }
   0x2   : > { %p312_p1 = scmp.lt.s32.totalorder %s7866_s13, 3 }
   0x4   : > { %p313_p2 = pnand %p6147_p0, %p312_p1 }
   0x6   : > { %316 = sbr.rel (%p313_p2) target bundleno = 2124 (0x84c), region = 60 }
   0xb   : > { %vm393_vm0 = vcmask 261120   ;;  %vm396_vm1 = vcmask 254976   ;;  %v11522_v0 = vmov 0.0   ;;  %p350_p3 = scmp.lt.s32.totalorder %s6143_s14, 1  ;;  %v7777_v1 = vld [vmem:[%s11512_s1 + $0x78] sm:$0xff]   ;;  %v7779_v3 = vld [vmem:[%s11512_s1 + $0x70] sm:$0xff]  }
   0xc   : > { %394 = vst.msk [vmem:[#allocation2] sm:$0xff] %vm393_vm0, %v11522_v0  ;;  %395 = vst.msk [vmem:[#allocation2 + $0x8] sm:$0xff] %vm393_vm0, %v11522_v0  ;;  %6288 = vmatprep.subr.bf16.mxu0 %v7777_v1  ;;  %v7778_v2 = vld [vmem:[%s11512_s1 + $0x38] sm:$0xff]   ;;  %v7780_v4 = vld [vmem:[%s11512_s1 + $0x30] sm:$0xff]   ;;  %vm665_vm2 = vcmask 1045504   ;;  %vm584_vm3 = vcmask 1046528  }
   0xd   : > { %397 = vst.msk [vmem:[#allocation2 + $0x10] sm:$0x3] %vm396_vm1, %v11522_v0  ;;  %400 = vst.msk [vmem:[#allocation2 + $0x28] sm:$0x3] %vm396_vm1, %v11522_v0  ;;  %s11817_s14 = smov (!%p350_p3, %s6143_s14), 1  ;;  %6289 = vmatpush3.bf16.msra.mxu0 %v7778_v2  ;;  %v7781_v5 = vld [vmem:[%s11512_s1 + $0x68] sm:$0xff]  }
   0xe   : > { %398 = vst.msk [vmem:[#allocation2 + $0x18] sm:$0xff] %vm393_vm0, %v11522_v0  ;;  %399 = vst.msk [vmem:[#allocation2 + $0x20] sm:$0xff] %vm393_vm0, %v11522_v0  ;;  %s6286_s21 = sshll.u32 %s11817_s14, 8  ;;  %6290 = vmatprep.subr.bf16.mxu0 %v7779_v3  ;;  %s7869_s29 = smov 64   ;;  %v7782_v47 = vld [vmem:[%s11512_s1 + $0x28] sm:$0xff]   ;;  %vm1444_vm4 = vcmask 523264  }
   0xf   : > { %401 = vst.msk [vmem:[#allocation2 + $0x30] sm:$0xff] %vm393_vm0, %v11522_v0  ;;  %402 = vst.msk [vmem:[#allocation2 + $0x38] sm:$0xff] %vm393_vm0, %v11522_v0  ;;  %s8068_s26 = scalar_lea.vmem %s11511_s0, %s6286_s21  ;;  %s7870_s30 = smov 32   ;;  %vm1477_vm5 = vcmask 785408   ;;  %vm7872_vm6 = vmmov 0   ;;  %vm4264_vm7 = vcmask 1040384  }
  0x10   : > { %403 = vst.msk [vmem:[#allocation2 + $0x40] sm:$0x3] %vm396_vm1, %v11522_v0  ;;  %406 = vst.msk [vmem:[#allocation2 + $0x58] sm:$0x3] %vm396_vm1, %v11522_v0  ;;  %v8074_v6 = vld [vmem:[%s8068_s26 + $0x20] sm:$0xff]  ;;  %v8077_v7 = vld [vmem:[%s8068_s26 + $0x28] sm:$0xff] }
  0x11   : > { %404 = vst.msk [vmem:[#allocation2 + $0x48] sm:$0xff] %vm393_vm0, %v11522_v0  ;;  %405 = vst.msk [vmem:[#allocation2 + $0x50] sm:$0xff] %vm393_vm0, %v11522_v0  ;;  %v8080_v8 = vld [vmem:[%s8068_s26 + $0x10] sm:$0xff]  ;;  %v8102_v16 = vld [vmem:[%s8068_s26 + $0x18] sm:$0xff]  ;;  %6291 = vmatpush3.bf16.msra.mxu0 %v7780_v4  ;;  %s7871_s15 = smov 96   ;;  %vm4349_vm8 = vcmask 1041408  }
  0x12   : > { %407 = vst.msk [vmem:[#allocation2 + $0x60] sm:$0xff] %vm393_vm0, %v11522_v0  ;;  %408 = vst.msk [vmem:[#allocation2 + $0x68] sm:$0xff] %vm393_vm0, %v11522_v0  ;;  %v8105_v17 = vld [vmem:[%s8068_s26] sm:$0xff]  ;;  %v8111_v20 = vld [vmem:[%s8068_s26 + $0x8] sm:$0xff]  ;;  %6292 = vmatprep.subr.bf16.mxu0 %v7781_v5  ;;  %vm4345_vm9 = vcmask 15360   ;;  %vm5131_vm10 = vcmask 1043456  }
  0x13   : > { %409 = vst.msk [vmem:[#allocation2 + $0x70] sm:$0x3] %vm396_vm1, %v11522_v0  ;;  %412 = vst.msk [vmem:[#allocation2 + $0x88] sm:$0x3] %vm396_vm1, %v11522_v0  ;;  %v8082_v9 = vld [vmem:[#allocation2] sm:$0xff]  ;;  %v8084_v10 = vld [vmem:[#allocation2 + $0x8] sm:$0xff] }
  0x14   : > { %410 = vst.msk [vmem:[#allocation2 + $0x78] sm:$0xff] %vm393_vm0, %v11522_v0  ;;  %411 = vst.msk [vmem:[#allocation2 + $0x80] sm:$0xff] %vm393_vm0, %v11522_v0  ;;  %v484_v11 = vld [vmem:[#allocation2 + $0x10] sm:$0x3]  ;;  %v666_v12 = vrot.slane %v8082_v9, 2  ;;  %v667_v13 = vrot.slane %v8084_v10, 2 }
  0x15   : > { %413 = vst.msk [vmem:[#allocation2 + $0x90] sm:$0xff] %vm393_vm0, %v11522_v0  ;;  %414 = vst.msk [vmem:[#allocation2 + $0x98] sm:$0xff] %vm393_vm0, %v11522_v0  ;;  %v669_v14 = vrot.slane %v484_v11, 2  ;;  %v585_v15 = vrot.slane %v8082_v9, 1  ;;  %v586_v18 = vrot.slane %v8084_v10, 1  ;;  %v588_v19 = vrot.slane %v484_v11, 1  ;;  %6293 = vmatpush3.bf16.msra.mxu0 %v7782_v47 }
  0x16   : > { %415 = vst.msk [vmem:[#allocation2 + $0xa0] sm:$0x3] %vm396_vm1, %v11522_v0  ;;  %418 = vst.msk [vmem:[#allocation2 + $0xb8] sm:$0x3] %vm396_vm1, %v11522_v0  ;;  %v8116_v21 = vld [vmem:[%s8068_s26 + $0x30] sm:$0xff]  ;;  %v8119_v22 = vld [vmem:[%s8068_s26 + $0x38] sm:$0xff]  ;;  %v668_v23 = vsel %vm665_vm2, %v666_v12, %v667_v13 }
  0x17   : > { %416 = vst.msk [vmem:[#allocation2 + $0xa8] sm:$0xff] %vm393_vm0, %v11522_v0  ;;  %417 = vst.msk [vmem:[#allocation2 + $0xb0] sm:$0xff] %vm393_vm0, %v11522_v0  ;;  %v670_v24 = vsel %vm665_vm2, %v667_v13, %v669_v14  ;;  %v8130_v25 = vld [vmem:[%s8068_s26 + $0x40] sm:$0xff]  ;;  %v8133_v26 = vld [vmem:[%s8068_s26 + $0x48] sm:$0xff]  ;;  %v587_v29 = vsel %vm584_vm3, %v585_v15, %v586_v18  ;;  %v589_v30 = vsel %vm584_vm3, %v586_v18, %v588_v19  ;;  %vm4693_vm11 = vcmask 359424  }
  0x18   : > { %419 = vst.msk [vmem:[#allocation2 + $0xc0] sm:$0xff] %vm393_vm0, %v11522_v0  ;;  %420 = vst.msk [vmem:[#allocation2 + $0xc8] sm:$0xff] %vm393_vm0, %v11522_v0  ;;  %v8136_v27 = vld [vmem:[%s8068_s26 + $0x50] sm:$0xff]  ;;  %v6822_v28 = vpack.i.bf16 %v670_v24, %v668_v23  ;;  %v8145_v31 = vld [vmem:[%s8068_s26 + $0x58] sm:$0xff]  ;;  %v6817_v34 = vpack.i.bf16 %v589_v30, %v587_v29  ;;  %vm4696_vm12 = vcmask 357376   ;;  %vm4742_vm13 = vcmask 154712  }
  0x19   : > { %421 = vst.msk [vmem:[#allocation2 + $0xd0] sm:$0x3] %vm396_vm1, %v11522_v0  ;;  %424 = vst.msk [vmem:[#allocation2 + $0xe8] sm:$0x3] %vm396_vm1, %v11522_v0  ;;  %v8150_v32 = vld [vmem:[%s8068_s26 + $0x60] sm:$0xff]  ;;  %v8153_v33 = vld [vmem:[%s8068_s26 + $0x68] sm:$0xff] }
  0x1a   : > { %422 = vst.msk [vmem:[#allocation2 + $0xd8] sm:$0xff] %vm393_vm0, %v11522_v0  ;;  %423 = vst.msk [vmem:[#allocation2 + $0xe0] sm:$0xff] %vm393_vm0, %v11522_v0  ;;  %v8162_v35 = vld [vmem:[%s8068_s26 + $0x70] sm:$0xff]  ;;  %v8165_v36 = vld [vmem:[%s8068_s26 + $0x78] sm:$0xff]  ;;  %6823 = vrot.lane.b32.xlu1 %v6822_v28, %s7869_s29  ;;  %6818 = vrot.lane.b32.xlu0 %v6817_v34, %s7870_s30  ;;  %vm4879_vm14 = vcmask 1041409   ;;  %vm4881_vm15 = vcmask 1042434  }
  0x1b   : > { %425 = vst.msk [vmem:[#allocation2 + $0xf0] sm:$0xff] %vm393_vm0, %v11522_v0  ;;  %426 = vst.msk [vmem:[#allocation2 + $0xf8] sm:$0xff] %vm393_vm0, %v11522_v0  ;;  %v8168_v37 = vld [vmem:[%s8068_s26 + $0x80] sm:$0xff]  ;;  %v8176_v38 = vld [vmem:[%s8068_s26 + $0x88] sm:$0xff] }
  0x1c   : > { %427 = vst.msk [vmem:[#allocation2 + $0x100] sm:$0x3] %vm396_vm1, %v11522_v0  ;;  %430 = vst.msk [vmem:[#allocation2 + $0x118] sm:$0x3] %vm396_vm1, %v11522_v0  ;;  %v8181_v39 = vld [vmem:[%s8068_s26 + $0x90] sm:$0xff]  ;;  %v8184_v40 = vld [vmem:[%s8068_s26 + $0x98] sm:$0xff] }
  0x1d   : > { %428 = vst.msk [vmem:[#allocation2 + $0x108] sm:$0xff] %vm393_vm0, %v11522_v0  ;;  %429 = vst.msk [vmem:[#allocation2 + $0x110] sm:$0xff] %vm393_vm0, %v11522_v0 }
  0x1e   : > { %431 = vst.msk [vmem:[#allocation2 + $0x120] sm:$0xff] %vm393_vm0, %v11522_v0  ;;  %432 = vst.msk [vmem:[#allocation2 + $0x128] sm:$0xff] %vm393_vm0, %v11522_v0 }
  0x1f   : > { %433 = vst.msk [vmem:[#allocation2 + $0x130] sm:$0x3] %vm396_vm1, %v11522_v0  ;;  %436 = vst.msk [vmem:[#allocation2 + $0x148] sm:$0x3] %vm396_vm1, %v11522_v0 }
  0x20   : > { %434 = vst.msk [vmem:[#allocation2 + $0x138] sm:$0xff] %vm393_vm0, %v11522_v0  ;;  %435 = vst.msk [vmem:[#allocation2 + $0x140] sm:$0xff] %vm393_vm0, %v11522_v0 }
  0x21   : > { %437 = vst.msk [vmem:[#allocation2 + $0x150] sm:$0xff] %vm393_vm0, %v11522_v0  ;;  %438 = vst.msk [vmem:[#allocation2 + $0x158] sm:$0xff] %vm393_vm0, %v11522_v0 }
  0x22   : > { %439 = vst.msk [vmem:[#allocation2 + $0x160] sm:$0x3] %vm396_vm1, %v11522_v0  ;;  %442 = vst.msk [vmem:[#allocation2 + $0x178] sm:$0x3] %vm396_vm1, %v11522_v0 }
  0x23   : > { %440 = vst.msk [vmem:[#allocation2 + $0x168] sm:$0xff] %vm393_vm0, %v11522_v0  ;;  %441 = vst.msk [vmem:[#allocation2 + $0x170] sm:$0xff] %vm393_vm0, %v11522_v0 }
  0x24   : > { %443 = vst.msk [vmem:[#allocation2 + $0x180] sm:$0xff] %vm393_vm0, %v11522_v0  ;;  %444 = vst.msk [vmem:[#allocation2 + $0x188] sm:$0xff] %vm393_vm0, %v11522_v0 }
  0x25   : > { %445 = vst.msk [vmem:[#allocation2 + $0x190] sm:$0x3] %vm396_vm1, %v11522_v0  ;;  %448 = vst.msk [vmem:[#allocation2 + $0x1a8] sm:$0x3] %vm396_vm1, %v11522_v0 }
  0x26   : > { %446 = vst.msk [vmem:[#allocation2 + $0x198] sm:$0xff] %vm393_vm0, %v11522_v0  ;;  %447 = vst.msk [vmem:[#allocation2 + $0x1a0] sm:$0xff] %vm393_vm0, %v11522_v0 }
  0x27   : > { %11616 = vst [vmem:[#allocation4_spill] sm:$0xff] %v8074_v6  ;;  %11617 = vst [vmem:[#allocation5_spill] sm:$0xff] %v8077_v7 }
  0x28   : > { %11618 = vst [vmem:[#allocation6_spill] sm:$0xff] %v8080_v8  ;;  %454 = vst.msk [vmem:[#allocation2 + $0x49] sm:$0xff] %vm393_vm0, %v8074_v6 }
  0x29   : > { %455 = vst.msk [vmem:[#allocation2 + $0x51] sm:$0xff] %vm393_vm0, %v8077_v7  ;;  %452 = vst.msk [vmem:[#allocation2 + $0x31] sm:$0xff] %vm393_vm0, %v8080_v8  ;;  %v8454_v8 = vld [vmem:[%s8068_s26 + $0xb0] sm:$0xff] }
  0x2a   : > { %2278 = vst.msk [vmem:[#allocation2] sm:$0xff] %vm393_vm0, %v11522_v0  ;;  %2279 = vst.msk [vmem:[#allocation2 + $0x8] sm:$0xff] %vm393_vm0, %v11522_v0 }
  0x2b   : > { %2280 = vst.msk [vmem:[#allocation2 + $0x10] sm:$0x3] %vm396_vm1, %v11522_v0  ;;  %11619 = vst [vmem:[#allocation7_spill] sm:$0xff] %v8102_v16 }
  0x2c   : > { %11620 = vst [vmem:[#allocation8_spill] sm:$0xff] %v8105_v17  ;;  %453 = vst.msk [vmem:[#allocation2 + $0x39] sm:$0xff] %vm393_vm0, %v8102_v16 }
  0x2d   : > { %11621 = vst [vmem:[#allocation9_spill] sm:$0xff] %v8111_v20  ;;  %450 = vst.msk [vmem:[#allocation2 + $0x19] sm:$0xff] %vm393_vm0, %v8105_v17  ;;  %v7791_v17 = vld [vmem:[%s11512_s1 + $0x8] sm:$0xff]  }
  0x2e   : > { %11622 = vst [vmem:[#allocation10_spill] sm:$0xff] %v8116_v21  ;;  %11623 = vst [vmem:[#allocation11_spill] sm:$0xff] %v8119_v22 }
  0x2f   : > { %451 = vst.msk [vmem:[#allocation2 + $0x21] sm:$0xff] %vm393_vm0, %v8111_v20  ;;  %456 = vst.msk [vmem:[#allocation2 + $0x61] sm:$0xff] %vm393_vm0, %v8116_v21  ;;  %v8187_v41 = vld [vmem:[#allocation2 + $0x48] sm:$0xff] }
  0x30   : > { %457 = vst.msk [vmem:[#allocation2 + $0x69] sm:$0xff] %vm393_vm0, %v8119_v22  ;;  %11624 = vst [vmem:[#allocation12_spill] sm:$0xff] %v8130_v25  ;;  %v8189_v42 = vld [vmem:[#allocation2 + $0x50] sm:$0xff]  ;;  %v8210_v46 = vld [vmem:[#allocation2 + $0x58] sm:$0x3]  ;;  %v681_v22 = vrot.slane %v8187_v41, 2 }
  0x31   : > { %11625 = vst [vmem:[#allocation13_spill] sm:$0xff] %v8133_v26  ;;  %11626 = vst [vmem:[#allocation14_spill] sm:$0xff] %v8136_v27  ;;  %v8191_v43 = vld [vmem:[#allocation2 + $0x30] sm:$0xff]  ;;  %v8201_v44 = vpack.i.bf16 %v8189_v42, %v8187_v41  ;;  %v684_v7 = vrot.slane %v8210_v46, 2 }
  0x32   : > { %458 = vst.msk [vmem:[#allocation2 + $0x79] sm:$0xff] %vm393_vm0, %v8130_v25  ;;  %459 = vst.msk [vmem:[#allocation2 + $0x81] sm:$0xff] %vm393_vm0, %v8133_v26  ;;  %v595_v45 = vrot.slane %v8191_v43, 1  ;;  %v676_v51 = vrot.slane %v8191_v43, 2  ;;  %v7784_v26 = vld [vmem:[%s11512_s1 + $0x20] sm:$0xff]   ;;  %v7785_v25 = vld [vmem:[%s11512_s1 + $0x58] sm:$0xff]  }
  0x33   : > { %11627 = vst [vmem:[#allocation15_spill] sm:$0xff] %v8145_v31  ;;  %460 = vst.msk [vmem:[#allocation2 + $0x91] sm:$0xff] %vm393_vm0, %v8136_v27  ;;  %v8215_v48 = vld [vmem:[#allocation2 + $0x38] sm:$0xff]  ;;  %v8219_v50 = vld [vmem:[#allocation2 + $0x40] sm:$0x3]  ;;  %6838 = vrot.lane.b32.xlu0 %v8201_v44, %s7869_s29  ;;  %v682_v27 = vrot.slane %v8189_v42, 2 }
  0x34   : > { %11628 = vst [vmem:[#allocation16_spill] sm:$0xff] %v8150_v32  ;;  %11629 = vst [vmem:[#allocation17_spill] sm:$0xff] %v8153_v33  ;;  %v8217_v49 = vld [vmem:[#allocation2 + $0x18] sm:$0xff]  ;;  %v8226_v52 = vpack.i.bf16 %v8215_v48, %v8191_v43  ;;  %v596_v56 = vrot.slane %v8215_v48, 1  ;;  %v598_v57 = vrot.slane %v8219_v50, 1  ;;  %v677_v18 = vrot.slane %v8215_v48, 2 }
  0x35   : > { %461 = vst.msk [vmem:[#allocation2 + $0x99] sm:$0xff] %vm393_vm0, %v8145_v31  ;;  %462 = vst.msk [vmem:[#allocation2 + $0xa9] sm:$0xff] %vm393_vm0, %v8150_v32  ;;  %v671_v55 = vrot.slane %v8217_v49, 2  ;;  %v590_v60 = vrot.slane %v8217_v49, 1  ;;  %v679_v34 = vrot.slane %v8219_v50, 2 }
  0x36   : > { %463 = vst.msk [vmem:[#allocation2 + $0xb1] sm:$0xff] %vm393_vm0, %v8153_v33  ;;  %11630 = vst [vmem:[#allocation18_spill] sm:$0xff] %v8162_v35  ;;  %v8230_v53 = vld [vmem:[#allocation2 + $0x20] sm:$0xff]  ;;  %v487_v54 = vld [vmem:[#allocation2 + $0x28] sm:$0x3]  ;;  %6828 = vrot.lane.b32.xlu1 %v8226_v52, %s7869_s29  ;;  %v8258_v2 = vsel %vm584_vm3, %v595_v45, %v596_v56  ;;  %v8276_v15 = vsel %vm584_vm3, %v596_v56, %v598_v57 }
  0x37   : > { %11631 = vst [vmem:[#allocation19_spill] sm:$0xff] %v8165_v36  ;;  %11632 = vst [vmem:[#allocation20_spill] sm:$0xff] %v8168_v37  ;;  %v672_v58 = vrot.slane %v8230_v53, 2  ;;  %v674_v59 = vrot.slane %v487_v54, 2  ;;  %v8247_v61 = vld [vmem:[#allocation2 + $0x60] sm:$0xff]  ;;  %v8249_v62 = vld [vmem:[#allocation2 + $0x68] sm:$0xff]  ;;  %v6832_v1 = vpack.i.bf16 %v8230_v53, %v8217_v49  ;;  %v8326_v57 = vpack.i.bf16 %v8276_v15, %v8258_v2 }
  0x38   : > { %464 = vst.msk [vmem:[#allocation2 + $0xc1] sm:$0xff] %vm393_vm0, %v8162_v35  ;;  %465 = vst.msk [vmem:[#allocation2 + $0xc9] sm:$0xff] %vm393_vm0, %v8165_v36  ;;  %v591_v3 = vrot.slane %v8230_v53, 1  ;;  %v593_v4 = vrot.slane %v487_v54, 1  ;;  %v8265_v5 = vld [vmem:[#allocation2 + $0x70] sm:$0x3]  ;;  %v8472_v20 = vpack.i.bf16 %v8249_v62, %v8247_v61 }
  0x39   : > { %11633 = vst [vmem:[#allocation21_spill] sm:$0xff] %v8176_v38  ;;  %466 = vst.msk [vmem:[#allocation2 + $0xd9] sm:$0xff] %vm393_vm0, %v8168_v37  ;;  %v8251_v63 = vld [vmem:[#allocation2 + $0x78] sm:$0xff]  ;;  %v8267_v11 = vld [vmem:[#allocation2 + $0x80] sm:$0xff]  ;;  %v673_v13 = vsel %vm665_vm2, %v671_v55, %v672_v58  ;;  %v675_v14 = vsel %vm665_vm2, %v672_v58, %v674_v59  ;;  %v600_v59 = vrot.slane %v8187_v41, 1  ;;  %v11651_v36 = vmov 0.0  }
  0x3a   : > { %11634 = vst [vmem:[#allocation22_spill] sm:$0xff] %v8181_v39  ;;  %11635 = vst [vmem:[#allocation23_spill] sm:$0xff] %v8184_v40  ;;  %v8271_v12 = vld [vmem:[#allocation2 + $0x90] sm:$0xff]  ;;  %v8283_v19 = vld [vmem:[#allocation2 + $0x88] sm:$0x3]  ;;  %v6842_v28 = vpack.i.bf16 %v675_v14, %v673_v13  ;;  %v8292_v29 = vsel %vm584_vm3, %v590_v60, %v591_v3  ;;  %v8295_v30 = vsel %vm584_vm3, %v591_v3, %v593_v4  ;;  %6833 = vrot.lane.b32.xlu1 %v6832_v1, %s7871_s15 }
  0x3b   : > { %11636 = vst [vmem:[#allocation24_spill] sm:$0xff] %v8187_v41  ;;  %11637 = vst [vmem:[#allocation25_spill] sm:$0xff] %v8189_v42  ;;  %v6857_v58 = vpack.i.bf16 %v8295_v30, %v8292_v29  ;;  %v8346_v4 = vsel %vm665_vm2, %v676_v51, %v677_v18  ;;  %v8349_v13 = vsel %vm665_vm2, %v677_v18, %v679_v34  ;;  %v601_v14 = vrot.slane %v8189_v42, 1  ;;  %v8372_v18 = vld [vmem:[%s8068_s26 + $0xa0] sm:$0xff]  ;;  %v8375_v34 = vld [vmem:[%s8068_s26 + $0xa8] sm:$0xff] }
  0x3c   : > { %11638 = vst [vmem:[#allocation26_spill] sm:$0xff] %v8191_v43  ;;  %467 = vst.msk [vmem:[#allocation2 + $0xe1] sm:$0xff] %vm393_vm0, %v8176_v38  ;;  %v8285_v23 = vld [vmem:[#allocation2 + $0x98] sm:$0xff]  ;;  %v8289_v24 = vld [vmem:[#allocation2 + $0xa0] sm:$0x3]  ;;  %6843 = vrot.lane.b32.xlu0 %v6842_v28, %s7870_s30  ;;  %v8392_v32 = vpack.i.bf16 %v8349_v13, %v8346_v4  ;;  %v608_v6 = vrot.slane %v8265_v5, 1  ;;  %v8587_v37 = vpack.i.bf16 %v8267_v11, %v8251_v63 }
  0x3d   : > { %468 = vst.msk [vmem:[#allocation2 + $0xf1] sm:$0xff] %vm393_vm0, %v8181_v39  ;;  %469 = vst.msk [vmem:[#allocation2 + $0xf9] sm:$0xff] %vm393_vm0, %v8184_v40  ;;  %v8304_v45 = vld [vmem:[#allocation2 + $0xa8] sm:$0xff]  ;;  %v8306_v47 = vld [vmem:[#allocation2 + $0xb0] sm:$0xff]  ;;  %v8401_v16 = vsel %vm584_vm3, %v600_v59, %v601_v14  ;;  %v691_v38 = vrot.slane %v8251_v63, 2 }
  0x3e   : > { %2287 = vst.msk [vmem:[#allocation2 + $0x48] sm:$0xff] %vm393_vm0, %v11522_v0  ;;  %2288 = vst.msk [vmem:[#allocation2 + $0x50] sm:$0xff] %vm393_vm0, %v11522_v0  ;;  %v8308_v54 = vld [vmem:[#allocation2 + $0xb8] sm:$0x3]  ;;  %v7783_v35 = vld [vmem:[%s11512_s1 + $0x60] sm:$0xff]   ;;  %6858 = vrot.lane.b32.xlu1 %v6857_v58, %s7870_s30 }
  0x3f   : > { %2284 = vst.msk [vmem:[#allocation2 + $0x30] sm:$0xff] %vm393_vm0, %v11522_v0  ;;  %11639 = vst [vmem:[#allocation27_spill] sm:$0xff] %v8215_v48  ;;  %v8316_v50 = vld [vmem:[#allocation2 + $0xc0] sm:$0xff]  ;;  %v8318_v55 = vld [vmem:[#allocation2 + $0xc8] sm:$0xff]  ;;  %6294 = vmatprep.subr.bf16.mxu0 %v7783_v35  ;;  %v8423_v35 = vsel %vm665_vm2, %v681_v22, %v682_v27 }
  0x40   : > { %2289 = vst.msk [vmem:[#allocation2 + $0x58] sm:$0x3] %vm396_vm1, %v11522_v0  ;;  %2286 = vst.msk [vmem:[#allocation2 + $0x40] sm:$0x3] %vm396_vm1, %v11522_v0  ;;  %v8320_v56 = vld [vmem:[#allocation2 + $0xd0] sm:$0x3]  ;;  %6848 = vrot.lane.b32.xlu0 %v8326_v57, %s7871_s15  ;;  %6295 = vmatpush3.bf16.msra.mxu0 %v7784_v26 }
  0x41   : > { %2285 = vst.msk [vmem:[#allocation2 + $0x38] sm:$0xff] %vm393_vm0, %v11522_v0  ;;  %2281 = vst.msk [vmem:[#allocation2 + $0x18] sm:$0xff] %vm393_vm0, %v11522_v0  ;;  %v8337_v60 = vld [vmem:[#allocation2 + $0xd8] sm:$0xff]  ;;  %6296 = vmatprep.subr.bf16.mxu0 %v7785_v25  ;;  %v7788_v26 = vld [vmem:[%s11512_s1 + $0x10] sm:$0xff]   ;;  %v8426_v25 = vsel %vm665_vm2, %v682_v27, %v684_v7  ;;  %v605_v27 = vrot.slane %v8247_v61, 1 }
  0x42   : > { %2282 = vst.msk [vmem:[#allocation2 + $0x20] sm:$0xff] %vm393_vm0, %v11522_v0  ;;  %11640 = vst [vmem:[#allocation28_spill] sm:$0xff] %v8247_v61  ;;  %v7786_v58 = vld [vmem:[%s11512_s1 + $0x18] sm:$0xff]   ;;  %6863 = vrot.lane.b32.xlu1 %v6842_v28, %s7869_s29  ;;  %v7789_v7 = vld [vmem:[%s11512_s1 + $0x88] sm:$0xff]   ;;  %v8449_v22 = vpack.i.bf16 %v8426_v25, %v8423_v35 }
  0x43   : > { %2283 = vst.msk [vmem:[#allocation2 + $0x28] sm:$0x3] %vm396_vm1, %v11522_v0  ;;  %11641 = vst [vmem:[#allocation29_spill] sm:$0xff] %v8249_v62  ;;  %v8339_v1 = vld [vmem:[#allocation2 + $0xe0] sm:$0xff]  ;;  %v8341_v3 = vld [vmem:[#allocation2 + $0xe8] sm:$0x3]  ;;  %6611 = vmatprep.subr.bf16.mxu1 %v7789_v7 }
  0x44   : > { %11642 = vst [vmem:[#allocation30_spill] sm:$0xff] %v8251_v63  ;;  %2290 = vst.msk [vmem:[#allocation2 + $0x60] sm:$0xff] %vm393_vm0, %v11522_v0  ;;  %v8359_v33 = vld [vmem:[#allocation2 + $0xf0] sm:$0xff]  ;;  %v8361_v51 = vld [vmem:[#allocation2 + $0xf8] sm:$0xff]  ;;  %6853 = vrot.lane.b32.xlu0 %v8392_v32, %s7870_s30  ;;  %6297 = vmatpush3.bf16.msra.mxu0 %v7786_v58  ;;  %v606_v58 = vrot.slane %v8249_v62, 1 }
  0x45   : > { %2291 = vst.msk [vmem:[#allocation2 + $0x68] sm:$0xff] %vm393_vm0, %v11522_v0  ;;  %11643 = vst [vmem:[#allocation31_spill] sm:$0xff] %v8267_v11  ;;  %v8363_v31 = vld [vmem:[#allocation2 + $0x100] sm:$0x3]  ;;  %6612 = vmatpush3.bf16.msra.mxu1 %v7789_v7  ;;  %v689_v7 = vrot.slane %v8265_v5, 2  ;;  %v8500_v5 = vld [vmem:[%s8068_s26 + $0xc8] sm:$0xff] }
  0x46   : > { %2293 = vst.msk [vmem:[#allocation2 + $0x78] sm:$0xff] %vm393_vm0, %v11522_v0  ;;  %11644 = vst [vmem:[#allocation32_spill] sm:$0xff] %v8271_v12  ;;  %6873 = vrot.lane.b32.xlu1 %v8226_v52, %s7871_s15  ;;  %v7790_v52 = vld [vmem:[%s11512_s1 + $0x48] sm:$0xff]   ;;  %v8497_v39 = vld [vmem:[%s8068_s26 + $0xc0] sm:$0xff] }
  0x47   : > { %2292 = vst.msk [vmem:[#allocation2 + $0x70] sm:$0x3] %vm396_vm1, %v11522_v0  ;;  %11645 = vst [vmem:[#allocation33_spill] sm:$0xff] %v8285_v23 }
  0x48   : > { %2294 = vst.msk [vmem:[#allocation2 + $0x80] sm:$0xff] %vm393_vm0, %v11522_v0  ;;  %2296 = vst.msk [vmem:[#allocation2 + $0x90] sm:$0xff] %vm393_vm0, %v11522_v0 }
  0x49   : > { %2295 = vst.msk [vmem:[#allocation2 + $0x88] sm:$0x3] %vm396_vm1, %v11522_v0  ;;  %2298 = vst.msk [vmem:[#allocation2 + $0xa0] sm:$0x3] %vm396_vm1, %v11522_v0 }
  0x4a   : > { %2297 = vst.msk [vmem:[#allocation2 + $0x98] sm:$0xff] %vm393_vm0, %v11522_v0  ;;  %11646 = vst [vmem:[#allocation34_spill] sm:$0xff] %v8304_v45  ;;  %6883 = vrot.lane.b32.xlu1 %v8326_v57, %s7870_s30  ;;  %v7794_v57 = vld [vmem:[%s11512_s1] sm:$0xff]  }
  0x4b   : > { %11647 = vst [vmem:[#allocation35_spill] sm:$0xff] %v8306_v47  ;;  %2299 = vst.msk [vmem:[#allocation2 + $0xa8] sm:$0xff] %vm393_vm0, %v11522_v0 }
  0x4c   : > { %2300 = vst.msk [vmem:[#allocation2 + $0xb0] sm:$0xff] %vm393_vm0, %v11522_v0  ;;  %11648 = vst [vmem:[#allocation36_spill] sm:$0xff] %v8316_v50 }
  0x4d   : > { %2301 = vst.msk [vmem:[#allocation2 + $0xb8] sm:$0x3] %vm396_vm1, %v11522_v0  ;;  %2304 = vst.msk [vmem:[#allocation2 + $0xd0] sm:$0x3] %vm396_vm1, %v11522_v0 }
  0x4e   : > { %2302 = vst.msk [vmem:[#allocation2 + $0xc0] sm:$0xff] %vm393_vm0, %v11522_v0  ;;  %2303 = vst.msk [vmem:[#allocation2 + $0xc8] sm:$0xff] %vm393_vm0, %v11522_v0  ;;  %v603_v0 = vrot.slane %v8210_v46, 1  ;;  %v7787_v46 = vld [vmem:[%s11512_s1 + $0x50] sm:$0xff]   ;;  %6893 = vrot.lane.b32.xlu1 %v8392_v32, %s7869_s29 }
  0x4f   : > { %11649 = vst [vmem:[#allocation37_spill] sm:$0xff] %v8337_v60  ;;  %11650 = vst [vmem:[#allocation38_spill] sm:$0xff] %v8339_v1  ;;  %6298 = vmatprep.subr.bf16.mxu0 %v7787_v46  ;;  %v8457_v46 = vld [vmem:[%s8068_s26 + $0xb8] sm:$0xff] }
  0x50   : > { %2305 = vst.msk [vmem:[#allocation2 + $0xd8] sm:$0xff] %vm393_vm0, %v11651_v36  ;;  %2306 = vst.msk [vmem:[#allocation2 + $0xe0] sm:$0xff] %vm393_vm0, %v11651_v36  ;;  %v8404_v21 = vsel %vm584_vm3, %v601_v14, %v603_v0  ;;  %6299 = vmatpush3.bf16.msra.mxu0 %v7788_v26  ;;  %v686_v26 = vrot.slane %v8247_v61, 2  ;;  %v692_v61 = vrot.slane %v8267_v11, 2 }
  0x51   : > { %2307 = vst.msk [vmem:[#allocation2 + $0xe8] sm:$0x3] %vm396_vm1, %v11651_v36  ;;  %11652 = vst [vmem:[#allocation39_spill] sm:$0xff] %v8359_v33  ;;  %v8417_v0 = vpack.i.bf16 %v8404_v21, %v8401_v16  ;;  %6300 = vmatprep.subr.bf16.mxu0 %v7790_v52  ;;  %v7793_v52 = vld [vmem:[%s11512_s1 + $0x40] sm:$0xff]  }
  0x52   : > { %11653 = vst [vmem:[#allocation40_spill] sm:$0xff] %v8361_v51  ;;  %2308 = vst.msk [vmem:[#allocation2 + $0xf0] sm:$0xff] %vm393_vm0, %v11651_v36  ;;  %6903 = vrot.lane.b32.xlu1 %v8201_v44, %s7871_s15 }
  0x53   : > { %2309 = vst.msk [vmem:[#allocation2 + $0xf8] sm:$0xff] %vm393_vm0, %v11651_v36  ;;  %11654 = vst [vmem:[#allocation41_spill] sm:$0xff] %v8372_v18  ;;  %6868 = vrot.lane.b32.xlu0 %v8417_v0, %s7871_s15 }
  0x54   : > { %2310 = vst.msk [vmem:[#allocation2 + $0x100] sm:$0x3] %vm396_vm1, %v11651_v36  ;;  %11655 = vst [vmem:[#allocation42_spill] sm:$0xff] %v8375_v34  ;;  %6301 = vmatpush3.bf16.msra.mxu0 %v7791_v17 }
  0x55   : > { %470 = vst.msk [vmem:[#allocation2 + $0x109] sm:$0xff] %vm393_vm0, %v8372_v18  ;;  %471 = vst.msk [vmem:[#allocation2 + $0x111] sm:$0xff] %vm393_vm0, %v8375_v34  ;;  %v8488_v18 = vsel %vm584_vm3, %v605_v27, %v606_v58  ;;  %v8491_v34 = vsel %vm584_vm3, %v606_v58, %v608_v6  ;;  %6302 = vmatprep.subr.bf16.mxu0 %v7793_v52  ;;  %v8505_v27 = vld [vmem:[%s8068_s26 + $0xd0] sm:$0xff]  ;;  %v8508_v6 = vld [vmem:[%s8068_s26 + $0xd8] sm:$0xff] }
  0x56   : > { %11658 = vst [vmem:[#allocation45_spill] sm:$0xff] %v8454_v8  ;;  %11659 = vst [vmem:[#allocation46_spill] sm:$0xff] %v8457_v46  ;;  %v8529_v52 = vld [vmem:[%s8068_s26 + $0xe0] sm:$0xff]  ;;  %6913 = vrot.lane.b32.xlu1 %v8417_v0, %s7870_s30 }
  0x57   : > { %472 = vst.msk [vmem:[#allocation2 + $0x121] sm:$0xff] %vm393_vm0, %v8454_v8  ;;  %473 = vst.msk [vmem:[#allocation2 + $0x129] sm:$0xff] %vm393_vm0, %v8457_v46  ;;  %v7792_v8 = vld [vmem:[%s11512_s1 + $0x80] sm:$0xff]   ;;  %6878 = vrot.lane.b32.xlu0 %v8449_v22, %s7870_s30  ;;  %v687_v46 = vrot.slane %v8249_v62, 2 }
  0x58   : > { %11660 = vst [vmem:[#allocation47_spill] sm:$0xff] %v8488_v18  ;;  %11661 = vst [vmem:[#allocation48_spill] sm:$0xff] %v8491_v34  ;;  %6613 = vmatprep.subr.bf16.mxu1 %v7792_v8  ;;  %6303 = vmatpush3.bf16.msra.mxu0 %v7794_v57 }
  0x59   : > { %11662 = vst [vmem:[#allocation49_spill] sm:$0xff] %v8497_v39  ;;  %6614 = vmatpush3.bf16.msra.mxu1 %v7792_v8  ;;  %11663 = vst [vmem:[#allocation50_spill] sm:$0xff] %v8500_v5  ;;  %v8516_v8 = vpack.i.bf16 %v8491_v34, %v8488_v18  ;;  %v8532_v32 = vsel %vm665_vm2, %v686_v26, %v687_v46  ;;  %v610_v26 = vrot.slane %v8251_v63, 1  ;;  %v694_v63 = vrot.slane %v8283_v19, 2 }
  0x5a   : > { %474 = vst.msk [vmem:[#allocation2 + $0x139] sm:$0xff] %vm393_vm0, %v8497_v39  ;;  %11664 = vst [vmem:[#allocation51_spill] sm:$0xff] %v8505_v27  ;;  %v8535_v39 = vsel %vm665_vm2, %v687_v46, %v689_v7  ;;  %v611_v7 = vrot.slane %v8267_v11, 1  ;;  %6923 = vrot.lane.b32.xlu1 %v8449_v22, %s7869_s29  ;;  %v1611_v22 = vpack.c.bf16 %v8426_v25, %v8423_v35  ;;  %v697_v25 = vrot.slane %v8285_v23, 2 }
  0x5b   : > { %11665 = vst [vmem:[#allocation52_spill] sm:$0xff] %v8508_v6  ;;  %6888 = vrot.lane.b32.xlu0 %v8472_v20, %s7869_s29  ;;  %475 = vst.msk [vmem:[#allocation2 + $0x141] sm:$0xff] %vm393_vm0, %v8500_v5  ;;  %v8544_v5 = vld [vmem:[%s8068_s26 + $0xe8] sm:$0xff]  ;;  %v8558_v46 = vpack.i.bf16 %v8535_v39, %v8532_v32 }
  0x5c   : > { %v8428_v59 = vld [vmem:[#allocation2 + $0x108] sm:$0xff]  ;;  %v8430_v14 = vld [vmem:[#allocation2 + $0x110] sm:$0xff]  ;;  %v8432_v28 = vld [vmem:[#allocation2 + $0x118] sm:$0x3]  ;;  %476 = vst.msk [vmem:[#allocation2 + $0x151] sm:$0xff] %vm393_vm0, %v8505_v27  ;;  %v8602_v0 = vsel %vm584_vm3, %v610_v26, %v611_v7 }
  0x5d   : > { %11656 = vst [vmem:[#allocation43_spill] sm:$0xff] %v8428_v59  ;;  %11657 = vst [vmem:[#allocation44_spill] sm:$0xff] %v8430_v14 }
  0x5e   : > { %2311 = vst.msk [vmem:[#allocation2 + $0x108] sm:$0xff] %vm393_vm0, %v11651_v36  ;;  %2312 = vst.msk [vmem:[#allocation2 + $0x110] sm:$0xff] %vm393_vm0, %v11651_v36  ;;  %v8518_v17 = vld [vmem:[#allocation2 + $0x120] sm:$0xff]  ;;  %v8520_v58 = vld [vmem:[#allocation2 + $0x128] sm:$0xff]  ;;  %6933 = vrot.lane.b32.xlu1 %v8472_v20, %s7871_s15  ;;  %v8666_v20 = vpack.i.bf16 %v8285_v23, %v8271_v12 }
  0x5f   : > { %2313 = vst.msk [vmem:[#allocation2 + $0x118] sm:$0x3] %vm396_vm1, %v11651_v36  ;;  %11666 = vst [vmem:[#allocation53_spill] sm:$0xff] %v8518_v17  ;;  %v8541_v27 = vld [vmem:[#allocation2 + $0x130] sm:$0x3]  ;;  %6898 = vrot.lane.b32.xlu0 %v8516_v8, %s7871_s15 }
  0x60   : > { %11667 = vst [vmem:[#allocation54_spill] sm:$0xff] %v8520_v58  ;;  %477 = vst.msk [vmem:[#allocation2 + $0x159] sm:$0xff] %vm393_vm0, %v8508_v6  ;;  %v8566_v6 = vld [vmem:[%s8068_s26 + $0xf0] sm:$0xff] }
  0x61   : > { %11668 = vst [vmem:[#allocation55_spill] sm:$0xff] %v8529_v52  ;;  %2314 = vst.msk [vmem:[#allocation2 + $0x120] sm:$0xff] %vm393_vm0, %v11651_v36  ;;  %v8563_v57 = vld [vmem:[#allocation2 + $0x138] sm:$0xff] }
  0x62   : > { %2315 = vst.msk [vmem:[#allocation2 + $0x128] sm:$0xff] %vm393_vm0, %v11651_v36  ;;  %11669 = vst [vmem:[#allocation56_spill] sm:$0xff] %v8544_v5  ;;  %v8571_v40 = vld [vmem:[#allocation2 + $0x140] sm:$0xff]  ;;  %v8575_v44 = vld [vmem:[#allocation2 + $0x148] sm:$0x3]  ;;  %6943 = vrot.lane.b32.xlu1 %v8516_v8, %s7870_s30 }
  0x63   : > { %478 = vst.msk [vmem:[#allocation2 + $0x169] sm:$0xff] %vm393_vm0, %v8529_v52  ;;  %479 = vst.msk [vmem:[#allocation2 + $0x171] sm:$0xff] %vm393_vm0, %v8544_v5  ;;  %v613_v52 = vrot.slane %v8283_v19, 1  ;;  %v8569_v5 = vld [vmem:[%s8068_s26 + $0xf8] sm:$0xff]  ;;  %6908 = vrot.lane.b32.xlu0 %v8558_v46, %s7870_s30  ;;  %s11382_s26 = scalar_lea.vmem %s11521_s10, %s6286_s21 }
  0x64   : > { %2316 = vst.msk [vmem:[#allocation2 + $0x130] sm:$0x3] %vm396_vm1, %v11651_v36  ;;  %11670 = vst [vmem:[#allocation57_spill] sm:$0xff] %v8563_v57 }
  0x65   : > { %11671 = vst [vmem:[#allocation58_spill] sm:$0xff] %v8566_v6  ;;  %11672 = vst [vmem:[#allocation59_spill] sm:$0xff] %v8569_v5  ;;  %v8605_v41 = vsel %vm584_vm3, %v611_v7, %v613_v52  ;;  %v693_v52 = vsel %vm665_vm2, %v691_v38, %v692_v61  ;;  %v695_v7 = vsel %vm665_vm2, %v692_v61, %v694_v63  ;;  %v615_v61 = vrot.slane %v8271_v12, 1 }
  0x66   : > { %11673 = vst [vmem:[#allocation60_spill] sm:$0xff] %v8571_v40  ;;  %2317 = vst.msk [vmem:[#allocation2 + $0x138] sm:$0xff] %vm393_vm0, %v11651_v36  ;;  %v6927_v19 = vpack.i.bf16 %v8605_v41, %v8602_v0  ;;  %v8647_v38 = vpack.i.bf16 %v695_v7, %v693_v52  ;;  %v1608_v63 = vpack.c.bf16 %v8349_v13, %v8346_v4  ;;  %v696_v4 = vrot.slane %v8271_v12, 2 }
  0x67   : > { %480 = vst.msk [vmem:[#allocation2 + $0x181] sm:$0xff] %vm393_vm0, %v8566_v6  ;;  %481 = vst.msk [vmem:[#allocation2 + $0x189] sm:$0xff] %vm393_vm0, %v8569_v5  ;;  %v8595_v5 = vld [vmem:[#allocation2 + $0x150] sm:$0xff]  ;;  %v8597_v6 = vld [vmem:[#allocation2 + $0x158] sm:$0xff]  ;;  %6918 = vrot.lane.b32.xlu0 %v8587_v37, %s7869_s29  ;;  %v1617_v8 = vpack.c.bf16 %v695_v7, %v693_v52  ;;  %6953 = vrot.lane.b32.xlu1 %v8558_v46, %s7869_s29  ;;  %v623_v46 = vrot.slane %v8308_v54, 1  ;;  %v701_v7 = vrot.slane %v8304_v45, 2 }
  0x68   : > { %2318 = vst.msk [vmem:[#allocation2 + $0x140] sm:$0xff] %vm393_vm0, %v11651_v36  ;;  %11674 = vst [vmem:[#allocation61_spill] sm:$0xff] %v8602_v0  ;;  %v8612_v11 = vld [vmem:[#allocation2 + $0x160] sm:$0x3]  ;;  %v618_v0 = vrot.slane %v8289_v24, 1  ;;  %6615 = vmatprep.mubr.msk.bf16.mxu1 %vm393_vm0, %v1608_v63  ;;  %v699_v63 = vrot.slane %v8289_v24, 2 }
  0x69   : > { %2319 = vst.msk [vmem:[#allocation2 + $0x148] sm:$0x3] %vm396_vm1, %v11651_v36  ;;  %11675 = vst [vmem:[#allocation62_spill] sm:$0xff] %v8605_v41  ;;  %v616_v41 = vrot.slane %v8285_v23, 1  ;;  %6616 = vmatmul.mubr.msk.bf16.vlgmr.msra.gmra.mxu1 %vm393_vm0, %v1611_v22  ;;  %v1614_v22 = vpack.c.bf16 %v8535_v39, %v8532_v32  ;;  %v620_v24 = vrot.slane %v8304_v45, 1  ;;  %v621_v39 = vrot.slane %v8306_v47, 1 }
  0x6a   : > { %v8599_v62 = vld [vmem:[#allocation2 + $0x168] sm:$0xff]  ;;  %2320 = vst.msk [vmem:[#allocation2 + $0x150] sm:$0xff] %vm393_vm0, %v11651_v36  ;;  %2321 = vst.msk [vmem:[#allocation2 + $0x158] sm:$0xff] %vm393_vm0, %v11651_v36  ;;  %v8614_v42 = vld [vmem:[#allocation2 + $0x170] sm:$0xff]  ;;  %v702_v12 = vrot.slane %v8306_v47, 2 }
  0x6b   : > { %2323 = vst.msk [vmem:[#allocation2 + $0x168] sm:$0xff] %vm393_vm0, %v11651_v36  ;;  %v8618_v26 = vld [vmem:[#allocation2 + $0x178] sm:$0x3]  ;;  %2324 = vst.msk [vmem:[#allocation2 + $0x170] sm:$0xff] %vm393_vm0, %v11651_v36  ;;  %6928 = vrot.lane.b32.xlu0 %v6927_v19, %s7871_s15  ;;  %v8670_v13 = vsel %vm584_vm3, %v615_v61, %v616_v41  ;;  %v8673_v35 = vsel %vm584_vm3, %v616_v41, %v618_v0  ;;  %v698_v41 = vsel %vm665_vm2, %v696_v4, %v697_v25  ;;  %v8694_v52 = vld [vmem:[#allocation2 + $0x1a0] sm:$0xff] }
  0x6c   : > { %2322 = vst.msk [vmem:[#allocation2 + $0x160] sm:$0x3] %vm396_vm1, %v11651_v36  ;;  %2325 = vst.msk [vmem:[#allocation2 + $0x178] sm:$0x3] %vm396_vm1, %v11651_v36  ;;  %v8685_v61 = vpack.i.bf16 %v8673_v35, %v8670_v13  ;;  %v700_v0 = vsel %vm665_vm2, %v697_v25, %v699_v63  ;;  %6619 = vmatprep.mubr.msk.bf16.mxu1 %vm393_vm0, %v1614_v22  ;;  %v8692_v32 = vld [vmem:[#allocation2 + $0x198] sm:$0xff]  ;;  %v704_v4 = vrot.slane %v8308_v54, 2  ;;  %6963 = vrot.lane.b32.xlu1 %v8587_v37, %s7871_s15 }
  0x6d   : > { %11677 = vst [vmem:[#allocation64_spill] sm:$0xff] %v8670_v13  ;;  %11678 = vst [vmem:[#allocation65_spill] sm:$0xff] %v8673_v35  ;;  %v8705_v25 = vld [vmem:[#allocation2 + $0x1a8] sm:$0x3]  ;;  %v6967_v63 = vpack.i.bf16 %v700_v0, %v698_v41  ;;  %v6977_v54 = vpack.i.bf16 %v8306_v47, %v8304_v45  ;;  %v8716_v22 = vsel %vm584_vm3, %v620_v24, %v621_v39  ;;  %v707_v24 = vrot.slane %v8318_v55, 2 }
  0x6e   : > { %v8634_v34 = vld [vmem:[#allocation2 + $0x180] sm:$0xff]  ;;  %v8636_v18 = vld [vmem:[#allocation2 + $0x188] sm:$0xff]  ;;  %v8642_v43 = vld [vmem:[#allocation2 + $0x190] sm:$0x3]  ;;  %2330 = vst.msk [vmem:[#allocation2 + $0x1a0] sm:$0xff] %vm393_vm0, %v11651_v36  ;;  %v8719_v23 = vsel %vm584_vm3, %v621_v39, %v623_v46  ;;  %v703_v35 = vsel %vm665_vm2, %v701_v7, %v702_v12  ;;  %v705_v13 = vsel %vm665_vm2, %v702_v12, %v704_v4  ;;  %v709_v39 = vrot.slane %v8320_v56, 2 }
  0x6f   : > { %2327 = vst.msk [vmem:[#allocation2 + $0x188] sm:$0xff] %vm393_vm0, %v11651_v36  ;;  %2326 = vst.msk [vmem:[#allocation2 + $0x180] sm:$0xff] %vm393_vm0, %v11651_v36  ;;  %6938 = vrot.lane.b32.xlu0 %v8647_v38, %s7870_s30  ;;  %v8725_v37 = vpack.i.bf16 %v8636_v18, %v8634_v34  ;;  %v711_v46 = vrot.slane %v8337_v60, 2  ;;  %v11578_v12 = vrot.slane %v8636_v18, 1  ;;  %v786_v7 = vrot.slane %v8634_v34, 2 }
  0x70   : > { %11676 = vst [vmem:[#allocation63_spill] sm:$0xff] %v8642_v43  ;;  %2328 = vst.msk [vmem:[#allocation2 + $0x190] sm:$0x3] %vm396_vm1, %v11651_v36  ;;  %6973 = vrot.lane.b32.xlu1 %v6927_v19, %s7870_s30  ;;  %v712_v4 = vrot.slane %v8339_v1, 2  ;;  %v714_v19 = vrot.slane %v8341_v3, 2  ;;  %v787_v45 = vrot.slane %v8636_v18, 2 }
  0x71   : > { %6620 = vmatmul.mubr.msk.bf16.gmra.mxu1 %vm393_vm0, %v1617_v8  ;;  %2329 = vst.msk [vmem:[#allocation2 + $0x198] sm:$0xff] %vm393_vm0, %v11651_v36  ;;  %11679 = vst [vmem:[#allocation66_spill] sm:$0xff] %v8716_v22  ;;  %v1620_v8 = vpack.c.bf16 %v700_v0, %v698_v41  ;;  %v1623_v41 = vpack.c.bf16 %v705_v13, %v703_v35  ;;  %v749_v0 = vrot.slane %v8634_v34, 1  ;;  %v789_v47 = vrot.slane %v8642_v43, 2 }
  0x72   : > { %2331 = vst.msk [vmem:[#allocation2 + $0x1a8] sm:$0x3] %vm396_vm1, %v11651_v36  ;;  %11680 = vst [vmem:[#allocation67_spill] sm:$0xff] %v8719_v23  ;;  %v706_v36 = vrot.slane %v8316_v50, 2  ;;  %v8756_v48 = vsel %vm665_vm2, %v786_v7, %v787_v45  ;;  %v715_v7 = vsel %vm665_vm2, %v712_v4, %v714_v19  ;;  %v628_v19 = vrot.slane %v8320_v56, 1 }
  0x73   : > { %6948 = vrot.lane.b32.xlu0 %v8666_v20, %s7869_s29  ;;  %11681 = vst [vmem:[#allocation68_spill] sm:$0xff] %v8725_v37  ;;  %6623 = vmatprep.mubr.msk.bf16.mxu1 %vm393_vm0, %v1620_v8  ;;  %v6987_v37 = vpack.i.bf16 %v8719_v23, %v8716_v22  ;;  %v8747_v8 = vsel %vm584_vm3, %v749_v0, %v11578_v12  ;;  %v794_v22 = vrot.slane %v8692_v32, 1  ;;  %v797_v23 = vrot.slane %v8705_v25, 1 }
  0x74   : > { %11682 = vst [vmem:[#allocation69_spill] sm:$0xff] %v8747_v8  ;;  %6983 = vrot.lane.b32.xlu1 %v8647_v38, %s7869_s29  ;;  %v708_v43 = vsel %vm665_vm2, %v706_v36, %v707_v24  ;;  %v710_v0 = vsel %vm665_vm2, %v707_v24, %v709_v39  ;;  %v795_v38 = vrot.slane %v8694_v52, 1  ;;  %v713_v36 = vsel %vm665_vm2, %v711_v46, %v712_v4 }
  0x75   : > { %v1629_v8 = vpack.c.bf16 %v715_v7, %v713_v36  ;;  %v6997_v24 = vpack.i.bf16 %v705_v13, %v703_v35  ;;  %v625_v46 = vrot.slane %v8316_v50, 1  ;;  %v626_v4 = vrot.slane %v8318_v55, 1 }
  0x76   : > { %v8778_v39 = vsel %vm584_vm3, %v795_v38, %v797_v23  ;;  %v7007_v23 = vpack.i.bf16 %v8318_v55, %v8316_v50  ;;  %v7027_v35 = vpack.i.bf16 %v710_v0, %v708_v43  ;;  %v638_v50 = vrot.slane %v8363_v31, 1 }
  0x77   : > { %6958 = vrot.lane.b32.xlu0 %v8685_v61, %s7871_s15  ;;  %v8796_v56 = vsel %vm584_vm3, %v626_v4, %v628_v19  ;;  %vm4947_vm1 = vcmask 335112  }
  0x78   : > { %6993 = vrot.lane.b32.xlu1 %v8666_v20, %s7871_s15  ;;  %v8793_v20 = vsel %vm584_vm3, %v625_v46, %v626_v4  ;;  %v722_v4 = vrot.slane %v8430_v14, 2 }
  0x79   : > { %6624 = vmatmul.mubr.msk.bf16.gmra.mxu1 %vm393_vm0, %v1623_v41  ;;  %v8759_v41 = vsel %vm665_vm2, %v787_v45, %v789_v47  ;;  %v8772_v45 = vsel %vm584_vm3, %v794_v22, %v795_v38  ;;  %v1626_v47 = vpack.c.bf16 %v710_v0, %v708_v43  ;;  %v7017_v13 = vpack.i.bf16 %v8796_v56, %v8793_v20 }
  0x7a   : > { %v633_v38 = vrot.slane %v8341_v3, 1  ;;  %v716_v43 = vrot.slane %v8359_v33, 2  ;;  %v719_v0 = vrot.slane %v8363_v31, 2  ;;  %v721_v3 = vrot.slane %v8428_v59, 2 }
  0x7b   : > { %6968 = vrot.lane.b32.xlu0 %v6967_v63, %s7870_s30  ;;  %6627 = vmatprep.mubr.msk.bf16.mxu1 %vm393_vm0, %v1626_v47 }
  0x7c   : > { %7003 = vrot.lane.b32.xlu1 %v8685_v61, %s7870_s30  ;;  %v630_v61 = vrot.slane %v8337_v60, 1 }
  0x7f   : > { %6978 = vrot.lane.b32.xlu0 %v6977_v54, %s7869_s29 }
  0x80   : > { %7013 = vrot.lane.b32.xlu1 %v6967_v63, %s7869_s29  ;;  %v7037_v63 = vpack.i.bf16 %v8339_v1, %v8337_v60  ;;  %v7057_v60 = vpack.i.bf16 %v715_v7, %v713_v36  ;;  %v641_v7 = vrot.slane %v8430_v14, 1 }
  0x81   : > { %6628 = vmatmul.mubr.msk.bf16.gmra.mxu1 %vm393_vm0, %v1629_v8  ;;  %v631_v8 = vrot.slane %v8339_v1, 1  ;;  %v636_v1 = vrot.slane %v8361_v51, 1 }
  0x83   : > { %6988 = vrot.lane.b32.xlu0 %v6987_v37, %s7871_s15  ;;  %v8812_v47 = vsel %vm584_vm3, %v630_v61, %v631_v8  ;;  %v8815_v46 = vsel %vm584_vm3, %v631_v8, %v633_v38  ;;  %v723_v38 = vsel %vm665_vm2, %v721_v3, %v722_v4  ;;  %v8846_v36 = vsel %vm584_vm3, %v636_v1, %v638_v50 }
  0x84   : > { %7023 = vrot.lane.b32.xlu1 %v6977_v54, %s7871_s15  ;;  %v717_v54 = vrot.slane %v8361_v51, 2  ;;  %v7047_v19 = vpack.i.bf16 %v8815_v46, %v8812_v47  ;;  %v8861_v50 = vpack.i.bf16 %v8430_v14, %v8428_v59  ;;  %v732_v3 = vrot.slane %v8571_v40, 2 }
  0x86   : > { %v718_v61 = vsel %vm665_vm2, %v716_v43, %v717_v54  ;;  %v720_v8 = vsel %vm665_vm2, %v717_v54, %v719_v0  ;;  %v7067_v43 = vpack.i.bf16 %v8361_v51, %v8359_v33  ;;  %v727_v54 = vrot.slane %v8520_v58, 2 }
  0x87   : > { %6998 = vrot.lane.b32.xlu0 %v6997_v24, %s7870_s30  ;;  %v1632_v34 = vpack.c.bf16 %v720_v8, %v718_v61  ;;  %v731_v0 = vrot.slane %v8563_v57, 2  ;;  %v653_v51 = vrot.slane %v8575_v44, 1 }
  0x88   : > { %7033 = vrot.lane.b32.xlu1 %v6987_v37, %s7870_s30  ;;  %v724_v37 = vrot.slane %v8432_v28, 2 }
  0x89   : > { %6631 = vmatprep.mubr.msk.bf16.mxu1 %vm393_vm0, %v1632_v34  ;;  %v640_v34 = vrot.slane %v8428_v59, 1  ;;  %v8888_v59 = vsel %vm665_vm2, %v731_v0, %v732_v3 }
  0x8a   : > { %v725_v22 = vsel %vm665_vm2, %v722_v4, %v724_v37  ;;  %v734_v4 = vrot.slane %v8575_v44, 2 }
  0x8b   : > { %7008 = vrot.lane.b32.xlu0 %v7007_v23, %s7869_s29  ;;  %v1635_v12 = vpack.c.bf16 %v725_v22, %v723_v38 }
  0x8c   : > { %7043 = vrot.lane.b32.xlu1 %v6997_v24, %s7869_s29  ;;  %v635_v24 = vrot.slane %v8359_v33, 1  ;;  %v6824_v37 = vpop.permute.xlu1 %6823 }
  0x8d   : > { %6632 = vmatmul.mubr.msk.bf16.gmra.mxu1 %vm393_vm0, %v1635_v12  ;;  %v7087_v12 = vpack.i.bf16 %v720_v8, %v718_v61  ;;  %v6819_v61 = vpop.permute.xlu0 %6818  ;;  %v645_v8 = vrot.slane %v8518_v17, 1 }
  0x8f   : > { %7018 = vrot.lane.b32.xlu0 %v7017_v13, %s7871_s15 }
  0x90   : > { %7053 = vrot.lane.b32.xlu1 %v7007_v23, %s7871_s15  ;;  %v8843_v23 = vsel %vm584_vm3, %v635_v24, %v636_v1  ;;  %v8864_v1 = vsel %vm584_vm3, %v640_v34, %v641_v7  ;;  %v646_v24 = vrot.slane %v8520_v58, 1  ;;  %v648_v34 = vrot.slane %v8541_v27, 1 }
  0x91   : > { %v7077_v31 = vpack.i.bf16 %v8846_v36, %v8843_v23  ;;  %11683 = vst [vmem:[#allocation70_spill] sm:$0xff] %v8864_v1 }
  0x92   : > { %v8907_v0 = vsel %vm584_vm3, %v646_v24, %v648_v34  ;;  %v6825_v34 = vunpack.i.l.bf16 %v6824_v37 }
  0x93   : > { %7028 = vrot.lane.b32.xlu0 %v7027_v35, %s7870_s30  ;;  %11685 = vst [vmem:[#allocation72_spill] sm:$0xff] %v8907_v0 }
  0x94   : > { %7063 = vrot.lane.b32.xlu1 %v7017_v13, %s7870_s30  ;;  %v643_v13 = vrot.slane %v8432_v28, 1  ;;  %v729_v28 = vrot.slane %v8541_v27, 2  ;;  %v8898_v27 = vpack.i.bf16 %v725_v22, %v723_v38  ;;  %v6821_v22 = vunpack.i.h.bf16 %v6819_v61 }
  0x95   : > { %v6820_v38 = vunpack.i.l.bf16 %v6819_v61 }
  0x97   : > { %7038 = vrot.lane.b32.xlu0 %v7037_v63, %s7869_s29 }
  0x98   : > { %7073 = vrot.lane.b32.xlu1 %v7027_v35, %s7869_s29  ;;  %v8867_v35 = vsel %vm584_vm3, %v641_v7, %v643_v13  ;;  %v730_v13 = vsel %vm665_vm2, %v727_v54, %v729_v28 }
  0x9b   : > { %7048 = vrot.lane.b32.xlu0 %v7047_v19, %s7871_s15 }
  0x9c   : > { %7083 = vrot.lane.b32.xlu1 %v7037_v63, %s7871_s15  ;;  %v726_v63 = vrot.slane %v8518_v17, 2 }
  0x9e   : > { %v728_v7 = vsel %vm665_vm2, %v726_v63, %v727_v54  ;;  %v8903_v54 = vsel %vm584_vm3, %v645_v8, %v646_v24  ;;  %v6826_v24 = vunpack.i.h.bf16 %v6824_v37 }
  0x9f   : > { %7058 = vrot.lane.b32.xlu0 %v7057_v60, %s7870_s30  ;;  %v1638_v14 = vpack.c.bf16 %v730_v13, %v728_v7  ;;  %11684 = vst [vmem:[#allocation71_spill] sm:$0xff] %v8903_v54 }
  0xa0   : > { %7093 = vrot.lane.b32.xlu1 %v7047_v19, %s7870_s30  ;;  %v8880_v19 = vpack.i.bf16 %v8867_v35, %v8864_v1 }
  0xa1   : > { %6635 = vmatprep.mubr.msk.bf16.mxu1 %vm393_vm0, %v1638_v14  ;;  %v8918_v14 = vpack.i.bf16 %v8520_v58, %v8518_v17 }
  0xa3   : > { %7068 = vrot.lane.b32.xlu0 %v7067_v43, %s7869_s29 }
  0xa4   : > { %7103 = vrot.lane.b32.xlu1 %v7057_v60, %s7869_s29  ;;  %v8891_v60 = vsel %vm665_vm2, %v732_v3, %v734_v4  ;;  %v650_v3 = vrot.slane %v8563_v57, 1  ;;  %v651_v4 = vrot.slane %v8571_v40, 1 }
  0xa5   : > { %v1641_v33 = vpack.c.bf16 %v8891_v60, %v8888_v59  ;;  %v8900_v63 = vpop.permute.xlu0 %6838 }
  0xa6   : > { %v8929_v61 = vsel %vm584_vm3, %v650_v3, %v651_v4 }
  0xa7   : > { %7078 = vrot.lane.b32.xlu0 %v7077_v31, %s7871_s15  ;;  %6636 = vmatmul.mubr.msk.bf16.gmra.mxu1 %vm393_vm0, %v1641_v33  ;;  %v8926_v33 = vpack.i.bf16 %v8571_v40, %v8563_v57  ;;  %v8941_v57 = vpack.i.bf16 %v730_v13, %v728_v7 }
  0xa8   : > { %7113 = vrot.lane.b32.xlu1 %v7067_v43, %s7871_s15  ;;  %v6829_v28 = vpop.permute.xlu1 %6828  ;;  %v8922_v43 = vpack.i.bf16 %v8907_v0, %v8903_v54  ;;  %v1413_v54 = vsel %vm393_vm0, %v8084_v10, %v6821_v22  ;;  %v1412_v0 = vsel %vm393_vm0, %v8082_v9, %v6820_v38 }
  0xa9   : > { %v6830_v10 = vunpack.i.l.bf16 %v6829_v28  ;;  %v1446_v7 = vsel %vm1444_vm4, %v1413_v54, %v6826_v24 }
  0xab   : > { %7088 = vrot.lane.b32.xlu0 %v7087_v12, %s7870_s30 }
  0xac   : > { %7123 = vrot.lane.b32.xlu1 %v7077_v31, %s7870_s30  ;;  %v6834_v44 = vpop.permute.xlu1 %6833  ;;  %v8932_v31 = vsel %vm584_vm3, %v651_v4, %v653_v51  ;;  %v6831_v4 = vunpack.i.h.bf16 %v6829_v28 }
  0xad   : > { %v6835_v1 = vunpack.i.l.bf16 %v6834_v44  ;;  %v6836_v3 = vunpack.i.h.bf16 %v6834_v44  ;;  %v8949_v9 = vpack.i.bf16 %v8932_v31, %v8929_v61 }
  0xae   : > { %v6844_v8 = vpop.permute.xlu0 %6843 }
  0xaf   : > { %7098 = vrot.lane.b32.xlu0 %v8861_v50, %s7869_s29  ;;  %v6846_v17 = vunpack.i.h.bf16 %v6844_v8  ;;  %v6845_v58 = vunpack.i.l.bf16 %v6844_v8  ;;  %v1479_v54 = vsel %vm1477_vm5, %v1446_v7, %v6836_v3  ;;  %v741_v3 = vrot.slane %v8599_v62, 2 }
  0xb0   : > { %7133 = vrot.lane.b32.xlu1 %v7087_v12, %s7869_s29  ;;  %v6859_v8 = vpop.permute.xlu1 %6858  ;;  %v1445_v12 = vsel %vm1444_vm4, %v1412_v0, %v6825_v34 }
  0xb1   : > { %v1510_v51 = vsel %vm393_vm0, %v8292_v29, %v6845_v58  ;;  %v1511_v37 = vsel %vm393_vm0, %v8295_v30, %v6846_v17  ;;  %v1478_v17 = vsel %vm1477_vm5, %v1445_v12, %v6835_v1  ;;  %v655_v58 = vrot.slane %v8595_v5, 1 }
  0xb2   : > { %v6849_v22 = vpop.permute.xlu0 %6848  ;;  %v1542_v29 = vsel %vm1444_vm4, %v1510_v51, %v6830_v10  ;;  %v1543_v30 = vsel %vm1444_vm4, %v1511_v37, %v6831_v4  ;;  %v6860_v13 = vunpack.i.l.bf16 %v6859_v8  ;;  %v6861_v44 = vunpack.i.h.bf16 %v6859_v8 }
  0xb3   : > { %7108 = vrot.lane.b32.xlu0 %v8880_v19, %s7871_s15  ;;  %v6851_v38 = vunpack.i.h.bf16 %v6849_v22  ;;  %v6850_v40 = vunpack.i.l.bf16 %v6849_v22  ;;  %v737_v51 = vrot.slane %v8597_v6, 2  ;;  %v739_v10 = vrot.slane %v8612_v11, 2 }
  0xb4   : > { %7143 = vrot.lane.b32.xlu1 %v8861_v50, %s7871_s15  ;;  %v6864_v34 = vpop.permute.xlu1 %6863  ;;  %v736_v50 = vrot.slane %v8595_v5, 2  ;;  %v742_v8 = vrot.slane %v8614_v42, 2 }
  0xb5   : > { %v1574_v28 = vsel %vm1477_vm5, %v1542_v29, %v6850_v40  ;;  %v1575_v0 = vsel %vm1477_vm5, %v1543_v30, %v6851_v38  ;;  %v6865_v1 = vunpack.i.l.bf16 %v6864_v34  ;;  %v6866_v12 = vunpack.i.h.bf16 %v6864_v34 }
  0xb6   : > { %v6854_v24 = vpop.permute.xlu0 %6853  ;;  %v1607_v22 = vpack.c.bf16 %v1575_v0, %v1574_v28  ;;  %v1606_v40 = vpack.c.bf16 %v1479_v54, %v1478_v17  ;;  %v1414_v38 = vsel %vm393_vm0, %v8217_v49, %v6860_v13  ;;  %v744_v30 = vrot.slane %v8618_v26, 2 }
  0xb7   : > { %7118 = vrot.lane.b32.xlu0 %v8898_v27, %s7870_s30  ;;  %v6856_v37 = vunpack.i.h.bf16 %v6854_v24  ;;  %v6855_v4 = vunpack.i.l.bf16 %v6854_v24  ;;  %v6841_v28 = vunpack.i.h.bf16 %v8900_v63  ;;  %v1415_v17 = vsel %vm393_vm0, %v8230_v53, %v6861_v44 }
  0xb8   : > { %7153 = vrot.lane.b32.xlu1 %v8880_v19, %s7870_s30  ;;  %1878 = vmatprep.mubr.bf16.mxu0 %v1607_v22  ;;  %v6840_v19 = vunpack.i.l.bf16 %v8900_v63  ;;  %v6874_v54 = vpop.permute.xlu1 %6873  ;;  %v1447_v49 = vsel %vm1444_vm4, %v1414_v38, %v6865_v1  ;;  %v1448_v53 = vsel %vm1444_vm4, %v1415_v17, %v6866_v12  ;;  %v656_v44 = vrot.slane %v8597_v6, 1 }
  0xb9   : > { %v1513_v7 = vsel %vm393_vm0, %v8276_v15, %v6856_v37  ;;  %v1512_v29 = vsel %vm393_vm0, %v8258_v2, %v6855_v4  ;;  %1879 = vmatmul.mubr.bf16.vlgmr.msra.gmra.mxu0 %v1606_v40  ;;  %v6876_v24 = vunpack.i.h.bf16 %v6874_v54  ;;  %v6875_v34 = vunpack.i.l.bf16 %v6874_v54 }
  0xba   : > { %v1544_v2 = vsel %vm1444_vm4, %v1512_v29, %v6840_v19  ;;  %v1545_v63 = vsel %vm1444_vm4, %v1513_v7, %v6841_v28  ;;  %v658_v29 = vrot.slane %v8612_v11, 1  ;;  %v738_v7 = vsel %vm665_vm2, %v736_v50, %v737_v51 }
  0xbb   : > { %7128 = vrot.lane.b32.xlu0 %v8918_v14, %s7869_s29  ;;  %v1480_v4 = vsel %vm1477_vm5, %v1447_v49, %v6875_v34  ;;  %v1481_v1 = vsel %vm1477_vm5, %v1448_v53, %v6876_v24  ;;  %v740_v12 = vsel %vm665_vm2, %v737_v51, %v739_v10  ;;  %v9001_v28 = vsel %vm665_vm2, %v741_v3, %v742_v8 }
  0xbc   : > { %7163 = vrot.lane.b32.xlu1 %v8898_v27, %s7869_s29  ;;  %v6884_v38 = vpop.permute.xlu1 %6883  ;;  %v1609_v27 = vpack.c.bf16 %v1481_v1, %v1480_v4  ;;  %v9004_v19 = vsel %vm665_vm2, %v742_v8, %v744_v30  ;;  %v9012_v17 = vpack.i.bf16 %v8891_v60, %v8888_v59  ;;  %v1644_v11 = vpack.c.bf16 %v740_v12, %v738_v7 }
  0xbd   : > { %v1647_v50 = vpack.c.bf16 %v9004_v19, %v9001_v28  ;;  %v9019_v10 = vsel %vm584_vm3, %v655_v58, %v656_v44  ;;  %v6886_v8 = vunpack.i.h.bf16 %v6884_v38  ;;  %v6885_v30 = vunpack.i.l.bf16 %v6884_v38 }
  0xbe   : > { %v9022_v59 = vsel %vm584_vm3, %v656_v44, %v658_v29  ;;  %6639 = vmatprep.mubr.msk.bf16.mxu1 %vm393_vm0, %v1644_v11  ;;  %v9027_v49 = vpack.i.bf16 %v8597_v6, %v8595_v5  ;;  %v11687_v44 = vld [vmem:[#allocation27_spill] sm:$0xff] }
  0xbf   : > { %7138 = vrot.lane.b32.xlu0 %v8922_v43, %s7871_s15  ;;  %6640 = vmatmul.mubr.msk.bf16.gmra.mxu1 %vm393_vm0, %v1647_v50  ;;  %v9038_v34 = vpack.i.bf16 %v9022_v59, %v9019_v10  ;;  %v661_v50 = vrot.slane %v8614_v42, 1 }
  0xc0   : > { %7173 = vrot.lane.b32.xlu1 %v8918_v14, %s7871_s15  ;;  %v6894_v54 = vpop.permute.xlu1 %6893 }
  0xc3   : > { %7148 = vrot.lane.b32.xlu0 %v8941_v57, %s7870_s30 }
  0xc4   : > { %7183 = vrot.lane.b32.xlu1 %v8922_v43, %s7870_s30  ;;  %v1417_v43 = vsel %vm393_vm0, %v11687_v44, %v6886_v8  ;;  %v6904_v4 = vpop.permute.xlu1 %6903 }
  0xc5   : > { %v6869_v0 = vpop.permute.xlu0 %6868 }
  0xc6   : > { %v6871_v13 = vunpack.i.h.bf16 %v6869_v0  ;;  %v6870_v15 = vunpack.i.l.bf16 %v6869_v0 }
  0xc7   : > { %7158 = vrot.lane.b32.xlu0 %v8926_v33, %s7869_s29 }
  0xc8   : > { %v1576_v22 = vsel %vm1477_vm5, %v1544_v2, %v6870_v15  ;;  %v1577_v37 = vsel %vm1477_vm5, %v1545_v63, %v6871_v13  ;;  %v6896_v13 = vunpack.i.h.bf16 %v6894_v54  ;;  %v6895_v15 = vunpack.i.l.bf16 %v6894_v54  ;;  %7193 = vrot.lane.b32.xlu1 %v8941_v57, %s7869_s29  ;;  %v6914_v54 = vpop.permute.xlu1 %6913 }
  0xc9   : > { %v6879_v40 = vpop.permute.xlu0 %6878  ;;  %v1610_v0 = vpack.c.bf16 %v1577_v37, %v1576_v22  ;;  %v660_v2 = vrot.slane %v8599_v62, 1  ;;  %v11686_v63 = vpack.c.bf16 %v8759_v41, %v8756_v48  ;;  %v11688_v22 = vld [vmem:[#allocation26_spill] sm:$0xff]  ;;  %v6915_v44 = vunpack.i.l.bf16 %v6914_v54 }
  0xca   : > { %v6880_v51 = vunpack.i.l.bf16 %v6879_v40  ;;  %v6881_v3 = vunpack.i.h.bf16 %v6879_v40  ;;  %v1450_v11 = vsel %vm1444_vm4, %v1417_v43, %v6896_v13  ;;  %v9069_v13 = vpack.i.bf16 %v740_v12, %v738_v7 }
  0xcb   : > { %7168 = vrot.lane.b32.xlu0 %v8949_v9, %s7871_s15  ;;  %1886 = vmatprep.mubr.bf16.mxu0 %v1610_v0  ;;  %v6906_v0 = vunpack.i.h.bf16 %v6904_v4 }
  0xcc   : > { %1887 = vmatmul.mubr.bf16.gmra.mxu0 %v1609_v27  ;;  %v1514_v24 = vsel %vm393_vm0, %v8401_v16, %v6880_v51  ;;  %6643 = vmatprep.mubr.msk.bf16.mxu1 %vm393_vm0, %v11686_v63  ;;  %v1515_v53 = vsel %vm393_vm0, %v8404_v21, %v6881_v3  ;;  %v1416_v16 = vsel %vm393_vm0, %v11688_v22, %v6885_v30  ;;  %v6905_v27 = vunpack.i.l.bf16 %v6904_v4  ;;  %v6924_v22 = vpop.permute.xlu1 %6923 }
  0xcd   : > { %v6889_v14 = vpop.permute.xlu0 %6888  ;;  %v1449_v29 = vsel %vm1444_vm4, %v1416_v16, %v6895_v15  ;;  %v1483_v30 = vsel %vm1477_vm5, %v1450_v11, %v6906_v0  ;;  %7203 = vrot.lane.b32.xlu1 %v8926_v33, %s7871_s15  ;;  %v9079_v33 = vpack.i.bf16 %v8614_v42, %v8599_v62  ;;  %v6926_v12 = vunpack.i.h.bf16 %v6924_v22 }
  0xce   : > { %v6890_v60 = vunpack.i.l.bf16 %v6889_v14  ;;  %v6891_v58 = vunpack.i.h.bf16 %v6889_v14  ;;  %v1482_v8 = vsel %vm1477_vm5, %v1449_v29, %v6905_v27  ;;  %v800_v0 = vrot.slane %v8694_v52, 2  ;;  %v11691_v27 = vld [vmem:[#allocation48_spill] sm:$0xff]  ;;  %v11692_v29 = vld [vmem:[#allocation25_spill] sm:$0xff] }
  0xcf   : > { %7178 = vrot.lane.b32.xlu0 %v9012_v17, %s7870_s30  ;;  %v1612_v57 = vpack.c.bf16 %v1483_v30, %v1482_v8 }
  0xd0   : > { %v1546_v1 = vsel %vm1444_vm4, %v1514_v24, %v6890_v60  ;;  %v1547_v21 = vsel %vm1444_vm4, %v1515_v53, %v6891_v58  ;;  %v663_v58 = vrot.slane %v8618_v26, 1  ;;  %v9072_v24 = vsel %vm584_vm3, %v660_v2, %v661_v50  ;;  %v11689_v2 = vld [vmem:[#allocation47_spill] sm:$0xff] }
  0xd1   : > { %v6899_v37 = vpop.permute.xlu0 %6898  ;;  %v6916_v53 = vunpack.i.h.bf16 %v6914_v54  ;;  %7213 = vrot.lane.b32.xlu1 %v8949_v9, %s7870_s30 }
  0xd2   : > { %v6901_v40 = vunpack.i.h.bf16 %v6899_v37  ;;  %v6900_v38 = vunpack.i.l.bf16 %v6899_v37  ;;  %v9075_v26 = vsel %vm584_vm3, %v661_v50, %v663_v58  ;;  %v6925_v37 = vunpack.i.l.bf16 %v6924_v22  ;;  %v11693_v50 = vld [vmem:[#allocation24_spill] sm:$0xff] }
  0xd3   : > { %7188 = vrot.lane.b32.xlu0 %v9027_v49, %s7869_s29  ;;  %v1419_v11 = vsel %vm393_vm0, %v11692_v29, %v6916_v53  ;;  %v1418_v9 = vsel %vm393_vm0, %v11693_v50, %v6915_v44 }
  0xd4   : > { %v1578_v51 = vsel %vm1477_vm5, %v1546_v1, %v6900_v38  ;;  %v1579_v3 = vsel %vm1477_vm5, %v1547_v21, %v6901_v40  ;;  %v9089_v1 = vpack.i.bf16 %v9075_v26, %v9072_v24  ;;  %v11690_v40 = vld [vmem:[#allocation63_spill] sm:$0xff]  ;;  %v1451_v58 = vsel %vm1444_vm4, %v1418_v9, %v6925_v37 }
  0xd5   : > { %v6909_v14 = vpop.permute.xlu0 %6908  ;;  %v1613_v60 = vpack.c.bf16 %v1579_v3, %v1578_v51  ;;  %v752_v38 = vrot.slane %v11690_v40, 1  ;;  %v6934_v3 = vpop.permute.xlu1 %6933  ;;  %7223 = vrot.lane.b32.xlu1 %v9012_v17, %s7869_s29 }
  0xd6   : > { %v6910_v15 = vunpack.i.l.bf16 %v6909_v14  ;;  %v6911_v63 = vunpack.i.h.bf16 %v6909_v14  ;;  %v6936_v54 = vunpack.i.h.bf16 %v6934_v3 }
  0xd7   : > { %7198 = vrot.lane.b32.xlu0 %v9038_v34, %s7871_s15  ;;  %1894 = vmatprep.mubr.bf16.mxu0 %v1613_v60  ;;  %v6935_v60 = vunpack.i.l.bf16 %v6934_v3 }
  0xd8   : > { %1895 = vmatmul.mubr.bf16.gmra.mxu0 %v1612_v57  ;;  %v1516_v4 = vsel %vm393_vm0, %v11689_v2, %v6910_v15  ;;  %v1517_v21 = vsel %vm393_vm0, %v11691_v27, %v6911_v63  ;;  %v1452_v15 = vsel %vm1444_vm4, %v1419_v11, %v6926_v12  ;;  %v799_v63 = vrot.slane %v8692_v32, 2 }
  0xd9   : > { %v6919_v43 = vpop.permute.xlu0 %6918  ;;  %v1485_v22 = vsel %vm1477_vm5, %v1452_v15, %v6936_v54  ;;  %v6944_v2 = vpop.permute.xlu1 %6943  ;;  %7233 = vrot.lane.b32.xlu1 %v9027_v49, %s7871_s15  ;;  %v9119_v12 = vpack.i.bf16 %v9004_v19, %v9001_v28 }
  0xda   : > { %v6920_v16 = vunpack.i.l.bf16 %v6919_v43  ;;  %v6921_v7 = vunpack.i.h.bf16 %v6919_v43  ;;  %v1484_v43 = vsel %vm1477_vm5, %v1451_v58, %v6935_v60  ;;  %v801_v37 = vsel %vm665_vm2, %v799_v63, %v800_v0  ;;  %v11698_v60 = vld [vmem:[#allocation29_spill] sm:$0xff]  ;;  %v11699_v58 = vld [vmem:[#allocation28_spill] sm:$0xff] }
  0xdb   : > { %7208 = vrot.lane.b32.xlu0 %v9069_v13, %s7870_s30  ;;  %v1615_v17 = vpack.c.bf16 %v1485_v22, %v1484_v43  ;;  %v6946_v11 = vunpack.i.h.bf16 %v6944_v2  ;;  %v6945_v50 = vunpack.i.l.bf16 %v6944_v2  ;;  %v11700_v2 = vld [vmem:[#allocation68_spill] sm:$0xff] }
  0xdc   : > { %v1548_v8 = vsel %vm1444_vm4, %v1516_v4, %v6920_v16  ;;  %v1549_v57 = vsel %vm1444_vm4, %v1517_v21, %v6921_v7  ;;  %v802_v7 = vrot.slane %v8705_v25, 2  ;;  %v11694_v21 = vrot.slane %v8636_v18, 1  ;;  %v11695_v18 = vld [vmem:[#allocation61_spill] sm:$0xff] }
  0xdd   : > { %v6929_v51 = vpop.permute.xlu0 %6928  ;;  %v6954_v9 = vpop.permute.xlu1 %6953  ;;  %7243 = vrot.lane.b32.xlu1 %v9038_v34, %s7870_s30  ;;  %v1420_v15 = vsel %vm393_vm0, %v11699_v58, %v6945_v50  ;;  %v11704_v58 = vld [vmem:[#allocation31_spill] sm:$0xff] }
  0xde   : > { %v6931_v30 = vunpack.i.h.bf16 %v6929_v51  ;;  %v6930_v14 = vunpack.i.l.bf16 %v6929_v51  ;;  %v803_v40 = vsel %vm665_vm2, %v800_v0, %v802_v7  ;;  %v9126_v25 = vsel %vm584_vm3, %v11694_v21, %v752_v38  ;;  %v11696_v0 = vld [vmem:[#allocation69_spill] sm:$0xff] }
  0xdf   : > { %7218 = vrot.lane.b32.xlu0 %v9079_v33, %s7869_s29  ;;  %v1653_v51 = vpack.c.bf16 %v803_v40, %v801_v37  ;;  %v6956_v3 = vunpack.i.h.bf16 %v6954_v9 }
  0xe0   : > { %v1580_v53 = vsel %vm1477_vm5, %v1548_v8, %v6930_v14  ;;  %v1581_v44 = vsel %vm1477_vm5, %v1549_v57, %v6931_v30  ;;  %v6955_v8 = vunpack.i.l.bf16 %v6954_v9  ;;  %v7257_v30 = vpack.i.bf16 %v9126_v25, %v11696_v0  ;;  %v11697_v14 = vld [vmem:[#allocation62_spill] sm:$0xff] }
  0xe1   : > { %v6939_v16 = vpop.permute.xlu0 %6938  ;;  %v1616_v4 = vpack.c.bf16 %v1581_v44, %v1580_v53  ;;  %6644 = vmatmul.mubr.msk.bf16.gmra.mxu1 %vm393_vm0, %v1653_v51  ;;  %v1421_v57 = vsel %vm393_vm0, %v11698_v60, %v6946_v11  ;;  %v6964_v53 = vpop.permute.xlu1 %6963  ;;  %7253 = vrot.lane.b32.xlu1 %v9069_v13, %s7869_s29  ;;  %v11703_v60 = vld [vmem:[#allocation65_spill] sm:$0xff] }
  0xe2   : > { %v6940_v27 = vunpack.i.l.bf16 %v6939_v16  ;;  %v6941_v29 = vunpack.i.h.bf16 %v6939_v16  ;;  %v6966_v22 = vunpack.i.h.bf16 %v6964_v53  ;;  %v6965_v16 = vunpack.i.l.bf16 %v6964_v53 }
  0xe3   : > { %7228 = vrot.lane.b32.xlu0 %v9089_v1, %s7871_s15  ;;  %1902 = vmatprep.mubr.bf16.mxu0 %v1616_v4  ;;  %v1454_v7 = vsel %vm1444_vm4, %v1421_v57, %v6956_v3 }
  0xe4   : > { %1903 = vmatmul.mubr.bf16.gmra.mxu0 %v1615_v17  ;;  %v1518_v38 = vsel %vm393_vm0, %v11695_v18, %v6940_v27  ;;  %v1519_v54 = vsel %vm393_vm0, %v11697_v14, %v6941_v29  ;;  %v1453_v17 = vsel %vm1444_vm4, %v1420_v15, %v6955_v8  ;;  %v1487_v21 = vsel %vm1477_vm5, %v1454_v7, %v6966_v22 }
  0xe5   : > { %v6949_v49 = vpop.permute.xlu0 %6948  ;;  %v1486_v27 = vsel %vm1477_vm5, %v1453_v17, %v6965_v16  ;;  %v6974_v11 = vpop.permute.xlu1 %6973  ;;  %7263 = vrot.lane.b32.xlu1 %v9079_v33, %s7871_s15  ;;  %v11702_v33 = vld [vmem:[#allocation64_spill] sm:$0xff]  ;;  %v11706_v16 = vpack.i.bf16 %v8694_v52, %v8692_v32 }
  0xe6   : > { %v6950_v28 = vunpack.i.l.bf16 %v6949_v49  ;;  %v6951_v19 = vunpack.i.h.bf16 %v6949_v49  ;;  %v1618_v49 = vpack.c.bf16 %v1487_v21, %v1486_v27  ;;  %v6976_v51 = vunpack.i.h.bf16 %v6974_v11 }
  0xe7   : > { %7238 = vrot.lane.b32.xlu0 %v9119_v12, %s7870_s30 }
  0xe8   : > { %v1550_v34 = vsel %vm1444_vm4, %v1518_v38, %v6950_v28  ;;  %v1551_v4 = vsel %vm1444_vm4, %v1519_v54, %v6951_v19  ;;  %v6975_v28 = vunpack.i.l.bf16 %v6974_v11  ;;  %v11701_v54 = vpack.i.bf16 %v8759_v41, %v8756_v48 }
  0xe9   : > { %v6959_v63 = vpop.permute.xlu0 %6958  ;;  %v6984_v3 = vpop.permute.xlu1 %6983  ;;  %7273 = vrot.lane.b32.xlu1 %v9089_v1, %s7870_s30  ;;  %v1423_v15 = vsel %vm393_vm0, %v11704_v58, %v6976_v51 }
  0xea   : > { %v6961_v44 = vunpack.i.h.bf16 %v6959_v63  ;;  %v6960_v43 = vunpack.i.l.bf16 %v6959_v63  ;;  %v6986_v38 = vunpack.i.h.bf16 %v6984_v3  ;;  %v6985_v14 = vunpack.i.l.bf16 %v6984_v3  ;;  %v11705_v63 = vld [vmem:[#allocation30_spill] sm:$0xff] }
  0xeb   : > { %7248 = vrot.lane.b32.xlu0 %v11700_v2, %s7869_s29  ;;  %v1422_v53 = vsel %vm393_vm0, %v11705_v63, %v6975_v28 }
  0xec   : > { %v1582_v37 = vsel %vm1477_vm5, %v1550_v34, %v6960_v43  ;;  %v1583_v40 = vsel %vm1477_vm5, %v1551_v4, %v6961_v44  ;;  %v1455_v17 = vsel %vm1444_vm4, %v1422_v53, %v6985_v14  ;;  %v1456_v7 = vsel %vm1444_vm4, %v1423_v15, %v6986_v38  ;;  %v11708_v38 = vld [vmem:[#allocation67_spill] sm:$0xff] }
  0xed   : > { %v6969_v29 = vpop.permute.xlu0 %6968  ;;  %v1619_v50 = vpack.c.bf16 %v1583_v40, %v1582_v37  ;;  %v6994_v44 = vpop.permute.xlu1 %6993  ;;  %7283 = vrot.lane.b32.xlu1 %v9119_v12, %s7869_s29  ;;  %v11707_v12 = vpack.i.bf16 %v8778_v39, %v8772_v45  ;;  %v11709_v45 = vld [vmem:[#allocation66_spill] sm:$0xff] }
  0xee   : > { %v6970_v13 = vunpack.i.l.bf16 %v6969_v29  ;;  %v6971_v9 = vunpack.i.h.bf16 %v6969_v29  ;;  %v6996_v22 = vunpack.i.h.bf16 %v6994_v44  ;;  %v6995_v1 = vunpack.i.l.bf16 %v6994_v44 }
  0xef   : > { %7258 = vrot.lane.b32.xlu0 %v7257_v30, %s7871_s15  ;;  %1910 = vmatprep.mubr.bf16.mxu0 %v1619_v50 }
  0xf0   : > { %1911 = vmatmul.mubr.bf16.gmra.mxu0 %v1618_v49  ;;  %v1520_v30 = vsel %vm393_vm0, %v11702_v33, %v6970_v13  ;;  %v1521_v57 = vsel %vm393_vm0, %v11703_v60, %v6971_v9  ;;  %v1488_v27 = vsel %vm1477_vm5, %v1455_v17, %v6995_v1  ;;  %v1489_v21 = vsel %vm1477_vm5, %v1456_v7, %v6996_v22  ;;  %v11711_v33 = vld [vmem:[#allocation32_spill] sm:$0xff] }
  0xf1   : > { %v6979_v19 = vpop.permute.xlu0 %6978  ;;  %v7004_v32 = vpop.permute.xlu1 %7003  ;;  %v1621_v11 = vpack.c.bf16 %v1489_v21, %v1488_v27  ;;  %7293 = vrot.lane.b32.xlu1 %v11700_v2, %s7871_s15 }
  0xf2   : > { %v6980_v8 = vunpack.i.l.bf16 %v6979_v19  ;;  %v6981_v18 = vunpack.i.h.bf16 %v6979_v19  ;;  %v7006_v13 = vunpack.i.h.bf16 %v7004_v32  ;;  %v7005_v9 = vunpack.i.l.bf16 %v7004_v32 }
  0xf3   : > { %7268 = vrot.lane.b32.xlu0 %v11701_v54, %s7870_s30  ;;  %v11710_v54 = vld [vmem:[#allocation33_spill] sm:$0xff] }
  0xf4   : > { %v1552_v48 = vsel %vm1444_vm4, %v1520_v30, %v6980_v8  ;;  %v1553_v4 = vsel %vm1444_vm4, %v1521_v57, %v6981_v18  ;;  %v1425_v2 = vsel %vm393_vm0, %v11710_v54, %v7006_v13  ;;  %v1424_v30 = vsel %vm393_vm0, %v11711_v33, %v7005_v9 }
  0xf5   : > { %v6989_v34 = vpop.permute.xlu0 %6988  ;;  %v7014_v28 = vpop.permute.xlu1 %7013 }
  0xf6   : > { %v6991_v41 = vunpack.i.h.bf16 %v6989_v34  ;;  %v6990_v43 = vunpack.i.l.bf16 %v6989_v34  ;;  %v7016_v8 = vunpack.i.h.bf16 %v7014_v28  ;;  %v7015_v18 = vunpack.i.l.bf16 %v7014_v28 }
  0xf7   : > { %7278 = vrot.lane.b32.xlu0 %v11706_v16, %s7869_s29 }
  0xf8   : > { %v1584_v37 = vsel %vm1477_vm5, %v1552_v48, %v6990_v43  ;;  %v1585_v40 = vsel %vm1477_vm5, %v1553_v4, %v6991_v41  ;;  %v1457_v48 = vsel %vm1444_vm4, %v1424_v30, %v7015_v18  ;;  %v1458_v41 = vsel %vm1444_vm4, %v1425_v2, %v7016_v8 }
  0xf9   : > { %v6999_v29 = vpop.permute.xlu0 %6998  ;;  %v1622_v52 = vpack.c.bf16 %v1585_v40, %v1584_v37  ;;  %v7024_v57 = vpop.permute.xlu1 %7023 }
  0xfa   : > { %v7001_v50 = vunpack.i.h.bf16 %v6999_v29  ;;  %v7000_v49 = vunpack.i.l.bf16 %v6999_v29  ;;  %v7026_v63 = vunpack.i.h.bf16 %v7024_v57  ;;  %v7025_v53 = vunpack.i.l.bf16 %v7024_v57 }
  0xfb   : > { %7288 = vrot.lane.b32.xlu0 %v11707_v12, %s7871_s15  ;;  %1918 = vmatprep.mubr.bf16.mxu0 %v1622_v52 }
  0xfc   : > { %1919 = vmatmul.mubr.bf16.gmra.mxu0 %v1621_v11  ;;  %v1523_v14 = vsel %vm393_vm0, %v11708_v38, %v7001_v50  ;;  %v1522_v39 = vsel %vm393_vm0, %v11709_v45, %v7000_v49  ;;  %v1490_v1 = vsel %vm1477_vm5, %v1457_v48, %v7025_v53  ;;  %v1491_v16 = vsel %vm1477_vm5, %v1458_v41, %v7026_v63  ;;  %v2366_v48 = vld [vmem:[#allocation2 + $0x10] sm:$0x3] }
  0xfd   : > { %v7009_v51 = vpop.permute.xlu0 %7008  ;;  %v7034_v17 = vpop.permute.xlu1 %7033  ;;  %v1624_v37 = vpack.c.bf16 %v1491_v16, %v1490_v1 }
  0xfe   : > { %v7011_v19 = vunpack.i.h.bf16 %v7009_v51  ;;  %v7010_v3 = vunpack.i.l.bf16 %v7009_v51  ;;  %v7036_v21 = vunpack.i.h.bf16 %v7034_v17  ;;  %v7035_v29 = vunpack.i.l.bf16 %v7034_v17  ;;  %v11712_v51 = vld [vmem:[#allocation35_spill] sm:$0xff] }
 0x100   : > { %v1554_v34 = vsel %vm1444_vm4, %v1522_v39, %v7010_v3  ;;  %v1555_v44 = vsel %vm1444_vm4, %v1523_v14, %v7011_v19  ;;  %v1427_v28 = vsel %vm393_vm0, %v11712_v51, %v7036_v21  ;;  %v11713_v19 = vld [vmem:[#allocation34_spill] sm:$0xff] }
 0x101   : > { %v7019_v60 = vpop.permute.xlu0 %7018  ;;  %v7044_v52 = vpop.permute.xlu1 %7043  ;;  %v1426_v3 = vsel %vm393_vm0, %v11713_v19, %v7035_v29 }
 0x102   : > { %v7021_v58 = vunpack.i.h.bf16 %v7019_v60  ;;  %v7020_v15 = vunpack.i.l.bf16 %v7019_v60  ;;  %v7046_v50 = vunpack.i.h.bf16 %v7044_v52  ;;  %v7045_v49 = vunpack.i.l.bf16 %v7044_v52 }
 0x104   : > { %v1586_v43 = vsel %vm1477_vm5, %v1554_v34, %v7020_v15  ;;  %v1587_v22 = vsel %vm1477_vm5, %v1555_v44, %v7021_v58  ;;  %v2364_v34 = vld [vmem:[#allocation2] sm:$0xff]  ;;  %v2365_v44 = vld [vmem:[#allocation2 + $0x8] sm:$0xff] }
 0x105   : > { %v7029_v4 = vpop.permute.xlu0 %7028  ;;  %v1625_v7 = vpack.c.bf16 %v1587_v22, %v1586_v43  ;;  %v7054_v18 = vpop.permute.xlu1 %7053  ;;  %v2466_v41 = vrot.slane %v2364_v34, 1  ;;  %v2467_v43 = vrot.slane %v2365_v44, 1  ;;  %v2469_v22 = vrot.slane %v2366_v48, 1 }
 0x106   : > { %v7031_v40 = vunpack.i.h.bf16 %v7029_v4  ;;  %v7030_v27 = vunpack.i.l.bf16 %v7029_v4  ;;  %v7056_v45 = vunpack.i.h.bf16 %v7054_v18  ;;  %v7055_v39 = vunpack.i.l.bf16 %v7054_v18 }
 0x107   : > { %1926 = vmatprep.mubr.bf16.mxu0 %v1625_v7 }
 0x108   : > { %1927 = vmatmul.mubr.bf16.gmra.mxu0 %v1624_v37  ;;  %v1525_v13 = vsel %vm393_vm0, %v8796_v56, %v7031_v40  ;;  %v1524_v9 = vsel %vm393_vm0, %v8793_v20, %v7030_v27  ;;  %v1459_v56 = vsel %vm1444_vm4, %v1426_v3, %v7045_v49  ;;  %v1460_v20 = vsel %vm1444_vm4, %v1427_v28, %v7046_v50  ;;  %v11714_v28 = vld [vmem:[#allocation36_spill] sm:$0xff] }
 0x109   : > { %v7039_v32 = vpop.permute.xlu0 %7038  ;;  %v1492_v60 = vsel %vm1477_vm5, %v1459_v56, %v7055_v39  ;;  %v1493_v57 = vsel %vm1477_vm5, %v1460_v20, %v7056_v45  ;;  %v7064_v15 = vpop.permute.xlu1 %7063  ;;  %v2468_v40 = vsel %vm584_vm3, %v2466_v41, %v2467_v43  ;;  %v2470_v27 = vsel %vm584_vm3, %v2467_v43, %v2469_v22 }
 0x10a   : > { %v7041_v11 = vunpack.i.h.bf16 %v7039_v32  ;;  %v7040_v12 = vunpack.i.l.bf16 %v7039_v32  ;;  %v1627_v53 = vpack.c.bf16 %v1493_v57, %v1492_v60  ;;  %v7066_v4 = vunpack.i.h.bf16 %v7064_v15  ;;  %v2415_v57 = vld [vmem:[#allocation2 + $0x198] sm:$0xff] }
 0x10b   : > { %v7065_v17 = vunpack.i.l.bf16 %v7064_v15  ;;  %v2546_v50 = vrot.slane %v2364_v34, 2  ;;  %v2547_v49 = vrot.slane %v2365_v44, 2 }
 0x10c   : > { %v1556_v54 = vsel %vm1444_vm4, %v1524_v9, %v7040_v12  ;;  %v1557_v2 = vsel %vm1444_vm4, %v1525_v13, %v7041_v11  ;;  %v2549_v11 = vrot.slane %v2366_v48, 2  ;;  %v7297_v12 = vpack.i.bf16 %v2470_v27, %v2468_v40 }
 0x10d   : > { %v7049_v8 = vpop.permute.xlu0 %7048  ;;  %v7074_v37 = vpop.permute.xlu1 %7073  ;;  %v1429_v51 = vsel %vm393_vm0, %v8318_v55, %v7066_v4  ;;  %v1428_v19 = vsel %vm393_vm0, %v11714_v28, %v7065_v17 }
 0x10e   : > { %v7051_v38 = vunpack.i.h.bf16 %v7049_v8  ;;  %v7050_v14 = vunpack.i.l.bf16 %v7049_v8  ;;  %v7076_v32 = vunpack.i.h.bf16 %v7074_v37  ;;  %v7075_v52 = vunpack.i.l.bf16 %v7074_v37  ;;  %7298 = vrot.lane.b32.xlu1 %v7297_v12, %s7870_s30 }
 0x110   : > { %v1588_v33 = vsel %vm1477_vm5, %v1556_v54, %v7050_v14  ;;  %v1589_v30 = vsel %vm1477_vm5, %v1557_v2, %v7051_v38  ;;  %v2548_v38 = vsel %vm665_vm2, %v2546_v50, %v2547_v49  ;;  %v2550_v14 = vsel %vm665_vm2, %v2547_v49, %v2549_v11 }
 0x111   : > { %v7059_v58 = vpop.permute.xlu0 %7058  ;;  %v1628_v63 = vpack.c.bf16 %v1589_v30, %v1588_v33  ;;  %v7084_v8 = vpop.permute.xlu1 %7083  ;;  %v1461_v55 = vsel %vm1444_vm4, %v1428_v19, %v7075_v52  ;;  %v1462_v2 = vsel %vm1444_vm4, %v1429_v51, %v7076_v32  ;;  %v7302_v56 = vpack.i.bf16 %v2550_v14, %v2548_v38  ;;  %v11716_v32 = vld [vmem:[#allocation37_spill] sm:$0xff] }
 0x112   : > { %v7061_v1 = vunpack.i.h.bf16 %v7059_v58  ;;  %v7060_v16 = vunpack.i.l.bf16 %v7059_v58  ;;  %v7086_v39 = vunpack.i.h.bf16 %v7084_v8  ;;  %v2416_v58 = vld [vmem:[#allocation2 + $0x1a0] sm:$0xff] }
 0x113   : > { %1934 = vmatprep.mubr.bf16.mxu0 %v1628_v63  ;;  %7303 = vrot.lane.b32.xlu1 %v7302_v56, %s7869_s29  ;;  %v7307_v44 = vpack.i.bf16 %v2416_v58, %v2415_v57 }
 0x114   : > { %1935 = vmatmul.mubr.bf16.gmra.mxu0 %v1627_v53  ;;  %v1527_v13 = vsel %vm393_vm0, %v8815_v46, %v7061_v1  ;;  %v1526_v9 = vsel %vm393_vm0, %v8812_v47, %v7060_v16  ;;  %v7085_v47 = vunpack.i.l.bf16 %v7084_v8  ;;  %v1495_v60 = vsel %vm1477_vm5, %v1462_v2, %v7086_v39 }
 0x115   : > { %v7069_v7 = vpop.permute.xlu0 %7068  ;;  %v7094_v63 = vpop.permute.xlu1 %7093  ;;  %7308 = vrot.lane.b32.xlu0 %v7307_v44, %s7869_s29  ;;  %v11719_v44 = vld [vmem:[#allocation39_spill] sm:$0xff] }
 0x116   : > { %v7071_v21 = vunpack.i.h.bf16 %v7069_v7  ;;  %v7070_v29 = vunpack.i.l.bf16 %v7069_v7  ;;  %v1494_v30 = vsel %vm1477_vm5, %v1461_v55, %v7085_v47  ;;  %v7096_v43 = vunpack.i.h.bf16 %v7094_v63 }
 0x117   : > { %v1630_v34 = vpack.c.bf16 %v1495_v60, %v1494_v30  ;;  %v7095_v22 = vunpack.i.l.bf16 %v7094_v63 }
 0x118   : > { %v1558_v18 = vsel %vm1444_vm4, %v1526_v9, %v7070_v29  ;;  %v1559_v54 = vsel %vm1444_vm4, %v1527_v13, %v7071_v21  ;;  %v11715_v21 = vld [vmem:[#allocation38_spill] sm:$0xff] }
 0x119   : > { %v7079_v3 = vpop.permute.xlu0 %7078  ;;  %v7104_v16 = vpop.permute.xlu1 %7103  ;;  %v1431_v29 = vsel %vm393_vm0, %v11715_v21, %v7096_v43  ;;  %v1430_v52 = vsel %vm393_vm0, %v11716_v32, %v7095_v22 }
 0x11a   : > { %v7081_v46 = vunpack.i.h.bf16 %v7079_v3  ;;  %v7080_v45 = vunpack.i.l.bf16 %v7079_v3  ;;  %v7106_v7 = vunpack.i.h.bf16 %v7104_v16  ;;  %v7105_v37 = vunpack.i.l.bf16 %v7104_v16 }
 0x11c   : > { %v1590_v20 = vsel %vm1477_vm5, %v1558_v18, %v7080_v45  ;;  %v1591_v33 = vsel %vm1477_vm5, %v1559_v54, %v7081_v46 }
 0x11d   : > { %v7089_v15 = vpop.permute.xlu0 %7088  ;;  %v1631_v53 = vpack.c.bf16 %v1591_v33, %v1590_v20  ;;  %v7114_v12 = vpop.permute.xlu1 %7113  ;;  %v7795_v20 = vld [vmem:[%s11515_s4 + $0x88] sm:$0xff]  }
 0x11e   : > { %v7091_v48 = vunpack.i.h.bf16 %v7089_v15  ;;  %v7090_v41 = vunpack.i.l.bf16 %v7089_v15  ;;  %v7116_v13 = vunpack.i.h.bf16 %v7114_v12  ;;  %v7115_v9 = vunpack.i.l.bf16 %v7114_v12  ;;  %6647 = vmatprep.subr.bf16.mxu0 %v7795_v20  ;;  %v11717_v15 = vld [vmem:[#allocation70_spill] sm:$0xff] }
 0x11f   : > { %1942 = vmatprep.mubr.bf16.mxu0 %v1631_v53  ;;  %v11718_v53 = vld [vmem:[#allocation40_spill] sm:$0xff]  ;;  %6648 = vmatpush3.bf16.msra.mxu0 %v7795_v20 }
 0x120   : > { %1943 = vmatmul.mubr.bf16.gmra.mxu0 %v1630_v34  ;;  %v1529_v40 = vsel %vm393_vm0, %v8846_v36, %v7091_v48  ;;  %v1528_v27 = vsel %vm393_vm0, %v8843_v23, %v7090_v41  ;;  %v1463_v36 = vsel %vm1444_vm4, %v1430_v52, %v7105_v37  ;;  %v1464_v23 = vsel %vm1444_vm4, %v1431_v29, %v7106_v7 }
 0x121   : > { %v7099_v1 = vpop.permute.xlu0 %7098  ;;  %v1496_v8 = vsel %vm1477_vm5, %v1463_v36, %v7115_v9  ;;  %v1497_v18 = vsel %vm1477_vm5, %v1464_v23, %v7116_v13  ;;  %v7124_v14 = vpop.permute.xlu1 %7123 }
 0x122   : > { %v7101_v4 = vunpack.i.h.bf16 %v7099_v1  ;;  %v7100_v17 = vunpack.i.l.bf16 %v7099_v1  ;;  %v1633_v45 = vpack.c.bf16 %v1497_v18, %v1496_v8  ;;  %v7126_v54 = vunpack.i.h.bf16 %v7124_v14  ;;  %v11720_v18 = vld [vmem:[#allocation72_spill] sm:$0xff] }
 0x123   : > { %v7125_v55 = vunpack.i.l.bf16 %v7124_v14  ;;  %v11721_v14 = vld [vmem:[#allocation71_spill] sm:$0xff] }
 0x124   : > { %v1560_v51 = vsel %vm1444_vm4, %v1528_v27, %v7100_v17  ;;  %v1561_v28 = vsel %vm1444_vm4, %v1529_v40, %v7101_v4  ;;  %v1433_v34 = vsel %vm393_vm0, %v11718_v53, %v7126_v54 }
 0x125   : > { %v7109_v11 = vpop.permute.xlu0 %7108  ;;  %v7134_v56 = vpop.permute.xlu1 %7133  ;;  %v1432_v48 = vsel %vm393_vm0, %v11719_v44, %v7125_v55 }
 0x126   : > { %v7111_v50 = vunpack.i.h.bf16 %v7109_v11  ;;  %v7110_v49 = vunpack.i.l.bf16 %v7109_v11  ;;  %v7136_v60 = vunpack.i.h.bf16 %v7134_v56  ;;  %v7135_v57 = vunpack.i.l.bf16 %v7134_v56 }
 0x128   : > { %v1592_v19 = vsel %vm1477_vm5, %v1560_v51, %v7110_v49  ;;  %v1593_v3 = vsel %vm1477_vm5, %v1561_v28, %v7111_v50  ;;  %v1465_v37 = vsel %vm1444_vm4, %v1432_v48, %v7135_v57  ;;  %v1466_v40 = vsel %vm1444_vm4, %v1433_v34, %v7136_v60 }
 0x129   : > { %v7119_v38 = vpop.permute.xlu0 %7118  ;;  %v1634_v46 = vpack.c.bf16 %v1593_v3, %v1592_v19  ;;  %v7144_v43 = vpop.permute.xlu1 %7143 }
 0x12a   : > { %v7121_v39 = vunpack.i.h.bf16 %v7119_v38  ;;  %v7120_v47 = vunpack.i.l.bf16 %v7119_v38  ;;  %v7146_v16 = vunpack.i.h.bf16 %v7144_v43  ;;  %v7145_v4 = vunpack.i.l.bf16 %v7144_v43 }
 0x12b   : > { %1950 = vmatprep.mubr.bf16.mxu0 %v1634_v46 }
 0x12c   : > { %1951 = vmatmul.mubr.bf16.gmra.mxu0 %v1633_v45  ;;  %v1531_v58 = vsel %vm393_vm0, %v8867_v35, %v7121_v39  ;;  %v1530_v63 = vsel %vm393_vm0, %v11717_v15, %v7120_v47  ;;  %v7796_v35 = vld [vmem:[%s11515_s4 + $0x80] sm:$0xff]   ;;  %v1498_v29 = vsel %vm1477_vm5, %v1465_v37, %v7145_v4  ;;  %v1499_v32 = vsel %vm1477_vm5, %v1466_v40, %v7146_v16  ;;  %v11722_v45 = vld [vmem:[#allocation44_spill] sm:$0xff] }
 0x12d   : > { %v7129_v2 = vpop.permute.xlu0 %7128  ;;  %6649 = vmatprep.subr.bf16.mxu0 %v7796_v35  ;;  %v7154_v11 = vpop.permute.xlu1 %7153  ;;  %v1636_v50 = vpack.c.bf16 %v1499_v32, %v1498_v29  ;;  %v11723_v47 = vld [vmem:[#allocation43_spill] sm:$0xff] }
 0x12e   : > { %v7131_v33 = vunpack.i.h.bf16 %v7129_v2  ;;  %v7130_v30 = vunpack.i.l.bf16 %v7129_v2  ;;  %6650 = vmatpush3.bf16.msra.mxu0 %v7796_v35  ;;  %v7156_v9 = vunpack.i.h.bf16 %v7154_v11  ;;  %v7155_v51 = vunpack.i.l.bf16 %v7154_v11 }
 0x130   : > { %v1562_v17 = vsel %vm1444_vm4, %v1530_v63, %v7130_v30  ;;  %v1563_v7 = vsel %vm1444_vm4, %v1531_v58, %v7131_v33  ;;  %v1435_v39 = vsel %vm393_vm0, %v11722_v45, %v7156_v9  ;;  %v1434_v54 = vsel %vm393_vm0, %v11723_v47, %v7155_v51 }
 0x131   : > { %v7139_v41 = vpop.permute.xlu0 %7138  ;;  %v7164_v36 = vpop.permute.xlu1 %7163 }
 0x132   : > { %v7141_v22 = vunpack.i.h.bf16 %v7139_v41  ;;  %v7140_v1 = vunpack.i.l.bf16 %v7139_v41  ;;  %v7166_v3 = vunpack.i.h.bf16 %v7164_v36  ;;  %v7165_v8 = vunpack.i.l.bf16 %v7164_v36 }
 0x134   : > { %v1594_v27 = vsel %vm1477_vm5, %v1562_v17, %v7140_v1  ;;  %v1595_v21 = vsel %vm1477_vm5, %v1563_v7, %v7141_v22  ;;  %v1467_v58 = vsel %vm1444_vm4, %v1434_v54, %v7165_v8  ;;  %v1468_v15 = vsel %vm1444_vm4, %v1435_v39, %v7166_v3 }
 0x135   : > { %v7149_v52 = vpop.permute.xlu0 %7148  ;;  %v1637_v12 = vpack.c.bf16 %v1595_v21, %v1594_v27  ;;  %v7174_v2 = vpop.permute.xlu1 %7173 }
 0x136   : > { %v7151_v49 = vunpack.i.h.bf16 %v7149_v52  ;;  %v7150_v13 = vunpack.i.l.bf16 %v7149_v52  ;;  %v7176_v33 = vunpack.i.h.bf16 %v7174_v2  ;;  %v7175_v30 = vunpack.i.l.bf16 %v7174_v2  ;;  %v11724_v52 = vld [vmem:[#allocation54_spill] sm:$0xff] }
 0x137   : > { %1958 = vmatprep.mubr.bf16.mxu0 %v1637_v12  ;;  %v11725_v12 = vld [vmem:[#allocation53_spill] sm:$0xff] }
 0x138   : > { %1959 = vmatmul.mubr.bf16.gmra.mxu0 %v1636_v50  ;;  %v1533_v38 = vsel %vm393_vm0, %v11720_v18, %v7151_v49  ;;  %v1532_v46 = vsel %vm393_vm0, %v11721_v14, %v7150_v13  ;;  %v1500_v34 = vsel %vm1477_vm5, %v1467_v58, %v7175_v30  ;;  %v1501_v44 = vsel %vm1477_vm5, %v1468_v15, %v7176_v33 }
 0x139   : > { %v7159_v28 = vpop.permute.xlu0 %7158  ;;  %v7184_v41 = vpop.permute.xlu1 %7183  ;;  %v1639_v22 = vpack.c.bf16 %v1501_v44, %v1500_v34  ;;  %v11727_v34 = vld [vmem:[#allocation57_spill] sm:$0xff] }
 0x13a   : > { %v7161_v23 = vunpack.i.h.bf16 %v7159_v28  ;;  %v7160_v19 = vunpack.i.l.bf16 %v7159_v28  ;;  %v7186_v4 = vunpack.i.h.bf16 %v7184_v41  ;;  %v7185_v35 = vunpack.i.l.bf16 %v7184_v41 }
 0x13c   : > { %v1564_v60 = vsel %vm1444_vm4, %v1532_v46, %v7160_v19  ;;  %v1565_v57 = vsel %vm1444_vm4, %v1533_v38, %v7161_v23  ;;  %v1437_v11 = vsel %vm393_vm0, %v11724_v52, %v7186_v4  ;;  %v1436_v50 = vsel %vm393_vm0, %v11725_v12, %v7185_v35 }
 0x13d   : > { %v7169_v55 = vpop.permute.xlu0 %7168  ;;  %v7194_v7 = vpop.permute.xlu1 %7193 }
 0x13e   : > { %v7171_v56 = vunpack.i.h.bf16 %v7169_v55  ;;  %v7170_v20 = vunpack.i.l.bf16 %v7169_v55  ;;  %v7196_v27 = vunpack.i.h.bf16 %v7194_v7  ;;  %v7195_v21 = vunpack.i.l.bf16 %v7194_v7 }
 0x140   : > { %v1596_v63 = vsel %vm1477_vm5, %v1564_v60, %v7170_v20  ;;  %v1597_v53 = vsel %vm1477_vm5, %v1565_v57, %v7171_v56 }
 0x141   : > { %v7179_v48 = vpop.permute.xlu0 %7178  ;;  %v1640_v43 = vpack.c.bf16 %v1597_v53, %v1596_v63  ;;  %v7204_v13 = vpop.permute.xlu1 %7203  ;;  %v11726_v63 = vld [vmem:[#allocation60_spill] sm:$0xff] }
 0x142   : > { %v7181_v1 = vunpack.i.h.bf16 %v7179_v48  ;;  %v7180_v16 = vunpack.i.l.bf16 %v7179_v48  ;;  %v7206_v28 = vunpack.i.h.bf16 %v7204_v13  ;;  %v7205_v36 = vunpack.i.l.bf16 %v7204_v13 }
 0x143   : > { %1966 = vmatprep.mubr.bf16.mxu0 %v1640_v43 }
 0x144   : > { %1967 = vmatmul.mubr.bf16.gmra.mxu0 %v1639_v22  ;;  %v1535_v29 = vsel %vm393_vm0, %v8932_v31, %v7181_v1  ;;  %v1534_v32 = vsel %vm393_vm0, %v8929_v61, %v7180_v16  ;;  %v1469_v31 = vsel %vm1444_vm4, %v1436_v50, %v7195_v21  ;;  %v1470_v61 = vsel %vm1444_vm4, %v1437_v11, %v7196_v27 }
 0x145   : > { %v7189_v17 = vpop.permute.xlu0 %7188  ;;  %v1502_v18 = vsel %vm1477_vm5, %v1469_v31, %v7205_v36  ;;  %v1503_v38 = vsel %vm1477_vm5, %v1470_v61, %v7206_v28  ;;  %v7214_v46 = vpop.permute.xlu1 %7213 }
 0x146   : > { %v7191_v37 = vunpack.i.h.bf16 %v7189_v17  ;;  %v7190_v40 = vunpack.i.l.bf16 %v7189_v17  ;;  %v1642_v39 = vpack.c.bf16 %v1503_v38, %v1502_v18  ;;  %v7216_v55 = vunpack.i.h.bf16 %v7214_v46 }
 0x147   : > { %v7215_v2 = vunpack.i.l.bf16 %v7214_v46 }
 0x148   : > { %v1566_v23 = vsel %vm1444_vm4, %v1534_v32, %v7190_v40  ;;  %v1567_v19 = vsel %vm1444_vm4, %v1535_v29, %v7191_v37  ;;  %v1439_v53 = vsel %vm393_vm0, %v11726_v63, %v7216_v55 }
 0x149   : > { %v7199_v49 = vpop.permute.xlu0 %7198  ;;  %v7224_v20 = vpop.permute.xlu1 %7223  ;;  %v1438_v44 = vsel %vm393_vm0, %v11727_v34, %v7215_v2 }
 0x14a   : > { %v7201_v9 = vunpack.i.h.bf16 %v7199_v49  ;;  %v7200_v51 = vunpack.i.l.bf16 %v7199_v49  ;;  %v7226_v60 = vunpack.i.h.bf16 %v7224_v20  ;;  %v7225_v57 = vunpack.i.l.bf16 %v7224_v20 }
 0x14c   : > { %v1598_v3 = vsel %vm1477_vm5, %v1566_v23, %v7200_v51  ;;  %v1599_v8 = vsel %vm1477_vm5, %v1567_v19, %v7201_v9 }
 0x14d   : > { %v7209_v14 = vpop.permute.xlu0 %7208  ;;  %v1643_v45 = vpack.c.bf16 %v1599_v8, %v1598_v3  ;;  %v7234_v41 = vpop.permute.xlu1 %7233 }
 0x14e   : > { %v7211_v47 = vunpack.i.h.bf16 %v7209_v14  ;;  %v7210_v54 = vunpack.i.l.bf16 %v7209_v14  ;;  %v7236_v1 = vunpack.i.h.bf16 %v7234_v41  ;;  %v7235_v16 = vunpack.i.l.bf16 %v7234_v41 }
 0x14f   : > { %1974 = vmatprep.mubr.bf16.mxu0 %v1643_v45 }
 0x150   : > { %1975 = vmatmul.mubr.bf16.gmra.mxu0 %v1642_v39  ;;  %v1537_v58 = vsel %vm393_vm0, %v9022_v59, %v7211_v47  ;;  %v1536_v15 = vsel %vm393_vm0, %v9019_v10, %v7210_v54  ;;  %v1471_v59 = vsel %vm1444_vm4, %v1438_v44, %v7225_v57  ;;  %v1472_v10 = vsel %vm1444_vm4, %v1439_v53, %v7226_v60 }
 0x151   : > { %v7219_v56 = vpop.permute.xlu0 %7218  ;;  %v1504_v37 = vsel %vm1477_vm5, %v1471_v59, %v7235_v16  ;;  %v1505_v40 = vsel %vm1477_vm5, %v1472_v10, %v7236_v1  ;;  %v7244_v21 = vpop.permute.xlu1 %7243 }
 0x152   : > { %v7221_v33 = vunpack.i.h.bf16 %v7219_v56  ;;  %v7220_v30 = vunpack.i.l.bf16 %v7219_v56  ;;  %v1645_v32 = vpack.c.bf16 %v1505_v40, %v1504_v37  ;;  %v7246_v12 = vunpack.i.h.bf16 %v7244_v21 }
 0x153   : > { %v7245_v50 = vunpack.i.l.bf16 %v7244_v21 }
 0x154   : > { %v1568_v4 = vsel %vm1444_vm4, %v1536_v15, %v7220_v30  ;;  %v1569_v35 = vsel %vm1444_vm4, %v1537_v58, %v7221_v33  ;;  %v1441_v31 = vsel %vm393_vm0, %v8597_v6, %v7246_v12  ;;  %v7798_v12 = vld [vmem:[%s11515_s4 + $0x38] sm:$0xff]  }
 0x155   : > { %v7229_v48 = vpop.permute.xlu0 %7228  ;;  %v7254_v13 = vpop.permute.xlu1 %7253  ;;  %v1440_v61 = vsel %vm393_vm0, %v8595_v5, %v7245_v50 }
 0x156   : > { %v7231_v43 = vunpack.i.h.bf16 %v7229_v48  ;;  %v7230_v22 = vunpack.i.l.bf16 %v7229_v48  ;;  %v7256_v28 = vunpack.i.h.bf16 %v7254_v13  ;;  %v7255_v36 = vunpack.i.l.bf16 %v7254_v13  ;;  %v7799_v13 = vld [vmem:[%s11515_s4 + $0x70] sm:$0xff]  }
 0x158   : > { %v1600_v17 = vsel %vm1477_vm5, %v1568_v4, %v7230_v22  ;;  %v1601_v7 = vsel %vm1477_vm5, %v1569_v35, %v7231_v43 }
 0x159   : > { %v7239_v27 = vpop.permute.xlu0 %7238  ;;  %v1646_v29 = vpack.c.bf16 %v1601_v7, %v1600_v17  ;;  %v7264_v8 = vpop.permute.xlu1 %7263 }
 0x15a   : > { %v7241_v52 = vunpack.i.h.bf16 %v7239_v27  ;;  %v7240_v11 = vunpack.i.l.bf16 %v7239_v27  ;;  %v7266_v14 = vunpack.i.h.bf16 %v7264_v8  ;;  %v7265_v46 = vunpack.i.l.bf16 %v7264_v8  ;;  %v7801_v8 = vld [vmem:[%s11515_s4 + $0x68] sm:$0xff]  }
 0x15b   : > { %1982 = vmatprep.mubr.bf16.mxu0 %v1646_v29  ;;  %v6617_v29 = vpop.f32.mrf.mxu1 }
 0x15c   : > { %1983 = vmatmul.mubr.bf16.gmra.mxu0 %v1645_v32  ;;  %v1539_v23 = vsel %vm393_vm0, %v9075_v26, %v7241_v52  ;;  %v1538_v19 = vsel %vm393_vm0, %v9072_v24, %v7240_v11  ;;  %v1473_v26 = vsel %vm1444_vm4, %v1440_v61, %v7255_v36  ;;  %v1474_v24 = vsel %vm1444_vm4, %v1441_v31, %v7256_v28  ;;  %v7797_v32 = vld [vmem:[%s11515_s4 + $0x78] sm:$0xff]   ;;  %v7800_v36 = vld [vmem:[%s11515_s4 + $0x30] sm:$0xff]  }
 0x15d   : > { %v7249_v49 = vpop.permute.xlu0 %7248  ;;  %v1506_v5 = vsel %vm1477_vm5, %v1473_v26, %v7265_v46  ;;  %v1507_v54 = vsel %vm1477_vm5, %v1474_v24, %v7266_v14  ;;  %v7274_v2 = vpop.permute.xlu1 %7273  ;;  %6418 = vmatprep.subr.bf16.mxu1 %v7797_v32  ;;  %v7802_v14 = vld [vmem:[%s11515_s4 + $0x28] sm:$0xff]  }
 0x15e   : > { %v7251_v9 = vunpack.i.h.bf16 %v7249_v49  ;;  %v7250_v51 = vunpack.i.l.bf16 %v7249_v49  ;;  %v1648_v20 = vpack.c.bf16 %v1507_v54, %v1506_v5  ;;  %v7276_v60 = vunpack.i.h.bf16 %v7274_v2  ;;  %v2041_v52 = vpop.f32.mrf.mxu1  ;;  %6419 = vmatpush3.bf16.msra.mxu1 %v7798_v12  ;;  %v7804_v54 = vld [vmem:[%s11515_s4 + $0x20] sm:$0xff]  }
 0x15f   : > { %v7275_v57 = vunpack.i.l.bf16 %v7274_v2  ;;  %6420 = vmatprep.subr.bf16.mxu1 %v7799_v13 }
 0x160   : > { %v1570_v45 = vsel %vm1444_vm4, %v1538_v19, %v7250_v51  ;;  %v1571_v39 = vsel %vm1444_vm4, %v1539_v23, %v7251_v9  ;;  %v1443_v43 = vsel %vm393_vm0, %v8614_v42, %v7276_v60  ;;  %v6618_v9 = vpop.f32.mrf.mxu1  ;;  %v9377_v51 = vld [vmem:[%s11513_s2] ss:$0 sm:$0xff]  ;;  %v7805_v60 = vld [vmem:[%s11515_s4 + $0x58] sm:$0xff]  }
 0x161   : > { %v7259_v3 = vpop.permute.xlu0 %7258  ;;  %v7284_v15 = vpop.permute.xlu1 %7283  ;;  %v1442_v22 = vsel %vm393_vm0, %v8599_v62, %v7275_v57  ;;  %v9385_v19 = vld [vmem:[%s11514_s3] ss:$0 sm:$0xff] }
 0x162   : > { %v7261_v18 = vunpack.i.h.bf16 %v7259_v3  ;;  %v7260_v38 = vunpack.i.l.bf16 %v7259_v3  ;;  %v7286_v34 = vunpack.i.h.bf16 %v7284_v15  ;;  %v7285_v44 = vunpack.i.l.bf16 %v7284_v15  ;;  %6421 = vmatpush3.bf16.msra.mxu1 %v7800_v36  ;;  %v7810_v36 = vld [vmem:[%s11515_s4 + $0x8] sm:$0xff]  }
 0x163   : > { %6422 = vmatprep.subr.bf16.mxu1 %v7801_v8 }
 0x164   : > { %v1602_v47 = vsel %vm1477_vm5, %v1570_v45, %v7260_v38  ;;  %v1603_v6 = vsel %vm1477_vm5, %v1571_v39, %v7261_v18  ;;  %v2044_v18 = vpop.f32.mrf.mxu1 }
 0x165   : > { %v7269_v55 = vpop.permute.xlu0 %7268  ;;  %v1649_v56 = vpack.c.bf16 %v1603_v6, %v1602_v47  ;;  %v7294_v16 = vpop.permute.xlu1 %7293  ;;  %v7803_v6 = vld [vmem:[%s11515_s4 + $0x60] sm:$0xff]  }
 0x166   : > { %v7271_v33 = vunpack.i.h.bf16 %v7269_v55  ;;  %v7270_v30 = vunpack.i.l.bf16 %v7269_v55  ;;  %v7296_v59 = vunpack.i.h.bf16 %v7294_v16  ;;  %v7295_v10 = vunpack.i.l.bf16 %v7294_v16  ;;  %6423 = vmatpush3.bf16.msra.mxu1 %v7802_v14  ;;  %v9408_v57 = vpop.f32.mrf.mxu1  ;;  %v7808_v16 = vld [vmem:[%s11515_s4 + $0x10] sm:$0xff]  }
 0x167   : > { %1990 = vmatprep.mubr.bf16.mxu0 %v1649_v56  ;;  %6424 = vmatprep.subr.bf16.mxu1 %v7803_v6 }
 0x168   : > { %1991 = vmatmul.mubr.bf16.gmra.mxu0 %v1648_v20  ;;  %v1541_v48 = vsel %vm393_vm0, %v9126_v25, %v7271_v33  ;;  %v1540_v41 = vsel %vm393_vm0, %v11696_v0, %v7270_v30  ;;  %v1475_v25 = vsel %vm1444_vm4, %v1442_v22, %v7285_v44  ;;  %v1476_v0 = vsel %vm1444_vm4, %v1443_v43, %v7286_v34  ;;  %v2057_v44 = vpop.f32.mrf.mxu1  ;;  %v7807_v22 = vld [vmem:[%s11515_s4 + $0x50] sm:$0xff]  }
 0x169   : > { %v7279_v58 = vpop.permute.xlu0 %7278  ;;  %v1508_v62 = vsel %vm1477_vm5, %v1475_v25, %v7295_v10  ;;  %v1509_v40 = vsel %vm1477_vm5, %v1476_v0, %v7296_v59 }
 0x16a   : > { %v7281_v63 = vunpack.i.h.bf16 %v7279_v58  ;;  %v7280_v53 = vunpack.i.l.bf16 %v7279_v58  ;;  %v1651_v21 = vpack.c.bf16 %v1509_v40, %v1508_v62  ;;  %6425 = vmatpush3.bf16.msra.mxu1 %v7804_v54  ;;  %v7806_v58 = vld [vmem:[%s11515_s4 + $0x18] sm:$0xff]   ;;  %v9424_v59 = vpop.f32.mrf.mxu1 }
 0x16b   : > { %6426 = vmatprep.subr.bf16.mxu1 %v7805_v60 }
 0x16c   : > { %v1572_v17 = vsel %vm1444_vm4, %v1540_v41, %v7280_v53  ;;  %v1573_v7 = vsel %vm1444_vm4, %v1541_v48, %v7281_v63 }
 0x16d   : > { %v7289_v1 = vpop.permute.xlu0 %7288 }
 0x16e   : > { %v7291_v4 = vunpack.i.h.bf16 %v7289_v1  ;;  %v7290_v35 = vunpack.i.l.bf16 %v7289_v1  ;;  %6427 = vmatpush3.bf16.msra.mxu1 %v7806_v58 }
 0x16f   : > { %6428 = vmatprep.subr.bf16.mxu1 %v7807_v22 }
 0x170   : > { %v1604_v37 = vsel %vm1477_vm5, %v1572_v17, %v7290_v35  ;;  %v1605_v42 = vsel %vm1477_vm5, %v1573_v7, %v7291_v4 }
 0x171   : > { %v1652_v27 = vpack.c.bf16 %v1605_v42, %v1604_v37 }
 0x172   : > { %6429 = vmatpush3.bf16.msra.mxu1 %v7808_v16 }
 0x173   : > { %1998 = vmatprep.mubr.bf16.mxu0 %v1652_v27 }
 0x174   : > { %1999 = vmatmul.mubr.bf16.gmra.mxu0 %v1651_v21 }
 0x179   : > { %v6304_v11 = vpop.f32.mrf.mxu0 }
 0x17b   : > { %v6305_v50 = vpop.f32.mrf.mxu0 }
 0x17c   : > { %v6306_v49 = vadd.f32 %v6305_v50, %v6304_v11  ;;  %v7809_v50 = vld [vmem:[%s11515_s4 + $0x48] sm:$0xff]  }
 0x17d   : > { %v6307_v28 = vpop.f32.mrf.mxu0  ;;  %6430 = vmatprep.subr.bf16.mxu1 %v7809_v50 }
 0x17e   : > { %v2042_v23 = vadd.f32 %v6306_v49, %v2041_v52  ;;  %v2060_v49 = vpop.f32.mrf.mxu1  ;;  %6431 = vmatpush3.bf16.msra.mxu1 %v7810_v36 }
 0x17f   : > { %v6308_v31 = vpop.f32.mrf.mxu0 }
 0x180   : > { %v2175_v61 = vmul.f32 %v9377_v51, %v2042_v23  ;;  %v6309_v3 = vadd.f32 %v6308_v31, %v6307_v28 }
 0x182   : > { %v2214_v46 = vadd.f32 %v9385_v19, %v2175_v61  ;;  %v2045_v45 = vadd.f32 %v6309_v3, %v2044_v18 }
 0x184   : > { %v2246_v26 = vmax.f32 %v2214_v46, 0.0  ;;  %v2176_v24 = vmul.f32 %v9377_v51, %v2045_v45 }
 0x186   : > { %2332 = vst.msk [vmem:[#allocation2 + $0x19] sm:$0xff] %vm393_vm0, %v2246_v26  ;;  %v2215_v55 = vadd.f32 %v9385_v19, %v2176_v24  ;;  %v7812_v26 = vld [vmem:[%s11515_s4] sm:$0xff]  }
 0x188   : > { %v2247_v20 = vmax.f32 %v2215_v55, 0.0 }
 0x18a   : > { %2333 = vst.msk [vmem:[#allocation2 + $0x21] sm:$0xff] %vm393_vm0, %v2247_v20 }
 0x18c   : > { %v6310_v38 = vpop.f32.mrf.mxu0 }
 0x18d   : > { %v2367_v43 = vld [vmem:[#allocation2 + $0x18] sm:$0xff] }
 0x18e   : > { %v6311_v39 = vpop.f32.mrf.mxu0  ;;  %v2551_v25 = vrot.slane %v2367_v43, 2  ;;  %v2471_v27 = vrot.slane %v2367_v43, 1 }
 0x18f   : > { %v6312_v47 = vadd.f32 %v6311_v39, %v6310_v38  ;;  %v7811_v38 = vld [vmem:[%s11515_s4 + $0x40] sm:$0xff]  }
 0x190   : > { %v6313_v5 = vpop.f32.mrf.mxu0  ;;  %6432 = vmatprep.subr.bf16.mxu1 %v7811_v38 }
 0x191   : > { %v2050_v2 = vadd.f32 %v6617_v29, %v6312_v47  ;;  %v2368_v17 = vld [vmem:[#allocation2 + $0x20] sm:$0xff]  ;;  %v2369_v7 = vld [vmem:[#allocation2 + $0x28] sm:$0x3]  ;;  %6433 = vmatpush3.bf16.msra.mxu1 %v7812_v26 }
 0x192   : > { %v6314_v56 = vpop.f32.mrf.mxu0  ;;  %v7312_v37 = vpack.i.bf16 %v2368_v17, %v2367_v43  ;;  %v2552_v42 = vrot.slane %v2368_v17, 2  ;;  %v2554_v62 = vrot.slane %v2369_v7, 2  ;;  %v2472_v21 = vrot.slane %v2368_v17, 1 }
 0x193   : > { %v2177_v33 = vmul.f32 %v9377_v51, %v2050_v2  ;;  %v6315_v30 = vadd.f32 %v6314_v56, %v6313_v5  ;;  %v2474_v29 = vrot.slane %v2369_v7, 1 }
 0x194   : > { %7313 = vrot.lane.b32.xlu1 %v7312_v37, %s7871_s15  ;;  %v2553_v11 = vsel %vm665_vm2, %v2551_v25, %v2552_v42  ;;  %v2555_v12 = vsel %vm665_vm2, %v2552_v42, %v2554_v62 }
 0x195   : > { %v2216_v15 = vadd.f32 %v9385_v19, %v2177_v33  ;;  %v2053_v63 = vadd.f32 %v6618_v9, %v6315_v30  ;;  %v7317_v13 = vpack.i.bf16 %v2555_v12, %v2553_v11  ;;  %v9435_v9 = vsel %vm584_vm3, %v2471_v27, %v2472_v21 }
 0x196   : > { %v9438_v28 = vsel %vm584_vm3, %v2472_v21, %v2474_v29 }
 0x197   : > { %v2248_v53 = vmax.f32 %v2216_v15, 0.0  ;;  %v2178_v34 = vmul.f32 %v9377_v51, %v2053_v63  ;;  %v7322_v61 = vpack.i.bf16 %v9438_v28, %v9435_v9  ;;  %7318 = vrot.lane.b32.xlu0 %v7317_v13, %s7870_s30 }
 0x198   : > { %v6316_v48 = vpop.f32.mrf.mxu0 }
 0x199   : > { %2334 = vst.msk [vmem:[#allocation2 + $0x31] sm:$0xff] %vm393_vm0, %v2248_v53  ;;  %v2217_v41 = vadd.f32 %v9385_v19, %v2178_v34  ;;  %7323 = vrot.lane.b32.xlu1 %v7322_v61, %s7870_s30  ;;  %v11728_v34 = vmov 0.0  }
 0x19a   : > { %v6317_v1 = vpop.f32.mrf.mxu0  ;;  %6683 = vmatprep.subr.mxu1 %v11728_v34 }
 0x19b   : > { %v2249_v4 = vmax.f32 %v2217_v41, 0.0  ;;  %v6318_v35 = vadd.f32 %v6317_v1, %v6316_v48  ;;  %v9476_v1 = vpop.f32.mrf.mxu1 }
 0x19c   : > { %v6319_v10 = vpop.f32.mrf.mxu0 }
 0x19d   : > { %2335 = vst.msk [vmem:[#allocation2 + $0x39] sm:$0xff] %vm393_vm0, %v2249_v4  ;;  %v2058_v0 = vadd.f32 %v6318_v35, %v2057_v44  ;;  %7328 = vrot.lane.b32.xlu1 %v7317_v13, %s7869_s29  ;;  %v2073_v7 = vpop.f32.mrf.mxu1 }
 0x19e   : > { %v6320_v40 = vpop.f32.mrf.mxu0 }
 0x19f   : > { %v2179_v32 = vmul.f32 %v9377_v51, %v2058_v0  ;;  %v6321_v52 = vadd.f32 %v6320_v40, %v6319_v10  ;;  %v6626_v13 = vpop.f32.mrf.mxu1 }
 0x1a0   : > { %v2370_v3 = vld [vmem:[#allocation2 + $0x30] sm:$0xff] }
 0x1a1   : > { %v2218_v23 = vadd.f32 %v9385_v19, %v2179_v32  ;;  %v2061_v31 = vadd.f32 %v6321_v52, %v2060_v49  ;;  %v2556_v39 = vrot.slane %v2370_v3, 2  ;;  %v2476_v55 = vrot.slane %v2370_v3, 1 }
 0x1a3   : > { %v2250_v8 = vmax.f32 %v2218_v23, 0.0  ;;  %v2180_v18 = vmul.f32 %v9377_v51, %v2061_v31 }
 0x1a4   : > { %v6322_v14 = vpop.f32.mrf.mxu0  ;;  %v2371_v46 = vld [vmem:[#allocation2 + $0x38] sm:$0xff]  ;;  %v2372_v45 = vld [vmem:[#allocation2 + $0x40] sm:$0x3] }
 0x1a5   : > { %2336 = vst.msk [vmem:[#allocation2 + $0x49] sm:$0xff] %vm393_vm0, %v2250_v8  ;;  %v2219_v24 = vadd.f32 %v9385_v19, %v2180_v18  ;;  %v7332_v47 = vpack.i.bf16 %v2371_v46, %v2370_v3  ;;  %v2557_v6 = vrot.slane %v2371_v46, 2  ;;  %v2559_v5 = vrot.slane %v2372_v45, 2 }
 0x1a6   : > { %v6323_v54 = vpop.f32.mrf.mxu0  ;;  %v2477_v2 = vrot.slane %v2371_v46, 1  ;;  %v2479_v56 = vrot.slane %v2372_v45, 1  ;;  %v2076_v46 = vpop.f32.mrf.mxu1 }
 0x1a7   : > { %v2251_v20 = vmax.f32 %v2219_v24, 0.0  ;;  %v6324_v33 = vadd.f32 %v6323_v54, %v6322_v14  ;;  %7333 = vrot.lane.b32.xlu0 %v7332_v47, %s7869_s29  ;;  %v2558_v30 = vsel %vm665_vm2, %v2556_v39, %v2557_v6  ;;  %v2560_v60 = vsel %vm665_vm2, %v2557_v6, %v2559_v5  ;;  %7338 = vrot.lane.b32.xlu1 %v7332_v47, %s7871_s15 }
 0x1a8   : > { %v6325_v58 = vpop.f32.mrf.mxu0  ;;  %v3486_v15 = vpack.c.bf16 %v2560_v60, %v2558_v30  ;;  %v9462_v63 = vsel %vm584_vm3, %v2476_v55, %v2477_v2  ;;  %v9465_v53 = vsel %vm584_vm3, %v2477_v2, %v2479_v56 }
 0x1a9   : > { %2337 = vst.msk [vmem:[#allocation2 + $0x51] sm:$0xff] %vm393_vm0, %v2251_v20  ;;  %v2066_v44 = vadd.f32 %v9408_v57, %v6324_v33  ;;  %v7342_v48 = vpack.i.bf16 %v9465_v53, %v9462_v63  ;;  %v7347_v57 = vpack.i.bf16 %v2560_v60, %v2558_v30 }
 0x1aa   : > { %v6326_v41 = vpop.f32.mrf.mxu0  ;;  %6651 = vmatprep.mubr.msk.bf16.mxu0 %vm393_vm0, %v3486_v15 }
 0x1ab   : > { %v2181_v43 = vmul.f32 %v9377_v51, %v2066_v44  ;;  %v6327_v22 = vadd.f32 %v6326_v41, %v6325_v58  ;;  %7343 = vrot.lane.b32.xlu0 %v7342_v48, %s7871_s15  ;;  %7353 = vrot.lane.b32.xlu1 %v7342_v48, %s7870_s30 }
 0x1ac   : > { %v2373_v35 = vld [vmem:[#allocation2 + $0x48] sm:$0xff] }
 0x1ad   : > { %v2220_v16 = vadd.f32 %v9385_v19, %v2181_v43  ;;  %v2069_v4 = vadd.f32 %v9424_v59, %v6327_v22  ;;  %v2561_v37 = vrot.slane %v2373_v35, 2  ;;  %v2481_v29 = vrot.slane %v2373_v35, 1 }
 0x1af   : > { %v2252_v10 = vmax.f32 %v2220_v16, 0.0  ;;  %v2182_v17 = vmul.f32 %v9377_v51, %v2069_v4  ;;  %7348 = vrot.lane.b32.xlu0 %v7347_v57, %s7870_s30  ;;  %7358 = vrot.lane.b32.xlu1 %v7347_v57, %s7869_s29 }
 0x1b0   : > { %v6328_v25 = vpop.f32.mrf.mxu0  ;;  %v2374_v0 = vld [vmem:[#allocation2 + $0x50] sm:$0xff]  ;;  %v2375_v42 = vld [vmem:[#allocation2 + $0x58] sm:$0x3] }
 0x1b1   : > { %2338 = vst.msk [vmem:[#allocation2 + $0x61] sm:$0xff] %vm393_vm0, %v2252_v10  ;;  %v2221_v62 = vadd.f32 %v9385_v19, %v2182_v17  ;;  %v2562_v40 = vrot.slane %v2374_v0, 2  ;;  %v7362_v59 = vpack.i.bf16 %v2374_v0, %v2373_v35  ;;  %v2564_v27 = vrot.slane %v2375_v42, 2 }
 0x1b2   : > { %v6329_v21 = vpop.f32.mrf.mxu0  ;;  %v2482_v32 = vrot.slane %v2374_v0, 1  ;;  %v2484_v52 = vrot.slane %v2375_v42, 1 }
 0x1b3   : > { %v2253_v11 = vmax.f32 %v2221_v62, 0.0  ;;  %v6330_v12 = vadd.f32 %v6329_v21, %v6328_v25  ;;  %7363 = vrot.lane.b32.xlu0 %v7362_v59, %s7869_s29  ;;  %v2563_v50 = vsel %vm665_vm2, %v2561_v37, %v2562_v40  ;;  %v2565_v49 = vsel %vm665_vm2, %v2562_v40, %v2564_v27  ;;  %7368 = vrot.lane.b32.xlu1 %v7362_v59, %s7871_s15  ;;  %v9526_v37 = vpop.f32.mrf.mxu1 }
 0x1b4   : > { %v6331_v36 = vpop.f32.mrf.mxu0  ;;  %v3489_v23 = vpack.c.bf16 %v2565_v49, %v2563_v50  ;;  %v9490_v31 = vsel %vm584_vm3, %v2481_v29, %v2482_v32  ;;  %v9493_v61 = vsel %vm584_vm3, %v2482_v32, %v2484_v52  ;;  %v7377_v26 = vpack.i.bf16 %v2565_v49, %v2563_v50 }
 0x1b5   : > { %2339 = vst.msk [vmem:[#allocation2 + $0x69] sm:$0xff] %vm393_vm0, %v2253_v11  ;;  %v2074_v3 = vadd.f32 %v6330_v12, %v2073_v7  ;;  %v7372_v8 = vpack.i.bf16 %v9493_v61, %v9490_v31  ;;  %v2089_v21 = vpop.f32.mrf.mxu1 }
 0x1b6   : > { %v6332_v18 = vpop.f32.mrf.mxu0  ;;  %6652 = vmatmul.mubr.msk.bf16.vlgmr.msra.gmra.mxu0 %vm393_vm0, %v3489_v23 }
 0x1b7   : > { %v2183_v38 = vmul.f32 %v9377_v51, %v2074_v3  ;;  %v6333_v14 = vadd.f32 %v6332_v18, %v6331_v36  ;;  %7373 = vrot.lane.b32.xlu0 %v7372_v8, %s7871_s15  ;;  %7383 = vrot.lane.b32.xlu1 %v7372_v8, %s7870_s30 }
 0x1b8   : > { %v2376_v24 = vld [vmem:[#allocation2 + $0x60] sm:$0xff] }
 0x1b9   : > { %v2222_v45 = vadd.f32 %v9385_v19, %v2183_v38  ;;  %v2077_v39 = vadd.f32 %v6333_v14, %v2076_v46  ;;  %v2566_v2 = vrot.slane %v2376_v24, 2  ;;  %v2486_v58 = vrot.slane %v2376_v24, 1  ;;  %v9534_v14 = vpop.f32.mrf.mxu1 }
 0x1bb   : > { %v2254_v47 = vmax.f32 %v2222_v45, 0.0  ;;  %v2184_v6 = vmul.f32 %v9377_v51, %v2077_v39  ;;  %7378 = vrot.lane.b32.xlu0 %v7377_v26, %s7870_s30  ;;  %7388 = vrot.lane.b32.xlu1 %v7377_v26, %s7869_s29 }
 0x1bc   : > { %v6334_v5 = vpop.f32.mrf.mxu0  ;;  %v2377_v54 = vld [vmem:[#allocation2 + $0x68] sm:$0xff]  ;;  %v2378_v55 = vld [vmem:[#allocation2 + $0x70] sm:$0x3] }
 0x1bd   : > { %2340 = vst.msk [vmem:[#allocation2 + $0x79] sm:$0xff] %vm393_vm0, %v2254_v47  ;;  %v2223_v56 = vadd.f32 %v9385_v19, %v2184_v6  ;;  %v7392_v20 = vpack.i.bf16 %v2377_v54, %v2376_v24  ;;  %v2567_v33 = vrot.slane %v2377_v54, 2  ;;  %v2569_v30 = vrot.slane %v2378_v55, 2 }
 0x1be   : > { %v6335_v60 = vpop.f32.mrf.mxu0  ;;  %v2487_v15 = vrot.slane %v2377_v54, 1  ;;  %v2489_v44 = vrot.slane %v2378_v55, 1 }
 0x1bf   : > { %v2255_v48 = vmax.f32 %v2223_v56, 0.0  ;;  %v6336_v41 = vadd.f32 %v6335_v60, %v6334_v5  ;;  %7393 = vrot.lane.b32.xlu0 %v7392_v20, %s7869_s29  ;;  %v2568_v43 = vsel %vm665_vm2, %v2566_v2, %v2567_v33  ;;  %v2570_v22 = vsel %vm665_vm2, %v2567_v33, %v2569_v30  ;;  %7398 = vrot.lane.b32.xlu1 %v7392_v20, %s7871_s15  ;;  %v2092_v56 = vpop.f32.mrf.mxu1 }
 0x1c0   : > { %v6337_v16 = vpop.f32.mrf.mxu0  ;;  %v3492_v4 = vpack.c.bf16 %v2570_v22, %v2568_v43  ;;  %v9513_v57 = vsel %vm584_vm3, %v2486_v58, %v2487_v15  ;;  %v9516_v35 = vsel %vm584_vm3, %v2487_v15, %v2489_v44  ;;  %v7407_v40 = vpack.i.bf16 %v2570_v22, %v2568_v43 }
 0x1c1   : > { %2341 = vst.msk [vmem:[#allocation2 + $0x81] sm:$0xff] %vm393_vm0, %v2255_v48  ;;  %v2082_v10 = vadd.f32 %v9476_v1, %v6336_v41  ;;  %v7402_v17 = vpack.i.bf16 %v9516_v35, %v9513_v57 }
 0x1c2   : > { %v6338_v7 = vpop.f32.mrf.mxu0  ;;  %6655 = vmatprep.mubr.msk.bf16.mxu0 %vm393_vm0, %v3492_v4 }
 0x1c3   : > { %v2185_v25 = vmul.f32 %v9377_v51, %v2082_v10  ;;  %v6339_v0 = vadd.f32 %v6338_v7, %v6337_v16  ;;  %7403 = vrot.lane.b32.xlu0 %v7402_v17, %s7871_s15  ;;  %7413 = vrot.lane.b32.xlu1 %v7402_v17, %s7870_s30 }
 0x1c4   : > { %v2379_v1 = vld [vmem:[#allocation2 + $0x78] sm:$0xff] }
 0x1c5   : > { %v2224_v42 = vadd.f32 %v9385_v19, %v2185_v25  ;;  %v2085_v62 = vadd.f32 %v6626_v13, %v6339_v0  ;;  %v2571_v11 = vrot.slane %v2379_v1, 2  ;;  %v2491_v3 = vrot.slane %v2379_v1, 1  ;;  %v9559_v0 = vld [vmem:[#allocation2 + $0x1a0] sm:$0xff] }
 0x1c7   : > { %v2256_v59 = vmax.f32 %v2224_v42, 0.0  ;;  %v2186_v27 = vmul.f32 %v9377_v51, %v2085_v62  ;;  %7408 = vrot.lane.b32.xlu0 %v7407_v40, %s7870_s30  ;;  %7418 = vrot.lane.b32.xlu1 %v7407_v40, %s7869_s29  ;;  %v2675_v42 = vrot.slane %v9559_v0, 1 }
 0x1c8   : > { %v6340_v29 = vpop.f32.mrf.mxu0  ;;  %v2380_v32 = vld [vmem:[#allocation2 + $0x80] sm:$0xff]  ;;  %v2381_v52 = vld [vmem:[#allocation2 + $0x88] sm:$0x3] }
 0x1c9   : > { %2342 = vst.msk [vmem:[#allocation2 + $0x91] sm:$0xff] %vm393_vm0, %v2256_v59  ;;  %v2225_v12 = vadd.f32 %v9385_v19, %v2186_v27  ;;  %v7422_v49 = vpack.i.bf16 %v2380_v32, %v2379_v1  ;;  %v2572_v13 = vrot.slane %v2380_v32, 2  ;;  %v2574_v36 = vrot.slane %v2381_v52, 2  ;;  %v9562_v59 = vld [vmem:[#allocation2 + $0x198] sm:$0xff] }
 0x1ca   : > { %v6341_v50 = vpop.f32.mrf.mxu0  ;;  %v2492_v8 = vrot.slane %v2380_v32, 1  ;;  %v2494_v18 = vrot.slane %v2381_v52, 1  ;;  %v2674_v27 = vrot.slane %v9562_v59, 1 }
 0x1cb   : > { %v6342_v23 = vadd.f32 %v6341_v50, %v6340_v29  ;;  %v2257_v38 = vmax.f32 %v2225_v12, 0.0  ;;  %7423 = vrot.lane.b32.xlu0 %v7422_v49, %s7869_s29  ;;  %v2573_v45 = vsel %vm665_vm2, %v2571_v11, %v2572_v13  ;;  %v2575_v39 = vsel %vm665_vm2, %v2572_v13, %v2574_v36  ;;  %7428 = vrot.lane.b32.xlu1 %v7422_v49, %s7871_s15 }
 0x1cc   : > { %v6343_v46 = vpop.f32.mrf.mxu0  ;;  %v3495_v24 = vpack.c.bf16 %v2575_v39, %v2573_v45  ;;  %v9541_v47 = vsel %vm584_vm3, %v2491_v3, %v2492_v8  ;;  %v9544_v6 = vsel %vm584_vm3, %v2492_v8, %v2494_v18  ;;  %v7437_v30 = vpack.i.bf16 %v2575_v39, %v2573_v45  ;;  %v9583_v3 = vpop.f32.mrf.mxu1 }
 0x1cd   : > { %v2090_v26 = vadd.f32 %v6342_v23, %v2089_v21  ;;  %2343 = vst.msk [vmem:[#allocation2 + $0x99] sm:$0xff] %vm393_vm0, %v2257_v38  ;;  %v7432_v54 = vpack.i.bf16 %v9544_v6, %v9541_v47  ;;  %v9586_v8 = vsel %vm584_vm3, %v2674_v27, %v2675_v42 }
 0x1ce   : > { %v6344_v5 = vpop.f32.mrf.mxu0  ;;  %6656 = vmatmul.mubr.msk.bf16.gmra.mxu0 %vm393_vm0, %v3495_v24 }
 0x1cf   : > { %v2187_v55 = vmul.f32 %v9377_v51, %v2090_v26  ;;  %v6345_v2 = vadd.f32 %v6344_v5, %v6343_v46  ;;  %7433 = vrot.lane.b32.xlu0 %v7432_v54, %s7871_s15  ;;  %7443 = vrot.lane.b32.xlu1 %v7432_v54, %s7870_s30  ;;  %v2105_v5 = vpop.f32.mrf.mxu1 }
 0x1d0   : > { %v2382_v60 = vld [vmem:[#allocation2 + $0x90] sm:$0xff] }
 0x1d1   : > { %v2226_v20 = vadd.f32 %v9385_v19, %v2187_v55  ;;  %v2093_v33 = vadd.f32 %v6345_v2, %v2092_v56  ;;  %v2576_v22 = vrot.slane %v2382_v60, 2  ;;  %v2496_v16 = vrot.slane %v2382_v60, 1 }
 0x1d3   : > { %v2258_v58 = vmax.f32 %v2226_v20, 0.0  ;;  %v2188_v15 = vmul.f32 %v9377_v51, %v2093_v33  ;;  %7438 = vrot.lane.b32.xlu0 %v7437_v30, %s7870_s30  ;;  %7448 = vrot.lane.b32.xlu1 %v7437_v30, %s7869_s29 }
 0x1d4   : > { %v6346_v44 = vpop.f32.mrf.mxu0  ;;  %v2383_v41 = vld [vmem:[#allocation2 + $0x98] sm:$0xff]  ;;  %v2384_v43 = vld [vmem:[#allocation2 + $0xa0] sm:$0x3] }
 0x1d5   : > { %2344 = vst.msk [vmem:[#allocation2 + $0xa9] sm:$0xff] %vm393_vm0, %v2258_v58  ;;  %v2227_v48 = vadd.f32 %v9385_v19, %v2188_v15  ;;  %v7452_v10 = vpack.i.bf16 %v2383_v41, %v2382_v60  ;;  %v2577_v17 = vrot.slane %v2383_v41, 2  ;;  %v2579_v7 = vrot.slane %v2384_v43, 2 }
 0x1d6   : > { %v6347_v4 = vpop.f32.mrf.mxu0  ;;  %v2497_v25 = vrot.slane %v2383_v41, 1  ;;  %v2499_v1 = vrot.slane %v2384_v43, 1 }
 0x1d7   : > { %v2259_v62 = vmax.f32 %v2227_v48, 0.0  ;;  %v6348_v40 = vadd.f32 %v6347_v4, %v6346_v44  ;;  %7453 = vrot.lane.b32.xlu0 %v7452_v10, %s7869_s29  ;;  %v2578_v29 = vsel %vm665_vm2, %v2576_v22, %v2577_v17  ;;  %v2580_v32 = vsel %vm665_vm2, %v2577_v17, %v2579_v7  ;;  %7458 = vrot.lane.b32.xlu1 %v7452_v10, %s7871_s15  ;;  %v6634_v10 = vpop.f32.mrf.mxu1 }
 0x1d8   : > { %v6349_v21 = vpop.f32.mrf.mxu0  ;;  %v9570_v52 = vsel %vm584_vm3, %v2496_v16, %v2497_v25  ;;  %v3498_v12 = vpack.c.bf16 %v2580_v32, %v2578_v29  ;;  %v9575_v50 = vsel %vm584_vm3, %v2497_v25, %v2499_v1  ;;  %v7467_v45 = vpack.i.bf16 %v2580_v32, %v2578_v29 }
 0x1d9   : > { %2345 = vst.msk [vmem:[#allocation2 + $0xb1] sm:$0xff] %vm393_vm0, %v2259_v62  ;;  %v2098_v11 = vadd.f32 %v9526_v37, %v6348_v40  ;;  %v7462_v13 = vpack.i.bf16 %v9575_v50, %v9570_v52  ;;  %v2417_v37 = vld [vmem:[#allocation2 + $0x1a8] sm:$0x3]  ;;  %v2108_v29 = vpop.f32.mrf.mxu1 }
 0x1da   : > { %v6350_v49 = vpop.f32.mrf.mxu0  ;;  %6659 = vmatprep.mubr.msk.bf16.mxu0 %vm393_vm0, %v3498_v12  ;;  %v2677_v39 = vrot.slane %v2417_v37, 1 }
 0x1db   : > { %v2189_v36 = vmul.f32 %v9377_v51, %v2098_v11  ;;  %v6351_v23 = vadd.f32 %v6350_v49, %v6349_v21  ;;  %7463 = vrot.lane.b32.xlu0 %v7462_v13, %s7871_s15  ;;  %7473 = vrot.lane.b32.xlu1 %v7462_v13, %s7870_s30 }
 0x1dc   : > { %v2385_v46 = vld [vmem:[#allocation2 + $0xa8] sm:$0xff]  ;;  %v9594_v20 = vsel %vm584_vm3, %v2675_v42, %v2677_v39 }
 0x1dd   : > { %v2228_v18 = vadd.f32 %v9385_v19, %v2189_v36  ;;  %v2101_v38 = vadd.f32 %v9534_v14, %v6351_v23  ;;  %v2581_v56 = vrot.slane %v2385_v46, 2  ;;  %v2501_v15 = vrot.slane %v2385_v46, 1 }
 0x1df   : > { %v2260_v26 = vmax.f32 %v2228_v18, 0.0  ;;  %v2190_v24 = vmul.f32 %v9377_v51, %v2101_v38  ;;  %7468 = vrot.lane.b32.xlu0 %v7467_v45, %s7870_s30  ;;  %7478 = vrot.lane.b32.xlu1 %v7467_v45, %s7869_s29 }
 0x1e0   : > { %v6352_v54 = vpop.f32.mrf.mxu0  ;;  %v2386_v55 = vld [vmem:[#allocation2 + $0xb0] sm:$0xff]  ;;  %v2387_v2 = vld [vmem:[#allocation2 + $0xb8] sm:$0x3] }
 0x1e1   : > { %2346 = vst.msk [vmem:[#allocation2 + $0xc1] sm:$0xff] %vm393_vm0, %v2260_v26  ;;  %v2229_v14 = vadd.f32 %v9385_v19, %v2190_v24  ;;  %v7482_v33 = vpack.i.bf16 %v2386_v55, %v2385_v46  ;;  %v2582_v30 = vrot.slane %v2386_v55, 2  ;;  %v2584_v60 = vrot.slane %v2387_v2, 2 }
 0x1e2   : > { %v6353_v58 = vpop.f32.mrf.mxu0  ;;  %v2502_v44 = vrot.slane %v2386_v55, 1  ;;  %v2504_v48 = vrot.slane %v2387_v2, 1 }
 0x1e3   : > { %v2261_v43 = vmax.f32 %v2229_v14, 0.0  ;;  %v6354_v22 = vadd.f32 %v6353_v58, %v6352_v54  ;;  %v2583_v16 = vsel %vm665_vm2, %v2581_v56, %v2582_v30  ;;  %v2585_v4 = vsel %vm665_vm2, %v2582_v30, %v2584_v60  ;;  %7483 = vrot.lane.b32.xlu0 %v7482_v33, %s7869_s29  ;;  %7488 = vrot.lane.b32.xlu1 %v7482_v33, %s7871_s15 }
 0x1e4   : > { %v6355_v17 = vpop.f32.mrf.mxu0  ;;  %v3501_v7 = vpack.c.bf16 %v2585_v4, %v2583_v16  ;;  %v9605_v25 = vsel %vm584_vm3, %v2501_v15, %v2502_v44  ;;  %v9608_v42 = vsel %vm584_vm3, %v2502_v44, %v2504_v48  ;;  %v7497_v49 = vpack.i.bf16 %v2585_v4, %v2583_v16  ;;  %v9641_v4 = vpop.f32.mrf.mxu1 }
 0x1e5   : > { %2347 = vst.msk [vmem:[#allocation2 + $0xc9] sm:$0xff] %vm393_vm0, %v2261_v43  ;;  %v2106_v62 = vadd.f32 %v6354_v22, %v2105_v5  ;;  %v7492_v40 = vpack.i.bf16 %v9608_v42, %v9605_v25 }
 0x1e6   : > { %v6356_v1 = vpop.f32.mrf.mxu0  ;;  %6660 = vmatmul.mubr.msk.bf16.gmra.mxu0 %vm393_vm0, %v3501_v7 }
 0x1e7   : > { %v2191_v27 = vmul.f32 %v9377_v51, %v2106_v62  ;;  %v6357_v21 = vadd.f32 %v6356_v1, %v6355_v17  ;;  %7493 = vrot.lane.b32.xlu0 %v7492_v40, %s7871_s15  ;;  %7503 = vrot.lane.b32.xlu1 %v7492_v40, %s7870_s30 }
 0x1e8   : > { %v2388_v12 = vld [vmem:[#allocation2 + $0xc0] sm:$0xff] }
 0x1e9   : > { %v2230_v32 = vadd.f32 %v9385_v19, %v2191_v27  ;;  %v2109_v11 = vadd.f32 %v6357_v21, %v2108_v29  ;;  %v2586_v38 = vrot.slane %v2388_v12, 2  ;;  %v2506_v5 = vrot.slane %v2388_v12, 1  ;;  %v2121_v27 = vpop.f32.mrf.mxu1 }
 0x1eb   : > { %v2262_v13 = vmax.f32 %v2230_v32, 0.0  ;;  %v2192_v36 = vmul.f32 %v9377_v51, %v2109_v11  ;;  %7498 = vrot.lane.b32.xlu0 %v7497_v49, %s7870_s30  ;;  %7508 = vrot.lane.b32.xlu1 %v7497_v49, %s7869_s29 }
 0x1ec   : > { %v6358_v23 = vpop.f32.mrf.mxu0  ;;  %v2389_v37 = vld [vmem:[#allocation2 + $0xc8] sm:$0xff]  ;;  %v2390_v18 = vld [vmem:[#allocation2 + $0xd0] sm:$0x3] }
 0x1ed   : > { %2348 = vst.msk [vmem:[#allocation2 + $0xd9] sm:$0xff] %vm393_vm0, %v2262_v13  ;;  %v2231_v46 = vadd.f32 %v9385_v19, %v2192_v36  ;;  %v7512_v45 = vpack.i.bf16 %v2389_v37, %v2388_v12  ;;  %v2587_v39 = vrot.slane %v2389_v37, 2  ;;  %v2589_v26 = vrot.slane %v2390_v18, 2 }
 0x1ee   : > { %v6359_v24 = vpop.f32.mrf.mxu0  ;;  %v2507_v54 = vrot.slane %v2389_v37, 1  ;;  %v2509_v55 = vrot.slane %v2390_v18, 1 }
 0x1ef   : > { %v2263_v2 = vmax.f32 %v2231_v46, 0.0  ;;  %v6360_v56 = vadd.f32 %v6359_v24, %v6358_v23  ;;  %v2588_v14 = vsel %vm665_vm2, %v2586_v38, %v2587_v39  ;;  %v2590_v33 = vsel %vm665_vm2, %v2587_v39, %v2589_v26  ;;  %7513 = vrot.lane.b32.xlu0 %v7512_v45, %s7869_s29  ;;  %7518 = vrot.lane.b32.xlu1 %v7512_v45, %s7871_s15  ;;  %v9651_v26 = vpop.f32.mrf.mxu1 }
 0x1f0   : > { %v6361_v30 = vpop.f32.mrf.mxu0  ;;  %v3504_v60 = vpack.c.bf16 %v2590_v33, %v2588_v14  ;;  %v9628_v58 = vsel %vm584_vm3, %v2506_v5, %v2507_v54  ;;  %v9631_v15 = vsel %vm584_vm3, %v2507_v54, %v2509_v55 }
 0x1f1   : > { %2349 = vst.msk [vmem:[#allocation2 + $0xe1] sm:$0xff] %vm393_vm0, %v2263_v2  ;;  %v2114_v44 = vadd.f32 %v9583_v3, %v6360_v56  ;;  %v7522_v48 = vpack.i.bf16 %v9631_v15, %v9628_v58  ;;  %v7527_v3 = vpack.i.bf16 %v2590_v33, %v2588_v14 }
 0x1f2   : > { %v6362_v43 = vpop.f32.mrf.mxu0  ;;  %6663 = vmatprep.mubr.msk.bf16.mxu0 %vm393_vm0, %v3504_v60  ;;  %v2124_v60 = vpop.f32.mrf.mxu1 }
 0x1f3   : > { %v2193_v22 = vmul.f32 %v9377_v51, %v2114_v44  ;;  %v6363_v16 = vadd.f32 %v6362_v43, %v6361_v30  ;;  %7523 = vrot.lane.b32.xlu0 %v7522_v48, %s7871_s15  ;;  %7533 = vrot.lane.b32.xlu1 %v7522_v48, %s7870_s30 }
 0x1f4   : > { %v2391_v62 = vld [vmem:[#allocation2 + $0xd8] sm:$0xff] }
 0x1f5   : > { %v2232_v17 = vadd.f32 %v9385_v19, %v2193_v22  ;;  %v2117_v7 = vadd.f32 %v6634_v10, %v6363_v16  ;;  %v2591_v11 = vrot.slane %v2391_v62, 2  ;;  %v2511_v23 = vrot.slane %v2391_v62, 1 }
 0x1f7   : > { %v2264_v40 = vmax.f32 %v2232_v17, 0.0  ;;  %v2194_v1 = vmul.f32 %v9377_v51, %v2117_v7  ;;  %7528 = vrot.lane.b32.xlu0 %v7527_v3, %s7870_s30  ;;  %7538 = vrot.lane.b32.xlu1 %v7527_v3, %s7869_s29 }
 0x1f8   : > { %v6364_v21 = vpop.f32.mrf.mxu0  ;;  %v2392_v29 = vld [vmem:[#allocation2 + $0xe0] sm:$0xff]  ;;  %v2393_v32 = vld [vmem:[#allocation2 + $0xe8] sm:$0x3] }
 0x1f9   : > { %2350 = vst.msk [vmem:[#allocation2 + $0xf1] sm:$0xff] %vm393_vm0, %v2264_v40  ;;  %v2233_v12 = vadd.f32 %v9385_v19, %v2194_v1  ;;  %v7542_v49 = vpack.i.bf16 %v2392_v29, %v2391_v62  ;;  %v2592_v10 = vrot.slane %v2392_v29, 2  ;;  %v2594_v13 = vrot.slane %v2393_v32, 2 }
 0x1fa   : > { %v6365_v36 = vpop.f32.mrf.mxu0  ;;  %v2512_v37 = vrot.slane %v2392_v29, 1  ;;  %v2514_v18 = vrot.slane %v2393_v32, 1 }
 0x1fb   : > { %v2265_v38 = vmax.f32 %v2233_v12, 0.0  ;;  %v6366_v46 = vadd.f32 %v6365_v36, %v6364_v21  ;;  %v2593_v45 = vsel %vm665_vm2, %v2591_v11, %v2592_v10  ;;  %v2595_v39 = vsel %vm665_vm2, %v2592_v10, %v2594_v13  ;;  %7543 = vrot.lane.b32.xlu0 %v7542_v49, %s7869_s29  ;;  %7548 = vrot.lane.b32.xlu1 %v7542_v49, %s7871_s15  ;;  %v7299_v11 = vpop.permute.xlu1 %7298 }
 0x1fc   : > { %v6367_v24 = vpop.f32.mrf.mxu0  ;;  %v3507_v5 = vpack.c.bf16 %v2595_v39, %v2593_v45  ;;  %v9656_v54 = vsel %vm584_vm3, %v2511_v23, %v2512_v37  ;;  %v9659_v55 = vsel %vm584_vm3, %v2512_v37, %v2514_v18  ;;  %v7557_v22 = vpack.i.bf16 %v2595_v39, %v2593_v45 }
 0x1fd   : > { %2351 = vst.msk [vmem:[#allocation2 + $0xf9] sm:$0xff] %vm393_vm0, %v2265_v38  ;;  %v2122_v2 = vadd.f32 %v6366_v46, %v2121_v27  ;;  %v7552_v56 = vpack.i.bf16 %v9659_v55, %v9656_v54 }
 0x1fe   : > { %v6368_v14 = vpop.f32.mrf.mxu0  ;;  %6664 = vmatmul.mubr.msk.bf16.gmra.mxu0 %vm393_vm0, %v3507_v5 }
 0x1ff   : > { %v2195_v33 = vmul.f32 %v9377_v51, %v2122_v2  ;;  %v6369_v30 = vadd.f32 %v6368_v14, %v6367_v24  ;;  %7553 = vrot.lane.b32.xlu0 %v7552_v56, %s7871_s15  ;;  %7563 = vrot.lane.b32.xlu1 %v7552_v56, %s7870_s30  ;;  %v7301_v14 = vunpack.i.h.bf16 %v7299_v11 }
 0x200   : > { %v2394_v43 = vld [vmem:[#allocation2 + $0xf0] sm:$0xff] }
 0x201   : > { %v2234_v44 = vadd.f32 %v9385_v19, %v2195_v33  ;;  %v2125_v48 = vadd.f32 %v6369_v30, %v2124_v60  ;;  %v2596_v40 = vrot.slane %v2394_v43, 2  ;;  %v2516_v12 = vrot.slane %v2394_v43, 1  ;;  %v9692_v30 = vpop.f32.mrf.mxu1  ;;  %v7304_v60 = vpop.permute.xlu1 %7303 }
 0x202   : > { %v7300_v33 = vunpack.i.l.bf16 %v7299_v11 }
 0x203   : > { %v2266_v16 = vmax.f32 %v2234_v44, 0.0  ;;  %v2196_v17 = vmul.f32 %v9377_v51, %v2125_v48  ;;  %7558 = vrot.lane.b32.xlu0 %v7557_v22, %s7870_s30  ;;  %7568 = vrot.lane.b32.xlu1 %v7557_v22, %s7869_s29 }
 0x204   : > { %v6370_v7 = vpop.f32.mrf.mxu0  ;;  %v2395_v62 = vld [vmem:[#allocation2 + $0xf8] sm:$0xff]  ;;  %v2396_v3 = vld [vmem:[#allocation2 + $0x100] sm:$0x3] }
 0x205   : > { %2352 = vst.msk [vmem:[#allocation2 + $0x109] sm:$0xff] %vm393_vm0, %v2266_v16  ;;  %v2235_v1 = vadd.f32 %v9385_v19, %v2196_v17  ;;  %v7572_v27 = vpack.i.bf16 %v2395_v62, %v2394_v43  ;;  %v2597_v21 = vrot.slane %v2395_v62, 2  ;;  %v2599_v29 = vrot.slane %v2396_v3, 2  ;;  %v9697_v16 = vpop.permute.xlu0 %7308 }
 0x206   : > { %v6371_v32 = vpop.f32.mrf.mxu0  ;;  %v2517_v49 = vrot.slane %v2395_v62, 1  ;;  %v2519_v10 = vrot.slane %v2396_v3, 1  ;;  %11729 = vst [vmem:[#allocation27_spill] sm:$0xff] %v9697_v16  ;;  %v7828_v3 = vld [vmem:[#allocation2] sm:$0xff] }
 0x207   : > { %v2267_v13 = vmax.f32 %v2235_v1, 0.0  ;;  %v6372_v36 = vadd.f32 %v6371_v32, %v6370_v7  ;;  %v2598_v23 = vsel %vm665_vm2, %v2596_v40, %v2597_v21  ;;  %v2600_v37 = vsel %vm665_vm2, %v2597_v21, %v2599_v29  ;;  %7573 = vrot.lane.b32.xlu0 %v7572_v27, %s7869_s29  ;;  %7578 = vrot.lane.b32.xlu1 %v7572_v27, %s7871_s15  ;;  %v7827_v7 = vld [vmem:[#allocation2 + $0x8] sm:$0xff]  ;;  %v2137_v21 = vpop.f32.mrf.mxu1 }
 0x208   : > { %v6373_v18 = vpop.f32.mrf.mxu0  ;;  %v3510_v38 = vpack.c.bf16 %v2600_v37, %v2598_v23  ;;  %v9679_v46 = vsel %vm584_vm3, %v2516_v12, %v2517_v49  ;;  %v9682_v45 = vsel %vm584_vm3, %v2517_v49, %v2519_v10  ;;  %v7587_v48 = vpack.i.bf16 %v2600_v37, %v2598_v23  ;;  %v7314_v10 = vpop.permute.xlu1 %7313 }
 0x209   : > { %2353 = vst.msk [vmem:[#allocation2 + $0x111] sm:$0xff] %vm393_vm0, %v2267_v13  ;;  %v2130_v39 = vadd.f32 %v9641_v4, %v6372_v36  ;;  %v7582_v24 = vpack.i.bf16 %v9682_v45, %v9679_v46  ;;  %v3293_v62 = vsel %vm393_vm0, %v7827_v7, %v7301_v14  ;;  %v3292_v40 = vsel %vm393_vm0, %v7828_v3, %v7300_v33 }
 0x20a   : > { %v6374_v5 = vpop.f32.mrf.mxu0  ;;  %6667 = vmatprep.mubr.msk.bf16.mxu0 %vm393_vm0, %v3510_v38  ;;  %v7306_v1 = vunpack.i.h.bf16 %v7304_v60  ;;  %v7305_v27 = vunpack.i.l.bf16 %v7304_v60 }
 0x20b   : > { %v2197_v2 = vmul.f32 %v9377_v51, %v2130_v39  ;;  %v6375_v56 = vadd.f32 %v6374_v5, %v6373_v18  ;;  %7583 = vrot.lane.b32.xlu0 %v7582_v24, %s7871_s15  ;;  %7593 = vrot.lane.b32.xlu1 %v7582_v24, %s7870_s30  ;;  %v9711_v5 = vpop.f32.mrf.mxu1 }
 0x20c   : > { %v2397_v17 = vld [vmem:[#allocation2 + $0x108] sm:$0xff]  ;;  %v3324_v24 = vsel %vm1444_vm4, %v3292_v40, %v7305_v27  ;;  %v3325_v33 = vsel %vm1444_vm4, %v3293_v62, %v7306_v1  ;;  %v9722_v7 = vpop.permute.xlu1 %7323  ;;  %v9730_v40 = vld [vmem:[%s11513_s2] ss:$0 sm:$0xff] }
 0x20d   : > { %v2236_v4 = vadd.f32 %v9385_v19, %v2197_v2  ;;  %v2133_v44 = vadd.f32 %v9651_v26, %v6375_v56  ;;  %v2601_v36 = vrot.slane %v2397_v17, 2  ;;  %v2521_v39 = vrot.slane %v2397_v17, 1 }
 0x20f   : > { %v2268_v43 = vmax.f32 %v2236_v4, 0.0  ;;  %v2198_v22 = vmul.f32 %v9377_v51, %v2133_v44  ;;  %7588 = vrot.lane.b32.xlu0 %v7587_v48, %s7870_s30  ;;  %v9707_v51 = vld [vmem:[%s11514_s3] ss:$0 sm:$0xff]  ;;  %7598 = vrot.lane.b32.xlu1 %v7587_v48, %s7869_s29  ;;  %v7319_v4 = vpop.permute.xlu0 %7318 }
 0x210   : > { %v6376_v19 = vpop.f32.mrf.mxu0  ;;  %v2398_v26 = vld [vmem:[#allocation2 + $0x110] sm:$0xff]  ;;  %v2399_v29 = vld [vmem:[#allocation2 + $0x118] sm:$0x3]  ;;  %v7321_v1 = vunpack.i.h.bf16 %v7319_v4  ;;  %v7320_v27 = vunpack.i.l.bf16 %v7319_v4 }
 0x211   : > { %2354 = vst.msk [vmem:[#allocation2 + $0x121] sm:$0xff] %vm393_vm0, %v2268_v43  ;;  %v2237_v32 = vadd.f32 %v9707_v51, %v2198_v22  ;;  %v7602_v11 = vpack.i.bf16 %v2398_v26, %v2397_v17  ;;  %v2602_v12 = vrot.slane %v2398_v26, 2  ;;  %v2604_v49 = vrot.slane %v2399_v29, 2 }
 0x212   : > { %v6377_v13 = vpop.f32.mrf.mxu0  ;;  %v2522_v23 = vrot.slane %v2398_v26, 1  ;;  %v2524_v37 = vrot.slane %v2399_v29, 1  ;;  %v7316_v22 = vunpack.i.h.bf16 %v7314_v10  ;;  %v7315_v17 = vunpack.i.l.bf16 %v7314_v10 }
 0x213   : > { %v2269_v18 = vmax.f32 %v2237_v32, 0.0  ;;  %v6378_v38 = vadd.f32 %v6377_v13, %v6376_v19  ;;  %7603 = vrot.lane.b32.xlu0 %v7602_v11, %s7869_s29  ;;  %v2603_v56 = vsel %vm665_vm2, %v2601_v36, %v2602_v12  ;;  %v2605_v14 = vsel %vm665_vm2, %v2602_v12, %v2604_v49  ;;  %v2140_v19 = vpop.f32.mrf.mxu1  ;;  %7608 = vrot.lane.b32.xlu1 %v7602_v11, %s7871_s15  ;;  %v9745_v36 = vpop.permute.xlu1 %7328 }
 0x214   : > { %v6379_v2 = vpop.f32.mrf.mxu0  ;;  %v3513_v44 = vpack.c.bf16 %v2605_v14, %v2603_v56  ;;  %v9720_v43 = vsel %vm584_vm3, %v2521_v39, %v2522_v23  ;;  %v9725_v3 = vsel %vm584_vm3, %v2522_v23, %v2524_v37  ;;  %v9739_v49 = vsel %vm1477_vm5, %v3325_v33, %v7316_v22 }
 0x215   : > { %2355 = vst.msk [vmem:[#allocation2 + $0x129] sm:$0xff] %vm393_vm0, %v2269_v18  ;;  %v2138_v60 = vadd.f32 %v6378_v38, %v2137_v21  ;;  %v7612_v26 = vpack.i.bf16 %v9725_v3, %v9720_v43  ;;  %v9742_v10 = vsel %vm1477_vm5, %v3324_v24, %v7315_v17  ;;  %v3389_v37 = vsel %vm393_vm0, %v9438_v28, %v7321_v1 }
 0x216   : > { %v6380_v48 = vpop.f32.mrf.mxu0  ;;  %6668 = vmatmul.mubr.msk.bf16.gmra.mxu0 %vm393_vm0, %v3513_v44  ;;  %v3388_v11 = vsel %vm393_vm0, %v9435_v9, %v7320_v27  ;;  %v7617_v39 = vpack.i.bf16 %v2605_v14, %v2603_v56 }
 0x217   : > { %v2199_v62 = vmul.f32 %v9730_v40, %v2138_v60  ;;  %v6381_v21 = vadd.f32 %v6380_v48, %v6379_v2  ;;  %7613 = vrot.lane.b32.xlu0 %v7612_v26, %s7871_s15  ;;  %7623 = vrot.lane.b32.xlu1 %v7612_v26, %s7870_s30 }
 0x218   : > { %v2400_v12 = vld [vmem:[#allocation2 + $0x120] sm:$0xff] }
 0x219   : > { %v2238_v29 = vadd.f32 %v9707_v51, %v2199_v62  ;;  %v2141_v32 = vadd.f32 %v6381_v21, %v2140_v19  ;;  %v7334_v13 = vpop.permute.xlu0 %7333  ;;  %v2606_v60 = vrot.slane %v2400_v12, 2  ;;  %v9756_v17 = vpop.permute.xlu1 %7338  ;;  %v2526_v56 = vrot.slane %v2400_v12, 1 }
 0x21a   : > { %v7335_v38 = vunpack.i.l.bf16 %v7334_v13  ;;  %v7336_v44 = vunpack.i.h.bf16 %v7334_v13 }
 0x21b   : > { %v2270_v23 = vmax.f32 %v2238_v29, 0.0  ;;  %v2200_v18 = vmul.f32 %v9730_v40, %v2141_v32  ;;  %7618 = vrot.lane.b32.xlu0 %v7617_v39, %s7870_s30  ;;  %7628 = vrot.lane.b32.xlu1 %v7617_v39, %s7869_s29 }
 0x21c   : > { %v6382_v24 = vpop.f32.mrf.mxu0  ;;  %v2401_v2 = vld [vmem:[#allocation2 + $0x128] sm:$0xff]  ;;  %v2402_v33 = vld [vmem:[#allocation2 + $0x130] sm:$0x3]  ;;  %v3420_v13 = vsel %vm1444_vm4, %v3388_v11, %v7335_v38 }
 0x21d   : > { %2356 = vst.msk [vmem:[#allocation2 + $0x139] sm:$0xff] %vm393_vm0, %v2270_v23  ;;  %v2239_v4 = vadd.f32 %v9707_v51, %v2200_v18  ;;  %v2607_v22 = vrot.slane %v2401_v2, 2  ;;  %v2609_v28 = vrot.slane %v2402_v33, 2  ;;  %v7344_v9 = vpop.permute.xlu0 %7343  ;;  %v7632_v48 = vpack.i.bf16 %v2401_v2, %v2400_v12 }
 0x21e   : > { %v2527_v14 = vrot.slane %v2401_v2, 1  ;;  %v2529_v62 = vrot.slane %v2402_v33, 1  ;;  %v7346_v27 = vunpack.i.h.bf16 %v7344_v9  ;;  %v7345_v21 = vunpack.i.l.bf16 %v7344_v9  ;;  %v6383_v19 = vpop.f32.mrf.mxu0 }
 0x21f   : > { %v2271_v1 = vmax.f32 %v2239_v4, 0.0  ;;  %v6384_v26 = vadd.f32 %v6383_v19, %v6382_v24  ;;  %v2608_v29 = vsel %vm665_vm2, %v2606_v60, %v2607_v22  ;;  %v2610_v32 = vsel %vm665_vm2, %v2607_v22, %v2609_v28  ;;  %7633 = vrot.lane.b32.xlu0 %v7632_v48, %s7869_s29  ;;  %v9772_v60 = vpop.permute.xlu1 %7353  ;;  %7638 = vrot.lane.b32.xlu1 %v7632_v48, %s7871_s15 }
 0x220   : > { %v6385_v23 = vpop.f32.mrf.mxu0  ;;  %v3516_v18 = vpack.c.bf16 %v2610_v32, %v2608_v29  ;;  %v9764_v12 = vsel %vm584_vm3, %v2526_v56, %v2527_v14  ;;  %v9767_v2 = vsel %vm584_vm3, %v2527_v14, %v2529_v62  ;;  %v3421_v24 = vsel %vm1444_vm4, %v3389_v37, %v7336_v44 }
 0x221   : > { %2357 = vst.msk [vmem:[#allocation2 + $0x141] sm:$0xff] %vm393_vm0, %v2271_v1  ;;  %v2146_v39 = vadd.f32 %v9692_v30, %v6384_v26  ;;  %v7349_v33 = vpop.permute.xlu0 %7348  ;;  %v7642_v11 = vpack.i.bf16 %v9767_v2, %v9764_v12  ;;  %v3452_v38 = vsel %vm1477_vm5, %v3420_v13, %v7345_v21  ;;  %v3453_v4 = vsel %vm1477_vm5, %v3421_v24, %v7346_v27  ;;  %v9787_v21 = vpop.f32.mrf.mxu1 }
 0x222   : > { %v7351_v22 = vunpack.i.h.bf16 %v7349_v33  ;;  %v7350_v28 = vunpack.i.l.bf16 %v7349_v33  ;;  %v6386_v9 = vpop.f32.mrf.mxu0  ;;  %6671 = vmatprep.mubr.msk.bf16.mxu0 %vm393_vm0, %v3516_v18  ;;  %v3484_v30 = vpack.c.bf16 %v9739_v49, %v9742_v10  ;;  %v3485_v56 = vpack.c.bf16 %v3453_v4, %v3452_v38 }
 0x223   : > { %v2201_v37 = vmul.f32 %v9730_v40, %v2146_v39  ;;  %v6387_v44 = vadd.f32 %v6386_v9, %v6385_v23  ;;  %7643 = vrot.lane.b32.xlu0 %v7642_v11, %s7871_s15  ;;  %v9793_v13 = vpop.permute.xlu1 %7358  ;;  %v7647_v39 = vpack.i.bf16 %v2610_v32, %v2608_v29  ;;  %7653 = vrot.lane.b32.xlu1 %v7642_v11, %s7870_s30 }
 0x224   : > { %v2403_v19 = vld [vmem:[#allocation2 + $0x138] sm:$0xff]  ;;  %3756 = vmatprep.mubr.bf16.mxu1 %v3485_v56  ;;  %v3391_v23 = vsel %vm393_vm0, %v9465_v53, %v7351_v22  ;;  %v3390_v18 = vsel %vm393_vm0, %v9462_v63, %v7350_v28  ;;  %v2153_v56 = vpop.f32.mrf.mxu1 }
 0x225   : > { %v2240_v26 = vadd.f32 %v9707_v51, %v2201_v37  ;;  %v2149_v10 = vadd.f32 %v9711_v5, %v6387_v44  ;;  %v7364_v48 = vpop.permute.xlu0 %7363  ;;  %3757 = vmatmul.mubr.bf16.vlgmr.msra.gmra.mxu1 %v3484_v30  ;;  %v2611_v44 = vrot.slane %v2403_v19, 2  ;;  %v2531_v28 = vrot.slane %v2403_v19, 1 }
 0x226   : > { %v7365_v24 = vunpack.i.l.bf16 %v7364_v48  ;;  %v7366_v4 = vunpack.i.h.bf16 %v7364_v48  ;;  %v9810_v14 = vpop.f32.mrf.mxu1 }
 0x227   : > { %v2272_v33 = vmax.f32 %v2240_v26, 0.0  ;;  %v2202_v38 = vmul.f32 %v9730_v40, %v2149_v10  ;;  %7648 = vrot.lane.b32.xlu0 %v7647_v39, %s7870_s30  ;;  %v9804_v32 = vpop.permute.xlu1 %7368  ;;  %7658 = vrot.lane.b32.xlu1 %v7647_v39, %s7869_s29 }
 0x228   : > { %v6388_v5 = vpop.f32.mrf.mxu0  ;;  %v2404_v9 = vld [vmem:[#allocation2 + $0x140] sm:$0xff]  ;;  %v2405_v37 = vld [vmem:[#allocation2 + $0x148] sm:$0x3]  ;;  %v3422_v48 = vsel %vm1444_vm4, %v3390_v18, %v7365_v24  ;;  %v3423_v18 = vsel %vm1444_vm4, %v3391_v23, %v7366_v4  ;;  %v7340_v23 = vunpack.i.l.bf16 %v9756_v17  ;;  %v7831_v4 = vld [vmem:[#allocation2 + $0x18] sm:$0xff]  ;;  %v7370_v34 = vunpack.i.l.bf16 %v9804_v32 }
 0x229   : > { %v2612_v41 = vrot.slane %v2404_v9, 2  ;;  %v2614_v1 = vrot.slane %v2405_v37, 2  ;;  %v2532_v53 = vrot.slane %v2404_v9, 1  ;;  %2358 = vst.msk [vmem:[#allocation2 + $0x151] sm:$0xff] %vm393_vm0, %v2272_v33  ;;  %v2241_v63 = vadd.f32 %v9707_v51, %v2202_v38  ;;  %v7374_v29 = vpop.permute.xlu0 %7373 }
 0x22a   : > { %v7662_v22 = vpack.i.bf16 %v2404_v9, %v2403_v19  ;;  %v2534_v11 = vrot.slane %v2405_v37, 1  ;;  %v7376_v30 = vunpack.i.h.bf16 %v7374_v29  ;;  %v7375_v26 = vunpack.i.l.bf16 %v7374_v29  ;;  %v6389_v10 = vpop.f32.mrf.mxu0 }
 0x22b   : > { %v2273_v27 = vmax.f32 %v2241_v63, 0.0  ;;  %v6390_v49 = vadd.f32 %v6389_v10, %v6388_v5  ;;  %v2613_v33 = vsel %vm665_vm2, %v2611_v44, %v2612_v41  ;;  %v2615_v38 = vsel %vm665_vm2, %v2612_v41, %v2614_v1  ;;  %v9823_v41 = vpop.permute.xlu1 %7383  ;;  %v7833_v10 = vld [vmem:[#allocation2 + $0x38] sm:$0xff] }
 0x22c   : > { %v6391_v62 = vpop.f32.mrf.mxu0  ;;  %v3519_v16 = vpack.c.bf16 %v2615_v38, %v2613_v33  ;;  %v9813_v19 = vsel %vm584_vm3, %v2531_v28, %v2532_v53  ;;  %v9816_v9 = vsel %vm584_vm3, %v2532_v53, %v2534_v11  ;;  %7663 = vrot.lane.b32.xlu0 %v7662_v22, %s7869_s29  ;;  %v3454_v5 = vsel %vm1477_vm5, %v3422_v48, %v7375_v26 }
 0x22d   : > { %11730 = vst [vmem:[#allocation26_spill] sm:$0xff] %v9813_v19  ;;  %11731 = vst [vmem:[#allocation47_spill] sm:$0xff] %v9816_v9  ;;  %v2154_v24 = vadd.f32 %v6390_v49, %v2153_v56  ;;  %v9821_v39 = vpop.permute.xlu0 %7378  ;;  %v7672_v1 = vpack.i.bf16 %v9816_v9, %v9813_v19  ;;  %v3455_v37 = vsel %vm1477_vm5, %v3423_v18, %v7376_v30  ;;  %v7341_v44 = vunpack.i.h.bf16 %v9756_v17  ;;  %v7832_v30 = vld [vmem:[#allocation2 + $0x20] sm:$0xff]  ;;  %v2156_v18 = vpop.f32.mrf.mxu1 }
 0x22e   : > { %2359 = vst.msk [vmem:[#allocation2 + $0x159] sm:$0xff] %vm393_vm0, %v2273_v27  ;;  %v7355_v27 = vunpack.i.l.bf16 %v9772_v60  ;;  %v6392_v49 = vpop.f32.mrf.mxu0  ;;  %6672 = vmatmul.mubr.msk.bf16.gmra.mxu0 %vm393_vm0, %v3519_v16  ;;  %v11732_v56 = vunpack.i.l.bf16 %v9722_v7  ;;  %7668 = vrot.lane.b32.xlu1 %v7662_v22, %s7871_s15  ;;  %v3488_v28 = vpack.c.bf16 %v3455_v37, %v3454_v5  ;;  %v11733_v17 = vunpack.i.h.bf16 %v9722_v7 }
 0x22f   : > { %v2203_v63 = vmul.f32 %v9730_v40, %v2154_v24  ;;  %v6393_v29 = vadd.f32 %v6392_v49, %v6391_v62  ;;  %v11734_v16 = vunpack.i.h.bf16 %v9772_v60  ;;  %v11735_v24 = vunpack.i.l.bf16 %v9745_v36 }
 0x230   : > { %v3294_v53 = vsel %vm393_vm0, %v7831_v4, %v11732_v56  ;;  %v3295_v26 = vsel %vm393_vm0, %v7832_v30, %v11733_v17  ;;  %7673 = vrot.lane.b32.xlu0 %v7672_v1, %s7871_s15  ;;  %3764 = vmatprep.mubr.bf16.mxu1 %v3488_v28  ;;  %v11736_v7 = vunpack.i.h.bf16 %v9745_v36  ;;  %v9858_v4 = vpop.permute.xlu1 %7388  ;;  %v7834_v56 = vld [vmem:[#allocation2 + $0x30] sm:$0xff] }
 0x231   : > { %v9845_v48 = vsel %vm393_vm0, %v7833_v10, %v11734_v16  ;;  %v3326_v62 = vsel %vm1444_vm4, %v3294_v53, %v11735_v24  ;;  %v2242_v5 = vadd.f32 %v9707_v51, %v2203_v63  ;;  %v2157_v37 = vadd.f32 %v6393_v29, %v2156_v18  ;;  %v9856_v49 = vpop.permute.xlu0 %7393  ;;  %v2406_v17 = vld [vmem:[#allocation2 + $0x150] sm:$0xff] }
 0x232   : > { %v3327_v60 = vsel %vm1444_vm4, %v3295_v26, %v11736_v7  ;;  %v9861_v30 = vsel %vm393_vm0, %v7834_v56, %v7355_v27  ;;  %v3358_v63 = vsel %vm1477_vm5, %v3326_v62, %v7340_v23  ;;  %v7381_v24 = vunpack.i.h.bf16 %v9821_v39  ;;  %7683 = vrot.lane.b32.xlu1 %v7672_v1, %s7870_s30 }
 0x233   : > { %v3359_v29 = vsel %vm1477_vm5, %v3327_v60, %v7341_v44  ;;  %v2274_v36 = vmax.f32 %v2242_v5, 0.0  ;;  %v2204_v26 = vmul.f32 %v9730_v40, %v2157_v37  ;;  %v7677_v27 = vpack.i.bf16 %v2615_v38, %v2613_v33 }
 0x234   : > { %v3487_v10 = vpack.c.bf16 %v3359_v29, %v3358_v63  ;;  %v6394_v16 = vpop.f32.mrf.mxu0  ;;  %v9872_v62 = vpop.permute.xlu1 %7398  ;;  %v2616_v5 = vrot.slane %v2406_v17, 2  ;;  %v7380_v63 = vunpack.i.l.bf16 %v9821_v39  ;;  %v7396_v29 = vunpack.i.h.bf16 %v9856_v49 }
 0x235   : > { %v2407_v7 = vld [vmem:[#allocation2 + $0x158] sm:$0xff]  ;;  %v2408_v56 = vld [vmem:[#allocation2 + $0x160] sm:$0x3]  ;;  %2360 = vst.msk [vmem:[#allocation2 + $0x169] sm:$0xff] %vm393_vm0, %v2274_v36  ;;  %v2243_v23 = vadd.f32 %v9707_v51, %v2204_v26  ;;  %v7404_v44 = vpop.permute.xlu0 %7403  ;;  %v7395_v22 = vunpack.i.l.bf16 %v9856_v49  ;;  %7678 = vrot.lane.b32.xlu0 %v7677_v27, %s7870_s30 }
 0x236   : > { %3765 = vmatmul.mubr.bf16.gmra.mxu1 %v3487_v10  ;;  %v2617_v60 = vrot.slane %v2407_v7, 2  ;;  %v2619_v37 = vrot.slane %v2408_v56, 2  ;;  %v6395_v33 = vpop.f32.mrf.mxu0  ;;  %v7692_v38 = vpack.i.bf16 %v2407_v7, %v2406_v17  ;;  %v2537_v28 = vrot.slane %v2407_v7, 1  ;;  %7688 = vrot.lane.b32.xlu1 %v7677_v27, %s7869_s29 }
 0x237   : > { %v2275_v36 = vmax.f32 %v2243_v23, 0.0  ;;  %v6396_v26 = vadd.f32 %v6395_v33, %v6394_v16  ;;  %v2539_v39 = vrot.slane %v2408_v56, 1  ;;  %v7405_v49 = vunpack.i.l.bf16 %v7404_v44 }
 0x238   : > { %v2618_v10 = vsel %vm665_vm2, %v2616_v5, %v2617_v60  ;;  %v2620_v11 = vsel %vm665_vm2, %v2617_v60, %v2619_v37  ;;  %v6397_v18 = vpop.f32.mrf.mxu0  ;;  %v9886_v9 = vpop.permute.xlu1 %7413  ;;  %v2536_v16 = vrot.slane %v2406_v17, 1  ;;  %v3393_v23 = vsel %vm393_vm0, %v9493_v61, %v7381_v24 }
 0x239   : > { %v3522_v53 = vpack.c.bf16 %v2620_v11, %v2618_v10  ;;  %2361 = vst.msk [vmem:[#allocation2 + $0x171] sm:$0xff] %vm393_vm0, %v2275_v36  ;;  %v2162_v19 = vadd.f32 %v9787_v21, %v6396_v26  ;;  %v9884_v1 = vpop.permute.xlu0 %7408  ;;  %v3392_v5 = vsel %vm393_vm0, %v9490_v31, %v7380_v63  ;;  %v7386_v7 = vunpack.i.h.bf16 %v9823_v41  ;;  %7693 = vrot.lane.b32.xlu0 %v7692_v38, %s7869_s29 }
 0x23a   : > { %v7406_v56 = vunpack.i.h.bf16 %v7404_v44  ;;  %v6398_v60 = vpop.f32.mrf.mxu0  ;;  %v9898_v17 = vsel %vm584_vm3, %v2536_v16, %v2537_v28  ;;  %v9901_v61 = vsel %vm584_vm3, %v2537_v28, %v2539_v39  ;;  %v7385_v31 = vunpack.i.l.bf16 %v9823_v41  ;;  %v7835_v28 = vld [vmem:[#allocation2 + $0x50] sm:$0xff]  ;;  %7698 = vrot.lane.b32.xlu1 %v7692_v38, %s7871_s15 }
 0x23b   : > { %v2205_v21 = vmul.f32 %v9730_v40, %v2162_v19  ;;  %v6399_v37 = vadd.f32 %v6398_v60, %v6397_v18  ;;  %6675 = vmatprep.mubr.msk.bf16.mxu0 %vm393_vm0, %v3522_v53  ;;  %v3424_v24 = vsel %vm1444_vm4, %v3392_v5, %v7395_v22  ;;  %v3425_v44 = vsel %vm1444_vm4, %v3393_v23, %v7396_v29  ;;  %v7836_v23 = vld [vmem:[#allocation2 + $0x48] sm:$0xff] }
 0x23c   : > { %v7702_v19 = vpack.i.bf16 %v9901_v61, %v9898_v17  ;;  %v3456_v53 = vsel %vm1477_vm5, %v3424_v24, %v7405_v49  ;;  %v9913_v33 = vpop.permute.xlu1 %7418  ;;  %v9916_v41 = vsel %vm393_vm0, %v7835_v28, %v7386_v7  ;;  %v3457_v22 = vsel %vm1477_vm5, %v3425_v44, %v7406_v56 }
 0x23d   : > { %v2244_v27 = vadd.f32 %v9707_v51, %v2205_v21  ;;  %v2165_v63 = vadd.f32 %v9810_v14, %v6399_v37  ;;  %v9911_v18 = vpop.permute.xlu0 %7423  ;;  %v11737_v29 = vunpack.i.l.bf16 %v9793_v13  ;;  %v11738_v36 = vunpack.i.h.bf16 %v9793_v13 }
 0x23e   : > { %7703 = vrot.lane.b32.xlu0 %v7702_v19, %s7871_s15  ;;  %v3491_v16 = vpack.c.bf16 %v3457_v22, %v3456_v53  ;;  %v3298_v5 = vsel %vm393_vm0, %v7836_v23, %v7385_v31  ;;  %v7391_v7 = vunpack.i.h.bf16 %v9858_v4  ;;  %v11739_v13 = vunpack.i.h.bf16 %v9804_v32  ;;  %7713 = vrot.lane.b32.xlu1 %v7702_v19, %s7870_s30 }
 0x23f   : > { %v3328_v14 = vsel %vm1444_vm4, %v9861_v30, %v11737_v29  ;;  %v3329_v26 = vsel %vm1444_vm4, %v9845_v48, %v11738_v36  ;;  %v2276_v39 = vmax.f32 %v2244_v27, 0.0  ;;  %v2206_v49 = vmul.f32 %v9730_v40, %v2165_v63  ;;  %v9947_v27 = vld [vmem:[#allocation2 + $0x168] sm:$0xff] }
 0x240   : > { %v3360_v38 = vsel %vm1477_vm5, %v3328_v14, %v7370_v34  ;;  %v7390_v30 = vunpack.i.l.bf16 %v9858_v4  ;;  %v3361_v56 = vsel %vm1477_vm5, %v3329_v26, %v11739_v13  ;;  %v9937_v48 = vld [vmem:[#allocation2 + $0x170] sm:$0xff]  ;;  %v7401_v40 = vunpack.i.h.bf16 %v9872_v62  ;;  %3772 = vmatprep.mubr.bf16.mxu1 %v3491_v16  ;;  %v9942_v31 = vpop.permute.xlu1 %7428  ;;  %v2411_v24 = vld [vmem:[#allocation2 + $0x178] sm:$0x3] }
 0x241   : > { %2362 = vst.msk [vmem:[#allocation2 + $0x181] sm:$0xff] %vm393_vm0, %v2276_v39  ;;  %v2245_v60 = vadd.f32 %v9707_v51, %v2206_v49  ;;  %v3490_v34 = vpack.c.bf16 %v3361_v56, %v3360_v38  ;;  %v7707_v21 = vpack.i.bf16 %v2620_v11, %v2618_v10  ;;  %v7434_v37 = vpop.permute.xlu0 %7433  ;;  %v7400_v4 = vunpack.i.l.bf16 %v9872_v62 }
 0x242   : > { %v7411_v32 = vunpack.i.h.bf16 %v9884_v1  ;;  %v7410_v44 = vunpack.i.l.bf16 %v9884_v1  ;;  %v7426_v53 = vunpack.i.h.bf16 %v9911_v18  ;;  %v7425_v51 = vunpack.i.l.bf16 %v9911_v18 }
 0x243   : > { %v2277_v63 = vmax.f32 %v2245_v60, 0.0  ;;  %3773 = vmatmul.mubr.bf16.gmra.mxu1 %v3490_v34  ;;  %7708 = vrot.lane.b32.xlu0 %v7707_v21, %s7870_s30  ;;  %v7722_v11 = vpack.i.bf16 %v9937_v48, %v9947_v27  ;;  %v7436_v62 = vunpack.i.h.bf16 %v7434_v37  ;;  %v2622_v10 = vrot.slane %v9937_v48, 2 }
 0x244   : > { %v2624_v28 = vrot.slane %v2411_v24, 2  ;;  %v2542_v1 = vrot.slane %v9937_v48, 1  ;;  %v7435_v22 = vunpack.i.l.bf16 %v7434_v37  ;;  %v9958_v14 = vpop.permute.xlu1 %7443  ;;  %v2621_v18 = vrot.slane %v9947_v27, 2  ;;  %7718 = vrot.lane.b32.xlu1 %v7707_v21, %s7869_s29 }
 0x245   : > { %2363 = vst.msk [vmem:[#allocation2 + $0x189] sm:$0xff] %vm393_vm0, %v2277_v63  ;;  %v7439_v29 = vpop.permute.xlu0 %7438  ;;  %v2541_v36 = vrot.slane %v9947_v27, 1  ;;  %v2544_v26 = vrot.slane %v2411_v24, 1  ;;  %v3395_v19 = vsel %vm393_vm0, %v9516_v35, %v7411_v32  ;;  %v3394_v39 = vsel %vm393_vm0, %v9513_v57, %v7410_v44 }
 0x246   : > { %v7416_v49 = vunpack.i.h.bf16 %v9886_v9  ;;  %v2623_v16 = vsel %vm665_vm2, %v2621_v18, %v2622_v10  ;;  %v2625_v38 = vsel %vm665_vm2, %v2622_v10, %v2624_v28  ;;  %v7441_v35 = vunpack.i.h.bf16 %v7439_v29 }
 0x247   : > { %7723 = vrot.lane.b32.xlu0 %v7722_v11, %s7869_s29  ;;  %v9971_v23 = vsel %vm584_vm3, %v2541_v36, %v2542_v1  ;;  %v9974_v13 = vsel %vm584_vm3, %v2542_v1, %v2544_v26  ;;  %v3426_v56 = vsel %vm1444_vm4, %v3394_v39, %v7425_v51  ;;  %v3427_v57 = vsel %vm1444_vm4, %v3395_v19, %v7426_v53 }
 0x248   : > { %v3525_v60 = vpack.c.bf16 %v2625_v38, %v2623_v16  ;;  %v7732_v34 = vpack.i.bf16 %v9974_v13, %v9971_v23  ;;  %v3458_v37 = vsel %vm1477_vm5, %v3426_v56, %v7435_v22  ;;  %v3459_v24 = vsel %vm1477_vm5, %v3427_v57, %v7436_v62  ;;  %v9983_v44 = vpop.permute.xlu1 %7448  ;;  %v2412_v28 = vld [vmem:[#allocation2 + $0x180] sm:$0xff]  ;;  %7728 = vrot.lane.b32.xlu1 %v7722_v11, %s7871_s15 }
 0x249   : > { %v7454_v32 = vpop.permute.xlu0 %7453  ;;  %v7440_v63 = vunpack.i.l.bf16 %v7439_v29  ;;  %v3494_v10 = vpack.c.bf16 %v3459_v24, %v3458_v37  ;;  %v3330_v21 = vsel %vm1444_vm4, %v3298_v5, %v7390_v30  ;;  %v3331_v51 = vsel %vm1444_vm4, %v9916_v41, %v7391_v7 }
 0x24a   : > { %v7415_v53 = vunpack.i.l.bf16 %v9886_v9  ;;  %v7421_v1 = vunpack.i.h.bf16 %v9913_v33  ;;  %6676 = vmatmul.mubr.msk.bf16.gmra.mxu0 %vm393_vm0, %v3525_v60  ;;  %v3362_v62 = vsel %vm1477_vm5, %v3330_v21, %v7400_v4  ;;  %v3363_v22 = vsel %vm1477_vm5, %v3331_v51, %v7401_v40 }
 0x24b   : > { %7733 = vrot.lane.b32.xlu0 %v7732_v34, %s7871_s15  ;;  %v7420_v29 = vunpack.i.l.bf16 %v9913_v33  ;;  %3780 = vmatprep.mubr.bf16.mxu1 %v3494_v10  ;;  %v3493_v5 = vpack.c.bf16 %v3363_v22, %v3362_v62  ;;  %v7456_v41 = vunpack.i.h.bf16 %v7454_v32  ;;  %v7455_v7 = vunpack.i.l.bf16 %v7454_v32  ;;  %v7837_v62 = vld [vmem:[#allocation2 + $0x68] sm:$0xff] }
 0x24c   : > { %v2413_v30 = vld [vmem:[#allocation2 + $0x188] sm:$0xff]  ;;  %v2414_v18 = vld [vmem:[#allocation2 + $0x190] sm:$0x3]  ;;  %v3397_v36 = vsel %vm393_vm0, %v9544_v6, %v7441_v35  ;;  %v7737_v26 = vpack.i.bf16 %v2625_v38, %v2623_v16  ;;  %v9998_v39 = vpop.permute.xlu1 %7458  ;;  %v2666_v4 = vrot.slane %v2412_v28, 2  ;;  %v3396_v33 = vsel %vm393_vm0, %v9541_v47, %v7440_v63  ;;  %7743 = vrot.lane.b32.xlu1 %v7732_v34, %s7870_s30 }
 0x24d   : > { %v7464_v19 = vpop.permute.xlu0 %7463  ;;  %v2667_v56 = vrot.slane %v2413_v30, 2  ;;  %3781 = vmatmul.mubr.bf16.gmra.mxu1 %v3493_v5  ;;  %v7752_v57 = vpack.i.bf16 %v2413_v30, %v2412_v28  ;;  %v2669_v37 = vrot.slane %v2414_v18, 2  ;;  %v2630_v6 = vrot.slane %v2413_v30, 1  ;;  %v7838_v5 = vld [vmem:[#allocation2 + $0x60] sm:$0xff] }
 0x24e   : > { %v7466_v40 = vunpack.i.h.bf16 %v7464_v19  ;;  %v7465_v11 = vunpack.i.l.bf16 %v7464_v19  ;;  %v2629_v16 = vrot.slane %v2412_v28, 1  ;;  %v2632_v38 = vrot.slane %v2414_v18, 1 }
 0x24f   : > { %7738 = vrot.lane.b32.xlu0 %v7737_v26, %s7870_s30  ;;  %v10004_v60 = vsel %vm665_vm2, %v2666_v4, %v2667_v56  ;;  %v3428_v35 = vsel %vm1444_vm4, %v3396_v33, %v7455_v7  ;;  %v3429_v24 = vsel %vm1444_vm4, %v3397_v36, %v7456_v41  ;;  %v7430_v47 = vunpack.i.l.bf16 %v9942_v31 }
 0x250   : > { %v10010_v63 = vpop.permute.xlu1 %7473  ;;  %v2670_v10 = vsel %vm665_vm2, %v2667_v56, %v2669_v37  ;;  %v3460_v21 = vsel %vm1477_vm5, %v3428_v35, %v7465_v11  ;;  %v3461_v51 = vsel %vm1477_vm5, %v3429_v24, %v7466_v40  ;;  %v3301_v34 = vsel %vm393_vm0, %v7837_v62, %v7416_v49  ;;  %7748 = vrot.lane.b32.xlu1 %v7737_v26, %s7869_s29  ;;  %v7840_v35 = vld [vmem:[#allocation2 + $0x80] sm:$0xff] }
 0x251   : > { %v7469_v32 = vpop.permute.xlu0 %7468  ;;  %v7431_v28 = vunpack.i.h.bf16 %v9942_v31  ;;  %v10020_v22 = vsel %vm584_vm3, %v2629_v16, %v2630_v6  ;;  %v3300_v41 = vsel %vm393_vm0, %v7838_v5, %v7415_v53  ;;  %v3528_v7 = vpack.c.bf16 %v2670_v10, %v10004_v60  ;;  %v7839_v16 = vld [vmem:[#allocation2 + $0x1a8] sm:$0x3] }
 0x252   : > { %v10026_v30 = vsel %vm584_vm3, %v2630_v6, %v2632_v38  ;;  %v3497_v18 = vpack.c.bf16 %v3461_v51, %v3460_v21  ;;  %v7446_v9 = vunpack.i.h.bf16 %v9958_v14  ;;  %v7445_v49 = vunpack.i.l.bf16 %v9958_v14 }
 0x253   : > { %7753 = vrot.lane.b32.xlu0 %v7752_v57, %s7869_s29  ;;  %v7451_v31 = vunpack.i.h.bf16 %v9983_v44  ;;  %v3332_v36 = vsel %vm1444_vm4, %v3300_v41, %v7420_v29  ;;  %v7471_v19 = vunpack.i.h.bf16 %v7469_v32  ;;  %6679 = vmatprep.mubr.msk.bf16.mxu0 %vm393_vm0, %v3528_v7  ;;  %v7757_v53 = vpack.i.bf16 %v10026_v30, %v10020_v22 }
 0x254   : > { %3788 = vmatprep.mubr.bf16.mxu1 %v3497_v18  ;;  %v3333_v4 = vsel %vm1444_vm4, %v3301_v34, %v7421_v1  ;;  %v3364_v56 = vsel %vm1477_vm5, %v3332_v36, %v7430_v47  ;;  %v10038_v40 = vpop.permute.xlu1 %7478  ;;  %v7450_v14 = vunpack.i.l.bf16 %v9983_v44  ;;  %v7470_v11 = vunpack.i.l.bf16 %v7469_v32  ;;  %7773 = vrot.lane.b32.xlu1 %v7752_v57, %s7871_s15  ;;  %v7841_v44 = vld [vmem:[#allocation2 + $0x78] sm:$0xff] }
 0x255   : > { %v7484_v33 = vpop.permute.xlu0 %7483  ;;  %v3365_v26 = vsel %vm1477_vm5, %v3333_v4, %v7431_v28  ;;  %v2682_v38 = vrot.slane %v7839_v16, 2  ;;  %v3303_v1 = vsel %vm393_vm0, %v7840_v35, %v7446_v9  ;;  %v7461_v24 = vunpack.i.h.bf16 %v9998_v39 }
 0x256   : > { %v3496_v29 = vpack.c.bf16 %v3365_v26, %v3364_v56  ;;  %v7486_v37 = vunpack.i.h.bf16 %v7484_v33  ;;  %v7485_v6 = vunpack.i.l.bf16 %v7484_v33  ;;  %v7460_v47 = vunpack.i.l.bf16 %v9998_v39 }
 0x257   : > { %7758 = vrot.lane.b32.xlu0 %v7757_v53, %s7871_s15  ;;  %v3302_v32 = vsel %vm393_vm0, %v7841_v44, %v7445_v49  ;;  %v3399_v21 = vsel %vm393_vm0, %v9575_v50, %v7471_v19  ;;  %v7762_v51 = vpack.i.bf16 %v2670_v10, %v10004_v60  ;;  %v11740_v28 = vrot.slane %v9559_v0, 2  ;;  %v7843_v44 = vld [vmem:[#allocation2 + $0x90] sm:$0xff] }
 0x258   : > { %3789 = vmatmul.mubr.bf16.gmra.mxu1 %v3496_v29  ;;  %v7489_v34 = vpop.permute.xlu1 %7488  ;;  %v11741_v5 = vrot.slane %v9562_v59, 2  ;;  %v3398_v39 = vsel %vm393_vm0, %v9570_v52, %v7470_v11  ;;  %v3334_v18 = vsel %vm1444_vm4, %v3302_v32, %v7450_v14  ;;  %v3431_v60 = vsel %vm1444_vm4, %v3399_v21, %v7486_v37 }
 0x259   : > { %v7494_v62 = vpop.permute.xlu0 %7493  ;;  %v3430_v50 = vsel %vm1444_vm4, %v3398_v39, %v7485_v6  ;;  %v3335_v10 = vsel %vm1444_vm4, %v3303_v1, %v7451_v31  ;;  %v11742_v9 = vmov %v11740_v28  ;;  %v3366_v36 = vsel %vm1477_vm5, %v3334_v18, %v7460_v47 }
 0x25a   : > { %v2681_v41 = vsel %vm665_vm2, %v11741_v5, %v11740_v28  ;;  %v7496_v57 = vunpack.i.h.bf16 %v7494_v62  ;;  %v7495_v7 = vunpack.i.l.bf16 %v7494_v62  ;;  %v2683_v59 = vsel %vm665_vm2, %v11742_v9, %v2682_v38 }
 0x25b   : > { %7763 = vrot.lane.b32.xlu0 %v7762_v51, %s7870_s30  ;;  %v3367_v19 = vsel %vm1477_vm5, %v3335_v10, %v7461_v24  ;;  %v3531_v33 = vpack.c.bf16 %v2683_v59, %v2681_v41  ;;  %v11743_v31 = vpack.i.bf16 %v9594_v20, %v9586_v8  ;;  %v7476_v14 = vunpack.i.h.bf16 %v10010_v63  ;;  %v7842_v24 = vld [vmem:[#allocation2 + $0x98] sm:$0xff] }
 0x25c   : > { %v3462_v49 = vsel %vm1477_vm5, %v3430_v50, %v7495_v7  ;;  %v3463_v52 = vsel %vm1477_vm5, %v3431_v60, %v7496_v57  ;;  %v7504_v4 = vpop.permute.xlu1 %7503  ;;  %v3499_v0 = vpack.c.bf16 %v3367_v19, %v3366_v36  ;;  %v7475_v11 = vunpack.i.l.bf16 %v10010_v63 }
 0x25d   : > { %v7499_v53 = vpop.permute.xlu0 %7498  ;;  %v3500_v56 = vpack.c.bf16 %v3463_v52, %v3462_v49  ;;  %6680 = vmatmul.mubr.msk.bf16.gmra.mxu0 %vm393_vm0, %v3531_v33  ;;  %v7481_v26 = vunpack.i.h.bf16 %v10038_v40  ;;  %v7480_v29 = vunpack.i.l.bf16 %v10038_v40  ;;  %v7491_v35 = vunpack.i.h.bf16 %v7489_v34 }
 0x25e   : > { %v7501_v16 = vunpack.i.h.bf16 %v7499_v53  ;;  %v7500_v38 = vunpack.i.l.bf16 %v7499_v53  ;;  %v7490_v8 = vunpack.i.l.bf16 %v7489_v34  ;;  %v3305_v47 = vsel %vm393_vm0, %v7842_v24, %v7476_v14 }
 0x25f   : > { %7768 = vrot.lane.b32.xlu0 %v11743_v31, %s7871_s15  ;;  %3796 = vmatprep.mubr.bf16.mxu1 %v3500_v56  ;;  %v3304_v63 = vsel %vm393_vm0, %v7843_v44, %v7475_v11  ;;  %v3337_v40 = vsel %vm1444_vm4, %v3305_v47, %v7481_v26  ;;  %v7505_v59 = vunpack.i.l.bf16 %v7504_v4  ;;  %v7844_v11 = vld [vmem:[#allocation2 + $0xb0] sm:$0xff] }
 0x260   : > { %3797 = vmatmul.mubr.bf16.gmra.mxu1 %v3499_v0  ;;  %v7509_v6 = vpop.permute.xlu1 %7508  ;;  %v3336_v51 = vsel %vm1444_vm4, %v3304_v63, %v7480_v29  ;;  %v3401_v62 = vsel %vm393_vm0, %v9608_v42, %v7501_v16  ;;  %v3400_v34 = vsel %vm393_vm0, %v9605_v25, %v7500_v38  ;;  %v3369_v7 = vsel %vm1477_vm5, %v3337_v40, %v7491_v35  ;;  %v7845_v29 = vld [vmem:[#allocation2 + $0xa8] sm:$0xff] }
 0x261   : > { %v7514_v37 = vpop.permute.xlu0 %7513  ;;  %v3368_v57 = vsel %vm1477_vm5, %v3336_v51, %v7490_v8  ;;  %v7506_v25 = vunpack.i.h.bf16 %v7504_v4  ;;  %v7511_v49 = vunpack.i.h.bf16 %v7509_v6  ;;  %v7510_v52 = vunpack.i.l.bf16 %v7509_v6 }
 0x262   : > { %v7516_v20 = vunpack.i.h.bf16 %v7514_v37  ;;  %v7515_v1 = vunpack.i.l.bf16 %v7514_v37  ;;  %v3502_v9 = vpack.c.bf16 %v3369_v7, %v3368_v57  ;;  %v3306_v37 = vsel %vm393_vm0, %v7845_v29, %v7505_v59  ;;  %v7847_v59 = vld [vmem:[#allocation2 + $0xc0] sm:$0xff] }
 0x263   : > { %v3307_v26 = vsel %vm393_vm0, %v7844_v11, %v7506_v25  ;;  %v3338_v4 = vsel %vm1444_vm4, %v3306_v37, %v7510_v52 }
 0x264   : > { %v7519_v21 = vpop.permute.xlu1 %7518  ;;  %v3432_v41 = vsel %vm1444_vm4, %v3400_v34, %v7515_v1  ;;  %v3433_v39 = vsel %vm1444_vm4, %v3401_v62, %v7516_v20  ;;  %v3339_v6 = vsel %vm1444_vm4, %v3307_v26, %v7511_v49 }
 0x265   : > { %v7524_v32 = vpop.permute.xlu0 %7523  ;;  %v7521_v33 = vunpack.i.h.bf16 %v7519_v21  ;;  %v7520_v31 = vunpack.i.l.bf16 %v7519_v21 }
 0x266   : > { %v7526_v28 = vunpack.i.h.bf16 %v7524_v32  ;;  %v7525_v5 = vunpack.i.l.bf16 %v7524_v32 }
 0x267   : > { %v3370_v44 = vsel %vm1477_vm5, %v3338_v4, %v7520_v31  ;;  %v3371_v63 = vsel %vm1477_vm5, %v3339_v6, %v7521_v33 }
 0x268   : > { %v3464_v18 = vsel %vm1477_vm5, %v3432_v41, %v7525_v5  ;;  %v3465_v50 = vsel %vm1477_vm5, %v3433_v39, %v7526_v28  ;;  %v7534_v10 = vpop.permute.xlu1 %7533  ;;  %v3505_v62 = vpack.c.bf16 %v3371_v63, %v3370_v44 }
 0x269   : > { %v7529_v60 = vpop.permute.xlu0 %7528  ;;  %v3503_v42 = vpack.c.bf16 %v3465_v50, %v3464_v18  ;;  %v7535_v34 = vunpack.i.l.bf16 %v7534_v10 }
 0x26a   : > { %v7531_v53 = vunpack.i.h.bf16 %v7529_v60  ;;  %v7530_v56 = vunpack.i.l.bf16 %v7529_v60 }
 0x26b   : > { %3804 = vmatprep.mubr.bf16.mxu1 %v3503_v42  ;;  %v3308_v49 = vsel %vm393_vm0, %v7847_v59, %v7535_v34 }
 0x26c   : > { %3805 = vmatmul.mubr.bf16.gmra.mxu1 %v3502_v9  ;;  %v7539_v19 = vpop.permute.xlu1 %7538  ;;  %v3403_v35 = vsel %vm393_vm0, %v9631_v15, %v7531_v53  ;;  %v3402_v8 = vsel %vm393_vm0, %v9628_v58, %v7530_v56  ;;  %v7536_v58 = vunpack.i.h.bf16 %v7534_v10  ;;  %v7846_v9 = vld [vmem:[#allocation2 + $0xc8] sm:$0xff] }
 0x26d   : > { %v7544_v36 = vpop.permute.xlu0 %7543  ;;  %v7541_v28 = vunpack.i.h.bf16 %v7539_v19  ;;  %v7540_v5 = vunpack.i.l.bf16 %v7539_v19 }
 0x26e   : > { %v7546_v0 = vunpack.i.h.bf16 %v7544_v36  ;;  %v7545_v14 = vunpack.i.l.bf16 %v7544_v36  ;;  %v3309_v25 = vsel %vm393_vm0, %v7846_v9, %v7536_v58  ;;  %v7849_v58 = vld [vmem:[#allocation2 + $0xd8] sm:$0xff] }
 0x26f   : > { %v3340_v10 = vsel %vm1444_vm4, %v3308_v49, %v7540_v5  ;;  %v3341_v19 = vsel %vm1444_vm4, %v3309_v25, %v7541_v28 }
 0x270   : > { %v7549_v38 = vpop.permute.xlu1 %7548  ;;  %v3434_v24 = vsel %vm1444_vm4, %v3402_v8, %v7545_v14  ;;  %v3435_v47 = vsel %vm1444_vm4, %v3403_v35, %v7546_v0 }
 0x271   : > { %v7554_v16 = vpop.permute.xlu0 %7553  ;;  %v7551_v18 = vunpack.i.h.bf16 %v7549_v38  ;;  %v7550_v50 = vunpack.i.l.bf16 %v7549_v38 }
 0x272   : > { %v7556_v20 = vunpack.i.h.bf16 %v7554_v16  ;;  %v7555_v1 = vunpack.i.l.bf16 %v7554_v16 }
 0x273   : > { %v3372_v11 = vsel %vm1477_vm5, %v3340_v10, %v7550_v50  ;;  %v3373_v26 = vsel %vm1477_vm5, %v3341_v19, %v7551_v18 }
 0x274   : > { %v3466_v32 = vsel %vm1477_vm5, %v3434_v24, %v7555_v1  ;;  %v3467_v21 = vsel %vm1477_vm5, %v3435_v47, %v7556_v20  ;;  %v7564_v40 = vpop.permute.xlu1 %7563  ;;  %v3508_v4 = vpack.c.bf16 %v3373_v26, %v3372_v11 }
 0x275   : > { %v7559_v51 = vpop.permute.xlu0 %7558  ;;  %v3506_v15 = vpack.c.bf16 %v3467_v21, %v3466_v32  ;;  %v7566_v35 = vunpack.i.h.bf16 %v7564_v40  ;;  %v7565_v8 = vunpack.i.l.bf16 %v7564_v40 }
 0x276   : > { %v7561_v57 = vunpack.i.h.bf16 %v7559_v51  ;;  %v7560_v7 = vunpack.i.l.bf16 %v7559_v51 }
 0x277   : > { %3812 = vmatprep.mubr.bf16.mxu1 %v3506_v15  ;;  %v7848_v15 = vld [vmem:[#allocation2 + $0xe0] sm:$0xff]  ;;  %v3310_v34 = vsel %vm393_vm0, %v7849_v58, %v7565_v8 }
 0x278   : > { %3813 = vmatmul.mubr.bf16.gmra.mxu1 %v3505_v62  ;;  %v7569_v39 = vpop.permute.xlu1 %7568  ;;  %v3405_v53 = vsel %vm393_vm0, %v9659_v55, %v7561_v57  ;;  %v3404_v56 = vsel %vm393_vm0, %v9656_v54, %v7560_v7  ;;  %v3311_v62 = vsel %vm393_vm0, %v7848_v15, %v7566_v35 }
 0x279   : > { %v7574_v41 = vpop.permute.xlu0 %7573  ;;  %v7571_v20 = vunpack.i.h.bf16 %v7569_v39  ;;  %v7570_v1 = vunpack.i.l.bf16 %v7569_v39 }
 0x27a   : > { %v7576_v60 = vunpack.i.h.bf16 %v7574_v41  ;;  %v7575_v42 = vunpack.i.l.bf16 %v7574_v41 }
 0x27b   : > { %v3342_v5 = vsel %vm1444_vm4, %v3310_v34, %v7570_v1  ;;  %v3343_v40 = vsel %vm1444_vm4, %v3311_v62, %v7571_v20 }
 0x27c   : > { %v7579_v36 = vpop.permute.xlu1 %7578  ;;  %v3436_v0 = vsel %vm1444_vm4, %v3404_v56, %v7575_v42  ;;  %v3437_v14 = vsel %vm1444_vm4, %v3405_v53, %v7576_v60 }
 0x27d   : > { %v7584_v52 = vpop.permute.xlu0 %7583  ;;  %v7581_v44 = vunpack.i.h.bf16 %v7579_v36  ;;  %v7580_v63 = vunpack.i.l.bf16 %v7579_v36 }
 0x27e   : > { %v7586_v33 = vunpack.i.h.bf16 %v7584_v52  ;;  %v7585_v31 = vunpack.i.l.bf16 %v7584_v52 }
 0x27f   : > { %v3374_v42 = vsel %vm1477_vm5, %v3342_v5, %v7580_v63  ;;  %v3375_v9 = vsel %vm1477_vm5, %v3343_v40, %v7581_v44 }
 0x280   : > { %v3468_v29 = vsel %vm1477_vm5, %v3436_v0, %v7585_v31  ;;  %v3469_v37 = vsel %vm1477_vm5, %v3437_v14, %v7586_v33  ;;  %v7594_v38 = vpop.permute.xlu1 %7593  ;;  %v3511_v52 = vpack.c.bf16 %v3375_v9, %v3374_v42  ;;  %v7852_v42 = vld [vmem:[#allocation2 + $0x110] sm:$0xff] }
 0x281   : > { %v7589_v16 = vpop.permute.xlu0 %7588  ;;  %v3509_v55 = vpack.c.bf16 %v3469_v37, %v3468_v29  ;;  %v7596_v36 = vunpack.i.h.bf16 %v7594_v38  ;;  %v7595_v10 = vunpack.i.l.bf16 %v7594_v38  ;;  %v7850_v37 = vld [vmem:[#allocation2 + $0xf8] sm:$0xff] }
 0x282   : > { %v7591_v24 = vunpack.i.h.bf16 %v7589_v16  ;;  %v7590_v47 = vunpack.i.l.bf16 %v7589_v16 }
 0x283   : > { %3820 = vmatprep.mubr.bf16.mxu1 %v3509_v55  ;;  %v3313_v16 = vsel %vm393_vm0, %v7850_v37, %v7596_v36  ;;  %v7851_v55 = vld [vmem:[#allocation2 + $0xf0] sm:$0xff] }
 0x284   : > { %3821 = vmatmul.mubr.bf16.gmra.mxu1 %v3508_v4  ;;  %v7599_v6 = vpop.permute.xlu1 %7598  ;;  %v3407_v41 = vsel %vm393_vm0, %v9682_v45, %v7591_v24  ;;  %v3406_v39 = vsel %vm393_vm0, %v9679_v46, %v7590_v47  ;;  %v3312_v4 = vsel %vm393_vm0, %v7851_v55, %v7595_v10 }
 0x285   : > { %v7604_v54 = vpop.permute.xlu0 %7603  ;;  %v7601_v19 = vunpack.i.h.bf16 %v7599_v6  ;;  %v7600_v53 = vunpack.i.l.bf16 %v7599_v6 }
 0x286   : > { %v7606_v32 = vunpack.i.h.bf16 %v7604_v54  ;;  %v7605_v21 = vunpack.i.l.bf16 %v7604_v54 }
 0x287   : > { %v3344_v38 = vsel %vm1444_vm4, %v3312_v4, %v7600_v53  ;;  %v3345_v35 = vsel %vm1444_vm4, %v3313_v16, %v7601_v19 }
 0x288   : > { %v7609_v51 = vpop.permute.xlu1 %7608  ;;  %v3438_v50 = vsel %vm1444_vm4, %v3406_v39, %v7605_v21  ;;  %v3439_v60 = vsel %vm1444_vm4, %v3407_v41, %v7606_v32 }
 0x289   : > { %v7614_v28 = vpop.permute.xlu0 %7613  ;;  %v7611_v0 = vunpack.i.h.bf16 %v7609_v51  ;;  %v7610_v14 = vunpack.i.l.bf16 %v7609_v51 }
 0x28a   : > { %v7616_v57 = vunpack.i.h.bf16 %v7614_v28  ;;  %v7615_v7 = vunpack.i.l.bf16 %v7614_v28 }
 0x28b   : > { %v3376_v63 = vsel %vm1477_vm5, %v3344_v38, %v7610_v14  ;;  %v3377_v32 = vsel %vm1477_vm5, %v3345_v35, %v7611_v0 }
 0x28c   : > { %v10129_v18 = vpop.permute.xlu1 %7623  ;;  %v3470_v25 = vsel %vm1477_vm5, %v3438_v50, %v7615_v7  ;;  %v3471_v59 = vsel %vm1477_vm5, %v3439_v60, %v7616_v57  ;;  %v3514_v62 = vpack.c.bf16 %v3377_v32, %v3376_v63  ;;  %v7855_v63 = vld [vmem:[#allocation2 + $0x120] sm:$0xff] }
 0x28d   : > { %v7619_v45 = vpop.permute.xlu0 %7618  ;;  %v3512_v49 = vpack.c.bf16 %v3471_v59, %v3470_v25  ;;  %v7626_v58 = vunpack.i.h.bf16 %v10129_v18  ;;  %v7625_v34 = vunpack.i.l.bf16 %v10129_v18  ;;  %v7853_v25 = vld [vmem:[#allocation2 + $0x108] sm:$0xff] }
 0x28e   : > { %v7621_v33 = vunpack.i.h.bf16 %v7619_v45  ;;  %v7620_v31 = vunpack.i.l.bf16 %v7619_v45 }
 0x28f   : > { %3828 = vmatprep.mubr.bf16.mxu1 %v3512_v49  ;;  %v3315_v9 = vsel %vm393_vm0, %v7852_v42, %v7626_v58  ;;  %v3314_v59 = vsel %vm393_vm0, %v7853_v25, %v7625_v34 }
 0x290   : > { %v7629_v46 = vpop.permute.xlu1 %7628  ;;  %3829 = vmatmul.mubr.bf16.gmra.mxu1 %v3511_v52  ;;  %v3409_v6 = vsel %vm393_vm0, %v9725_v3, %v7621_v33  ;;  %v3408_v8 = vsel %vm393_vm0, %v9720_v43, %v7620_v31 }
 0x291   : > { %v7634_v56 = vpop.permute.xlu0 %7633  ;;  %v7631_v28 = vunpack.i.h.bf16 %v7629_v46  ;;  %v7630_v5 = vunpack.i.l.bf16 %v7629_v46 }
 0x292   : > { %v7636_v11 = vunpack.i.h.bf16 %v7634_v56  ;;  %v7635_v26 = vunpack.i.l.bf16 %v7634_v56 }
 0x293   : > { %v3346_v18 = vsel %vm1444_vm4, %v3314_v59, %v7630_v5  ;;  %v3347_v52 = vsel %vm1444_vm4, %v3315_v9, %v7631_v28 }
 0x294   : > { %v7639_v29 = vpop.permute.xlu1 %7638  ;;  %v3440_v47 = vsel %vm1444_vm4, %v3408_v8, %v7635_v26  ;;  %v3441_v44 = vsel %vm1444_vm4, %v3409_v6, %v7636_v11 }
 0x295   : > { %v7644_v54 = vpop.permute.xlu0 %7643  ;;  %v7641_v57 = vunpack.i.h.bf16 %v7639_v29  ;;  %v7640_v7 = vunpack.i.l.bf16 %v7639_v29 }
 0x296   : > { %v7646_v20 = vunpack.i.h.bf16 %v7644_v54  ;;  %v7645_v1 = vunpack.i.l.bf16 %v7644_v54 }
 0x297   : > { %v3378_v33 = vsel %vm1477_vm5, %v3346_v18, %v7640_v7  ;;  %v3379_v31 = vsel %vm1477_vm5, %v3347_v52, %v7641_v57 }
 0x298   : > { %v10145_v24 = vpop.permute.xlu1 %7653  ;;  %v3472_v21 = vsel %vm1477_vm5, %v3440_v47, %v7645_v1  ;;  %v3473_v51 = vsel %vm1477_vm5, %v3441_v44, %v7646_v20  ;;  %v3517_v29 = vpack.c.bf16 %v3379_v31, %v3378_v33  ;;  %v7854_v47 = vld [vmem:[#allocation2 + $0x128] sm:$0xff]  ;;  %v7856_v33 = vld [vmem:[#allocation2 + $0x140] sm:$0xff] }
 0x299   : > { %v7649_v3 = vpop.permute.xlu0 %7648  ;;  %v3515_v15 = vpack.c.bf16 %v3473_v51, %v3472_v21  ;;  %v7655_v37 = vunpack.i.l.bf16 %v10145_v24 }
 0x29a   : > { %v7651_v41 = vunpack.i.h.bf16 %v7649_v3  ;;  %v7650_v39 = vunpack.i.l.bf16 %v7649_v3 }
 0x29b   : > { %3836 = vmatprep.mubr.bf16.mxu1 %v3515_v15  ;;  %v3316_v32 = vsel %vm393_vm0, %v7855_v63, %v7655_v37  ;;  %v11744_v15 = vld [vmem:[#allocation47_spill] sm:$0xff] }
 0x29c   : > { %v7659_v43 = vpop.permute.xlu1 %7658  ;;  %3837 = vmatmul.mubr.bf16.gmra.mxu1 %v3514_v62  ;;  %v3411_v46 = vsel %vm393_vm0, %v9767_v2, %v7651_v41  ;;  %v3410_v36 = vsel %vm393_vm0, %v9764_v12, %v7650_v39  ;;  %v7656_v12 = vunpack.i.h.bf16 %v10145_v24 }
 0x29d   : > { %v7661_v4 = vunpack.i.h.bf16 %v7659_v43  ;;  %v7660_v54 = vunpack.i.l.bf16 %v7659_v43  ;;  %v11745_v43 = vld [vmem:[#allocation26_spill] sm:$0xff] }
 0x29e   : > { %v7664_v40 = vpop.permute.xlu0 %7663  ;;  %v3317_v44 = vsel %vm393_vm0, %v7854_v47, %v7656_v12 }
 0x29f   : > { %v7666_v50 = vunpack.i.h.bf16 %v7664_v40  ;;  %v7665_v60 = vunpack.i.l.bf16 %v7664_v40  ;;  %v3348_v24 = vsel %vm1444_vm4, %v3316_v32, %v7660_v54  ;;  %v3349_v3 = vsel %vm1444_vm4, %v3317_v44, %v7661_v4 }
 0x2a0   : > { %v7669_v45 = vpop.permute.xlu1 %7668  ;;  %v11746_v54 = vmov 0.0  }
 0x2a1   : > { %v3442_v53 = vsel %vm1444_vm4, %v3410_v36, %v7665_v60  ;;  %v3443_v56 = vsel %vm1444_vm4, %v3411_v46, %v7666_v50  ;;  %v7671_v6 = vunpack.i.h.bf16 %v7669_v45  ;;  %v7670_v8 = vunpack.i.l.bf16 %v7669_v45  ;;  %4694 = vst.msk [vmem:[#allocation3] sm:$0xff] %vm4693_vm11, %v11746_v54  ;;  %4695 = vst.msk [vmem:[#allocation3 + $0x8] sm:$0xff] %vm4693_vm11, %v11746_v54 }
 0x2a2   : > { %v7674_v49 = vpop.permute.xlu0 %7673  ;;  %4697 = vst.msk [vmem:[#allocation3 + $0x10] sm:$0x3f] %vm4696_vm12, %v11746_v54  ;;  %vm4902_vm12 = vcmask 154648  }
 0x2a3   : > { %v7676_v10 = vunpack.i.h.bf16 %v7674_v49  ;;  %v7675_v19 = vunpack.i.l.bf16 %v7674_v49  ;;  %v3380_v41 = vsel %vm1477_vm5, %v3348_v24, %v7670_v8  ;;  %v3381_v39 = vsel %vm1477_vm5, %v3349_v3, %v7671_v6 }
 0x2a4   : > { %v7684_v2 = vpop.permute.xlu1 %7683  ;;  %v3520_v9 = vpack.c.bf16 %v3381_v39, %v3380_v41 }
 0x2a5   : > { %v3474_v0 = vsel %vm1477_vm5, %v3442_v53, %v7675_v19  ;;  %v3475_v14 = vsel %vm1477_vm5, %v3443_v56, %v7676_v10  ;;  %v7686_v25 = vunpack.i.h.bf16 %v7684_v2  ;;  %v7685_v59 = vunpack.i.l.bf16 %v7684_v2 }
 0x2a6   : > { %v3518_v11 = vpack.c.bf16 %v3475_v14, %v3474_v0  ;;  %v7857_v0 = vld [vmem:[#allocation2 + $0x138] sm:$0xff] }
 0x2a7   : > { %v7679_v26 = vpop.permute.xlu0 %7678  ;;  %v3319_v31 = vsel %vm393_vm0, %v7856_v33, %v7686_v25  ;;  %v3318_v14 = vsel %vm393_vm0, %v7857_v0, %v7685_v59 }
 0x2a8   : > { %3844 = vmatprep.mubr.bf16.mxu1 %v3518_v11  ;;  %v7689_v55 = vpop.permute.xlu1 %7688  ;;  %v7681_v38 = vunpack.i.h.bf16 %v7679_v26  ;;  %v7680_v35 = vunpack.i.l.bf16 %v7679_v26  ;;  %v4269_v11 = vld [vmem:[%s11518_s7 + $0x18] sm:$0xff] }
 0x2a9   : > { %3845 = vmatmul.mubr.bf16.gmra.mxu1 %v3517_v29  ;;  %v7691_v45 = vunpack.i.h.bf16 %v7689_v55  ;;  %v7690_v49 = vunpack.i.l.bf16 %v7689_v55 }
 0x2aa   : > { %v3413_v62 = vsel %vm393_vm0, %v11744_v15, %v7681_v38  ;;  %v3412_v58 = vsel %vm393_vm0, %v11745_v43, %v7680_v35  ;;  %6684 = vmatpush3.msra.mxu1 %v4269_v11 }
 0x2ab   : > { %v7694_v16 = vpop.permute.xlu0 %7693  ;;  %v3350_v2 = vsel %vm1444_vm4, %v3318_v14, %v7690_v49  ;;  %v3351_v29 = vsel %vm1444_vm4, %v3319_v31, %v7691_v45  ;;  %6685 = vmatprep.subr.mxu1 %v11746_v54 }
 0x2ac   : > { %v7696_v20 = vunpack.i.h.bf16 %v7694_v16  ;;  %v7695_v1 = vunpack.i.l.bf16 %v7694_v16  ;;  %v7699_v21 = vpop.permute.xlu1 %7698 }
 0x2ad   : > { %v7701_v10 = vunpack.i.h.bf16 %v7699_v21  ;;  %v7700_v19 = vunpack.i.l.bf16 %v7699_v21 }
 0x2ae   : > { %v3444_v5 = vsel %vm1444_vm4, %v3412_v58, %v7695_v1  ;;  %v3445_v40 = vsel %vm1444_vm4, %v3413_v62, %v7696_v20 }
 0x2af   : > { %v3382_v6 = vsel %vm1477_vm5, %v3350_v2, %v7700_v19  ;;  %v3383_v8 = vsel %vm1477_vm5, %v3351_v29, %v7701_v10  ;;  %v11747_v29 = vld [vmem:[#allocation27_spill] sm:$0xff] }
 0x2b0   : > { %v7704_v51 = vpop.permute.xlu0 %7703  ;;  %v7714_v42 = vpop.permute.xlu1 %7713  ;;  %v3523_v44 = vpack.c.bf16 %v3383_v8, %v3382_v6 }
 0x2b1   : > { %v7706_v34 = vunpack.i.h.bf16 %v7704_v51  ;;  %v7705_v28 = vunpack.i.l.bf16 %v7704_v51  ;;  %v7716_v63 = vunpack.i.h.bf16 %v7714_v42  ;;  %v7715_v32 = vunpack.i.l.bf16 %v7714_v42 }
 0x2b3   : > { %v3476_v57 = vsel %vm1477_vm5, %v3444_v5, %v7705_v28  ;;  %v3477_v7 = vsel %vm1477_vm5, %v3445_v40, %v7706_v34  ;;  %v7858_v34 = vld [vmem:[#allocation2 + $0x158] sm:$0xff]  ;;  %v7859_v5 = vld [vmem:[#allocation2 + $0x150] sm:$0xff] }
 0x2b4   : > { %v3521_v60 = vpack.c.bf16 %v3477_v7, %v3476_v57  ;;  %v3321_v28 = vsel %vm393_vm0, %v7858_v34, %v7716_v63  ;;  %v3320_v40 = vsel %vm393_vm0, %v7859_v5, %v7715_v32 }
 0x2b5   : > { %v7709_v50 = vpop.permute.xlu0 %7708 }
 0x2b6   : > { %3852 = vmatprep.mubr.bf16.mxu1 %v3521_v60  ;;  %v7711_v52 = vunpack.i.h.bf16 %v7709_v50  ;;  %v7710_v46 = vunpack.i.l.bf16 %v7709_v50  ;;  %v7719_v36 = vpop.permute.xlu1 %7718 }
 0x2b7   : > { %3853 = vmatmul.mubr.bf16.gmra.mxu1 %v3520_v9  ;;  %v7721_v21 = vunpack.i.h.bf16 %v7719_v36  ;;  %v7720_v51 = vunpack.i.l.bf16 %v7719_v36 }
 0x2b8   : > { %v3415_v12 = vsel %vm393_vm0, %v9901_v61, %v7711_v52  ;;  %v3414_v37 = vsel %vm393_vm0, %v9898_v17, %v7710_v46 }
 0x2b9   : > { %v7724_v18 = vpop.permute.xlu0 %7723  ;;  %v3352_v57 = vsel %vm1444_vm4, %v3320_v40, %v7720_v51  ;;  %v3353_v7 = vsel %vm1444_vm4, %v3321_v28, %v7721_v21 }
 0x2ba   : > { %v7726_v53 = vunpack.i.h.bf16 %v7724_v18  ;;  %v7725_v56 = vunpack.i.l.bf16 %v7724_v18  ;;  %v7729_v4 = vpop.permute.xlu1 %7728 }
 0x2bb   : > { %v7731_v24 = vunpack.i.h.bf16 %v7729_v4  ;;  %v7730_v3 = vunpack.i.l.bf16 %v7729_v4 }
 0x2bc   : > { %v3446_v38 = vsel %vm1444_vm4, %v3414_v37, %v7725_v56  ;;  %v3447_v35 = vsel %vm1444_vm4, %v3415_v12, %v7726_v53  ;;  %v7311_v12 = vunpack.i.h.bf16 %v11747_v29  ;;  %v7310_v37 = vunpack.i.l.bf16 %v11747_v29 }
 0x2bd   : > { %v7734_v26 = vpop.permute.xlu0 %7733  ;;  %v3384_v60 = vsel %vm1477_vm5, %v3352_v57, %v7730_v3  ;;  %v3385_v42 = vsel %vm1477_vm5, %v3353_v7, %v7731_v24 }
 0x2be   : > { %v7736_v16 = vunpack.i.h.bf16 %v7734_v26  ;;  %v7735_v55 = vunpack.i.l.bf16 %v7734_v26  ;;  %v7744_v17 = vpop.permute.xlu1 %7743  ;;  %v3526_v33 = vpack.c.bf16 %v3385_v42, %v3384_v60 }
 0x2bf   : > { %v7746_v10 = vunpack.i.h.bf16 %v7744_v17  ;;  %v7745_v19 = vunpack.i.l.bf16 %v7744_v17  ;;  %v4268_v17 = vld [vmem:[%s11518_s7 + $0x10] sm:$0xff] }
 0x2c0   : > { %v3478_v20 = vsel %vm1477_vm5, %v3446_v38, %v7735_v55  ;;  %v3479_v61 = vsel %vm1477_vm5, %v3447_v35, %v7736_v16  ;;  %6686 = vmatpush3.msra.mxu1 %v4268_v17 }
 0x2c1   : > { %v7739_v1 = vpop.permute.xlu0 %7738  ;;  %v3524_v47 = vpack.c.bf16 %v3479_v61, %v3478_v20  ;;  %v3323_v16 = vsel %vm393_vm0, %v9937_v48, %v7746_v10  ;;  %v3322_v55 = vsel %vm393_vm0, %v9947_v27, %v7745_v19  ;;  %6687 = vmatprep.subr.mxu1 %v11746_v54 }
 0x2c2   : > { %v7741_v62 = vunpack.i.h.bf16 %v7739_v1  ;;  %v7740_v43 = vunpack.i.l.bf16 %v7739_v1  ;;  %v7749_v58 = vpop.permute.xlu1 %7748 }
 0x2c3   : > { %3860 = vmatprep.mubr.bf16.mxu1 %v3524_v47  ;;  %v7750_v31 = vunpack.i.l.bf16 %v7749_v58 }
 0x2c4   : > { %3861 = vmatmul.mubr.bf16.gmra.mxu1 %v3523_v44  ;;  %v3417_v9 = vsel %vm393_vm0, %v9974_v13, %v7741_v62  ;;  %v3416_v25 = vsel %vm393_vm0, %v9971_v23, %v7740_v43  ;;  %v7751_v13 = vunpack.i.h.bf16 %v7749_v58  ;;  %v4267_v58 = vld [vmem:[%s11518_s7 + $0x8] sm:$0xff] }
 0x2c5   : > { %v7754_v15 = vpop.permute.xlu0 %7753  ;;  %v3354_v6 = vsel %vm1444_vm4, %v3322_v55, %v7750_v31  ;;  %6688 = vmatpush3.msra.mxu1 %v4267_v58  ;;  %v10331_v58 = vld [vmem:[%s11516_s5] ss:$0 sm:$0xff] }
 0x2c6   : > { %v7756_v41 = vunpack.i.h.bf16 %v7754_v15  ;;  %v7755_v39 = vunpack.i.l.bf16 %v7754_v15  ;;  %v7774_v52 = vpop.permute.xlu1 %7773  ;;  %6689 = vmatprep.subr.mxu1 %v11746_v54 }
 0x2c7   : > { %v7776_v14 = vunpack.i.h.bf16 %v7774_v52  ;;  %v7775_v11 = vunpack.i.l.bf16 %v7774_v52 }
 0x2c8   : > { %v3448_v49 = vsel %vm1444_vm4, %v3416_v25, %v7755_v39  ;;  %v3449_v18 = vsel %vm1444_vm4, %v3417_v9, %v7756_v41 }
 0x2c9   : > { %v7759_v50 = vpop.permute.xlu0 %7758  ;;  %v3386_v20 = vsel %vm1477_vm5, %v3354_v6, %v7775_v11 }
 0x2ca   : > { %v7761_v59 = vunpack.i.h.bf16 %v7759_v50  ;;  %v7760_v45 = vunpack.i.l.bf16 %v7759_v50 }
 0x2cc   : > { %v3480_v46 = vsel %vm1477_vm5, %v3448_v49, %v7760_v45  ;;  %v3481_v36 = vsel %vm1477_vm5, %v3449_v18, %v7761_v59  ;;  %v4266_v59 = vld [vmem:[%s11518_s7] sm:$0xff]  ;;  %v6653_v49 = vpop.f32.mrf.mxu0 }
 0x2cd   : > { %v7764_v53 = vpop.permute.xlu0 %7763  ;;  %v3527_v56 = vpack.c.bf16 %v3481_v36, %v3480_v46  ;;  %6690 = vmatpush3.msra.mxu1 %v4266_v59 }
 0x2ce   : > { %v7766_v0 = vunpack.i.h.bf16 %v7764_v53  ;;  %v7765_v23 = vunpack.i.l.bf16 %v7764_v53  ;;  %6694 = vmatprep.subr.mxu1 %v11746_v54  ;;  %v3919_v52 = vpop.f32.mrf.mxu0 }
 0x2cf   : > { %3868 = vmatprep.mubr.bf16.mxu1 %v3527_v56 }
 0x2d0   : > { %v3419_v26 = vsel %vm393_vm0, %v10026_v30, %v7766_v0  ;;  %v3418_v2 = vsel %vm393_vm0, %v10020_v22, %v7765_v23  ;;  %3869 = vmatmul.mubr.bf16.gmra.mxu1 %v3526_v33  ;;  %v3355_v30 = vsel %vm1444_vm4, %v3323_v16, %v7751_v13  ;;  %v6654_v10 = vpop.f32.mrf.mxu0 }
 0x2d1   : > { %v7769_v4 = vpop.permute.xlu0 %7768  ;;  %v3450_v22 = vsel %vm1444_vm4, %v3418_v2, %v7310_v37  ;;  %v3451_v8 = vsel %vm1444_vm4, %v3419_v26, %v7311_v12  ;;  %v3387_v61 = vsel %vm1477_vm5, %v3355_v30, %v7776_v14  ;;  %vm4883_vm4 = vcmask 1043459  }
 0x2d2   : > { %v7771_v38 = vunpack.i.h.bf16 %v7769_v4  ;;  %v7770_v35 = vunpack.i.l.bf16 %v7769_v4  ;;  %v3529_v47 = vpack.c.bf16 %v3387_v61, %v3386_v20  ;;  %v3922_v53 = vpop.f32.mrf.mxu0 }
 0x2d4   : > { %v3482_v48 = vsel %vm1477_vm5, %v3450_v22, %v7770_v35  ;;  %v3483_v1 = vsel %vm1477_vm5, %v3451_v8, %v7771_v38  ;;  %v6657_v56 = vpop.f32.mrf.mxu0  ;;  %vm4885_vm5 = vcmask 1044484  }
 0x2d5   : > { %v3530_v27 = vpack.c.bf16 %v3483_v1, %v3482_v48 }
 0x2d6   : > { %v3935_v31 = vpop.f32.mrf.mxu0 }
 0x2d7   : > { %3876 = vmatprep.mubr.bf16.mxu1 %v3530_v27 }
 0x2d8   : > { %3877 = vmatmul.mubr.bf16.gmra.mxu1 %v3529_v47  ;;  %v6658_v23 = vpop.f32.mrf.mxu0 }
 0x2d9   : > { %6691 = vmatprep.mubr.msk.f32.mxu1 %vm7872_vm6, %v11746_v54 }
 0x2da   : > { %v3938_v11 = vpop.f32.mrf.mxu0 }
 0x2dc   : > { %v10297_v2 = vpop.f32.mrf.mxu0 }
 0x2de   : > { %v3951_v12 = vpop.f32.mrf.mxu0 }
 0x2e0   : > { %v10303_v16 = vpop.f32.mrf.mxu0 }
 0x2e2   : > { %v3954_v4 = vpop.f32.mrf.mxu0 }
 0x2e4   : > { %v10309_v35 = vpop.f32.mrf.mxu0 }
 0x2e5   : > { %v6434_v44 = vpop.f32.mrf.mxu1 }
 0x2e6   : > { %v10315_v22 = vpop.f32.mrf.mxu0 }
 0x2e7   : > { %v6435_v63 = vpop.f32.mrf.mxu1 }
 0x2e8   : > { %v10239_v32 = vadd.f32 %v6435_v63, %v6434_v44  ;;  %v10319_v61 = vpop.f32.mrf.mxu0 }
 0x2e9   : > { %v6437_v21 = vpop.f32.mrf.mxu1 }
 0x2ea   : > { %v10323_v17 = vpop.f32.mrf.mxu0  ;;  %v3920_v44 = vadd.f32 %v10239_v32, %v3919_v52  ;;  %v10345_v52 = vld [vmem:[%s11517_s6] ss:$0 sm:$0xff] }
 0x2eb   : > { %v6438_v51 = vpop.f32.mrf.mxu1 }
 0x2ec   : > { %v6439_v20 = vadd.f32 %v6438_v51, %v6437_v21  ;;  %v10334_v51 = vpop.f32.mrf.mxu0 }
 0x2ee   : > { %v3923_v27 = vadd.f32 %v6439_v20, %v3922_v53  ;;  %v10350_v53 = vpop.f32.mrf.mxu0 }
 0x2f6   : > { %v6440_v24 = vpop.f32.mrf.mxu1 }
 0x2f8   : > { %v6441_v3 = vpop.f32.mrf.mxu1 }
 0x2f9   : > { %v6442_v48 = vadd.f32 %v6441_v3, %v6440_v24  ;;  %v4054_v3 = vmul.f32 %v10331_v58, %v3923_v27 }
 0x2fa   : > { %v6443_v15 = vpop.f32.mrf.mxu1 }
 0x2fb   : > { %v3928_v59 = vadd.f32 %v6653_v49, %v6442_v48 }
 0x2fc   : > { %v6444_v62 = vpop.f32.mrf.mxu1 }
 0x2fd   : > { %v6445_v47 = vadd.f32 %v6444_v62, %v6443_v15  ;;  %v4053_v62 = vmul.f32 %v10331_v58, %v3920_v44  ;;  %v4055_v49 = vmul.f32 %v10331_v58, %v3928_v59  ;;  %v10369_v44 = vpop.f32.mrf.mxu0 }
 0x2ff   : > { %v3931_v15 = vadd.f32 %v6654_v10, %v6445_v47  ;;  %v10355_v10 = vadd.f32 %v10345_v52, %v4054_v3  ;;  %v10361_v27 = vadd.f32 %v10345_v52, %v4053_v62  ;;  %v10393_v62 = vpop.f32.mrf.mxu0 }
 0x303   : > { %v10241_v43 = vpop.f32.mrf.mxu1 }
 0x305   : > { %v6447_v34 = vpop.f32.mrf.mxu1 }
 0x306   : > { %v6448_v21 = vadd.f32 %v6447_v34, %v10241_v43 }
 0x307   : > { %v10247_v28 = vpop.f32.mrf.mxu1 }
 0x308   : > { %v3936_v43 = vadd.f32 %v6448_v21, %v3935_v31  ;;  %v4124_v21 = vsel %vm393_vm0, %v10361_v27, 0.0 }
 0x309   : > { %v10249_v5 = vpop.f32.mrf.mxu1 }
 0x30a   : > { %v6451_v32 = vadd.f32 %v10249_v5, %v10247_v28  ;;  %v4056_v28 = vmul.f32 %v10331_v58, %v3931_v15 }
 0x30c   : > { %v3939_v5 = vadd.f32 %v6451_v32, %v3938_v11 }
 0x30d   : > { %v10251_v40 = vpop.f32.mrf.mxu1 }
 0x30f   : > { %v10253_v41 = vpop.f32.mrf.mxu1 }
 0x310   : > { %v6454_v34 = vadd.f32 %v10253_v41, %v10251_v40  ;;  %v10366_v40 = vadd.f32 %v10345_v52, %v4055_v49  ;;  %v4057_v41 = vmul.f32 %v10331_v58, %v3936_v43 }
 0x311   : > { %v10255_v39 = vpop.f32.mrf.mxu1 }
 0x312   : > { %v3944_v47 = vadd.f32 %v6657_v56, %v6454_v34 }
 0x313   : > { %v10257_v57 = vpop.f32.mrf.mxu1 }
 0x314   : > { %v6457_v48 = vadd.f32 %v10257_v57, %v10255_v39  ;;  %v4125_v39 = vsel %vm393_vm0, %v10355_v10, 0.0  ;;  %v10378_v57 = vadd.f32 %v10345_v52, %v4056_v28  ;;  %v4059_v15 = vmul.f32 %v10331_v58, %v3944_v47 }
 0x318   : > { %v10259_v7 = vpop.f32.mrf.mxu1 }
 0x31a   : > { %v10261_v50 = vpop.f32.mrf.mxu1 }
 0x31b   : > { %v6460_v31 = vadd.f32 %v10261_v50, %v10259_v7  ;;  %v4058_v7 = vmul.f32 %v10331_v58, %v3939_v5  ;;  %v3947_v50 = vadd.f32 %v6658_v23, %v6457_v48  ;;  %v4126_v23 = vadd.f32 %v4125_v39, %v4124_v21  ;;  %v10403_v5 = vpop.f32.mrf.mxu0 }
 0x31c   : > { %v10263_v60 = vpop.f32.mrf.mxu1 }
 0x31d   : > { %v3952_v56 = vadd.f32 %v6460_v31, %v3951_v12  ;;  %v4129_v12 = vsel %vm393_vm0, %v10378_v57, 0.0  ;;  %v10398_v43 = vadd.f32 %v10345_v52, %v4058_v7  ;;  %v4060_v34 = vmul.f32 %v10331_v58, %v3947_v50  ;;  %v10425_v21 = vpop.f32.mrf.mxu0 }
 0x31e   : > { %v10265_v42 = vpop.f32.mrf.mxu1  ;;  %v10411_v31 = vadd.f32 %v10345_v52, %v4059_v15 }
 0x31f   : > { %v6463_v11 = vadd.f32 %v10265_v42, %v10263_v60  ;;  %v4127_v60 = vsel %vm393_vm0, %v10366_v40, 0.0  ;;  %v10388_v42 = vadd.f32 %v10345_v52, %v4057_v41  ;;  %v10420_v39 = vadd.f32 %v10345_v52, %v4060_v34  ;;  %v10447_v34 = vpop.f32.mrf.mxu0 }
 0x320   : > { %v10267_v9 = vpop.f32.mrf.mxu1  ;;  %v4128_v48 = vadd.f32 %v4127_v60, %v4126_v23 }
 0x321   : > { %v3955_v49 = vadd.f32 %v6463_v11, %v3954_v4  ;;  %v4131_v4 = vsel %vm393_vm0, %v10388_v42, 0.0 }
 0x322   : > { %v10269_v25 = vpop.f32.mrf.mxu1  ;;  %v4130_v11 = vadd.f32 %v4129_v12, %v4128_v48 }
 0x323   : > { %v6466_v32 = vadd.f32 %v10269_v25, %v10267_v9  ;;  %v4061_v9 = vmul.f32 %v10331_v58, %v3952_v56 }
 0x324   : > { %v10274_v45 = vpop.f32.mrf.mxu1 }
 0x325   : > { %v3960_v41 = vadd.f32 %v10297_v2, %v6466_v32  ;;  %v4132_v2 = vadd.f32 %v4131_v4, %v4130_v11  ;;  %v10428_v56 = vadd.f32 %v10345_v52, %v4061_v9 }
 0x326   : > { %v10277_v18 = vpop.f32.mrf.mxu1 }
 0x327   : > { %v6469_v28 = vadd.f32 %v10277_v18, %v10274_v45  ;;  %v4062_v45 = vmul.f32 %v10331_v58, %v3955_v49  ;;  %v4133_v18 = vsel %vm393_vm0, %v10398_v43, 0.0  ;;  %v4063_v60 = vmul.f32 %v10331_v58, %v3960_v41 }
 0x328   : > { %v4134_v32 = vadd.f32 %v4133_v18, %v4132_v2  ;;  %v4002_v18 = vpop.f32.mrf.mxu0 }
 0x329   : > { %v3963_v7 = vadd.f32 %v10303_v16, %v6469_v28  ;;  %v10452_v28 = vadd.f32 %v10345_v52, %v4063_v60 }
 0x32b   : > { %v4064_v23 = vmul.f32 %v10331_v58, %v3963_v7  ;;  %v4143_v7 = vsel %vm393_vm0, %v10452_v28, 0.0 }
 0x32c   : > { %v10279_v46 = vpop.f32.mrf.mxu1 }
 0x32d   : > { %v10461_v41 = vadd.f32 %v10345_v52, %v4064_v23 }
 0x32e   : > { %v10281_v36 = vpop.f32.mrf.mxu1 }
 0x32f   : > { %v6472_v47 = vadd.f32 %v10281_v36, %v10279_v46  ;;  %v4135_v36 = vsel %vm393_vm0, %v10411_v31, 0.0 }
 0x330   : > { %v10285_v19 = vpop.f32.mrf.mxu1 }
 0x331   : > { %v3968_v15 = vadd.f32 %v6472_v47, %v10315_v22  ;;  %v4136_v22 = vadd.f32 %v4135_v36, %v4134_v32 }
 0x332   : > { %v10287_v33 = vpop.f32.mrf.mxu1 }
 0x333   : > { %v6475_v50 = vadd.f32 %v10287_v33, %v10285_v19  ;;  %v10439_v19 = vadd.f32 %v10345_v52, %v4062_v45  ;;  %v4137_v33 = vsel %vm393_vm0, %v10420_v39, 0.0  ;;  %v4065_v48 = vmul.f32 %v10331_v58, %v3968_v15 }
 0x334   : > { %v4138_v4 = vadd.f32 %v4137_v33, %v4136_v22 }
 0x335   : > { %v3971_v49 = vadd.f32 %v6475_v50, %v10323_v17  ;;  %v10472_v50 = vadd.f32 %v10345_v52, %v4065_v48 }
 0x337   : > { %v4066_v47 = vmul.f32 %v10331_v58, %v3971_v49  ;;  %v4147_v33 = vsel %vm393_vm0, %v10472_v50, 0.0 }
 0x338   : > { %v10289_v13 = vpop.f32.mrf.mxu1 }
 0x33a   : > { %v10291_v0 = vpop.f32.mrf.mxu1 }
 0x33b   : > { %v6478_v16 = vadd.f32 %v10291_v0, %v10289_v13  ;;  %v4139_v13 = vsel %vm393_vm0, %v10428_v56, 0.0 }
 0x33c   : > { %v10293_v14 = vpop.f32.mrf.mxu1 }
 0x33d   : > { %v3976_v9 = vadd.f32 %v10309_v35, %v6478_v16  ;;  %v4140_v35 = vadd.f32 %v4139_v13, %v4138_v4 }
 0x33e   : > { %v10295_v26 = vpop.f32.mrf.mxu1 }
 0x33f   : > { %v6481_v12 = vadd.f32 %v10295_v26, %v10293_v14  ;;  %v4141_v14 = vsel %vm393_vm0, %v10439_v19, 0.0  ;;  %v4067_v2 = vmul.f32 %v10331_v58, %v3976_v9 }
 0x340   : > { %v4142_v60 = vadd.f32 %v4141_v14, %v4140_v35 }
 0x341   : > { %v3979_v11 = vadd.f32 %v10319_v61, %v6481_v12  ;;  %v10476_v61 = vpop.f32.mrf.mxu0  ;;  %v10491_v23 = vadd.f32 %v10345_v52, %v4067_v2 }
 0x342   : > { %v4144_v16 = vadd.f32 %v4143_v7, %v4142_v60 }
 0x343   : > { %v4015_v49 = vpop.f32.mrf.mxu0 }
 0x344   : > { %v10299_v29 = vpop.f32.mrf.mxu1 }
 0x346   : > { %v10301_v37 = vpop.f32.mrf.mxu1 }
 0x347   : > { %v6484_v17 = vadd.f32 %v10301_v37, %v10299_v29 }
 0x348   : > { %v10305_v55 = vpop.f32.mrf.mxu1 }
 0x349   : > { %v3984_v36 = vadd.f32 %v6484_v17, %v10350_v53 }
 0x34a   : > { %v10307_v38 = vpop.f32.mrf.mxu1 }
 0x34b   : > { %v6487_v45 = vadd.f32 %v10307_v38, %v10305_v55  ;;  %v4145_v38 = vsel %vm393_vm0, %v10461_v41, 0.0 }
 0x34c   : > { %v4146_v12 = vadd.f32 %v4145_v38, %v4144_v16  ;;  %v4199_v38 = vsel %vm393_vm0, %v10388_v42, -inf }
 0x34d   : > { %v3987_v15 = vadd.f32 %v6487_v45, %v10393_v62 }
 0x34e   : > { %v4148_v9 = vadd.f32 %v4147_v33, %v4146_v12 }
 0x34f   : > { %v4070_v13 = vmul.f32 %v10331_v58, %v3987_v15 }
 0x350   : > { %v10311_v6 = vpop.f32.mrf.mxu1 }
 0x351   : > { %v10518_v35 = vadd.f32 %v10345_v52, %v4070_v13 }
 0x352   : > { %v10313_v30 = vpop.f32.mrf.mxu1 }
 0x353   : > { %v6490_v29 = vadd.f32 %v10313_v30, %v10311_v6  ;;  %v10483_v6 = vadd.f32 %v10345_v52, %v4066_v47  ;;  %v4068_v30 = vmul.f32 %v10331_v58, %v3979_v11  ;;  %v6678_v47 = vpop.f32.mrf.mxu0  ;;  %v4157_v33 = vsel %vm393_vm0, %v10518_v35, 0.0 }
 0x354   : > { %v10317_v8 = vpop.f32.mrf.mxu1 }
 0x355   : > { %v3992_v32 = vadd.f32 %v10334_v51, %v6490_v29  ;;  %v4149_v62 = vsel %vm393_vm0, %v10483_v6, 0.0  ;;  %v10500_v51 = vadd.f32 %v10345_v52, %v4068_v30  ;;  %v4018_v30 = vpop.f32.mrf.mxu0 }
 0x356   : > { %v10321_v1 = vpop.f32.mrf.mxu1  ;;  %v4150_v11 = vadd.f32 %v4149_v62, %v4148_v9 }
 0x357   : > { %v6493_v55 = vadd.f32 %v10321_v1, %v10317_v8  ;;  %v4069_v8 = vmul.f32 %v10331_v58, %v3984_v36  ;;  %v4071_v17 = vmul.f32 %v10331_v58, %v3992_v32  ;;  %v10555_v13 = vpop.f32.mrf.mxu0 }
 0x359   : > { %v3995_v22 = vadd.f32 %v10369_v44, %v6493_v55  ;;  %v10530_v2 = vadd.f32 %v10345_v52, %v4071_v17  ;;  %v10538_v55 = vsel %vm393_vm0, %v10366_v40, -inf  ;;  %v4198_v17 = vsel %vm393_vm0, %v10378_v57, -inf }
 0x35b   : > { %v4072_v45 = vmul.f32 %v10331_v58, %v3995_v22  ;;  %v4159_v22 = vsel %vm393_vm0, %v10530_v2, 0.0 }
 0x35c   : > { %v10326_v63 = vpop.f32.mrf.mxu1 }
 0x35d   : > { %v10543_v16 = vadd.f32 %v10345_v52, %v4072_v45 }
 0x35e   : > { %v10336_v24 = vpop.f32.mrf.mxu1 }
 0x35f   : > { %v6496_v1 = vadd.f32 %v10336_v24, %v10326_v63  ;;  %v4151_v63 = vsel %vm393_vm0, %v10491_v23, 0.0  ;;  %v10509_v24 = vadd.f32 %v10345_v52, %v4069_v8 }
 0x360   : > { %v10352_v20 = vpop.f32.mrf.mxu1 }
 0x361   : > { %v4000_v44 = vadd.f32 %v6496_v1, %v10425_v21  ;;  %v10523_v21 = vsel %vm393_vm0, %v10361_v27, -inf  ;;  %v4155_v60 = vsel %vm393_vm0, %v10509_v24, 0.0  ;;  %v4203_v1 = vsel %vm393_vm0, %v10411_v31, -inf }
 0x362   : > { %v10373_v59 = vpop.f32.mrf.mxu1 }
 0x363   : > { %v6499_v48 = vadd.f32 %v10373_v59, %v10352_v20  ;;  %v4153_v59 = vsel %vm393_vm0, %v10500_v51, 0.0 }
 0x365   : > { %v4003_v29 = vadd.f32 %v6499_v48, %v4002_v18  ;;  %v4073_v18 = vmul.f32 %v10331_v58, %v4000_v44  ;;  %v4161_v44 = vsel %vm393_vm0, %v10543_v16, 0.0 }
 0x367   : > { %v4074_v8 = vmul.f32 %v10331_v58, %v4003_v29  ;;  %v10558_v48 = vadd.f32 %v10345_v52, %v4073_v18  ;;  %v4204_v29 = vmax.f32 %v10538_v55, %v4203_v1 }
 0x369   : > { %v10383_v3 = vpop.f32.mrf.mxu1 }
 0x36b   : > { %v10406_v25 = vpop.f32.mrf.mxu1 }
 0x36c   : > { %v6502_v14 = vadd.f32 %v10406_v25, %v10383_v3  ;;  %v10527_v3 = vsel %vm393_vm0, %v10355_v10, -inf  ;;  %v4152_v25 = vadd.f32 %v4151_v63, %v4150_v11 }
 0x36d   : > { %v10430_v46 = vpop.f32.mrf.mxu1 }
 0x36e   : > { %v4154_v15 = vadd.f32 %v4153_v59, %v4152_v25  ;;  %v4031_v25 = vpop.f32.mrf.mxu0 }
 0x36f   : > { %v6504_v0 = vpop.f32.mrf.mxu1 }
 0x370   : > { %v6505_v7 = vadd.f32 %v6504_v0, %v10430_v46  ;;  %v4008_v46 = vadd.f32 %v10403_v5, %v6502_v14  ;;  %v4156_v12 = vadd.f32 %v4155_v60, %v4154_v15  ;;  %v10568_v14 = vadd.f32 %v10345_v52, %v4074_v8  ;;  %v10597_v1 = vpop.f32.mrf.mxu0 }
 0x371   : > { %v4213_v8 = vsel %vm393_vm0, %v10461_v41, -inf }
 0x372   : > { %v4011_v5 = vadd.f32 %v10447_v34, %v6505_v7  ;;  %v4075_v9 = vmul.f32 %v10331_v58, %v4008_v46  ;;  %v4158_v63 = vadd.f32 %v4157_v33, %v4156_v12 }
 0x374   : > { %v4076_v11 = vmul.f32 %v10331_v58, %v4011_v5  ;;  %v4160_v7 = vadd.f32 %v4159_v22, %v4158_v63  ;;  %v10577_v60 = vadd.f32 %v10345_v52, %v4075_v9  ;;  %v4215_v5 = vsel %vm393_vm0, %v10472_v50, -inf }
 0x376   : > { %v4162_v55 = vadd.f32 %v4161_v44, %v4160_v7  ;;  %v10588_v15 = vadd.f32 %v10345_v52, %v4076_v11  ;;  %v4167_v12 = vsel %vm393_vm0, %v10577_v60, 0.0 }
 0x377   : > { %v6506_v26 = vpop.f32.mrf.mxu1 }
 0x378   : > { %v4169_v63 = vsel %vm393_vm0, %v10588_v15, 0.0 }
 0x379   : > { %v6507_v37 = vpop.f32.mrf.mxu1 }
 0x37a   : > { %v6508_v0 = vadd.f32 %v6507_v37, %v6506_v26  ;;  %v4201_v37 = vsel %vm393_vm0, %v10398_v43, -inf }
 0x37b   : > { %v6509_v53 = vpop.f32.mrf.mxu1 }
 0x37c   : > { %v4016_v34 = vadd.f32 %v6508_v0, %v4015_v49  ;;  %v4200_v49 = vmax.f32 %v10523_v21, %v4199_v38  ;;  %v4207_v21 = vsel %vm393_vm0, %v10428_v56, -inf }
 0x37d   : > { %v6510_v4 = vpop.f32.mrf.mxu1 }
 0x37e   : > { %v6511_v26 = vadd.f32 %v6510_v4, %v6509_v53  ;;  %v4205_v4 = vsel %vm393_vm0, %v10420_v39, -inf  ;;  %v4077_v18 = vmul.f32 %v10331_v58, %v4016_v34  ;;  %v4208_v9 = vmax.f32 %v4200_v49, %v4207_v21 }
 0x37f   : > { %v4206_v0 = vmax.f32 %v4198_v17, %v4205_v4 }
 0x380   : > { %v4019_v45 = vadd.f32 %v6511_v26, %v4018_v30  ;;  %v4165_v30 = vsel %vm393_vm0, %v10568_v14, 0.0  ;;  %v10602_v22 = vadd.f32 %v10345_v52, %v4077_v18 }
 0x381   : > { %v4214_v7 = vmax.f32 %v4206_v0, %v4213_v8 }
 0x384   : > { %v6512_v20 = vpop.f32.mrf.mxu1 }
 0x386   : > { %v6513_v36 = vpop.f32.mrf.mxu1 }
 0x387   : > { %v6514_v53 = vadd.f32 %v6513_v36, %v6512_v20  ;;  %v4202_v20 = vmax.f32 %v10527_v3, %v4201_v37  ;;  %v4163_v36 = vsel %vm393_vm0, %v10558_v48, 0.0  ;;  %v4209_v3 = vsel %vm393_vm0, %v10439_v19, -inf }
 0x388   : > { %v6515_v32 = vpop.f32.mrf.mxu1  ;;  %v4164_v26 = vadd.f32 %v4163_v36, %v4162_v55  ;;  %v4216_v36 = vmax.f32 %v4208_v9, %v4215_v5  ;;  %v4225_v5 = vsel %vm393_vm0, %v10518_v35, -inf }
 0x389   : > { %v4024_v46 = vadd.f32 %v10476_v61, %v6514_v53  ;;  %v4211_v61 = vsel %vm393_vm0, %v10452_v28, -inf  ;;  %v4210_v34 = vmax.f32 %v4202_v20, %v4209_v3  ;;  %v4217_v53 = vsel %vm393_vm0, %v10483_v6, -inf  ;;  %v4034_v20 = vpop.f32.mrf.mxu0 }
 0x38a   : > { %v6516_v62 = vpop.f32.mrf.mxu1  ;;  %v4166_v17 = vadd.f32 %v4165_v30, %v4164_v26  ;;  %v4219_v30 = vsel %vm393_vm0, %v10491_v23, -inf  ;;  %v4227_v26 = vsel %vm393_vm0, %v10530_v2, -inf }
 0x38b   : > { %v6517_v59 = vadd.f32 %v6516_v62, %v6515_v32  ;;  %v4078_v32 = vmul.f32 %v10331_v58, %v4019_v45 }
 0x38c   : > { %v4168_v18 = vadd.f32 %v4167_v12, %v4166_v17 }
 0x38d   : > { %v4027_v33 = vadd.f32 %v6678_v47, %v6517_v59  ;;  %v4079_v47 = vmul.f32 %v10331_v58, %v4024_v46  ;;  %v10610_v44 = vadd.f32 %v10345_v52, %v4078_v32  ;;  %v4212_v59 = vmax.f32 %v4204_v29, %v4211_v61 }
 0x38e   : > { %v4171_v46 = vsel %vm393_vm0, %v10602_v22, 0.0  ;;  %v4221_v29 = vsel %vm393_vm0, %v10500_v51, -inf  ;;  %v4223_v32 = vsel %vm393_vm0, %v10509_v24, -inf }
 0x38f   : > { %v4080_v11 = vmul.f32 %v10331_v58, %v4027_v33  ;;  %v10616_v21 = vadd.f32 %v10345_v52, %v4079_v47  ;;  %v4173_v33 = vsel %vm393_vm0, %v10610_v44, 0.0  ;;  %v4220_v17 = vmax.f32 %v4212_v59, %v4219_v30 }
 0x390   : > { %v6518_v38 = vpop.f32.mrf.mxu1 }
 0x391   : > { %v10628_v61 = vadd.f32 %v10345_v52, %v4080_v11 }
 0x392   : > { %v6519_v37 = vpop.f32.mrf.mxu1 }
 0x393   : > { %v6520_v62 = vadd.f32 %v6519_v37, %v6518_v38  ;;  %v4218_v38 = vmax.f32 %v4210_v34, %v4217_v53  ;;  %v4229_v37 = vsel %vm393_vm0, %v10543_v16, -inf }
 0x394   : > { %v6521_v4 = vpop.f32.mrf.mxu1 }
 0x395   : > { %v4032_v45 = vadd.f32 %v6520_v62, %v4031_v25  ;;  %v4170_v25 = vadd.f32 %v4169_v63, %v4168_v18  ;;  %v4175_v62 = vsel %vm393_vm0, %v10616_v21, 0.0  ;;  %v4224_v63 = vmax.f32 %v4216_v36, %v4223_v32 }
 0x396   : > { %v6522_v49 = vpop.f32.mrf.mxu1  ;;  %v4231_v18 = vsel %vm393_vm0, %v10558_v48, -inf }
 0x397   : > { %v4081_v3 = vmul.f32 %v10331_v58, %v4032_v45  ;;  %v6523_v55 = vadd.f32 %v6522_v49, %v6521_v4  ;;  %v4172_v12 = vadd.f32 %v4171_v46, %v4170_v25  ;;  %v4222_v4 = vmax.f32 %v4214_v7, %v4221_v29 }
 0x398   : > { %v6524_v0 = vpop.f32.mrf.mxu1  ;;  %v4177_v49 = vsel %vm393_vm0, %v10628_v61, 0.0  ;;  %v4233_v7 = vsel %vm393_vm0, %v10568_v14, -inf  ;;  %v4232_v32 = vmax.f32 %v4224_v63, %v4231_v18 }
 0x399   : > { %v4035_v8 = vadd.f32 %v6523_v55, %v4034_v20  ;;  %v10639_v9 = vadd.f32 %v10345_v52, %v4081_v3  ;;  %v4174_v11 = vadd.f32 %v4173_v33, %v4172_v12  ;;  %v4226_v3 = vmax.f32 %v4218_v38, %v4225_v5 }
 0x39a   : > { %v6525_v47 = vpop.f32.mrf.mxu1  ;;  %v4228_v55 = vmax.f32 %v4220_v17, %v4227_v26  ;;  %v4230_v25 = vmax.f32 %v4222_v4, %v4229_v37  ;;  %v4235_v33 = vsel %vm393_vm0, %v10577_v60, -inf }
 0x39b   : > { %v4082_v34 = vmul.f32 %v10331_v58, %v4035_v8  ;;  %v6526_v53 = vadd.f32 %v6525_v47, %v6524_v0  ;;  %v4176_v0 = vadd.f32 %v4175_v62, %v4174_v11  ;;  %v4179_v36 = vsel %vm393_vm0, %v10639_v9, 0.0 }
 0x39c   : > { %v6527_v45 = vpop.f32.mrf.mxu1  ;;  %v4241_v8 = vsel %vm393_vm0, %v10610_v44, -inf  ;;  %v4234_v12 = vmax.f32 %v4226_v3, %v4233_v7  ;;  %v4239_v47 = vsel %vm393_vm0, %v10602_v22, -inf  ;;  %v4243_v62 = vsel %vm393_vm0, %v10616_v21, -inf }
 0x39d   : > { %v10647_v20 = vadd.f32 %v10345_v52, %v4082_v34  ;;  %v4040_v46 = vadd.f32 %v10555_v13, %v6526_v53  ;;  %v4237_v13 = vsel %vm393_vm0, %v10588_v15, -inf  ;;  %v4178_v38 = vadd.f32 %v4177_v49, %v4176_v0 }
 0x39e   : > { %v6528_v59 = vpop.f32.mrf.mxu1  ;;  %v4245_v53 = vsel %vm393_vm0, %v10628_v61, -inf  ;;  %v4238_v11 = vmax.f32 %v4230_v25, %v4237_v13  ;;  %v4242_v18 = vmax.f32 %v4234_v12, %v4241_v8  ;;  %v4240_v49 = vmax.f32 %v4232_v32, %v4239_v47 }
 0x39f   : > { %v4083_v30 = vmul.f32 %v10331_v58, %v4040_v46  ;;  %v6529_v29 = vadd.f32 %v6528_v59, %v6527_v45  ;;  %v4181_v5 = vsel %vm393_vm0, %v10647_v20, 0.0  ;;  %v4180_v34 = vadd.f32 %v4179_v36, %v4178_v38 }
 0x3a0   : > { %v4249_v17 = vsel %vm393_vm0, %v10647_v20, -inf  ;;  %v4247_v46 = vsel %vm393_vm0, %v10639_v9, -inf  ;;  %v4246_v7 = vmax.f32 %v4238_v11, %v4245_v53 }
 0x3a1   : > { %v10664_v26 = vadd.f32 %v10345_v52, %v4083_v30  ;;  %v4043_v37 = vadd.f32 %v10597_v1, %v6529_v29  ;;  %v4236_v1 = vmax.f32 %v4228_v55, %v4235_v33  ;;  %v4182_v45 = vadd.f32 %v4181_v5, %v4180_v34 }
 0x3a2   : > { %v4250_v36 = vmax.f32 %v4242_v18, %v4249_v17  ;;  %v4248_v25 = vmax.f32 %v4240_v49, %v4247_v46 }
 0x3a3   : > { %v4183_v4 = vsel %vm393_vm0, %v10664_v26, 0.0  ;;  %v4084_v63 = vmul.f32 %v10331_v58, %v4043_v37  ;;  %v4251_v3 = vsel %vm393_vm0, %v10664_v26, -inf  ;;  %v4244_v59 = vmax.f32 %v4236_v1, %v4243_v62 }
 0x3a4   : > { %v4184_v30 = vadd.f32 %v4183_v4, %v4182_v45  ;;  %v4255_v13 = vmax.f32 %v4248_v25, %v4250_v36  ;;  %v4344_v45 = vld [vmem:[%s11519_s8] sm:$0x3] }
 0x3a5   : > { %v10683_v0 = vadd.f32 %v10345_v52, %v4084_v63  ;;  %v4252_v29 = vmax.f32 %v4244_v59, %v4251_v3 }
 0x3a7   : > { %v4185_v58 = vsel %vm393_vm0, %v10683_v0, 0.0  ;;  %v4253_v55 = vsel %vm393_vm0, %v10683_v0, -inf }
 0x3a8   : > { %v4186_v32 = vadd.f32 %v4185_v58, %v4184_v30  ;;  %v4254_v33 = vmax.f32 %v4246_v7, %v4253_v55 }
 0x3aa   : > { %v4187_v38 = vrot.slane %v4186_v32, 4  ;;  %v4256_v8 = vmax.f32 %v4252_v29, %v4254_v33 }
 0x3ac   : > { %v4188_v5 = vadd.f32 %v4187_v38, %v4186_v32  ;;  %v4257_v52 = vmax.f32 %v4255_v13, %v4256_v8  ;;  %v4432_v32 = vlaneseq }
 0x3ae   : > { %v4189_v37 = vrot.slane %v4188_v5, 2  ;;  %v4258_v12 = vrot.slane %v4257_v52, 4  ;;  %v10697_v33 = vshrl.u32 %v4432_v32, 7 }
 0x3b0   : > { %v4190_v47 = vadd.f32 %v4189_v37, %v4188_v5  ;;  %v4259_v62 = vmax.f32 %v4257_v52, %v4258_v12  ;;  %v10700_v13 = vsub.s32 0, %v10697_v33 }
 0x3b2   : > { %v4191_v34 = vrot.slane %v4190_v47, 1  ;;  %v4260_v53 = vrot.slane %v4259_v62, 2 }
 0x3b4   : > { %v4192_v17 = vadd.f32 %v4191_v34, %v4190_v47  ;;  %v4261_v4 = vmax.f32 %v4259_v62, %v4260_v53 }
 0x3b6   : > { %v4262_v63 = vrot.slane %v4261_v4, 1  ;;  %v4194_v1 = vmul.f32 0.00390625, %v4192_v17 }
 0x3b8   : > { %v4263_v11 = vmax.f32 %v4261_v4, %v4262_v63 }
 0x3ba   : > { %v4265_v18 = vsel %vm4264_vm7, %v4194_v1, %v4263_v11  ;;  %vm4889_vm7 = vcmask 1046534  }
 0x3bb   : > { %6692 = vmatmul.mubr.msk.f32.vlgmr.msra.gmra.mxu1 %vm393_vm0, %v4265_v18 }
 0x3bc   : > { %6695 = vmatpush3.msk.msra.mxu1 %vm4349_vm8, %v4344_v45  ;;  %6696 = vmatprep.mubr.msk.f32.mxu1 %vm7872_vm6, %v11746_v54  ;;  %vm4887_vm6 = vcmask 1045509  }
 0x47b   : > { %v4339_v49 = vpop.f32.mrf.mxu1 }
 0x47c   : > { %v4343_v46 = vmax.f32 %v4339_v49, 0.0 }
 0x47d   : > { %v6693_v3 = vpop.f32.mrf.mxu1 }
 0x47e   : > { %6697 = vmatmul.mubr.msk.f32.vlgmr.msra.gmra.mxu1 %vm4345_vm9, %v4343_v46  ;;  %vm4891_vm9 = vcmask 1047559  }
 0x53e   : > { %v4419_v59 = vpop.f32.mrf.mxu1 }
 0x53f   : > { %v4424_v7 = vrot.slane %v4419_v59, 1 }
 0x540   : > { %v6698_v36 = vpop.f32.mrf.mxu1 }
 0x541   : > { %v4426_v30 = vadd.f32 %v4424_v7, %v4419_v59 }
 0x543   : > { %v4427_v58 = vsub.f32 0.0, %v4426_v30 }
 0x545   : > { %v4428_v55 = vmul.f32 1.442695, %v4427_v58 }
 0x547   : > { %7813 = vpow2.f32 %v4428_v55 }
 0x554   : > { %v7814_v25 = vpop.eup %7813 }
 0x555   : > { %v4430_v29 = vadd.f32 1.0, %v7814_v25 }
 0x557   : > { %7815 = vrcp.f32 %v4430_v29 }
 0x564   : > { %v7816_v38 = vpop.eup %7815 }
 0x565   : > { %v10703_v8 = vrot.slane %v7816_v38, %v10700_v13 }
 0x567   : > { %v10707_v5 = vmul.f32 %v10703_v8, %v10355_v10  ;;  %v10711_v52 = vmul.f32 %v10703_v8, %v10361_v27  ;;  %v10719_v47 = vmul.f32 %v10703_v8, %v10509_v24  ;;  %v10723_v62 = vmul.f32 %v10703_v8, %v10366_v40 }
 0x568   : > { %v10731_v34 = vmul.f32 %v10703_v8, %v10530_v2  ;;  %v10735_v24 = vmul.f32 %v10703_v8, %v10378_v57  ;;  %v10743_v17 = vmul.f32 %v10703_v8, %v10388_v42  ;;  %v10747_v2 = vmul.f32 %v10703_v8, %v10518_v35 }
 0x569   : > { %11748 = vst [vmem:[#allocation63_spill] sm:$0xff] %v10707_v5  ;;  %11749 = vst [vmem:[#allocation48_spill] sm:$0xff] %v10711_v52  ;;  %v4471_v37 = vsel %vm393_vm0, %v10707_v5, 0.0  ;;  %v4468_v12 = vsel %vm393_vm0, %v10711_v52, 0.0  ;;  %v4516_v10 = vsel %vm393_vm0, %v10719_v47, 0.0  ;;  %v4474_v27 = vsel %vm393_vm0, %v10723_v62, 0.0 }
 0x56a   : > { %11750 = vst [vmem:[#allocation25_spill] sm:$0xff] %v10723_v62  ;;  %4472 = vadd.xlane.f32.xlu1 %v4471_v37  ;;  %4469 = vadd.xlane.f32.xlu0 %v4468_v12  ;;  %11751 = vst [vmem:[#allocation24_spill] sm:$0xff] %v10735_v24  ;;  %v4522_v40 = vsel %vm393_vm0, %v10731_v34, 0.0  ;;  %v4477_v53 = vsel %vm393_vm0, %v10735_v24, 0.0  ;;  %v4480_v57 = vsel %vm393_vm0, %v10743_v17, 0.0  ;;  %v4519_v4 = vsel %vm393_vm0, %v10747_v2, 0.0 }
 0x56b   : > { %11752 = vst [vmem:[#allocation61_spill] sm:$0xff] %v10743_v17  ;;  %v10755_v63 = vmul.f32 %v10703_v8, %v10558_v48  ;;  %v10759_v42 = vmul.f32 %v10703_v8, %v10543_v16  ;;  %v10767_v11 = vmul.f32 %v10703_v8, %v10411_v31  ;;  %v10771_v48 = vmul.f32 %v10703_v8, %v10398_v43 }
 0x56c   : > { %v10779_v18 = vmul.f32 %v10703_v8, %v10577_v60  ;;  %v10783_v31 = vmul.f32 %v10703_v8, %v10568_v14  ;;  %v10791_v46 = vmul.f32 %v10703_v8, %v10428_v56  ;;  %v10795_v60 = vmul.f32 %v10703_v8, %v10420_v39 }
 0x56d   : > { %v4528_v35 = vsel %vm393_vm0, %v10755_v63, 0.0  ;;  %v4525_v1 = vsel %vm393_vm0, %v10759_v42, 0.0  ;;  %11753 = vst [vmem:[#allocation69_spill] sm:$0xff] %v10767_v11  ;;  %11754 = vst [vmem:[#allocation62_spill] sm:$0xff] %v10771_v48  ;;  %v4486_v16 = vsel %vm393_vm0, %v10767_v11, 0.0  ;;  %v4483_v45 = vsel %vm393_vm0, %v10771_v48, 0.0 }
 0x56e   : > { %4517 = vadd.xlane.f32.xlu1 %v4516_v10  ;;  %4475 = vadd.xlane.f32.xlu0 %v4474_v27  ;;  %v4534_v43 = vsel %vm393_vm0, %v10779_v18, 0.0  ;;  %v4531_v49 = vsel %vm393_vm0, %v10783_v31, 0.0  ;;  %11755 = vst [vmem:[#allocation29_spill] sm:$0xff] %v10791_v46  ;;  %11756 = vst [vmem:[#allocation28_spill] sm:$0xff] %v10795_v60  ;;  %v4492_v14 = vsel %vm393_vm0, %v10791_v46, 0.0  ;;  %v4489_v3 = vsel %vm393_vm0, %v10795_v60, 0.0 }
 0x56f   : > { %v10803_v59 = vmul.f32 %v10703_v8, %v10602_v22  ;;  %v10807_v56 = vmul.f32 %v10703_v8, %v10588_v15  ;;  %v10815_v36 = vmul.f32 %v10703_v8, %v10439_v19  ;;  %v4597_v22 = vsel %vm393_vm0, %v10711_v52, -inf }
 0x570   : > { %v10823_v30 = vmul.f32 %v10703_v8, %v10610_v44  ;;  %v4603_v58 = vsel %vm393_vm0, %v10723_v62, -inf  ;;  %v4645_v55 = vsel %vm393_vm0, %v10719_v47, -inf  ;;  %v4600_v25 = vsel %vm393_vm0, %v10707_v5, -inf }
 0x571   : > { %v4540_v39 = vsel %vm393_vm0, %v10803_v59, 0.0  ;;  %v4537_v7 = vsel %vm393_vm0, %v10807_v56, 0.0  ;;  %11757 = vst [vmem:[#allocation68_spill] sm:$0xff] %v10815_v36  ;;  %v4495_v15 = vsel %vm393_vm0, %v10815_v36, 0.0  ;;  %v4651_v44 = vsel %vm393_vm0, %v10731_v34, -inf }
 0x572   : > { %4523 = vadd.xlane.f32.xlu1 %v4522_v40  ;;  %4478 = vadd.xlane.f32.xlu0 %v4477_v53  ;;  %v4543_v19 = vsel %vm393_vm0, %v10823_v30, 0.0  ;;  %v4606_v29 = vsel %vm393_vm0, %v10735_v24, -inf  ;;  %v10839_v38 = vmul.f32 %v10703_v8, %v10452_v28  ;;  %v4648_v12 = vsel %vm393_vm0, %v10747_v2, -inf }
 0x573   : > { %v10847_v10 = vmul.f32 %v10703_v8, %v10616_v21  ;;  %v4654_v28 = vsel %vm393_vm0, %v10759_v42, -inf  ;;  %v10855_v40 = vmul.f32 %v10703_v8, %v10461_v41  ;;  %v4609_v53 = vsel %vm393_vm0, %v10743_v17, -inf }
 0x574   : > { %11758 = vst [vmem:[#allocation64_spill] sm:$0xff] %v10839_v38  ;;  %v4498_v37 = vsel %vm393_vm0, %v10839_v38, 0.0 }
 0x575   : > { %v4546_v27 = vsel %vm393_vm0, %v10847_v10, 0.0  ;;  %11759 = vst [vmem:[#allocation65_spill] sm:$0xff] %v10855_v40  ;;  %v4501_v21 = vsel %vm393_vm0, %v10855_v40, 0.0 }
 0x576   : > { %4481 = vadd.xlane.f32.xlu1 %v4480_v57  ;;  %4520 = vadd.xlane.f32.xlu0 %v4519_v4  ;;  %v10863_v57 = vmul.f32 %v10703_v8, %v10628_v61  ;;  %v4657_v4 = vsel %vm393_vm0, %v10755_v63, -inf  ;;  %v4612_v61 = vsel %vm393_vm0, %v10771_v48, -inf }
 0x578   : > { %v4549_v41 = vsel %vm393_vm0, %v10863_v57, 0.0 }
 0x57a   : > { %4529 = vadd.xlane.f32.xlu1 %v4528_v35  ;;  %4526 = vadd.xlane.f32.xlu0 %v4525_v1  ;;  %v10871_v35 = vmul.f32 %v10703_v8, %v10472_v50  ;;  %v4660_v50 = vsel %vm393_vm0, %v10783_v31, -inf }
 0x57c   : > { %11760 = vst [vmem:[#allocation31_spill] sm:$0xff] %v10871_v35  ;;  %v4504_v1 = vsel %vm393_vm0, %v10871_v35, 0.0 }
 0x57e   : > { %4487 = vadd.xlane.f32.xlu1 %v4486_v16  ;;  %4484 = vadd.xlane.f32.xlu0 %v4483_v45  ;;  %v10879_v16 = vmul.f32 %v10703_v8, %v10639_v9 }
 0x580   : > { %v4552_v45 = vsel %vm393_vm0, %v10879_v16, 0.0 }
 0x582   : > { %4535 = vadd.xlane.f32.xlu1 %v4534_v43  ;;  %4532 = vadd.xlane.f32.xlu0 %v4531_v49  ;;  %v10887_v43 = vmul.f32 %v10703_v8, %v10483_v6  ;;  %v4615_v49 = vsel %vm393_vm0, %v10767_v11, -inf }
 0x584   : > { %11761 = vst [vmem:[#allocation30_spill] sm:$0xff] %v10887_v43  ;;  %v4507_v9 = vsel %vm393_vm0, %v10887_v43, 0.0 }
 0x586   : > { %4493 = vadd.xlane.f32.xlu1 %v4492_v14  ;;  %4490 = vadd.xlane.f32.xlu0 %v4489_v3  ;;  %v10895_v14 = vmul.f32 %v10703_v8, %v10647_v20  ;;  %v4663_v3 = vsel %vm393_vm0, %v10779_v18, -inf  ;;  %v4618_v20 = vsel %vm393_vm0, %v10795_v60, -inf }
 0x588   : > { %v4555_v6 = vsel %vm393_vm0, %v10895_v14, 0.0 }
 0x58a   : > { %4541 = vadd.xlane.f32.xlu1 %v4540_v39  ;;  %4538 = vadd.xlane.f32.xlu0 %v4537_v7  ;;  %v10903_v39 = vmul.f32 %v10703_v8, %v10491_v23  ;;  %v4666_v23 = vsel %vm393_vm0, %v10807_v56, -inf }
 0x58c   : > { %11762 = vst [vmem:[#allocation67_spill] sm:$0xff] %v10903_v39  ;;  %v4510_v7 = vsel %vm393_vm0, %v10903_v39, 0.0 }
 0x58e   : > { %4598 = vmax.xlane.f32.xlu1 %v4597_v22  ;;  %4496 = vadd.xlane.f32.xlu0 %v4495_v15  ;;  %v10911_v22 = vmul.f32 %v10703_v8, %v10664_v26 }
 0x590   : > { %11763 = vst [vmem:[#allocation66_spill] sm:$0xff] %v10911_v22  ;;  %v4558_v15 = vsel %vm393_vm0, %v10911_v22, 0.0 }
 0x592   : > { %4604 = vmax.xlane.f32.xlu1 %v4603_v58  ;;  %4544 = vadd.xlane.f32.xlu0 %v4543_v19  ;;  %v10919_v58 = vmul.f32 %v10703_v8, %v10500_v51  ;;  %v4621_v19 = vsel %vm393_vm0, %v10791_v46, -inf }
 0x594   : > { %11764 = vst [vmem:[#allocation33_spill] sm:$0xff] %v10919_v58  ;;  %v4513_v26 = vsel %vm393_vm0, %v10919_v58, 0.0 }
 0x596   : > { %4646 = vmax.xlane.f32.xlu1 %v4645_v55  ;;  %4601 = vmax.xlane.f32.xlu0 %v4600_v25  ;;  %v10927_v55 = vmul.f32 %v10703_v8, %v10683_v0  ;;  %v4669_v25 = vsel %vm393_vm0, %v10803_v59, -inf  ;;  %v5111_v0 = vld [vmem:[%s11520_s9 + $0x28] sm:$0xf]  ;;  %v4675_v8 = vsel %vm393_vm0, %v10847_v10, -inf }
 0x597   : > { %6714 = vmatprep.subr.msk.mxu0 %vm5131_vm10, %v5111_v0 }
 0x598   : > { %11765 = vst [vmem:[#allocation32_spill] sm:$0xff] %v10927_v55  ;;  %v4561_v51 = vsel %vm393_vm0, %v10927_v55, 0.0  ;;  %6715 = vmatpush3.msk.msra.mxu0 %vm5131_vm10, %v5111_v0  ;;  %v6232_v0 = vld [vmem:[%s11520_s9 + $0x58] sm:$0xf] }
 0x599   : > { %6699 = vmatprep.subr.msk.mxu1 %vm5131_vm10, %v6232_v0 }
 0x59a   : > { %4652 = vmax.xlane.f32.xlu1 %v4651_v44  ;;  %4607 = vmax.xlane.f32.xlu0 %v4606_v29  ;;  %v4627_v44 = vsel %vm393_vm0, %v10839_v38, -inf  ;;  %v4624_v29 = vsel %vm393_vm0, %v10815_v36, -inf }
 0x59b   : > { %6700 = vmatpush3.msk.msra.mxu1 %vm5131_vm10, %v6232_v0  ;;  %v11036_v0 = vld [vmem:[%s11520_s9 + $0x88] sm:$0xf] }
 0x59e   : > { %4499 = vadd.xlane.f32.xlu1 %v4498_v37  ;;  %4649 = vmax.xlane.f32.xlu0 %v4648_v12  ;;  %v4672_v37 = vsel %vm393_vm0, %v10823_v30, -inf  ;;  %v4633_v12 = vsel %vm393_vm0, %v10871_v35, -inf }
 0x5a2   : > { %4547 = vadd.xlane.f32.xlu1 %v4546_v27  ;;  %4655 = vmax.xlane.f32.xlu0 %v4654_v28  ;;  %v4630_v27 = vsel %vm393_vm0, %v10855_v40, -inf  ;;  %v4681_v28 = vsel %vm393_vm0, %v10879_v16, -inf }
 0x5a6   : > { %4610 = vmax.xlane.f32.xlu1 %v4609_v53  ;;  %4502 = vadd.xlane.f32.xlu0 %v4501_v21  ;;  %v4678_v53 = vsel %vm393_vm0, %v10863_v57, -inf  ;;  %v5110_v21 = vld [vmem:[%s11520_s9 + $0x20] sm:$0xff] }
 0x5a7   : > { %6716 = vmatprep.subr.mxu0 %v5110_v21 }
 0x5a8   : > { %6717 = vmatpush3.msra.mxu0 %v5110_v21 }
 0x5aa   : > { %4658 = vmax.xlane.f32.xlu1 %v4657_v4  ;;  %4550 = vadd.xlane.f32.xlu0 %v4549_v41  ;;  %v4639_v4 = vsel %vm393_vm0, %v10903_v39, -inf  ;;  %v4636_v41 = vsel %vm393_vm0, %v10887_v43, -inf }
 0x5ae   : > { %4505 = vadd.xlane.f32.xlu1 %v4504_v1  ;;  %4613 = vmax.xlane.f32.xlu0 %v4612_v61  ;;  %v4687_v1 = vsel %vm393_vm0, %v10911_v22, -inf  ;;  %v4684_v61 = vsel %vm393_vm0, %v10895_v14, -inf }
 0x5b2   : > { %4553 = vadd.xlane.f32.xlu1 %v4552_v45  ;;  %4661 = vmax.xlane.f32.xlu0 %v4660_v50  ;;  %v5109_v45 = vld [vmem:[%s11520_s9 + $0x18] sm:$0xff]  ;;  %v4642_v50 = vsel %vm393_vm0, %v10919_v58, -inf }
 0x5b3   : > { %6718 = vmatprep.subr.mxu0 %v5109_v45 }
 0x5b4   : > { %6719 = vmatpush3.msra.mxu0 %v5109_v45 }
 0x5b6   : > { %4616 = vmax.xlane.f32.xlu1 %v4615_v49  ;;  %4508 = vadd.xlane.f32.xlu0 %v4507_v9  ;;  %v4690_v49 = vsel %vm393_vm0, %v10927_v55, -inf  ;;  %v10973_v9 = vand.u32 127, %v4432_v32 }
 0x5ba   : > { %4664 = vmax.xlane.f32.xlu1 %v4663_v3  ;;  %4556 = vadd.xlane.f32.xlu0 %v4555_v6  ;;  %v4737_v3 = vadd.s32 4294967285, %v10973_v9  ;;  %v4732_v6 = vadd.s32 4294967293, %v10973_v9 }
 0x5bc   : > { %v10986_v32 = vsub.s32 %v4737_v3, %v10697_v33 }
 0x5be   : > { %4511 = vadd.xlane.f32.xlu1 %v4510_v7  ;;  %4619 = vmax.xlane.f32.xlu0 %v4618_v20  ;;  %v5108_v7 = vld [vmem:[%s11520_s9 + $0x10] sm:$0xff]  ;;  %v10989_v20 = vsub.s32 %v4732_v6, %v10697_v33 }
 0x5bf   : > { %6720 = vmatprep.subr.mxu0 %v5108_v7 }
 0x5c0   : > { %6721 = vmatpush3.msra.mxu0 %v5108_v7 }
 0x5c2   : > { %4559 = vadd.xlane.f32.xlu1 %v4558_v15  ;;  %4667 = vmax.xlane.f32.xlu0 %v4666_v23 }
 0x5c6   : > { %4622 = vmax.xlane.f32.xlu1 %v4621_v19  ;;  %4514 = vadd.xlane.f32.xlu0 %v4513_v26 }
 0x5ca   : > { %4670 = vmax.xlane.f32.xlu1 %v4669_v25  ;;  %4562 = vadd.xlane.f32.xlu0 %v4561_v51 }
 0x5ce   : > { %4628 = vmax.xlane.f32.xlu1 %v4627_v44  ;;  %4625 = vmax.xlane.f32.xlu0 %v4624_v29 }
 0x5d2   : > { %4676 = vmax.xlane.f32.xlu1 %v4675_v8  ;;  %4673 = vmax.xlane.f32.xlu0 %v4672_v37  ;;  %v5107_v8 = vld [vmem:[%s11520_s9 + $0x8] sm:$0xff]  ;;  %v6231_v37 = vld [vmem:[%s11520_s9 + $0x50] sm:$0xff] }
 0x5d3   : > { %6722 = vmatprep.subr.mxu0 %v5107_v8  ;;  %6701 = vmatprep.subr.mxu1 %v6231_v37 }
 0x5d4   : > { %6723 = vmatpush3.msra.mxu0 %v5107_v8  ;;  %6702 = vmatpush3.msra.mxu1 %v6231_v37 }
 0x5d6   : > { %4634 = vmax.xlane.f32.xlu1 %v4633_v12  ;;  %4631 = vmax.xlane.f32.xlu0 %v4630_v27  ;;  %v6230_v27 = vld [vmem:[%s11520_s9 + $0x48] sm:$0xff] }
 0x5d7   : > { %6703 = vmatprep.subr.mxu1 %v6230_v27 }
 0x5d8   : > { %6704 = vmatpush3.msra.mxu1 %v6230_v27 }
 0x5da   : > { %4682 = vmax.xlane.f32.xlu1 %v4681_v28  ;;  %4679 = vmax.xlane.f32.xlu0 %v4678_v53 }
 0x5de   : > { %4640 = vmax.xlane.f32.xlu1 %v4639_v4  ;;  %4637 = vmax.xlane.f32.xlu0 %v4636_v41  ;;  %v6229_v4 = vld [vmem:[%s11520_s9 + $0x40] sm:$0xff] }
 0x5df   : > { %v5106_v41 = vld [vmem:[%s11520_s9] sm:$0xff]  ;;  %6705 = vmatprep.subr.mxu1 %v6229_v4 }
 0x5e0   : > { %6724 = vmatprep.subr.mxu0 %v5106_v41  ;;  %6706 = vmatpush3.msra.mxu1 %v6229_v4 }
 0x5e1   : > { %6725 = vmatpush3.msra.mxu0 %v5106_v41 }
 0x5e2   : > { %4688 = vmax.xlane.f32.xlu1 %v4687_v1  ;;  %4685 = vmax.xlane.f32.xlu0 %v4684_v61  ;;  %v11017_v1 = vld [vmem:[%s11520_s9 + $0xb8] sm:$0xf] }
 0x5e3   : > { %6744 = vmatprep.subr.msk.mxu0 %vm5131_vm10, %v11017_v1 }
 0x5e6   : > { %4643 = vmax.xlane.f32.xlu0 %v4642_v50 }
 0x5ea   : > { %4691 = vmax.xlane.f32.xlu0 %v4690_v49  ;;  %v6228_v49 = vld [vmem:[%s11520_s9 + $0x38] sm:$0xff] }
 0x5eb   : > { %6707 = vmatprep.subr.mxu1 %v6228_v49 }
 0x5ec   : > { %6708 = vmatpush3.msra.mxu1 %v6228_v49 }
 0x5f3   : > { %v4473_v15 = vpop.xlane.xlu1 %4472  ;;  %v4470_v23 = vpop.xlane.xlu0 %4469 }
 0x5f4   : > { %v4566_v19 = vmul.f32 0.03125, %v4473_v15  ;;  %v4565_v26 = vmul.f32 0.03125, %v4470_v23 }
 0x5f6   : > { %v4741_v25 = vrot.slane %v4566_v19, %v10986_v32  ;;  %v4736_v54 = vrot.slane %v4565_v26, %v10989_v20  ;;  %v6227_v19 = vld [vmem:[%s11520_s9 + $0x30] sm:$0xff] }
 0x5f7   : > { %v4518_v51 = vpop.xlane.xlu1 %4517  ;;  %v4476_v44 = vpop.xlane.xlu0 %4475  ;;  %6709 = vmatprep.subr.mxu1 %v6227_v19 }
 0x5f8   : > { %v4743_v29 = vsel %vm4742_vm13, %v4741_v25, %v4736_v54  ;;  %v4567_v12 = vmul.f32 0.03125, %v4476_v44  ;;  %v4581_v61 = vmul.f32 0.03125, %v4518_v51  ;;  %6710 = vmatpush3.msra.mxu1 %v6227_v19 }
 0x5f9   : > { %6729 = vmatprep.subr.msk.mxu1 %vm5131_vm10, %v11036_v0 }
 0x5fa   : > { %v4747_v45 = vrot.slane %v4567_v12, %v10989_v20  ;;  %v4810_v26 = vrot.slane %v4581_v61, %v10989_v20 }
 0x5fb   : > { %v4524_v28 = vpop.xlane.xlu1 %4523  ;;  %v4479_v53 = vpop.xlane.xlu0 %4478 }
 0x5fc   : > { %v4568_v21 = vmul.f32 0.03125, %v4479_v53  ;;  %v4583_v25 = vmul.f32 0.03125, %v4524_v28 }
 0x5fe   : > { %v4751_v50 = vrot.slane %v4568_v21, %v10986_v32  ;;  %v4819_v37 = vrot.slane %v4583_v25, %v10989_v20 }
 0x5ff   : > { %v4482_v3 = vpop.xlane.xlu1 %4481  ;;  %v4521_v6 = vpop.xlane.xlu0 %4520 }
 0x600   : > { %v4752_v7 = vsel %vm4742_vm13, %v4751_v50, %v4747_v45  ;;  %v4582_v15 = vmul.f32 0.03125, %v4521_v6  ;;  %v4569_v12 = vmul.f32 0.03125, %v4482_v3 }
 0x601   : > { %v4880_v23 = vsel %vm4879_vm14, %v4752_v7, %v4743_v29 }
 0x602   : > { %v4814_v54 = vrot.slane %v4582_v15, %v10986_v32  ;;  %v4756_v61 = vrot.slane %v4569_v12, %v10989_v20 }
 0x603   : > { %v4530_v51 = vpop.xlane.xlu1 %4529  ;;  %v4527_v44 = vpop.xlane.xlu0 %4526 }
 0x604   : > { %v4815_v29 = vsel %vm4742_vm13, %v4814_v54, %v4810_v26  ;;  %v4584_v8 = vmul.f32 0.03125, %v4527_v44  ;;  %v4585_v45 = vmul.f32 0.03125, %v4530_v51 }
 0x606   : > { %v4823_v27 = vrot.slane %v4584_v8, %v10986_v32  ;;  %v4828_v19 = vrot.slane %v4585_v45, %v10989_v20 }
 0x607   : > { %v11043_v28 = vpop.xlane.xlu1 %4487  ;;  %v4485_v53 = vpop.xlane.xlu0 %4484 }
 0x608   : > { %v4824_v21 = vsel %vm4742_vm13, %v4823_v27, %v4819_v37  ;;  %v4570_v4 = vmul.f32 0.03125, %v4485_v53  ;;  %v4937_v27 = vadd.s32 4294967271, %v10973_v9 }
 0x609   : > { %v4893_v41 = vsel %vm4879_vm14, %v4824_v21, %v4815_v29 }
 0x60a   : > { %v4760_v50 = vrot.slane %v4570_v4, %v10986_v32  ;;  %v11066_v4 = vsub.s32 %v4937_v27, %v10697_v33 }
 0x60b   : > { %v11049_v49 = vpop.xlane.xlu1 %4535  ;;  %v4533_v6 = vpop.xlane.xlu0 %4532 }
 0x60c   : > { %v4761_v3 = vsel %vm4742_vm13, %v4760_v50, %v4756_v61  ;;  %v4586_v7 = vmul.f32 0.03125, %v4533_v6  ;;  %v4587_v48 = vmul.f32 0.03125, %v11049_v49 }
 0x60d   : > { %v11053_v15 = vsel %vm4881_vm15, %v4761_v3, %v4880_v23  ;;  %v4942_v23 = vadd.s32 4294967263, %v10973_v9 }
 0x60e   : > { %v4832_v26 = vrot.slane %v4586_v7, %v10986_v32 }
 0x60f   : > { %v4494_v25 = vpop.xlane.xlu1 %4493  ;;  %v4491_v54 = vpop.xlane.xlu0 %4490  ;;  %v11069_v61 = vsub.s32 %v4942_v23, %v10697_v33 }
 0x610   : > { %v4833_v51 = vsel %vm4742_vm13, %v4832_v26, %v4828_v19  ;;  %v4573_v39 = vmul.f32 0.03125, %v4494_v25 }
 0x611   : > { %v11059_v44 = vsel %vm4881_vm15, %v4833_v51, %v4893_v41 }
 0x612   : > { %v4774_v25 = vrot.slane %v4573_v39, %v10989_v20 }
 0x613   : > { %v11061_v29 = vpop.xlane.xlu1 %4541  ;;  %v4539_v8 = vpop.xlane.xlu0 %4538 }
 0x614   : > { %v4588_v46 = vmul.f32 0.03125, %v4539_v8  ;;  %v4589_v49 = vmul.f32 0.03125, %v11061_v29 }
 0x617   : > { %v4599_v37 = vpop.xlane.xlu1 %4598  ;;  %v4497_v12 = vpop.xlane.xlu0 %4496 }
 0x618   : > { %v4941_v50 = vrot.slane %v4599_v37, %v11066_v4 }
 0x61b   : > { %v4605_v53 = vpop.xlane.xlu1 %4604  ;;  %v4545_v21 = vpop.xlane.xlu0 %4544 }
 0x61c   : > { %v4952_v9 = vrot.slane %v4605_v53, %v11066_v4 }
 0x61f   : > { %v4647_v45 = vpop.xlane.xlu1 %4646  ;;  %v4602_v41 = vpop.xlane.xlu0 %4601 }
 0x620   : > { %v4946_v6 = vrot.slane %v4602_v41, %v11069_v61  ;;  %v5015_v58 = vrot.slane %v4647_v45, %v11066_v4 }
 0x622   : > { %v4948_v3 = vsel %vm4947_vm1, %v4946_v6, %v4941_v50 }
 0x623   : > { %v4653_v7 = vpop.xlane.xlu1 %4652  ;;  %v4608_v19 = vpop.xlane.xlu0 %4607 }
 0x624   : > { %v4956_v26 = vrot.slane %v4608_v19, %v11069_v61  ;;  %v5024_v43 = vrot.slane %v4653_v7, %v11066_v4 }
 0x626   : > { %v4957_v51 = vsel %vm4947_vm1, %v4956_v26, %v4952_v9 }
 0x627   : > { %v11078_v27 = vsel %vm4879_vm14, %v4957_v51, %v4948_v3  ;;  %v4500_v23 = vpop.xlane.xlu1 %4499  ;;  %v4650_v55 = vpop.xlane.xlu0 %4649 }
 0x628   : > { %v5019_v37 = vrot.slane %v4650_v55, %v11069_v61 }
 0x62a   : > { %v5020_v41 = vsel %vm4947_vm1, %v5019_v37, %v5015_v58 }
 0x62b   : > { %v4548_v50 = vpop.xlane.xlu1 %4547  ;;  %v4656_v6 = vpop.xlane.xlu0 %4655 }
 0x62c   : > { %v5028_v53 = vrot.slane %v4656_v6, %v11069_v61 }
 0x62e   : > { %v5029_v19 = vsel %vm4947_vm1, %v5028_v53, %v5024_v43  ;;  %v4571_v53 = vmul.f32 0.03125, %v11043_v28  ;;  %v4575_v28 = vmul.f32 0.03125, %v4500_v23  ;;  %v4841_v23 = vrot.slane %v4588_v46, %v10986_v32 }
 0x62f   : > { %v11087_v9 = vsel %vm4879_vm14, %v5029_v19, %v5020_v41  ;;  %v11089_v3 = vpop.xlane.xlu1 %4610  ;;  %v4503_v26 = vpop.xlane.xlu0 %4502  ;;  %v4572_v41 = vmul.f32 0.03125, %v4491_v54  ;;  %v4574_v19 = vmul.f32 0.03125, %v4497_v12  ;;  %v4590_v12 = vmul.f32 0.03125, %v4545_v21 }
 0x630   : > { %v4576_v38 = vmul.f32 0.03125, %v4503_v26  ;;  %v4765_v11 = vrot.slane %v4571_v53, %v10989_v20  ;;  %vm5395_vm14 = vcmask 1044480  }
 0x631   : > { %v4769_v60 = vrot.slane %v4572_v41, %v10986_v32  ;;  %v4778_v54 = vrot.slane %v4574_v19, %v10986_v32  ;;  %v4837_v41 = vrot.slane %v4587_v48, %v10989_v20  ;;  %v4591_v19 = vmul.f32 0.03125, %v4548_v50 }
 0x632   : > { %v4787_v8 = vrot.slane %v4576_v38, %v10986_v32 }
 0x633   : > { %v11091_v51 = vpop.xlane.xlu1 %4658  ;;  %v4551_v45 = vpop.xlane.xlu0 %4550  ;;  %v4770_v26 = vsel %vm4742_vm13, %v4769_v60, %v4765_v11  ;;  %v4779_v21 = vsel %vm4742_vm13, %v4778_v54, %v4774_v25  ;;  %v4850_v60 = vrot.slane %v4590_v12, %v10986_v32 }
 0x634   : > { %v4884_v11 = vsel %vm4883_vm4, %v4770_v26, %v11053_v15 }
 0x635   : > { %v4886_v50 = vsel %vm4885_vm5, %v4779_v21, %v4884_v11 }
 0x637   : > { %v4506_v55 = vpop.xlane.xlu1 %4505  ;;  %v11093_v22 = vpop.xlane.xlu0 %4613 }
 0x638   : > { %v4577_v62 = vmul.f32 0.03125, %v4506_v55  ;;  %v4783_v55 = vrot.slane %v4575_v28, %v10989_v20 }
 0x63a   : > { %v4792_v38 = vrot.slane %v4577_v62, %v10989_v20  ;;  %v4855_v62 = vrot.slane %v4591_v19, %v10989_v20 }
 0x63b   : > { %v4554_v58 = vpop.xlane.xlu1 %4553  ;;  %v11095_v37 = vpop.xlane.xlu0 %4661 }
 0x63c   : > { %v4593_v29 = vmul.f32 0.03125, %v4554_v58 }
 0x63f   : > { %v11097_v7 = vpop.xlane.xlu1 %4616  ;;  %v4509_v6 = vpop.xlane.xlu0 %4508 }
 0x640   : > { %v4578_v24 = vmul.f32 0.03125, %v4509_v6  ;;  %v4592_v6 = vmul.f32 0.03125, %v4551_v45  ;;  %v4788_v45 = vsel %vm4742_vm13, %v4787_v8, %v4783_v55  ;;  %v4864_v8 = vrot.slane %v4593_v29, %v10989_v20 }
 0x642   : > { %v4796_v53 = vrot.slane %v4578_v24, %v10986_v32  ;;  %v4846_v24 = vrot.slane %v4589_v49, %v10989_v20  ;;  %v4888_v49 = vsel %vm4887_vm6, %v4788_v45, %v4886_v50 }
 0x643   : > { %v11099_v40 = vpop.xlane.xlu1 %4664  ;;  %v4557_v43 = vpop.xlane.xlu0 %4556 }
 0x644   : > { %v4594_v39 = vmul.f32 0.03125, %v4557_v43  ;;  %v4859_v43 = vrot.slane %v4592_v6, %v10986_v32  ;;  %v4797_v15 = vsel %vm4742_vm13, %v4796_v53, %v4792_v38  ;;  %v4851_v26 = vsel %vm4742_vm13, %v4850_v60, %v4846_v24 }
 0x645   : > { %v4890_v53 = vsel %vm4889_vm7, %v4797_v15, %v4888_v49  ;;  %v5037_v49 = vrot.slane %v11095_v37, %v11069_v61 }
 0x646   : > { %v4868_v28 = vrot.slane %v4594_v39, %v10986_v32 }
 0x647   : > { %v4512_v36 = vpop.xlane.xlu1 %4511  ;;  %v11102_v35 = vpop.xlane.xlu0 %4619 }
 0x648   : > { %v4579_v5 = vmul.f32 0.03125, %v4512_v36  ;;  %v4842_v36 = vsel %vm4742_vm13, %v4841_v23, %v4837_v41  ;;  %v4860_v23 = vsel %vm4742_vm13, %v4859_v43, %v4855_v62  ;;  %v4869_v21 = vsel %vm4742_vm13, %v4868_v28, %v4864_v8 }
 0x649   : > { %v4961_v28 = vrot.slane %v11089_v3, %v11066_v4  ;;  %v4974_v62 = vrot.slane %v11102_v35, %v11069_v61 }
 0x64a   : > { %v4801_v58 = vrot.slane %v4579_v5, %v10989_v20 }
 0x64b   : > { %v4560_v17 = vpop.xlane.xlu1 %4559  ;;  %v11109_v52 = vpop.xlane.xlu0 %4667 }
 0x64c   : > { %v4595_v25 = vmul.f32 0.03125, %v4560_v17  ;;  %v4895_v17 = vsel %vm4883_vm4, %v4842_v36, %v11059_v44  ;;  %v5046_v3 = vrot.slane %v11109_v52, %v11069_v61 }
 0x64d   : > { %v4896_v19 = vsel %vm4885_vm5, %v4851_v26, %v4895_v17 }
 0x64e   : > { %v4873_v11 = vrot.slane %v4595_v25, %v10989_v20  ;;  %v4897_v38 = vsel %vm4887_vm6, %v4860_v23, %v4896_v19 }
 0x64f   : > { %v11123_v48 = vpop.xlane.xlu1 %4622  ;;  %v4515_v46 = vpop.xlane.xlu0 %4514  ;;  %v4898_v24 = vsel %vm4889_vm7, %v4869_v21, %v4897_v38 }
 0x650   : > { %v4580_v54 = vmul.f32 0.03125, %v4515_v46  ;;  %v4979_v35 = vrot.slane %v11123_v48, %v11066_v4 }
 0x652   : > { %v4805_v12 = vrot.slane %v4580_v54, %v10986_v32 }
 0x653   : > { %v11138_v6 = vpop.xlane.xlu1 %4670  ;;  %v4563_v41 = vpop.xlane.xlu0 %4562 }
 0x654   : > { %v4806_v39 = vsel %vm4742_vm13, %v4805_v12, %v4801_v58  ;;  %v4596_v5 = vmul.f32 0.03125, %v4563_v41  ;;  %v4970_v12 = vrot.slane %v11097_v7, %v11066_v4  ;;  %v5033_v7 = vrot.slane %v11091_v51, %v11066_v4 }
 0x655   : > { %v4892_v55 = vsel %vm4891_vm9, %v4806_v39, %v4890_v53 }
 0x656   : > { %v4877_v60 = vrot.slane %v4596_v5, %v10986_v32  ;;  %4903 = vst.msk [vmem:[#allocation3 + $0x3] sm:$0xff] %vm4902_vm12, %v4892_v55  ;;  %v4965_v32 = vrot.slane %v11093_v22, %v11069_v61  ;;  %v4975_v8 = vsel %vm4947_vm1, %v4974_v62, %v4970_v12  ;;  %v5042_v5 = vrot.slane %v11099_v40, %v11066_v4 }
 0x657   : > { %v4629_v29 = vpop.xlane.xlu1 %4628  ;;  %v4626_v46 = vpop.xlane.xlu0 %4625  ;;  %v5038_v21 = vsel %vm4947_vm1, %v5037_v49, %v5033_v7 }
 0x658   : > { %v4878_v44 = vsel %vm4742_vm13, %v4877_v60, %v4873_v11  ;;  %v4966_v25 = vsel %vm4947_vm1, %v4965_v32, %v4961_v28  ;;  %v4983_v26 = vrot.slane %v4626_v46, %v11069_v61  ;;  %v4988_v39 = vrot.slane %v4629_v29, %v11066_v4 }
 0x659   : > { %v4899_v45 = vsel %vm4891_vm9, %v4878_v44, %v4898_v24  ;;  %v5085_v37 = vsel %vm4881_vm15, %v4966_v25, %v11078_v27  ;;  %v5047_v27 = vsel %vm4947_vm1, %v5046_v3, %v5042_v5  ;;  %v5051_v11 = vrot.slane %v11138_v6, %v11066_v4 }
 0x65a   : > { %4904 = vst.msk [vmem:[#allocation3 + $0xb] sm:$0xff] %vm4902_vm12, %v4899_v45  ;;  %v4984_v52 = vsel %vm4947_vm1, %v4983_v26, %v4979_v35  ;;  %v5086_v55 = vsel %vm4883_vm4, %v4975_v8, %v5085_v37  ;;  %vm5100_vm13 = vcmask 335048  }
 0x65b   : > { %v4677_v43 = vpop.xlane.xlu1 %4676  ;;  %v4674_v54 = vpop.xlane.xlu0 %4673  ;;  %v5087_v29 = vsel %vm4885_vm5, %v4984_v52, %v5086_v55  ;;  %v6250_v55 = vld [vmem:[%s11520_s9 + $0xa0] sm:$0xff] }
 0x65c   : > { %v5055_v17 = vrot.slane %v4674_v54, %v11069_v61  ;;  %v5060_v46 = vrot.slane %v4677_v43, %v11066_v4 }
 0x65e   : > { %v5056_v45 = vsel %vm4947_vm1, %v5055_v17, %v5051_v11  ;;  %v6241_v11 = vld [vmem:[%s11520_s9 + $0x70] sm:$0xff] }
 0x65f   : > { %v4635_v36 = vpop.xlane.xlu1 %4634  ;;  %v4632_v20 = vpop.xlane.xlu0 %4631 }
 0x660   : > { %v4992_v22 = vrot.slane %v4632_v20, %v11069_v61  ;;  %v4997_v48 = vrot.slane %v4635_v36, %v11066_v4  ;;  %v5092_v20 = vsel %vm4881_vm15, %v5038_v21, %v11087_v9 }
 0x661   : > { %v5093_v28 = vsel %vm4883_vm4, %v5047_v27, %v5092_v20  ;;  %v6249_v27 = vld [vmem:[%s11520_s9 + $0x98] sm:$0xff] }
 0x662   : > { %v4993_v51 = vsel %vm4947_vm1, %v4992_v22, %v4988_v39  ;;  %v6251_v39 = vld [vmem:[%s11520_s9 + $0xa8] sm:$0xff] }
 0x663   : > { %v4680_v50 = vpop.xlane.xlu0 %4679  ;;  %v4683_v15 = vpop.xlane.xlu1 %4682  ;;  %v5088_v54 = vsel %vm4887_vm6, %v4993_v51, %v5087_v29  ;;  %v6271_v29 = vld [vmem:[%s11520_s9 + $0x118] sm:$0xf] }
 0x664   : > { %v5064_v19 = vrot.slane %v4680_v50, %v11069_v61  ;;  %v5069_v36 = vrot.slane %v4683_v15, %v11066_v4  ;;  %v5094_v15 = vsel %vm4885_vm5, %v5056_v45, %v5093_v28  ;;  %v6270_v45 = vld [vmem:[%s11520_s9 + $0x110] sm:$0xff]  ;;  %v6261_v28 = vld [vmem:[%s11520_s9 + $0xe0] sm:$0xff] }
 0x666   : > { %v5065_v50 = vsel %vm4947_vm1, %v5064_v19, %v5060_v46  ;;  %v6242_v19 = vld [vmem:[%s11520_s9 + $0x78] sm:$0xff] }
 0x667   : > { %v4638_v58 = vpop.xlane.xlu0 %4637  ;;  %v4641_v41 = vpop.xlane.xlu1 %4640  ;;  %v5095_v26 = vsel %vm4887_vm6, %v5065_v50, %v5094_v15  ;;  %v6269_v50 = vld [vmem:[%s11520_s9 + $0x108] sm:$0xff]  ;;  %v6267_v15 = vld [vmem:[%s11520_s9 + $0xf8] sm:$0xff] }
 0x668   : > { %v5001_v23 = vrot.slane %v4638_v58, %v11069_v61  ;;  %v5006_v24 = vrot.slane %v4641_v41, %v11066_v4 }
 0x66a   : > { %v5002_v40 = vsel %vm4947_vm1, %v5001_v23, %v4997_v48 }
 0x66b   : > { %v4686_v53 = vpop.xlane.xlu0 %4685  ;;  %v4689_v6 = vpop.xlane.xlu1 %4688  ;;  %v5089_v32 = vsel %vm4889_vm7, %v5002_v40, %v5088_v54 }
 0x66c   : > { %v5073_v60 = vrot.slane %v4686_v53, %v11069_v61  ;;  %v5078_v12 = vrot.slane %v4689_v6, %v11066_v4  ;;  %v6262_v6 = vld [vmem:[%s11520_s9 + $0xe8] sm:$0xf] }
 0x66e   : > { %v5074_v62 = vsel %vm4947_vm1, %v5073_v60, %v5069_v36  ;;  %v6240_v60 = vld [vmem:[%s11520_s9 + $0x68] sm:$0xff] }
 0x66f   : > { %v4644_v38 = vpop.xlane.xlu0 %4643  ;;  %v5096_v49 = vsel %vm4889_vm7, %v5074_v62, %v5095_v26  ;;  %v6268_v62 = vld [vmem:[%s11520_s9 + $0x100] sm:$0xff] }
 0x670   : > { %v5010_v44 = vrot.slane %v4644_v38, %v11069_v61 }
 0x672   : > { %v5011_v43 = vsel %vm4947_vm1, %v5010_v44, %v5006_v24  ;;  %v6239_v44 = vld [vmem:[%s11520_s9 + $0x60] sm:$0xff] }
 0x673   : > { %v5090_v58 = vsel %vm4891_vm9, %v5011_v43, %v5089_v32  ;;  %v4692_v25 = vpop.xlane.xlu0 %4691 }
 0x674   : > { %5101 = vst.msk [vmem:[#allocation3 + $0x3] sm:$0xff] %vm5100_vm13, %v5090_v58  ;;  %v5082_v9 = vrot.slane %v4692_v25, %v11069_v61  ;;  %v6252_v61 = vld [vmem:[%s11520_s9 + $0xb0] sm:$0xff]  ;;  %v6260_v25 = vld [vmem:[%s11520_s9 + $0xd8] sm:$0xff] }
 0x676   : > { %v5083_v22 = vsel %vm4947_vm1, %v5082_v9, %v5078_v12  ;;  %v6259_v12 = vld [vmem:[%s11520_s9 + $0xd0] sm:$0xff] }
 0x677   : > { %v5097_v8 = vsel %vm4891_vm9, %v5083_v22, %v5096_v49  ;;  %v6266_v9 = vld [vmem:[%s11520_s9 + $0xf0] sm:$0xff]  ;;  %v6258_v49 = vld [vmem:[%s11520_s9 + $0xc8] sm:$0xff] }
 0x678   : > { %5102 = vst.msk [vmem:[#allocation3 + $0xb] sm:$0xff] %vm5100_vm13, %v5097_v8  ;;  %v6257_v8 = vld [vmem:[%s11520_s9 + $0xc0] sm:$0xff] }
 0x67b   : > { %v11218_v3 = vld [vmem:[#allocation3] sm:$0xff] }
 0x67c   : > { %6726 = vmatprep.mubr.msk.f32.mxu0 %vm4693_vm11, %v11218_v3  ;;  %v5122_v35 = vrot.slane %v11218_v3, 1  ;;  %v5396_v53 = vrot.slane %v11218_v3, 3  ;;  %v5299_v21 = vrot.slane %v11218_v3, 2  ;;  %v5589_v24 = vrot.slane %v11218_v3, 5 }
 0x67d   : > { %v5492_v43 = vrot.slane %v11218_v3, 4 }
 0x67f   : > { %v11222_v4 = vld [vmem:[#allocation3 + $0x8] sm:$0xff]  ;;  %v11228_v41 = vld [vmem:[#allocation3 + $0x10] sm:$0x3f] }
 0x680   : > { %6727 = vmatmul.mubr.msk.f32.vlgmr.msra.gmra.mxu0 %vm4693_vm11, %v11222_v4  ;;  %v5123_v23 = vrot.slane %v11222_v4, 1  ;;  %v5397_v7 = vrot.slane %v11222_v4, 3  ;;  %v5125_v37 = vrot.slane %v11228_v41, 1  ;;  %v5300_v5 = vrot.slane %v11222_v4, 2 }
 0x681   : > { %6745 = vmatpush3.msk.msra.mxu0 %vm5131_vm10, %v11017_v1  ;;  %v6243_v1 = vld [vmem:[%s11520_s9 + $0x80] sm:$0xff]  ;;  %v5399_v40 = vrot.slane %v11228_v41, 3  ;;  %v5590_v38 = vrot.slane %v11222_v4, 5  ;;  %v5302_v54 = vrot.slane %v11228_v41, 2  ;;  %v5493_v20 = vrot.slane %v11222_v4, 4 }
 0x682   : > { %6746 = vmatprep.subr.mxu0 %v6252_v61  ;;  %v5124_v52 = vsel %vm584_vm3, %v5122_v35, %v5123_v23  ;;  %v5398_v17 = vsel %vm5395_vm14, %v5396_v53, %v5397_v7  ;;  %v5126_v48 = vsel %vm584_vm3, %v5123_v23, %v5125_v37  ;;  %v5301_v51 = vsel %vm665_vm2, %v5299_v21, %v5300_v5  ;;  %v6280_v23 = vld [vmem:[%s11520_s9 + $0x148] sm:$0xf]  ;;  %v6279_v37 = vld [vmem:[%s11520_s9 + $0x140] sm:$0xff] }
 0x683   : > { %6747 = vmatpush3.msra.mxu0 %v6252_v61  ;;  %6711 = vmatprep.mubr.msk.f32.mxu1 %vm4693_vm11, %v5124_v52  ;;  %vm5588_vm3 = vcmask 1042432   ;;  %v5400_v46 = vsel %vm5395_vm14, %v5397_v7, %v5399_v40  ;;  %v5303_v32 = vsel %vm665_vm2, %v5300_v5, %v5302_v54  ;;  %v5494_v58 = vsel %vm5131_vm10, %v5492_v43, %v5493_v20  ;;  %v6276_v5 = vld [vmem:[%s11520_s9 + $0x128] sm:$0xff]  ;;  %v6275_v52 = vld [vmem:[%s11520_s9 + $0x120] sm:$0xff] }
 0x684   : > { %6748 = vmatprep.subr.mxu0 %v6251_v39  ;;  %6756 = vmatprep.mubr.msk.f32.mxu0 %vm4693_vm11, %v5398_v17  ;;  %v5591_v36 = vsel %vm5588_vm3, %v5589_v24, %v5590_v38  ;;  %v5592_v26 = vrot.slane %v11228_v41, 5  ;;  %v5495_v61 = vrot.slane %v11228_v41, 4  ;;  %v5686_v35 = vrot.slane %v11222_v4, 6 }
 0x685   : > { %6712 = vmatmul.mubr.msk.f32.vlgmr.msra.gmra.mxu1 %vm4693_vm11, %v5126_v48  ;;  %6749 = vmatpush3.msra.mxu0 %v6251_v39  ;;  %v5685_v53 = vrot.slane %v11218_v3, 6  ;;  %v6278_v3 = vld [vmem:[%s11520_s9 + $0x138] sm:$0xff]  ;;  %v6277_v39 = vld [vmem:[%s11520_s9 + $0x130] sm:$0xff]  ;;  %v5688_v17 = vrot.slane %v11228_v41, 6 }
 0x686   : > { %6730 = vmatpush3.msk.msra.mxu1 %vm5131_vm10, %v11036_v0  ;;  %6741 = vmatprep.mubr.msk.f32.mxu1 %vm4693_vm11, %v5301_v51  ;;  %v6248_v0 = vld [vmem:[%s11520_s9 + $0x90] sm:$0xff]  ;;  %v5593_v22 = vsel %vm5588_vm3, %v5590_v38, %v5592_v26  ;;  %v5496_v7 = vsel %vm5131_vm10, %v5493_v20, %v5495_v61 }
 0x687   : > { %6731 = vmatprep.subr.mxu1 %v6243_v1  ;;  %6750 = vmatprep.subr.mxu0 %v6250_v55  ;;  %v5687_v4 = vsel %vm4349_vm8, %v5685_v53, %v5686_v35  ;;  %v5689_v48 = vsel %vm4349_vm8, %v5686_v35, %v5688_v17  ;;  %v5808_v35 = vsub.s32 2, %v10697_v33  ;;  %v5852_v17 = vsub.s32 6, %v10697_v33 }
 0x688   : > { %6732 = vmatpush3.msra.mxu1 %v6243_v1  ;;  %6751 = vmatpush3.msra.mxu0 %v6250_v55 }
 0x689   : > { %6733 = vmatprep.subr.mxu1 %v6242_v19  ;;  %6752 = vmatprep.subr.mxu0 %v6249_v27 }
 0x68a   : > { %6734 = vmatpush3.msra.mxu1 %v6242_v19  ;;  %6753 = vmatpush3.msra.mxu0 %v6249_v27 }
 0x68b   : > { %6735 = vmatprep.subr.mxu1 %v6241_v11  ;;  %6754 = vmatprep.subr.mxu0 %v6248_v0 }
 0x68c   : > { %6736 = vmatpush3.msra.mxu1 %v6241_v11  ;;  %6755 = vmatpush3.msra.mxu0 %v6248_v0 }
 0x68d   : > { %6737 = vmatprep.subr.mxu1 %v6240_v60  ;;  %6757 = vmatmul.mubr.msk.f32.vlgmr.msra.gmra.mxu0 %vm4693_vm11, %v5400_v46 }
 0x68e   : > { %6774 = vmatprep.subr.msk.mxu0 %vm5131_vm10, %v6271_v29  ;;  %6738 = vmatpush3.msra.mxu1 %v6240_v60 }
 0x68f   : > { %6775 = vmatpush3.msk.msra.mxu0 %vm5131_vm10, %v6271_v29  ;;  %6786 = vmatprep.mubr.msk.f32.mxu0 %vm4693_vm11, %v5591_v36 }
 0x690   : > { %6739 = vmatprep.subr.mxu1 %v6239_v44  ;;  %6776 = vmatprep.subr.mxu0 %v6270_v45 }
 0x691   : > { %6740 = vmatpush3.msra.mxu1 %v6239_v44  ;;  %6777 = vmatpush3.msra.mxu0 %v6270_v45 }
 0x692   : > { %6742 = vmatmul.mubr.msk.f32.vlgmr.msra.gmra.mxu1 %vm4693_vm11, %v5303_v32  ;;  %6759 = vmatprep.subr.msk.mxu1 %vm5131_vm10, %v6262_v6 }
 0x693   : > { %6778 = vmatprep.subr.mxu0 %v6269_v50  ;;  %6760 = vmatpush3.msk.msra.mxu1 %vm5131_vm10, %v6262_v6 }
 0x694   : > { %6771 = vmatprep.mubr.msk.f32.mxu1 %vm4693_vm11, %v5494_v58  ;;  %6779 = vmatpush3.msra.mxu0 %v6269_v50 }
 0x695   : > { %6761 = vmatprep.subr.mxu1 %v6261_v28  ;;  %6780 = vmatprep.subr.mxu0 %v6268_v62 }
 0x696   : > { %6762 = vmatpush3.msra.mxu1 %v6261_v28  ;;  %6781 = vmatpush3.msra.mxu0 %v6268_v62 }
 0x697   : > { %6763 = vmatprep.subr.mxu1 %v6260_v25  ;;  %6782 = vmatprep.subr.mxu0 %v6267_v15 }
 0x698   : > { %6764 = vmatpush3.msra.mxu1 %v6260_v25  ;;  %6783 = vmatpush3.msra.mxu0 %v6267_v15 }
 0x699   : > { %6765 = vmatprep.subr.mxu1 %v6259_v12  ;;  %6784 = vmatprep.subr.mxu0 %v6266_v9 }
 0x69a   : > { %6766 = vmatpush3.msra.mxu1 %v6259_v12  ;;  %6785 = vmatpush3.msra.mxu0 %v6266_v9 }
 0x69b   : > { %6767 = vmatprep.subr.mxu1 %v6258_v49  ;;  %6787 = vmatmul.mubr.msk.f32.vlgmr.msra.gmra.mxu0 %vm4693_vm11, %v5593_v22 }
 0x69c   : > { %6768 = vmatpush3.msra.mxu1 %v6258_v49 }
 0x69d   : > { %6769 = vmatprep.subr.mxu1 %v6257_v8 }
 0x69e   : > { %6770 = vmatpush3.msra.mxu1 %v6257_v8  ;;  %v5797_v8 = vsub.s32 1, %v10697_v33 }
 0x69f   : > { %6772 = vmatmul.mubr.msk.f32.vlgmr.msra.gmra.mxu1 %vm4693_vm11, %v5496_v7  ;;  %6789 = vmatprep.subr.msk.mxu1 %vm5131_vm10, %v6280_v23 }
 0x6a0   : > { %6790 = vmatpush3.msk.msra.mxu1 %vm5131_vm10, %v6280_v23  ;;  %6801 = vmatprep.mubr.msk.f32.mxu1 %vm4693_vm11, %v5687_v4 }
 0x6a1   : > { %6791 = vmatprep.subr.mxu1 %v6279_v37 }
 0x6a2   : > { %6792 = vmatpush3.msra.mxu1 %v6279_v37  ;;  %v5819_v37 = vsub.s32 3, %v10697_v33 }
 0x6a3   : > { %6793 = vmatprep.subr.mxu1 %v6278_v3 }
 0x6a4   : > { %6794 = vmatpush3.msra.mxu1 %v6278_v3  ;;  %v5830_v3 = vsub.s32 4, %v10697_v33 }
 0x6a5   : > { %6795 = vmatprep.subr.mxu1 %v6277_v39 }
 0x6a6   : > { %6796 = vmatpush3.msra.mxu1 %v6277_v39 }
 0x6a7   : > { %6797 = vmatprep.subr.mxu1 %v6276_v5 }
 0x6a8   : > { %6798 = vmatpush3.msra.mxu1 %v6276_v5  ;;  %v5841_v5 = vsub.s32 5, %v10697_v33 }
 0x6a9   : > { %6799 = vmatprep.subr.mxu1 %v6275_v52 }
 0x6aa   : > { %6800 = vmatpush3.msra.mxu1 %v6275_v52 }
 0x6ab   : > { %6802 = vmatmul.mubr.msk.f32.vlgmr.msra.gmra.mxu1 %vm4693_vm11, %v5689_v48 }
 0x740   : > { %v6728_v55 = vpop.f32.mrf.mxu0 }
 0x742   : > { %v5283_v11 = vpop.f32.mrf.mxu0 }
 0x745   : > { %v6713_v21 = vpop.f32.mrf.mxu1 }
 0x746   : > { %v5289_v19 = vadd.f32 %v6728_v55, %v6713_v21 }
 0x747   : > { %v5201_v1 = vpop.f32.mrf.mxu1 }
 0x748   : > { %v5284_v36 = vadd.f32 %v5283_v11, %v5201_v1 }
 0x74d   : > { %v6758_v40 = vpop.f32.mrf.mxu0 }
 0x74f   : > { %v5474_v29 = vpop.f32.mrf.mxu0 }
 0x752   : > { %v6743_v51 = vpop.f32.mrf.mxu1 }
 0x753   : > { %v5387_v27 = vadd.f32 %v6743_v51, %v5289_v19 }
 0x754   : > { %v5377_v0 = vpop.f32.mrf.mxu1 }
 0x755   : > { %v5484_v38 = vadd.f32 %v6758_v40, %v5387_v27  ;;  %v5386_v20 = vadd.f32 %v5377_v0, %v5284_v36 }
 0x757   : > { %v5483_v32 = vadd.f32 %v5474_v29, %v5386_v20 }
 0x75b   : > { %v6788_v46 = vpop.f32.mrf.mxu0 }
 0x75d   : > { %v5667_v28 = vpop.f32.mrf.mxu0 }
 0x75f   : > { %v6773_v60 = vpop.f32.mrf.mxu1 }
 0x760   : > { %v5580_v41 = vadd.f32 %v6773_v60, %v5484_v38 }
 0x761   : > { %v5570_v24 = vpop.f32.mrf.mxu1 }
 0x762   : > { %v5677_v44 = vadd.f32 %v6788_v46, %v5580_v41  ;;  %v5579_v43 = vadd.f32 %v5570_v24, %v5483_v32  ;;  %v11766_v24 = vld [vmem:[#allocation21_spill] sm:$0xff] }
 0x764   : > { %v5676_v58 = vadd.f32 %v5667_v28, %v5579_v43  ;;  %v11769_v43 = vld [vmem:[#allocation22_spill] sm:$0xff] }
 0x76b   : > { %v6803_v45 = vpop.f32.mrf.mxu1 }
 0x76c   : > { %v5773_v54 = vadd.f32 %v6803_v45, %v5677_v44  ;;  %v11767_v45 = vld [vmem:[#allocation20_spill] sm:$0xff] }
 0x76d   : > { %v5763_v62 = vpop.f32.mrf.mxu1 }
 0x76e   : > { %v5775_v6 = vsub.f32 0.0, %v5773_v54  ;;  %v5772_v25 = vadd.f32 %v5763_v62, %v5676_v58 }
 0x770   : > { %v5778_v50 = vmul.f32 1.442695, %v5775_v6  ;;  %v5774_v9 = vsub.f32 0.0, %v5772_v25 }
 0x772   : > { %7817 = vpow2.f32 %v5778_v50  ;;  %v5776_v26 = vmul.f32 1.442695, %v5774_v9  ;;  %v11768_v50 = vld [vmem:[#allocation23_spill] sm:$0xff] }
 0x77f   : > { %v7818_v15 = vpop.eup %7817 }
 0x780   : > { %v5781_v12 = vadd.f32 1.0, %v7818_v15 }
 0x782   : > { %7819 = vrcp.f32 %v5781_v12 }
 0x783   : > { %7821 = vpow2.f32 %v5776_v26  ;;  %v11771_v26 = vld [vmem:[#allocation41_spill] sm:$0xff] }
 0x78f   : > { %v7820_v49 = vpop.eup %7819 }
 0x790   : > { %v5875_v22 = vrot.slane %v7820_v49, %v10700_v13  ;;  %v5886_v61 = vrot.slane %v7820_v49, %v5797_v8  ;;  %v7822_v23 = vpop.eup %7821  ;;  %v5897_v7 = vrot.slane %v7820_v49, %v5808_v35  ;;  %v5908_v4 = vrot.slane %v7820_v49, %v5819_v37 }
 0x791   : > { %v5780_v53 = vadd.f32 1.0, %v7822_v23  ;;  %v5919_v39 = vrot.slane %v7820_v49, %v5830_v3  ;;  %v5930_v52 = vrot.slane %v7820_v49, %v5841_v5  ;;  %v5941_v48 = vrot.slane %v7820_v49, %v5852_v17 }
 0x792   : > { %5881 = vbcast.lane.b32.xlu1 %v5875_v22, 264  ;;  %5877 = vbcast.lane.b32.xlu0 %v5875_v22, 256 }
 0x793   : > { %7823 = vrcp.f32 %v5780_v53 }
 0x796   : > { %5892 = vbcast.lane.b32.xlu1 %v5886_v61, 264  ;;  %5888 = vbcast.lane.b32.xlu0 %v5886_v61, 256 }
 0x79a   : > { %5903 = vbcast.lane.b32.xlu1 %v5897_v7, 264  ;;  %5899 = vbcast.lane.b32.xlu0 %v5897_v7, 256  ;;  %v11773_v7 = vld [vmem:[#allocation45_spill] sm:$0xff] }
 0x79e   : > { %5914 = vbcast.lane.b32.xlu1 %v5908_v4, 264  ;;  %5910 = vbcast.lane.b32.xlu0 %v5908_v4, 256 }
 0x7a0   : > { %v7824_v21 = vpop.eup %7823 }
 0x7a1   : > { %v5787_v1 = vrot.slane %v7824_v21, %v10700_v13  ;;  %v5809_v55 = vrot.slane %v7824_v21, %v5808_v35  ;;  %v5798_v51 = vrot.slane %v7824_v21, %v5797_v8  ;;  %v5820_v19 = vrot.slane %v7824_v21, %v5819_v37 }
 0x7a2   : > { %5925 = vbcast.lane.b32.xlu1 %v5919_v39, 264  ;;  %5921 = vbcast.lane.b32.xlu0 %v5919_v39, 256  ;;  %v5831_v27 = vrot.slane %v7824_v21, %v5830_v3  ;;  %v5842_v11 = vrot.slane %v7824_v21, %v5841_v5  ;;  %v5853_v0 = vrot.slane %v7824_v21, %v5852_v17  ;;  %v5863_v13 = vsub.s32 7, %v10697_v33 }
 0x7a4   : > { %v5864_v40 = vrot.slane %v7824_v21, %v5863_v13  ;;  %v5952_v60 = vrot.slane %v7820_v49, %v5863_v13 }
 0x7a6   : > { %5936 = vbcast.lane.b32.xlu1 %v5930_v52, 264  ;;  %5932 = vbcast.lane.b32.xlu0 %v5930_v52, 256 }
 0x7aa   : > { %5947 = vbcast.lane.b32.xlu1 %v5941_v48, 264  ;;  %5943 = vbcast.lane.b32.xlu0 %v5941_v48, 256  ;;  %v11775_v48 = vld [vmem:[#allocation49_spill] sm:$0xff] }
 0x7ae   : > { %5793 = vbcast.lane.b32.xlu0 %v5787_v1, 264  ;;  %5789 = vbcast.lane.b32.xlu1 %v5787_v1, 256 }
 0x7b2   : > { %5811 = vbcast.lane.b32.xlu0 %v5809_v55, 256  ;;  %5800 = vbcast.lane.b32.xlu1 %v5798_v51, 256 }
 0x7b6   : > { %5822 = vbcast.lane.b32.xlu0 %v5820_v19, 256  ;;  %5804 = vbcast.lane.b32.xlu1 %v5798_v51, 264 }
 0x7ba   : > { %5833 = vbcast.lane.b32.xlu0 %v5831_v27, 256  ;;  %5815 = vbcast.lane.b32.xlu1 %v5809_v55, 264 }
 0x7be   : > { %5844 = vbcast.lane.b32.xlu0 %v5842_v11, 256  ;;  %5826 = vbcast.lane.b32.xlu1 %v5820_v19, 264 }
 0x7c2   : > { %5855 = vbcast.lane.b32.xlu0 %v5853_v0, 256  ;;  %5837 = vbcast.lane.b32.xlu1 %v5831_v27, 264 }
 0x7c6   : > { %5866 = vbcast.lane.b32.xlu0 %v5864_v40, 256  ;;  %5848 = vbcast.lane.b32.xlu1 %v5842_v11, 264 }
 0x7ca   : > { %5954 = vbcast.lane.b32.xlu0 %v5952_v60, 256  ;;  %5859 = vbcast.lane.b32.xlu1 %v5853_v0, 264  ;;  %v11777_v0 = vld [vmem:[#allocation51_spill] sm:$0xff] }
 0x7ce   : > { %5870 = vbcast.lane.b32.xlu1 %v5864_v40, 264 }
 0x7d2   : > { %5958 = vbcast.lane.b32.xlu1 %v5952_v60, 264 }
 0x804   : > { %v5882_v38 = vpop.permute.xlu1 %5881  ;;  %v5878_v41 = vpop.permute.xlu0 %5877 }
 0x805   : > { %v5977_v29 = vmul.f32 %v5882_v38, %v10747_v2  ;;  %v5976_v46 = vmul.f32 %v5878_v41, %v10719_v47 }
 0x807   : > { %v6009_v44 = vadd.f32 %v5977_v29, %v11766_v24  ;;  %v6008_v54 = vadd.f32 %v5976_v46, %v11767_v45  ;;  %v11779_v24 = vld [vmem:[#allocation55_spill] sm:$0xff] }
 0x808   : > { %v5893_v33 = vpop.permute.xlu1 %5892  ;;  %v5889_v36 = vpop.permute.xlu0 %5888 }
 0x809   : > { %v6041_v6 = vmax.f32 %v6009_v44, 0.0  ;;  %v6040_v2 = vmax.f32 %v6008_v54, 0.0  ;;  %v5979_v47 = vmul.f32 %v5893_v33, %v10759_v42  ;;  %v5978_v20 = vmul.f32 %v5889_v36, %v10731_v34  ;;  %v11770_v34 = vld [vmem:[#allocation42_spill] sm:$0xff] }
 0x80b   : > { %6073 = vst.msk [vmem:[%s11382_s26 + $0x88] sm:$0xff] %vm393_vm0, %v6041_v6  ;;  %6072 = vst.msk [vmem:[%s11382_s26 + $0x80] sm:$0xff] %vm393_vm0, %v6040_v2  ;;  %v6011_v32 = vadd.f32 %v5979_v47, %v11768_v50  ;;  %v6010_v28 = vadd.f32 %v5978_v20, %v11769_v43  ;;  %v11780_v6 = vld [vmem:[#allocation63_spill] sm:$0xff]  ;;  %v11781_v47 = vld [vmem:[#allocation48_spill] sm:$0xff] }
 0x80c   : > { %v5904_v62 = vpop.permute.xlu1 %5903  ;;  %v5900_v58 = vpop.permute.xlu0 %5899  ;;  %v11783_v50 = vld [vmem:[#allocation8_spill] sm:$0xff] }
 0x80d   : > { %v6043_v25 = vmax.f32 %v6011_v32, 0.0  ;;  %v6042_v15 = vmax.f32 %v6010_v28, 0.0  ;;  %v5981_v12 = vmul.f32 %v5904_v62, %v10783_v31  ;;  %v5980_v42 = vmul.f32 %v5900_v58, %v10755_v63  ;;  %v11772_v63 = vld [vmem:[#allocation46_spill] sm:$0xff] }
 0x80f   : > { %6075 = vst.msk [vmem:[%s11382_s26 + $0x98] sm:$0xff] %vm393_vm0, %v6043_v25  ;;  %6074 = vst.msk [vmem:[%s11382_s26 + $0x90] sm:$0xff] %vm393_vm0, %v6042_v15  ;;  %v6013_v9 = vadd.f32 %v5981_v12, %v11770_v34  ;;  %v6012_v49 = vadd.f32 %v5980_v42, %v11771_v26  ;;  %v11784_v25 = vld [vmem:[#allocation61_spill] sm:$0xff]  ;;  %v11786_v34 = vld [vmem:[#allocation4_spill] sm:$0xff] }
 0x810   : > { %v5915_v22 = vpop.permute.xlu1 %5914  ;;  %v5911_v8 = vpop.permute.xlu0 %5910  ;;  %v11785_v12 = vld [vmem:[#allocation25_spill] sm:$0xff]  ;;  %v11787_v26 = vld [vmem:[#allocation6_spill] sm:$0xff] }
 0x811   : > { %v6045_v61 = vmax.f32 %v6013_v9, 0.0  ;;  %v6044_v35 = vmax.f32 %v6012_v49, 0.0  ;;  %v5983_v23 = vmul.f32 %v5915_v22, %v10807_v56  ;;  %v5982_v31 = vmul.f32 %v5911_v8, %v10779_v18  ;;  %v11774_v18 = vld [vmem:[#allocation50_spill] sm:$0xff] }
 0x813   : > { %6077 = vst.msk [vmem:[%s11382_s26 + $0xa8] sm:$0xff] %vm393_vm0, %v6045_v61  ;;  %6076 = vst.msk [vmem:[%s11382_s26 + $0xa0] sm:$0xff] %vm393_vm0, %v6044_v35  ;;  %v6015_v53 = vadd.f32 %v5983_v23, %v11772_v63  ;;  %v6014_v37 = vadd.f32 %v5982_v31, %v11773_v7  ;;  %v11788_v23 = vld [vmem:[#allocation69_spill] sm:$0xff]  ;;  %v11789_v63 = vld [vmem:[#allocation24_spill] sm:$0xff] }
 0x814   : > { %v5926_v4 = vpop.permute.xlu1 %5925  ;;  %v5922_v3 = vpop.permute.xlu0 %5921  ;;  %v11790_v7 = vld [vmem:[#allocation10_spill] sm:$0xff] }
 0x815   : > { %v6047_v39 = vmax.f32 %v6015_v53, 0.0  ;;  %v6046_v5 = vmax.f32 %v6014_v37, 0.0  ;;  %v5985_v52 = vmul.f32 %v5926_v4, %v10823_v30  ;;  %v5984_v56 = vmul.f32 %v5922_v3, %v10803_v59  ;;  %v11776_v59 = vld [vmem:[#allocation52_spill] sm:$0xff]  ;;  %v11791_v4 = vld [vmem:[#allocation7_spill] sm:$0xff] }
 0x817   : > { %6079 = vst.msk [vmem:[%s11382_s26 + $0xb8] sm:$0xff] %vm393_vm0, %v6047_v39  ;;  %6078 = vst.msk [vmem:[%s11382_s26 + $0xb0] sm:$0xff] %vm393_vm0, %v6046_v5  ;;  %v6017_v17 = vadd.f32 %v5985_v52, %v11774_v18  ;;  %v6016_v21 = vadd.f32 %v5984_v56, %v11775_v48  ;;  %v11792_v18 = vld [vmem:[#allocation29_spill] sm:$0xff]  ;;  %v11793_v48 = vld [vmem:[#allocation62_spill] sm:$0xff] }
 0x818   : > { %v5937_v1 = vpop.permute.xlu1 %5936  ;;  %v5933_v55 = vpop.permute.xlu0 %5932 }
 0x819   : > { %v6049_v51 = vmax.f32 %v6017_v17, 0.0  ;;  %v6048_v19 = vmax.f32 %v6016_v21, 0.0  ;;  %v5987_v27 = vmul.f32 %v5937_v1, %v10863_v57  ;;  %v5986_v30 = vmul.f32 %v5933_v55, %v10847_v10  ;;  %v11778_v10 = vld [vmem:[#allocation56_spill] sm:$0xff] }
 0x81a   : > { %v11794_v1 = vld [vmem:[#allocation12_spill] sm:$0xff] }
 0x81b   : > { %6081 = vst.msk [vmem:[%s11382_s26 + $0xc8] sm:$0xff] %vm393_vm0, %v6049_v51  ;;  %6080 = vst.msk [vmem:[%s11382_s26 + $0xc0] sm:$0xff] %vm393_vm0, %v6048_v19  ;;  %v6019_v11 = vadd.f32 %v5987_v27, %v11776_v59  ;;  %v6018_v13 = vadd.f32 %v5986_v30, %v11777_v0  ;;  %v11795_v51 = vld [vmem:[#allocation5_spill] sm:$0xff]  ;;  %v11796_v0 = vld [vmem:[#allocation64_spill] sm:$0xff] }
 0x81c   : > { %v5948_v40 = vpop.permute.xlu1 %5947  ;;  %v5944_v60 = vpop.permute.xlu0 %5943 }
 0x81d   : > { %v6051_v38 = vmax.f32 %v6019_v11, 0.0  ;;  %v6050_v41 = vmax.f32 %v6018_v13, 0.0  ;;  %v5989_v29 = vmul.f32 %v5948_v40, %v10895_v14  ;;  %v5988_v57 = vmul.f32 %v5944_v60, %v10879_v16  ;;  %v11782_v16 = vld [vmem:[#allocation9_spill] sm:$0xff]  ;;  %v11797_v40 = vld [vmem:[#allocation28_spill] sm:$0xff] }
 0x81f   : > { %6083 = vst.msk [vmem:[%s11382_s26 + $0xd8] sm:$0xff] %vm393_vm0, %v6051_v38  ;;  %6082 = vst.msk [vmem:[%s11382_s26 + $0xd0] sm:$0xff] %vm393_vm0, %v6050_v41  ;;  %v6021_v46 = vadd.f32 %v5989_v29, %v11778_v10  ;;  %v6020_v44 = vadd.f32 %v5988_v57, %v11779_v24  ;;  %v11798_v38 = vld [vmem:[#allocation14_spill] sm:$0xff]  ;;  %v11799_v29 = vld [vmem:[#allocation11_spill] sm:$0xff] }
 0x820   : > { %v5794_v45 = vpop.permute.xlu0 %5793  ;;  %v5790_v54 = vpop.permute.xlu1 %5789 }
 0x821   : > { %v6053_v33 = vmax.f32 %v6021_v46, 0.0  ;;  %v6052_v36 = vmax.f32 %v6020_v44, 0.0  ;;  %v5961_v2 = vmul.f32 %v5794_v45, %v11780_v6  ;;  %v5960_v14 = vmul.f32 %v5790_v54, %v11781_v47  ;;  %v11800_v45 = vld [vmem:[#allocation31_spill] sm:$0xff]  ;;  %v11802_v6 = vld [vmem:[#allocation16_spill] sm:$0xff]  ;;  %v11803_v47 = vld [vmem:[#allocation13_spill] sm:$0xff] }
 0x823   : > { %6085 = vst.msk [vmem:[%s11382_s26 + $0xe8] sm:$0xff] %vm393_vm0, %v6053_v33  ;;  %6084 = vst.msk [vmem:[%s11382_s26 + $0xe0] sm:$0xff] %vm393_vm0, %v6052_v36  ;;  %v5993_v20 = vadd.f32 %v5961_v2, %v11782_v16  ;;  %v5992_v32 = vadd.f32 %v5960_v14, %v11783_v50  ;;  %v11801_v33 = vld [vmem:[#allocation68_spill] sm:$0xff] }
 0x824   : > { %v5812_v43 = vpop.permute.xlu0 %5811  ;;  %v5801_v28 = vpop.permute.xlu1 %5800 }
 0x825   : > { %v6025_v62 = vmax.f32 %v5993_v20, 0.0  ;;  %v6024_v58 = vmax.f32 %v5992_v32, 0.0  ;;  %v5964_v15 = vmul.f32 %v5812_v43, %v11784_v25  ;;  %v5962_v42 = vmul.f32 %v5801_v28, %v11785_v12  ;;  %v11804_v43 = vld [vmem:[#allocation67_spill] sm:$0xff]  ;;  %v11806_v25 = vld [vmem:[#allocation18_spill] sm:$0xff] }
 0x826   : > { %v11807_v12 = vld [vmem:[#allocation15_spill] sm:$0xff] }
 0x827   : > { %6057 = vst.msk [vmem:[%s11382_s26 + $0x8] sm:$0xff] %vm393_vm0, %v6025_v62  ;;  %6056 = vst.msk [vmem:[%s11382_s26] sm:$0xff] %vm393_vm0, %v6024_v58  ;;  %v5996_v9 = vadd.f32 %v5964_v15, %v11786_v34  ;;  %v5994_v49 = vadd.f32 %v5962_v42, %v11787_v26  ;;  %v11805_v62 = vld [vmem:[#allocation65_spill] sm:$0xff] }
 0x828   : > { %v5823_v22 = vpop.permute.xlu0 %5822  ;;  %v5805_v8 = vpop.permute.xlu1 %5804 }
 0x829   : > { %v6028_v61 = vmax.f32 %v5996_v9, 0.0  ;;  %v6026_v35 = vmax.f32 %v5994_v49, 0.0  ;;  %v5966_v31 = vmul.f32 %v5823_v22, %v11788_v23  ;;  %v5963_v53 = vmul.f32 %v5805_v8, %v11789_v63  ;;  %v11808_v22 = vld [vmem:[#allocation66_spill] sm:$0xff]  ;;  %v11811_v63 = vld [vmem:[#allocation17_spill] sm:$0xff] }
 0x82a   : > { %v11810_v23 = vld [vmem:[#allocation58_spill] sm:$0xff] }
 0x82b   : > { %6060 = vst.msk [vmem:[%s11382_s26 + $0x20] sm:$0xff] %vm393_vm0, %v6028_v61  ;;  %6058 = vst.msk [vmem:[%s11382_s26 + $0x10] sm:$0xff] %vm393_vm0, %v6026_v35  ;;  %v5998_v37 = vadd.f32 %v5966_v31, %v11790_v7  ;;  %v5995_v3 = vadd.f32 %v5963_v53, %v11791_v4  ;;  %v11809_v61 = vld [vmem:[#allocation30_spill] sm:$0xff] }
 0x82c   : > { %v5834_v39 = vpop.permute.xlu0 %5833  ;;  %v5816_v5 = vpop.permute.xlu1 %5815 }
 0x82d   : > { %v6030_v52 = vmax.f32 %v5998_v37, 0.0  ;;  %v6027_v56 = vmax.f32 %v5995_v3, 0.0  ;;  %v5968_v17 = vmul.f32 %v5834_v39, %v11792_v18  ;;  %v5965_v21 = vmul.f32 %v5816_v5, %v11793_v48  ;;  %v11812_v3 = vld [vmem:[#allocation33_spill] sm:$0xff]  ;;  %v11813_v5 = vld [vmem:[#allocation19_spill] sm:$0xff] }
 0x82f   : > { %6062 = vst.msk [vmem:[%s11382_s26 + $0x30] sm:$0xff] %vm393_vm0, %v6030_v52  ;;  %6059 = vst.msk [vmem:[%s11382_s26 + $0x18] sm:$0xff] %vm393_vm0, %v6027_v56  ;;  %v6000_v55 = vadd.f32 %v5968_v17, %v11794_v1  ;;  %v5997_v19 = vadd.f32 %v5965_v21, %v11795_v51  ;;  %v11814_v17 = vld [vmem:[#allocation32_spill] sm:$0xff]  ;;  %v11815_v21 = vld [vmem:[#allocation59_spill] sm:$0xff] }
 0x830   : > { %v5845_v27 = vpop.permute.xlu0 %5844  ;;  %v5827_v30 = vpop.permute.xlu1 %5826 }
 0x831   : > { %v6032_v59 = vmax.f32 %v6000_v55, 0.0  ;;  %v6029_v11 = vmax.f32 %v5997_v19, 0.0  ;;  %v5970_v13 = vmul.f32 %v5845_v27, %v11796_v0  ;;  %v5967_v60 = vmul.f32 %v5827_v30, %v11797_v40 }
 0x833   : > { %6064 = vst.msk [vmem:[%s11382_s26 + $0x40] sm:$0xff] %vm393_vm0, %v6032_v59  ;;  %6061 = vst.msk [vmem:[%s11382_s26 + $0x28] sm:$0xff] %vm393_vm0, %v6029_v11  ;;  %v6002_v41 = vadd.f32 %v5970_v13, %v11798_v38  ;;  %v5999_v57 = vadd.f32 %v5967_v60, %v11799_v29 }
 0x834   : > { %v5856_v10 = vpop.permute.xlu0 %5855  ;;  %v5838_v46 = vpop.permute.xlu1 %5837 }
 0x835   : > { %v6034_v24 = vmax.f32 %v6002_v41, 0.0  ;;  %v6031_v44 = vmax.f32 %v5999_v57, 0.0  ;;  %v5972_v54 = vmul.f32 %v5856_v10, %v11800_v45  ;;  %v5969_v36 = vmul.f32 %v5838_v46, %v11801_v33 }
 0x837   : > { %6066 = vst.msk [vmem:[%s11382_s26 + $0x50] sm:$0xff] %vm393_vm0, %v6034_v24  ;;  %6063 = vst.msk [vmem:[%s11382_s26 + $0x38] sm:$0xff] %vm393_vm0, %v6031_v44  ;;  %v6004_v2 = vadd.f32 %v5972_v54, %v11802_v6  ;;  %v6001_v14 = vadd.f32 %v5969_v36, %v11803_v47 }
 0x838   : > { %v5867_v16 = vpop.permute.xlu0 %5866  ;;  %v5849_v20 = vpop.permute.xlu1 %5848 }
 0x839   : > { %v6036_v50 = vmax.f32 %v6004_v2, 0.0  ;;  %v6033_v32 = vmax.f32 %v6001_v14, 0.0  ;;  %v5974_v28 = vmul.f32 %v5867_v16, %v11804_v43  ;;  %v5971_v58 = vmul.f32 %v5849_v20, %v11805_v62 }
 0x83b   : > { %6068 = vst.msk [vmem:[%s11382_s26 + $0x60] sm:$0xff] %vm393_vm0, %v6036_v50  ;;  %6065 = vst.msk [vmem:[%s11382_s26 + $0x48] sm:$0xff] %vm393_vm0, %v6033_v32  ;;  %v6006_v15 = vadd.f32 %v5974_v28, %v11806_v25  ;;  %v6003_v42 = vadd.f32 %v5971_v58, %v11807_v12 }
 0x83c   : > { %v5955_v34 = vpop.permute.xlu0 %5954  ;;  %v5860_v9 = vpop.permute.xlu1 %5859 }
 0x83d   : > { %v6038_v26 = vmax.f32 %v6006_v15, 0.0  ;;  %v6035_v49 = vmax.f32 %v6003_v42, 0.0  ;;  %v5990_v8 = vmul.f32 %v5955_v34, %v11808_v22  ;;  %v5973_v35 = vmul.f32 %v5860_v9, %v11809_v61 }
 0x83f   : > { %6070 = vst.msk [vmem:[%s11382_s26 + $0x70] sm:$0xff] %vm393_vm0, %v6038_v26  ;;  %6067 = vst.msk [vmem:[%s11382_s26 + $0x58] sm:$0xff] %vm393_vm0, %v6035_v49  ;;  %v6022_v31 = vadd.f32 %v5990_v8, %v11810_v23  ;;  %v6005_v53 = vadd.f32 %v5973_v35, %v11811_v63 }
 0x840   : > { %v5871_v7 = vpop.permute.xlu1 %5870 }
 0x841   : > { %v6054_v37 = vmax.f32 %v6022_v31, 0.0  ;;  %v6037_v4 = vmax.f32 %v6005_v53, 0.0  ;;  %v5975_v39 = vmul.f32 %v5871_v7, %v11812_v3 }
 0x843   : > { %6086 = vst.msk [vmem:[%s11382_s26 + $0xf0] sm:$0xff] %vm393_vm0, %v6054_v37  ;;  %6069 = vst.msk [vmem:[%s11382_s26 + $0x68] sm:$0xff] %vm393_vm0, %v6037_v4  ;;  %v6007_v52 = vadd.f32 %v5975_v39, %v11813_v5 }
 0x844   : > { %v5959_v56 = vpop.permute.xlu1 %5958 }
 0x845   : > { %v6039_v18 = vmax.f32 %v6007_v52, 0.0  ;;  %v5991_v48 = vmul.f32 %v5959_v56, %v11814_v17 }
 0x847   : > { %6071 = vst.msk [vmem:[%s11382_s26 + $0x78] sm:$0xff] %vm393_vm0, %v6039_v18  ;;  %v6023_v1 = vadd.f32 %v5991_v48, %v11815_v21 }
 0x849   : > { %v6055_v55 = vmax.f32 %v6023_v1, 0.0 }
 0x84b   : > { %6087 = vst.msk [vmem:[%s11382_s26 + $0xf8] sm:$0xff] %vm393_vm0, %v6055_v55 }
 0x84c PF: > { %s20_s13 = sadd.s32 1, %s7866_s13  }
 0x84d   : > { %p17_p4 = scmp.ge.s32.totalorder %s20_s13, 4  }
 0x84f   :  { %19 = sbr.rel (!%p17_p4) target bundleno = 1 (0x1), region = 97 }

</bundles_post_ra>
